<compile_context>
chip_gen: v5e
topology: v5e:2x2
jax: 0.10.0
libtpu: 0.0.40
codegen_flags: <defaults>
</compile_context>

<pallas_src>
import math
from functools import partial

import jax
import jax.numpy as jnp
from jax.experimental import pallas as pl
from jax.experimental.pallas import tpu as pltpu


# ----------------------------------------------------------------------------
# fused whole-model kernel: grid = (batch_tiles, layer)
# ----------------------------------------------------------------------------
def _transformer2d_kernel(
        # batched over the batch-tile axis
        tokens_ref,                  # (Bt, S, C)    f32
        enc_ref,                     # (Bt, Skv, D)  bf16 (features zero-padded to D)
        # shared (constant block index -> DMA'd once)
        oh_cg_ref,                   # (C, G) f32   channel -> group one-hot
        oh_gc_ref,                   # (G, C) f32   group  -> channel one-hot
        gn_aff_ref,                  # (2, C) f32   [gamma; beta]
        pin_w_ref,                   # (C, D) bf16
        pin_b_ref,                   # (1, D) f32
        pout_w_ref,                  # (D, C) bf16
        pout_b_ref,                  # (1, C) f32
        # per-layer (leading layer dim squeezed by BlockSpec)
        vecs_ref,                    # (9, D) f32: n1g,n1b,n2g,n2b,n3g,n3b,
                                     #             attn1_bo, attn2_bo, ff_b2
        ff_b1_ref,                   # (1, 2*ffi) f32
        slab_ref,                    # (D, 8*D + 2*ffi) bf16  packed weights:
                                     #   [wqkv1 | wo1 | wq2 | wkv2 | wo2 | ff_w1]
        ffw2_ref,                    # (ffi, D) bf16
        # output
        o_ref,                       # (Bt, S, C) f32
        # scratch
        hs_ref,                      # (Bt*S, D) f32, resident hidden state
        *, heads, head_dim, groups, eps_gn, eps_ln):

    f32, bf16 = jnp.float32, jnp.bfloat16
    Bt, S, C = tokens_ref.shape
    _, Skv, _ = enc_ref.shape
    D = pin_w_ref.shape[1]
    ffi = ffw2_ref.shape[0]
    N = Bt * S
    scale = head_dim ** -0.5

    layer = pl.program_id(1)
    last_layer = pl.num_programs(1) - 1

    # slab column offsets (must match host packing)
    o_qkv1, o_wo1, o_wq2, o_wkv2, o_wo2, o_ffw1 = (
        0, 3 * D, 4 * D, 5 * D, 7 * D, 8 * D)

    # ---- prologue (layer 0): per-batch two-pass GroupNorm + proj_in --------
    @pl.when(layer == 0)
    def _prologue():
        x = tokens_ref[...]                               # (Bt, S, C) f32
        inv_cg = 1.0 / float(C // groups)
        mean_c = jnp.mean(x, axis=1)                      # (Bt, C)
        mean = jnp.dot(jnp.dot(mean_c, oh_cg_ref[...],
                               preferred_element_type=f32) * inv_cg,
                       oh_gc_ref[...], preferred_element_type=f32)
        d = x - mean[:, None, :]
        var_c = jnp.mean(d * d, axis=1)                   # (Bt, C)
        var = jnp.dot(jnp.dot(var_c, oh_cg_ref[...],
                              preferred_element_type=f32) * inv_cg,
                      oh_gc_ref[...], preferred_element_type=f32)
        xn = (d * jax.lax.rsqrt(var[:, None, :] + eps_gn)
              * gn_aff_ref[0:1, :] + gn_aff_ref[1:2, :])  # (Bt, S, C)
        xn2 = xn.reshape(N, C).astype(bf16)
        hs_ref[...] = (jnp.dot(xn2, pin_w_ref[...],
                               preferred_element_type=f32) + pin_b_ref[...])

    # ---- transformer block (runs every layer step) --------------------------
    hs = hs_ref[...]                                      # (N, D) f32

    def layer_norm(x, g, b):
        mu = jnp.mean(x, axis=-1, keepdims=True)
        var = jnp.mean(jnp.square(x - mu), axis=-1, keepdims=True)
        return (x - mu) * jax.lax.rsqrt(var + eps_ln) * g + b

    _BMT = (((2,), (2,)), ((0,), (0,)))   # (B,M,K) x (B,N,K) -> (B,M,N)
    _BMM = (((2,), (1,)), ((0,), (0,)))   # (B,M,K) x (B,K,N) -> (B,M,N)

    def attention(q2d, k2d, v2d, sk, wo_col, bias_row):
        # q2d: (N, D) f32   k2d/v2d: (Bt*sk, D) f32   heads fused in lanes.
        out = jnp.zeros((N, D), dtype=f32)
        for h in range(heads):
            c0 = h * head_dim
            qh = q2d[:, c0:c0 + head_dim].astype(bf16).reshape(Bt, S, head_dim)
            kh = k2d[:, c0:c0 + head_dim].astype(bf16).reshape(Bt, sk, head_dim)
            vh = v2d[:, c0:c0 + head_dim].astype(bf16).reshape(Bt, sk, head_dim)
            s = jax.lax.dot_general(qh, kh, _BMT,
                                    preferred_element_type=f32) * scale
            s = s - jnp.max(s, axis=-1, keepdims=True)     # f32 softmax
            p = jnp.exp(s)
            p = p * pl.reciprocal(jnp.sum(p, axis=-1, keepdims=True),
                                  approx=True)
            oh = jax.lax.dot_general(p.astype(bf16), vh, _BMM,
                                     preferred_element_type=f32)
            # K-block of the fused (H*dh, D) output projection (no lane concat)
            wo_h = slab_ref[c0:c0 + head_dim, wo_col:wo_col + D]
            out = out + jnp.dot(oh.reshape(N, head_dim).astype(bf16), wo_h,
                                preferred_element_type=f32)
        return out + bias_row

    # norm1 + self-attention + residual (fused QKV projection)
    n1 = layer_norm(hs, vecs_ref[0:1, :], vecs_ref[1:2, :]).astype(bf16)
    qkv = jnp.dot(n1, slab_ref[:, o_qkv1:o_qkv1 + 3 * D],
                  preferred_element_type=f32)              # (N, 3D)
    hs = hs + attention(qkv[:, 0:D], qkv[:, D:2 * D], qkv[:, 2 * D:3 * D],
                        S, o_wo1, vecs_ref[6:7, :])

    # norm2 + cross-attention + residual (fused K|V projection, padded enc)
    n2 = layer_norm(hs, vecs_ref[2:3, :], vecs_ref[3:4, :]).astype(bf16)
    q2 = jnp.dot(n2, slab_ref[:, o_wq2:o_wq2 + D], preferred_element_type=f32)
    encb = enc_ref[...].reshape(Bt * Skv, D)               # bf16
    kv2 = jnp.dot(encb, slab_ref[:, o_wkv2:o_wkv2 + 2 * D],
                  preferred_element_type=f32)              # (Bt*Skv, 2D)
    hs = hs + attention(q2, kv2[:, 0:D], kv2[:, D:2 * D],
                        Skv, o_wo2, vecs_ref[7:8, :])

    # norm3 + GEGLU feed-forward (split halves, tanh GELU) + residual
    n3 = layer_norm(hs, vecs_ref[4:5, :], vecs_ref[5:6, :]).astype(bf16)
    gate = (jnp.dot(n3, slab_ref[:, o_ffw1 + ffi:o_ffw1 + 2 * ffi],
                    preferred_element_type=f32) + ff_b1_ref[:, ffi:2 * ffi])
    c_t = math.sqrt(2.0 / math.pi)
    gate = (0.5 * gate
            * (1.0 + jnp.tanh(c_t * (gate + 0.044715 * gate * gate * gate))))
    gate = gate.astype(bf16)                               # halve live intermediate
    val = (jnp.dot(n3, slab_ref[:, o_ffw1:o_ffw1 + ffi],
                   preferred_element_type=f32) + ff_b1_ref[:, 0:ffi])
    ff = (val * gate).astype(bf16)                         # (N, ffi)
    hs = hs + (jnp.dot(ff, ffw2_ref[...], preferred_element_type=f32)
               + vecs_ref[8:9, :])

    hs_ref[...] = hs

    # ---- epilogue (last layer): proj_out + residual with original input ----
    @pl.when(layer == last_layer)
    def _epilogue():
        out = (jnp.dot(hs.astype(bf16), pout_w_ref[...],
                       preferred_element_type=f32) + pout_b_ref[...])
        o_ref[...] = out.reshape(Bt, S, C) + tokens_ref[...]


# ----------------------------------------------------------------------------
# parameter init (deterministic, synthetic — mirrors module __init__ shapes)
# Master weights kept f32 but rounded to bf16-representable values so the
# pure-JAX reference and the bf16-matmul kernel agree.
# ----------------------------------------------------------------------------
def init_params(key, cfg):
    C = cfg["in_channels"]
    heads, dh = cfg["heads"], cfg["head_dim"]
    D = heads * dh
    G = cfg["groups"]
    Dc = cfg["cross_dim"]
    L = cfg["num_layers"]
    ffi = D * cfg.get("ff_mult", 4)
    keys = iter(jax.random.split(key, 8 + 20 * L))

    def mat(din, dout, scl=0.02):
        w = jax.random.normal(next(keys), (din, dout), jnp.float32) * scl
        return w.astype(jnp.bfloat16).astype(jnp.float32)

    def vec(d, base=0.0, scl=0.05):
        return base + jax.random.normal(next(keys), (1, d), jnp.float32) * scl

    cgrp = C // G
    oh_cg = jax.nn.one_hot(jnp.arange(C) // cgrp, G, dtype=jnp.float32)  # (C,G)
    params = dict(
        oh_cg=oh_cg, oh_gc=oh_cg.T,
        gn_gamma=vec(C, base=1.0), gn_beta=vec(C),
        proj_in_w=mat(C, D), proj_in_b=vec(D),       # Conv2d 1x1 == matmul
        proj_out_w=mat(D, C), proj_out_b=vec(C),
        blocks=[])
    for _ in range(L):
        params["blocks"].append(dict(
            norm1_g=vec(D, 1.0), norm1_b=vec(D),
            attn1_wq=mat(D, D), attn1_wk=mat(D, D), attn1_wv=mat(D, D),
            attn1_wo=mat(D, D), attn1_bo=vec(D),
            norm2_g=vec(D, 1.0), norm2_b=vec(D),
            attn2_wq=mat(D, D), attn2_wk=mat(Dc, D), attn2_wv=mat(Dc, D),
            attn2_wo=mat(D, D), attn2_bo=vec(D),
            norm3_g=vec(D, 1.0), norm3_b=vec(D),
            ff_w1=mat(D, 2 * ffi), ff_b1=vec(2 * ffi),
            ff_w2=mat(ffi, D), ff_b2=vec(D)))
    return params


def _pack_kernel_params(params, cfg):
    """Pack per-layer weights into one bf16 slab (+ ff_w2) per layer."""
    heads, dh = cfg["heads"], cfg["head_dim"]
    D = heads * dh
    Dc = cfg["cross_dim"]
    bf = jnp.bfloat16

    kp = dict(
        oh_cg=params["oh_cg"], oh_gc=params["oh_gc"],
        gn_aff=jnp.concatenate([params["gn_gamma"], params["gn_beta"]], axis=0),
        pin_w=params["proj_in_w"].astype(bf), pin_b=params["proj_in_b"],
        pout_w=params["proj_out_w"].astype(bf), pout_b=params["proj_out_b"])

    vecs, ffb1, slabs, ffw2 = [], [], [], []
    for blk in params["blocks"]:
        vecs.append(jnp.concatenate(
            [blk["norm1_g"], blk["norm1_b"], blk["norm2_g"], blk["norm2_b"],
             blk["norm3_g"], blk["norm3_b"], blk["attn1_bo"], blk["attn2_bo"],
             blk["ff_b2"]], axis=0))                               # (9, D)
        ffb1.append(blk["ff_b1"])                                  # (1, 2*ffi)
        wkv2 = jnp.concatenate([blk["attn2_wk"], blk["attn2_wv"]], axis=1)
        wkv2 = jnp.pad(wkv2, ((0, D - Dc), (0, 0)))                # (D, 2D)
        slabs.append(jnp.concatenate(
            [blk["attn1_wq"], blk["attn1_wk"], blk["attn1_wv"],    # (D, 3D)
             blk["attn1_wo"], blk["attn2_wq"], wkv2,               # (D, 4D)
             blk["attn2_wo"], blk["ff_w1"]], axis=1).astype(bf))   # (D, D+2ffi)
        ffw2.append(blk["ff_w2"].astype(bf))
    kp["vecs"] = jnp.stack(vecs)
    kp["ff_b1"] = jnp.stack(ffb1)
    kp["slab"] = jnp.stack(slabs)
    kp["ff_w2"] = jnp.stack(ffw2)
    return kp


# ----------------------------------------------------------------------------
# forward (single fused pallas_call)
# ----------------------------------------------------------------------------
def transformer2d_forward(params, x_nchw, encoder_hidden_states, cfg,
                          batch_tile=None):
    B, C, Hh, Ww = x_nchw.shape
    S = Hh * Ww
    heads, dh = cfg["heads"], cfg["head_dim"]
    D = heads * dh
    L = cfg["num_layers"]
    Dc = cfg["cross_dim"]
    assert Dc <= D, "slab packing assumes cross_attention_dim <= inner_dim"
    Bt = B if batch_tile is None else batch_tile
    assert B % Bt == 0
    nb = B // Bt

    tokens = jnp.transpose(x_nchw, (0, 2, 3, 1)).reshape(B, S, C)   # (B,S,C) f32
    Skv = encoder_hidden_states.shape[1]
    # zero-pad encoder features to D lanes (matching zero-padded wkv2 rows)
    enc = jnp.zeros((B, Skv, D), jnp.bfloat16)
    enc = enc.at[:, :, :Dc].set(encoder_hidden_states.astype(jnp.bfloat16))

    kp = _pack_kernel_params(params, cfg)
    ffi = kp["ff_w2"].shape[1 + 0]                                  # (L, ffi, D)
    ffi = kp["ff_w2"].shape[1]
    assert kp["slab"].shape[2] == 8 * D + 2 * ffi

    def sspec(a):              # shared: constant block index, DMA'd once
        nd = a.ndim
        return pl.BlockSpec(a.shape, lambda bi, l, _nd=nd: (0,) * _nd)

    def lspec(a):              # per-layer stacked, leading layer dim squeezed
        nd = a.ndim
        return pl.BlockSpec((None,) + a.shape[1:],
                            lambda bi, l, _nd=nd: (l,) + (0,) * (_nd - 1))

    tok_spec = pl.BlockSpec((Bt, S, C), lambda bi, l: (bi, 0, 0))
    enc_spec = pl.BlockSpec((Bt, Skv, D), lambda bi, l: (bi, 0, 0))
    out_spec = pl.BlockSpec((Bt, S, C), lambda bi, l: (bi, 0, 0))

    shared_names = ("oh_cg", "oh_gc", "gn_aff", "pin_w", "pin_b",
                    "pout_w", "pout_b")
    layer_names = ("vecs", "ff_b1", "slab", "ff_w2")

    operands = ([tokens, enc] + [kp[n] for n in shared_names]
                + [kp[n] for n in layer_names])
    in_specs = ([tok_spec, enc_spec]
                + [sspec(kp[n]) for n in shared_names]
                + [lspec(kp[n]) for n in layer_names])

    kernel = partial(_transformer2d_kernel, heads=heads, head_dim=dh,
                     groups=cfg["groups"], eps_gn=1e-6, eps_ln=1e-5)

    out_tokens = pl.pallas_call(
        kernel,
        out_shape=jax.ShapeDtypeStruct((B, S, C), jnp.float32),
        grid=(nb, L),
        in_specs=in_specs,
        out_specs=out_spec,
        scratch_shapes=[pltpu.VMEM((Bt * S, D), jnp.float32)],  # resident hs
        compiler_params=pltpu.CompilerParams(
            dimension_semantics=("arbitrary", "arbitrary"),
            vmem_limit_bytes=32 * 1024 * 1024),
    )(*operands)

    return jnp.transpose(out_tokens.reshape(B, Hh, Ww, C), (0, 3, 1, 2))


# ----------------------------------------------------------------------------
# pure-JAX (f32) reference for a correctness sanity check
# ----------------------------------------------------------------------------
def reference_forward(params, x_nchw, enc, cfg):
    B, C, Hh, Ww = x_nchw.shape
    S = Hh * Ww
    G = cfg["groups"]
    nh, dh = cfg["heads"], cfg["head_dim"]
    t = jnp.transpose(x_nchw, (0, 2, 3, 1)).reshape(B, S, C)
    res = t
    xg = t.reshape(B, S, G, C // G)
    mu = xg.mean(axis=(1, 3), keepdims=True)
    var = jnp.square(xg - mu).mean(axis=(1, 3), keepdims=True)
    xn = ((xg - mu) * jax.lax.rsqrt(var + 1e-6)).reshape(B, S, C)
    xn = xn * params["gn_gamma"] + params["gn_beta"]
    hs = xn @ params["proj_in_w"] + params["proj_in_b"]

    def ln(x, g, b):
        m = x.mean(-1, keepdims=True)
        v = jnp.square(x - m).mean(-1, keepdims=True)
        return (x - m) * jax.lax.rsqrt(v + 1e-5) * g + b

    def attn(xq, ctx, wq, wk, wv, wo, bo):
        q = (xq @ wq).reshape(B, -1, nh, dh).transpose(0, 2, 1, 3)
        k = (ctx @ wk).reshape(B, -1, nh, dh).transpose(0, 2, 1, 3)
        v = (ctx @ wv).reshape(B, -1, nh, dh).transpose(0, 2, 1, 3)
        s = jnp.einsum("bhqd,bhkd->bhqk", q, k) * (dh ** -0.5)
        p = jax.nn.softmax(s, axis=-1)
        o = jnp.einsum("bhqk,bhkd->bhqd", p, v)
        o = o.transpose(0, 2, 1, 3).reshape(B, -1, nh * dh)
        return o @ wo + bo

    for blk in params["blocks"]:
        n1 = ln(hs, blk["norm1_g"], blk["norm1_b"])
        hs = hs + attn(n1, n1, blk["attn1_wq"], blk["attn1_wk"],
                       blk["attn1_wv"], blk["attn1_wo"], blk["attn1_bo"])
        n2 = ln(hs, blk["norm2_g"], blk["norm2_b"])
        hs = hs + attn(n2, enc, blk["attn2_wq"], blk["attn2_wk"],
                       blk["attn2_wv"], blk["attn2_wo"], blk["attn2_bo"])
        n3 = ln(hs, blk["norm3_g"], blk["norm3_b"])
        proj = n3 @ blk["ff_w1"] + blk["ff_b1"]
        half = proj.shape[-1] // 2
        hh, gate = proj[..., :half], proj[..., half:]
        ff = hh * (0.5 * gate * (1.0 + jax.lax.erf(gate / jnp.sqrt(2.0))))
        hs = hs + ff @ blk["ff_w2"] + blk["ff_b2"]
    out = hs @ params["proj_out_w"] + params["proj_out_b"] + res
    return jnp.transpose(out.reshape(B, Hh, Ww, C), (0, 3, 1, 2))


# ----------------------------------------------------------------------------
if __name__ == "__main__":
    # small, lane-dense demo config: C = inner = 128, head_dim = 64
    cfg = dict(in_channels=128, heads=2, head_dim=64, groups=32,
               cross_dim=64, num_layers=2, ff_mult=4)

    key = jax.random.PRNGKey(0)
    kx, kenc, kp = jax.random.split(key, 3)
    B, C, Hh, Ww = 2, cfg["in_channels"], 8, 8
    Skv = 8
    x = jax.random.normal(kx, (B, C, Hh, Ww), jnp.float32)              # NCHW
    enc = jax.random.normal(kenc, (B, Skv, cfg["cross_dim"]), jnp.float32)
    enc = enc.astype(jnp.bfloat16).astype(jnp.float32)  # bf16-representable

    params = init_params(kp, cfg)

    fwd = jax.jit(lambda p, xx, ee: transformer2d_forward(p, xx, ee, cfg))
    out = jax.block_until_ready(fwd(params, x, enc))

    ref = reference_forward(params, x, enc, cfg)
    max_err = float(jnp.max(jnp.abs(out - ref)))
    assert out.shape == (B, C, Hh, Ww), out.shape
    assert max_err < 5e-2, f"max abs error vs reference = {max_err}"

    print("KERNEL_OK")
</pallas_src>

<mosaic_0001>
module attributes {stable_mosaic.version = 11 : i64} {
  func.func @_transformer2d_kernel(%arg0: i32, %arg1: i32, %arg2: memref<2x64x128xf32, #tpu.memory_space<vmem>>, %arg3: memref<2x8x128xbf16, #tpu.memory_space<vmem>>, %arg4: memref<128x32xf32, #tpu.memory_space<vmem>>, %arg5: memref<32x128xf32, #tpu.memory_space<vmem>>, %arg6: memref<2x128xf32, #tpu.memory_space<vmem>>, %arg7: memref<128x128xbf16, #tpu.memory_space<vmem>>, %arg8: memref<1x128xf32, #tpu.memory_space<vmem>>, %arg9: memref<128x128xbf16, #tpu.memory_space<vmem>>, %arg10: memref<1x128xf32, #tpu.memory_space<vmem>>, %arg11: memref<1x9x128xf32, #tpu.memory_space<vmem>>, %arg12: memref<1x1x1024xf32, #tpu.memory_space<vmem>>, %arg13: memref<1x128x2048xbf16, #tpu.memory_space<vmem>>, %arg14: memref<1x512x128xbf16, #tpu.memory_space<vmem>>, %arg15: memref<2x64x128xf32, #tpu.memory_space<vmem>>, %arg16: memref<128x128xf32, #tpu.memory_space<vmem>>) attributes {dimension_semantics = [#tpu.dimension_semantics<arbitrary>, #tpu.dimension_semantics<arbitrary>], iteration_bounds = array<i64: 1, 2>, scalar_prefetch = 0 : i64, scratch_operands = 1 : i64, tpu.core_type = #tpu.core_type<tc>, window_params = [{transform_indices = @transform_0, window_bounds = array<i64: 2, 64, 128>}, {transform_indices = @transform_1, window_bounds = array<i64: 2, 8, 128>}, {pipeline_mode = #tpu.pipeline_mode<synchronous>, transform_indices = @transform_2, window_bounds = array<i64: 128, 32>}, {pipeline_mode = #tpu.pipeline_mode<synchronous>, transform_indices = @transform_3, window_bounds = array<i64: 32, 128>}, {pipeline_mode = #tpu.pipeline_mode<synchronous>, transform_indices = @transform_4, window_bounds = array<i64: 2, 128>}, {pipeline_mode = #tpu.pipeline_mode<synchronous>, transform_indices = @transform_5, window_bounds = array<i64: 128, 128>}, {pipeline_mode = #tpu.pipeline_mode<synchronous>, transform_indices = @transform_6, window_bounds = array<i64: 1, 128>}, {pipeline_mode = #tpu.pipeline_mode<synchronous>, transform_indices = @transform_7, window_bounds = array<i64: 128, 128>}, {pipeline_mode = #tpu.pipeline_mode<synchronous>, transform_indices = @transform_8, window_bounds = array<i64: 1, 128>}, {transform_indices = @transform_9, window_bounds = array<i64: 1, 9, 128>}, {transform_indices = @transform_10, window_bounds = array<i64: 1, 1, 1024>}, {transform_indices = @transform_11, window_bounds = array<i64: 1, 128, 2048>}, {transform_indices = @transform_12, window_bounds = array<i64: 1, 512, 128>}, {transform_indices = @transform_13, window_bounds = array<i64: 2, 64, 128>}]} {
    %c0_i32 = arith.constant 0 : i32
    %0 = arith.cmpi eq, %arg1, %c0_i32 : i32
    %1 = arith.extui %0 : i1 to i32
    %c0_i32_0 = arith.constant 0 : i32
    %2 = arith.cmpi ne, %1, %c0_i32_0 : i32
    scf.if %2 {
      %c0_106 = arith.constant 0 : index
      %c0_107 = arith.constant 0 : index
      %c0_108 = arith.constant 0 : index
      %276 = vector.load %arg2[%c0_106, %c0_107, %c0_108] : memref<2x64x128xf32, #tpu.memory_space<vmem>>, vector<2x64x128xf32>
      %cst_109 = arith.constant dense<0.000000e+00> : vector<2x128xf32>
      %277 = vector.multi_reduction <add>, %276, %cst_109 [1] : vector<2x64x128xf32> to vector<2x128xf32>
      %cst_110 = arith.constant 6.400000e+01 : f32
      %278 = vector.broadcast %cst_110 : f32 to vector<2x128xf32>
      %279 = arith.divf %277, %278 : vector<2x128xf32>
      %c0_111 = arith.constant 0 : index
      %c0_112 = arith.constant 0 : index
      %280 = vector.load %arg4[%c0_111, %c0_112] : memref<128x32xf32, #tpu.memory_space<vmem>>, vector<128x32xf32>
      %cst_113 = arith.constant dense<0.000000e+00> : vector<2x32xf32>
      %281 = tpu.matmul %279, %280, %cst_113 {dimension_numbers = #tpu.dot_dimension_numbers<[1], [0], [0], [1], [0, 0, 1, 1], [], []>} : vector<2x128xf32>, vector<128x32xf32>, vector<2x32xf32> -> vector<2x32xf32>
      %cst_114 = arith.constant 2.500000e-01 : f32
      %282 = vector.broadcast %cst_114 : f32 to vector<2x32xf32>
      %283 = arith.mulf %281, %282 : vector<2x32xf32>
      %c0_115 = arith.constant 0 : index
      %c0_116 = arith.constant 0 : index
      %284 = vector.load %arg5[%c0_115, %c0_116] : memref<32x128xf32, #tpu.memory_space<vmem>>, vector<32x128xf32>
      %cst_117 = arith.constant dense<0.000000e+00> : vector<2x128xf32>
      %285 = tpu.matmul %283, %284, %cst_117 {dimension_numbers = #tpu.dot_dimension_numbers<[1], [0], [0], [1], [0, 0, 1, 1], [], []>} : vector<2x32xf32>, vector<32x128xf32>, vector<2x128xf32> -> vector<2x128xf32>
      %286 = vector.shape_cast %285 : vector<2x128xf32> to vector<2x1x128xf32>
      %287 = vector.broadcast %286 : vector<2x1x128xf32> to vector<2x64x128xf32>
      %288 = arith.subf %276, %287 : vector<2x64x128xf32>
      %289 = arith.mulf %288, %288 : vector<2x64x128xf32>
      %cst_118 = arith.constant dense<0.000000e+00> : vector<2x128xf32>
      %290 = vector.multi_reduction <add>, %289, %cst_118 [1] : vector<2x64x128xf32> to vector<2x128xf32>
      %cst_119 = arith.constant 6.400000e+01 : f32
      %291 = vector.broadcast %cst_119 : f32 to vector<2x128xf32>
      %292 = arith.divf %290, %291 : vector<2x128xf32>
      %c0_120 = arith.constant 0 : index
      %c0_121 = arith.constant 0 : index
      %293 = vector.load %arg4[%c0_120, %c0_121] : memref<128x32xf32, #tpu.memory_space<vmem>>, vector<128x32xf32>
      %cst_122 = arith.constant dense<0.000000e+00> : vector<2x32xf32>
      %294 = tpu.matmul %292, %293, %cst_122 {dimension_numbers = #tpu.dot_dimension_numbers<[1], [0], [0], [1], [0, 0, 1, 1], [], []>} : vector<2x128xf32>, vector<128x32xf32>, vector<2x32xf32> -> vector<2x32xf32>
      %cst_123 = arith.constant 2.500000e-01 : f32
      %295 = vector.broadcast %cst_123 : f32 to vector<2x32xf32>
      %296 = arith.mulf %294, %295 : vector<2x32xf32>
      %c0_124 = arith.constant 0 : index
      %c0_125 = arith.constant 0 : index
      %297 = vector.load %arg5[%c0_124, %c0_125] : memref<32x128xf32, #tpu.memory_space<vmem>>, vector<32x128xf32>
      %cst_126 = arith.constant dense<0.000000e+00> : vector<2x128xf32>
      %298 = tpu.matmul %296, %297, %cst_126 {dimension_numbers = #tpu.dot_dimension_numbers<[1], [0], [0], [1], [0, 0, 1, 1], [], []>} : vector<2x32xf32>, vector<32x128xf32>, vector<2x128xf32> -> vector<2x128xf32>
      %299 = vector.shape_cast %298 : vector<2x128xf32> to vector<2x1x128xf32>
      %cst_127 = arith.constant 9.99999997E-7 : f32
      %300 = vector.broadcast %cst_127 : f32 to vector<2x1x128xf32>
      %301 = arith.addf %299, %300 : vector<2x1x128xf32>
      %302 = math.rsqrt %301 : vector<2x1x128xf32>
      %303 = vector.broadcast %302 : vector<2x1x128xf32> to vector<2x64x128xf32>
      %304 = arith.mulf %288, %303 : vector<2x64x128xf32>
      %c0_128 = arith.constant 0 : index
      %c0_129 = arith.constant 0 : index
      %305 = vector.load %arg6[%c0_128, %c0_129] : memref<2x128xf32, #tpu.memory_space<vmem>>, vector<1x128xf32>
      %306 = vector.shape_cast %305 : vector<1x128xf32> to vector<1x1x128xf32>
      %307 = vector.broadcast %306 : vector<1x1x128xf32> to vector<2x64x128xf32>
      %308 = arith.mulf %304, %307 : vector<2x64x128xf32>
      %c1_130 = arith.constant 1 : index
      %c0_131 = arith.constant 0 : index
      %309 = vector.load %arg6[%c1_130, %c0_131] : memref<2x128xf32, #tpu.memory_space<vmem>>, vector<1x128xf32>
      %310 = vector.shape_cast %309 : vector<1x128xf32> to vector<1x1x128xf32>
      %311 = vector.broadcast %310 : vector<1x1x128xf32> to vector<2x64x128xf32>
      %312 = arith.addf %308, %311 : vector<2x64x128xf32>
      %313 = vector.shape_cast %312 : vector<2x64x128xf32> to vector<128x128xf32>
      %314 = arith.truncf %313 : vector<128x128xf32> to vector<128x128xbf16>
      %c0_132 = arith.constant 0 : index
      %c0_133 = arith.constant 0 : index
      %315 = vector.load %arg7[%c0_132, %c0_133] : memref<128x128xbf16, #tpu.memory_space<vmem>>, vector<128x128xbf16>
      %cst_134 = arith.constant dense<0.000000e+00> : vector<128x128xf32>
      %316 = tpu.matmul %314, %315, %cst_134 {dimension_numbers = #tpu.dot_dimension_numbers<[1], [0], [0], [1], [0, 0, 1, 1], [], []>} : vector<128x128xbf16>, vector<128x128xbf16>, vector<128x128xf32> -> vector<128x128xf32>
      %c0_135 = arith.constant 0 : index
      %c0_136 = arith.constant 0 : index
      %317 = vector.load %arg8[%c0_135, %c0_136] : memref<1x128xf32, #tpu.memory_space<vmem>>, vector<1x128xf32>
      %318 = vector.broadcast %317 : vector<1x128xf32> to vector<128x128xf32>
      %319 = arith.addf %316, %318 : vector<128x128xf32>
      %c0_137 = arith.constant 0 : index
      %c0_138 = arith.constant 0 : index
      %320 = vector.load %arg16[%c0_137, %c0_138] : memref<128x128xf32, #tpu.memory_space<vmem>>, vector<128x128xf32>
      tpu.vector_store %arg16[%c0_137, %c0_138], %319 {strides = array<i32>} : memref<128x128xf32, #tpu.memory_space<vmem>>, vector<128x128xf32>,
    } else {
    }
    %c0 = arith.constant 0 : index
    %c0_1 = arith.constant 0 : index
    %3 = vector.load %arg16[%c0, %c0_1] : memref<128x128xf32, #tpu.memory_space<vmem>>, vector<128x128xf32>
    %c0_2 = arith.constant 0 : index
    %c0_3 = arith.constant 0 : index
    %c0_4 = arith.constant 0 : index
    %4 = vector.load %arg11[%c0_2, %c0_3, %c0_4] : memref<1x9x128xf32, #tpu.memory_space<vmem>>, vector<1x1x128xf32>
    %5 = vector.shape_cast %4 : vector<1x1x128xf32> to vector<1x128xf32>
    %c0_5 = arith.constant 0 : index
    %c1 = arith.constant 1 : index
    %c0_6 = arith.constant 0 : index
    %6 = vector.load %arg11[%c0_5, %c1, %c0_6] : memref<1x9x128xf32, #tpu.memory_space<vmem>>, vector<1x1x128xf32>
    %7 = vector.shape_cast %6 : vector<1x1x128xf32> to vector<1x128xf32>
    %cst = arith.constant dense<0.000000e+00> : vector<128xf32>
    %8 = vector.multi_reduction <add>, %3, %cst [1] : vector<128x128xf32> to vector<128xf32>
    %9 = vector.shape_cast %8 : vector<128xf32> to vector<128x1xf32>
    %cst_7 = arith.constant 1.280000e+02 : f32
    %10 = vector.broadcast %cst_7 : f32 to vector<128x1xf32>
    %11 = arith.divf %9, %10 : vector<128x1xf32>
    %12 = vector.broadcast %11 : vector<128x1xf32> to vector<128x128xf32>
    %13 = arith.subf %3, %12 : vector<128x128xf32>
    %14 = arith.mulf %13, %13 : vector<128x128xf32>
    %cst_8 = arith.constant dense<0.000000e+00> : vector<128xf32>
    %15 = vector.multi_reduction <add>, %14, %cst_8 [1] : vector<128x128xf32> to vector<128xf32>
    %16 = vector.shape_cast %15 : vector<128xf32> to vector<128x1xf32>
    %cst_9 = arith.constant 1.280000e+02 : f32
    %17 = vector.broadcast %cst_9 : f32 to vector<128x1xf32>
    %18 = arith.divf %16, %17 : vector<128x1xf32>
    %19 = vector.broadcast %11 : vector<128x1xf32> to vector<128x128xf32>
    %20 = arith.subf %3, %19 : vector<128x128xf32>
    %cst_10 = arith.constant 9.99999974E-6 : f32
    %21 = vector.broadcast %cst_10 : f32 to vector<128x1xf32>
    %22 = arith.addf %18, %21 : vector<128x1xf32>
    %23 = math.rsqrt %22 : vector<128x1xf32>
    %24 = vector.broadcast %23 : vector<128x1xf32> to vector<128x128xf32>
    %25 = arith.mulf %20, %24 : vector<128x128xf32>
    %26 = vector.broadcast %5 : vector<1x128xf32> to vector<128x128xf32>
    %27 = arith.mulf %25, %26 : vector<128x128xf32>
    %28 = vector.broadcast %7 : vector<1x128xf32> to vector<128x128xf32>
    %29 = arith.addf %27, %28 : vector<128x128xf32>
    %30 = arith.truncf %29 : vector<128x128xf32> to vector<128x128xbf16>
    %c0_11 = arith.constant 0 : index
    %c0_12 = arith.constant 0 : index
    %c0_13 = arith.constant 0 : index
    %31 = vector.load %arg13[%c0_11, %c0_12, %c0_13] : memref<1x128x2048xbf16, #tpu.memory_space<vmem>>, vector<1x128x384xbf16>
    %32 = vector.shape_cast %31 : vector<1x128x384xbf16> to vector<128x384xbf16>
    %cst_14 = arith.constant dense<0.000000e+00> : vector<128x384xf32>
    %33 = tpu.matmul %30, %32, %cst_14 {dimension_numbers = #tpu.dot_dimension_numbers<[1], [0], [0], [1], [0, 0, 1, 1], [], []>} : vector<128x128xbf16>, vector<128x384xbf16>, vector<128x384xf32> -> vector<128x384xf32>
    %34 = vector.extract_strided_slice %33 {offsets = [0, 0], sizes = [128, 128], strides = [1, 1]} : vector<128x384xf32> to vector<128x128xf32>
    %35 = vector.extract_strided_slice %33 {offsets = [0, 128], sizes = [128, 128], strides = [1, 1]} : vector<128x384xf32> to vector<128x128xf32>
    %36 = vector.extract_strided_slice %33 {offsets = [0, 256], sizes = [128, 128], strides = [1, 1]} : vector<128x384xf32> to vector<128x128xf32>
    %c0_15 = arith.constant 0 : index
    %c6 = arith.constant 6 : index
    %c0_16 = arith.constant 0 : index
    %37 = vector.load %arg11[%c0_15, %c6, %c0_16] : memref<1x9x128xf32, #tpu.memory_space<vmem>>, vector<1x1x128xf32>
    %38 = vector.shape_cast %37 : vector<1x1x128xf32> to vector<1x128xf32>
    %cst_17 = arith.constant 0.000000e+00 : f32
    %39 = vector.broadcast %cst_17 : f32 to vector<128x128xf32>
    %40 = vector.extract_strided_slice %34 {offsets = [0, 0], sizes = [128, 64], strides = [1, 1]} : vector<128x128xf32> to vector<128x64xf32>
    %41 = arith.truncf %40 : vector<128x64xf32> to vector<128x64xbf16>
    %42 = vector.shape_cast %41 : vector<128x64xbf16> to vector<2x64x64xbf16>
    %43 = vector.extract_strided_slice %35 {offsets = [0, 0], sizes = [128, 64], strides = [1, 1]} : vector<128x128xf32> to vector<128x64xf32>
    %44 = arith.truncf %43 : vector<128x64xf32> to vector<128x64xbf16>
    %45 = vector.shape_cast %44 : vector<128x64xbf16> to vector<2x64x64xbf16>
    %46 = vector.extract_strided_slice %36 {offsets = [0, 0], sizes = [128, 64], strides = [1, 1]} : vector<128x128xf32> to vector<128x64xf32>
    %47 = arith.truncf %46 : vector<128x64xf32> to vector<128x64xbf16>
    %48 = vector.shape_cast %47 : vector<128x64xbf16> to vector<2x64x64xbf16>
    %cst_18 = arith.constant dense<0.000000e+00> : vector<2x64x64xf32>
    %49 = tpu.matmul %42, %45, %cst_18 {dimension_numbers = #tpu.dot_dimension_numbers<[2], [2], [1], [1], [0, 0, 0, 1, 1, 1], [0], [0]>} : vector<2x64x64xbf16>, vector<2x64x64xbf16>, vector<2x64x64xf32> -> vector<2x64x64xf32>
    %cst_19 = arith.constant 1.250000e-01 : f32
    %50 = vector.broadcast %cst_19 : f32 to vector<2x64x64xf32>
    %51 = arith.mulf %49, %50 : vector<2x64x64xf32>
    %cst_20 = arith.constant dense<0xFF800000> : vector<2x64xf32>
    %52 = vector.multi_reduction <maximumf>, %51, %cst_20 [2] : vector<2x64x64xf32> to vector<2x64xf32>
    %53 = vector.shape_cast %52 : vector<2x64xf32> to vector<2x64x1xf32>
    %54 = vector.broadcast %53 : vector<2x64x1xf32> to vector<2x64x64xf32>
    %55 = arith.subf %51, %54 : vector<2x64x64xf32>
    %56 = math.exp %55 : vector<2x64x64xf32>
    %cst_21 = arith.constant dense<0.000000e+00> : vector<2x64xf32>
    %57 = vector.multi_reduction <add>, %56, %cst_21 [2] : vector<2x64x64xf32> to vector<2x64xf32>
    %58 = vector.shape_cast %57 : vector<2x64xf32> to vector<2x64x1xf32>
    %59 = tpu.reciprocal %58 {approx = true} : vector<2x64x1xf32> -> vector<2x64x1xf32>
    %60 = vector.broadcast %59 : vector<2x64x1xf32> to vector<2x64x64xf32>
    %61 = arith.mulf %56, %60 : vector<2x64x64xf32>
    %62 = arith.truncf %61 : vector<2x64x64xf32> to vector<2x64x64xbf16>
    %cst_22 = arith.constant dense<0.000000e+00> : vector<2x64x64xf32>
    %63 = tpu.matmul %62, %48, %cst_22 {dimension_numbers = #tpu.dot_dimension_numbers<[2], [1], [1], [2], [0, 0, 0, 1, 1, 2], [0], [0]>} : vector<2x64x64xbf16>, vector<2x64x64xbf16>, vector<2x64x64xf32> -> vector<2x64x64xf32>
    %c0_23 = arith.constant 0 : index
    %c0_24 = arith.constant 0 : index
    %c384 = arith.constant 384 : index
    %64 = vector.load %arg13[%c0_23, %c0_24, %c384] : memref<1x128x2048xbf16, #tpu.memory_space<vmem>>, vector<1x64x128xbf16>
    %65 = vector.shape_cast %64 : vector<1x64x128xbf16> to vector<64x128xbf16>
    %66 = vector.shape_cast %63 : vector<2x64x64xf32> to vector<128x64xf32>
    %67 = arith.truncf %66 : vector<128x64xf32> to vector<128x64xbf16>
    %cst_25 = arith.constant dense<0.000000e+00> : vector<128x128xf32>
    %68 = tpu.matmul %67, %65, %cst_25 {dimension_numbers = #tpu.dot_dimension_numbers<[1], [0], [0], [1], [0, 0, 1, 1], [], []>} : vector<128x64xbf16>, vector<64x128xbf16>, vector<128x128xf32> -> vector<128x128xf32>
    %69 = arith.addf %39, %68 : vector<128x128xf32>
    %70 = vector.extract_strided_slice %34 {offsets = [0, 64], sizes = [128, 64], strides = [1, 1]} : vector<128x128xf32> to vector<128x64xf32>
    %71 = arith.truncf %70 : vector<128x64xf32> to vector<128x64xbf16>
    %72 = vector.shape_cast %71 : vector<128x64xbf16> to vector<2x64x64xbf16>
    %73 = vector.extract_strided_slice %35 {offsets = [0, 64], sizes = [128, 64], strides = [1, 1]} : vector<128x128xf32> to vector<128x64xf32>
    %74 = arith.truncf %73 : vector<128x64xf32> to vector<128x64xbf16>
    %75 = vector.shape_cast %74 : vector<128x64xbf16> to vector<2x64x64xbf16>
    %76 = vector.extract_strided_slice %36 {offsets = [0, 64], sizes = [128, 64], strides = [1, 1]} : vector<128x128xf32> to vector<128x64xf32>
    %77 = arith.truncf %76 : vector<128x64xf32> to vector<128x64xbf16>
    %78 = vector.shape_cast %77 : vector<128x64xbf16> to vector<2x64x64xbf16>
    %cst_26 = arith.constant dense<0.000000e+00> : vector<2x64x64xf32>
    %79 = tpu.matmul %72, %75, %cst_26 {dimension_numbers = #tpu.dot_dimension_numbers<[2], [2], [1], [1], [0, 0, 0, 1, 1, 1], [0], [0]>} : vector<2x64x64xbf16>, vector<2x64x64xbf16>, vector<2x64x64xf32> -> vector<2x64x64xf32>
    %cst_27 = arith.constant 1.250000e-01 : f32
    %80 = vector.broadcast %cst_27 : f32 to vector<2x64x64xf32>
    %81 = arith.mulf %79, %80 : vector<2x64x64xf32>
    %cst_28 = arith.constant dense<0xFF800000> : vector<2x64xf32>
    %82 = vector.multi_reduction <maximumf>, %81, %cst_28 [2] : vector<2x64x64xf32> to vector<2x64xf32>
    %83 = vector.shape_cast %82 : vector<2x64xf32> to vector<2x64x1xf32>
    %84 = vector.broadcast %83 : vector<2x64x1xf32> to vector<2x64x64xf32>
    %85 = arith.subf %81, %84 : vector<2x64x64xf32>
    %86 = math.exp %85 : vector<2x64x64xf32>
    %cst_29 = arith.constant dense<0.000000e+00> : vector<2x64xf32>
    %87 = vector.multi_reduction <add>, %86, %cst_29 [2] : vector<2x64x64xf32> to vector<2x64xf32>
    %88 = vector.shape_cast %87 : vector<2x64xf32> to vector<2x64x1xf32>
    %89 = tpu.reciprocal %88 {approx = true} : vector<2x64x1xf32> -> vector<2x64x1xf32>
    %90 = vector.broadcast %89 : vector<2x64x1xf32> to vector<2x64x64xf32>
    %91 = arith.mulf %86, %90 : vector<2x64x64xf32>
    %92 = arith.truncf %91 : vector<2x64x64xf32> to vector<2x64x64xbf16>
    %cst_30 = arith.constant dense<0.000000e+00> : vector<2x64x64xf32>
    %93 = tpu.matmul %92, %78, %cst_30 {dimension_numbers = #tpu.dot_dimension_numbers<[2], [1], [1], [2], [0, 0, 0, 1, 1, 2], [0], [0]>} : vector<2x64x64xbf16>, vector<2x64x64xbf16>, vector<2x64x64xf32> -> vector<2x64x64xf32>
    %c0_31 = arith.constant 0 : index
    %c64 = arith.constant 64 : index
    %c384_32 = arith.constant 384 : index
    %94 = vector.load %arg13[%c0_31, %c64, %c384_32] : memref<1x128x2048xbf16, #tpu.memory_space<vmem>>, vector<1x64x128xbf16>
    %95 = vector.shape_cast %94 : vector<1x64x128xbf16> to vector<64x128xbf16>
    %96 = vector.shape_cast %93 : vector<2x64x64xf32> to vector<128x64xf32>
    %97 = arith.truncf %96 : vector<128x64xf32> to vector<128x64xbf16>
    %cst_33 = arith.constant dense<0.000000e+00> : vector<128x128xf32>
    %98 = tpu.matmul %97, %95, %cst_33 {dimension_numbers = #tpu.dot_dimension_numbers<[1], [0], [0], [1], [0, 0, 1, 1], [], []>} : vector<128x64xbf16>, vector<64x128xbf16>, vector<128x128xf32> -> vector<128x128xf32>
    %99 = arith.addf %69, %98 : vector<128x128xf32>
    %100 = vector.broadcast %38 : vector<1x128xf32> to vector<128x128xf32>
    %101 = arith.addf %99, %100 : vector<128x128xf32>
    %102 = arith.addf %3, %101 : vector<128x128xf32>
    %c0_34 = arith.constant 0 : index
    %c2 = arith.constant 2 : index
    %c0_35 = arith.constant 0 : index
    %103 = vector.load %arg11[%c0_34, %c2, %c0_35] : memref<1x9x128xf32, #tpu.memory_space<vmem>>, vector<1x1x128xf32>
    %104 = vector.shape_cast %103 : vector<1x1x128xf32> to vector<1x128xf32>
    %c0_36 = arith.constant 0 : index
    %c3 = arith.constant 3 : index
    %c0_37 = arith.constant 0 : index
    %105 = vector.load %arg11[%c0_36, %c3, %c0_37] : memref<1x9x128xf32, #tpu.memory_space<vmem>>, vector<1x1x128xf32>
    %106 = vector.shape_cast %105 : vector<1x1x128xf32> to vector<1x128xf32>
    %cst_38 = arith.constant dense<0.000000e+00> : vector<128xf32>
    %107 = vector.multi_reduction <add>, %102, %cst_38 [1] : vector<128x128xf32> to vector<128xf32>
    %108 = vector.shape_cast %107 : vector<128xf32> to vector<128x1xf32>
    %cst_39 = arith.constant 1.280000e+02 : f32
    %109 = vector.broadcast %cst_39 : f32 to vector<128x1xf32>
    %110 = arith.divf %108, %109 : vector<128x1xf32>
    %111 = vector.broadcast %110 : vector<128x1xf32> to vector<128x128xf32>
    %112 = arith.subf %102, %111 : vector<128x128xf32>
    %113 = arith.mulf %112, %112 : vector<128x128xf32>
    %cst_40 = arith.constant dense<0.000000e+00> : vector<128xf32>
    %114 = vector.multi_reduction <add>, %113, %cst_40 [1] : vector<128x128xf32> to vector<128xf32>
    %115 = vector.shape_cast %114 : vector<128xf32> to vector<128x1xf32>
    %cst_41 = arith.constant 1.280000e+02 : f32
    %116 = vector.broadcast %cst_41 : f32 to vector<128x1xf32>
    %117 = arith.divf %115, %116 : vector<128x1xf32>
    %118 = vector.broadcast %110 : vector<128x1xf32> to vector<128x128xf32>
    %119 = arith.subf %102, %118 : vector<128x128xf32>
    %cst_42 = arith.constant 9.99999974E-6 : f32
    %120 = vector.broadcast %cst_42 : f32 to vector<128x1xf32>
    %121 = arith.addf %117, %120 : vector<128x1xf32>
    %122 = math.rsqrt %121 : vector<128x1xf32>
    %123 = vector.broadcast %122 : vector<128x1xf32> to vector<128x128xf32>
    %124 = arith.mulf %119, %123 : vector<128x128xf32>
    %125 = vector.broadcast %104 : vector<1x128xf32> to vector<128x128xf32>
    %126 = arith.mulf %124, %125 : vector<128x128xf32>
    %127 = vector.broadcast %106 : vector<1x128xf32> to vector<128x128xf32>
    %128 = arith.addf %126, %127 : vector<128x128xf32>
    %129 = arith.truncf %128 : vector<128x128xf32> to vector<128x128xbf16>
    %c0_43 = arith.constant 0 : index
    %c0_44 = arith.constant 0 : index
    %c512 = arith.constant 512 : index
    %130 = vector.load %arg13[%c0_43, %c0_44, %c512] : memref<1x128x2048xbf16, #tpu.memory_space<vmem>>, vector<1x128x128xbf16>
    %131 = vector.shape_cast %130 : vector<1x128x128xbf16> to vector<128x128xbf16>
    %cst_45 = arith.constant dense<0.000000e+00> : vector<128x128xf32>
    %132 = tpu.matmul %129, %131, %cst_45 {dimension_numbers = #tpu.dot_dimension_numbers<[1], [0], [0], [1], [0, 0, 1, 1], [], []>} : vector<128x128xbf16>, vector<128x128xbf16>, vector<128x128xf32> -> vector<128x128xf32>
    %c0_46 = arith.constant 0 : index
    %c0_47 = arith.constant 0 : index
    %c0_48 = arith.constant 0 : index
    %133 = vector.load %arg3[%c0_46, %c0_47, %c0_48] : memref<2x8x128xbf16, #tpu.memory_space<vmem>>, vector<2x8x128xbf16>
    %134 = vector.shape_cast %133 : vector<2x8x128xbf16> to vector<16x128xbf16>
    %c0_49 = arith.constant 0 : index
    %c0_50 = arith.constant 0 : index
    %c640 = arith.constant 640 : index
    %135 = vector.load %arg13[%c0_49, %c0_50, %c640] : memref<1x128x2048xbf16, #tpu.memory_space<vmem>>, vector<1x128x256xbf16>
    %136 = vector.shape_cast %135 : vector<1x128x256xbf16> to vector<128x256xbf16>
    %cst_51 = arith.constant dense<0.000000e+00> : vector<16x256xf32>
    %137 = tpu.matmul %134, %136, %cst_51 {dimension_numbers = #tpu.dot_dimension_numbers<[1], [0], [0], [1], [0, 0, 1, 1], [], []>} : vector<16x128xbf16>, vector<128x256xbf16>, vector<16x256xf32> -> vector<16x256xf32>
    %138 = vector.extract_strided_slice %137 {offsets = [0, 0], sizes = [16, 128], strides = [1, 1]} : vector<16x256xf32> to vector<16x128xf32>
    %139 = vector.extract_strided_slice %137 {offsets = [0, 128], sizes = [16, 128], strides = [1, 1]} : vector<16x256xf32> to vector<16x128xf32>
    %c0_52 = arith.constant 0 : index
    %c7 = arith.constant 7 : index
    %c0_53 = arith.constant 0 : index
    %140 = vector.load %arg11[%c0_52, %c7, %c0_53] : memref<1x9x128xf32, #tpu.memory_space<vmem>>, vector<1x1x128xf32>
    %141 = vector.shape_cast %140 : vector<1x1x128xf32> to vector<1x128xf32>
    %cst_54 = arith.constant 0.000000e+00 : f32
    %142 = vector.broadcast %cst_54 : f32 to vector<128x128xf32>
    %143 = vector.extract_strided_slice %132 {offsets = [0, 0], sizes = [128, 64], strides = [1, 1]} : vector<128x128xf32> to vector<128x64xf32>
    %144 = arith.truncf %143 : vector<128x64xf32> to vector<128x64xbf16>
    %145 = vector.shape_cast %144 : vector<128x64xbf16> to vector<2x64x64xbf16>
    %146 = vector.extract_strided_slice %138 {offsets = [0, 0], sizes = [16, 64], strides = [1, 1]} : vector<16x128xf32> to vector<16x64xf32>
    %147 = arith.truncf %146 : vector<16x64xf32> to vector<16x64xbf16>
    %148 = vector.shape_cast %147 : vector<16x64xbf16> to vector<2x8x64xbf16>
    %149 = vector.extract_strided_slice %139 {offsets = [0, 0], sizes = [16, 64], strides = [1, 1]} : vector<16x128xf32> to vector<16x64xf32>
    %150 = arith.truncf %149 : vector<16x64xf32> to vector<16x64xbf16>
    %151 = vector.shape_cast %150 : vector<16x64xbf16> to vector<2x8x64xbf16>
    %cst_55 = arith.constant dense<0.000000e+00> : vector<2x64x8xf32>
    %152 = tpu.matmul %145, %148, %cst_55 {dimension_numbers = #tpu.dot_dimension_numbers<[2], [2], [1], [1], [0, 0, 0, 1, 1, 1], [0], [0]>} : vector<2x64x64xbf16>, vector<2x8x64xbf16>, vector<2x64x8xf32> -> vector<2x64x8xf32>
    %cst_56 = arith.constant 1.250000e-01 : f32
    %153 = vector.broadcast %cst_56 : f32 to vector<2x64x8xf32>
    %154 = arith.mulf %152, %153 : vector<2x64x8xf32>
    %cst_57 = arith.constant dense<0xFF800000> : vector<2x64xf32>
    %155 = vector.multi_reduction <maximumf>, %154, %cst_57 [2] : vector<2x64x8xf32> to vector<2x64xf32>
    %156 = vector.shape_cast %155 : vector<2x64xf32> to vector<2x64x1xf32>
    %157 = vector.broadcast %156 : vector<2x64x1xf32> to vector<2x64x8xf32>
    %158 = arith.subf %154, %157 : vector<2x64x8xf32>
    %159 = math.exp %158 : vector<2x64x8xf32>
    %cst_58 = arith.constant dense<0.000000e+00> : vector<2x64xf32>
    %160 = vector.multi_reduction <add>, %159, %cst_58 [2] : vector<2x64x8xf32> to vector<2x64xf32>
    %161 = vector.shape_cast %160 : vector<2x64xf32> to vector<2x64x1xf32>
    %162 = tpu.reciprocal %161 {approx = true} : vector<2x64x1xf32> -> vector<2x64x1xf32>
    %163 = vector.broadcast %162 : vector<2x64x1xf32> to vector<2x64x8xf32>
    %164 = arith.mulf %159, %163 : vector<2x64x8xf32>
    %165 = arith.truncf %164 : vector<2x64x8xf32> to vector<2x64x8xbf16>
    %cst_59 = arith.constant dense<0.000000e+00> : vector<2x64x64xf32>
    %166 = tpu.matmul %165, %151, %cst_59 {dimension_numbers = #tpu.dot_dimension_numbers<[2], [1], [1], [2], [0, 0, 0, 1, 1, 2], [0], [0]>} : vector<2x64x8xbf16>, vector<2x8x64xbf16>, vector<2x64x64xf32> -> vector<2x64x64xf32>
    %c0_60 = arith.constant 0 : index
    %c0_61 = arith.constant 0 : index
    %c896 = arith.constant 896 : index
    %167 = vector.load %arg13[%c0_60, %c0_61, %c896] : memref<1x128x2048xbf16, #tpu.memory_space<vmem>>, vector<1x64x128xbf16>
    %168 = vector.shape_cast %167 : vector<1x64x128xbf16> to vector<64x128xbf16>
    %169 = vector.shape_cast %166 : vector<2x64x64xf32> to vector<128x64xf32>
    %170 = arith.truncf %169 : vector<128x64xf32> to vector<128x64xbf16>
    %cst_62 = arith.constant dense<0.000000e+00> : vector<128x128xf32>
    %171 = tpu.matmul %170, %168, %cst_62 {dimension_numbers = #tpu.dot_dimension_numbers<[1], [0], [0], [1], [0, 0, 1, 1], [], []>} : vector<128x64xbf16>, vector<64x128xbf16>, vector<128x128xf32> -> vector<128x128xf32>
    %172 = arith.addf %142, %171 : vector<128x128xf32>
    %173 = vector.extract_strided_slice %132 {offsets = [0, 64], sizes = [128, 64], strides = [1, 1]} : vector<128x128xf32> to vector<128x64xf32>
    %174 = arith.truncf %173 : vector<128x64xf32> to vector<128x64xbf16>
    %175 = vector.shape_cast %174 : vector<128x64xbf16> to vector<2x64x64xbf16>
    %176 = vector.extract_strided_slice %138 {offsets = [0, 64], sizes = [16, 64], strides = [1, 1]} : vector<16x128xf32> to vector<16x64xf32>
    %177 = arith.truncf %176 : vector<16x64xf32> to vector<16x64xbf16>
    %178 = vector.shape_cast %177 : vector<16x64xbf16> to vector<2x8x64xbf16>
    %179 = vector.extract_strided_slice %139 {offsets = [0, 64], sizes = [16, 64], strides = [1, 1]} : vector<16x128xf32> to vector<16x64xf32>
    %180 = arith.truncf %179 : vector<16x64xf32> to vector<16x64xbf16>
    %181 = vector.shape_cast %180 : vector<16x64xbf16> to vector<2x8x64xbf16>
    %cst_63 = arith.constant dense<0.000000e+00> : vector<2x64x8xf32>
    %182 = tpu.matmul %175, %178, %cst_63 {dimension_numbers = #tpu.dot_dimension_numbers<[2], [2], [1], [1], [0, 0, 0, 1, 1, 1], [0], [0]>} : vector<2x64x64xbf16>, vector<2x8x64xbf16>, vector<2x64x8xf32> -> vector<2x64x8xf32>
    %cst_64 = arith.constant 1.250000e-01 : f32
    %183 = vector.broadcast %cst_64 : f32 to vector<2x64x8xf32>
    %184 = arith.mulf %182, %183 : vector<2x64x8xf32>
    %cst_65 = arith.constant dense<0xFF800000> : vector<2x64xf32>
    %185 = vector.multi_reduction <maximumf>, %184, %cst_65 [2] : vector<2x64x8xf32> to vector<2x64xf32>
    %186 = vector.shape_cast %185 : vector<2x64xf32> to vector<2x64x1xf32>
    %187 = vector.broadcast %186 : vector<2x64x1xf32> to vector<2x64x8xf32>
    %188 = arith.subf %184, %187 : vector<2x64x8xf32>
    %189 = math.exp %188 : vector<2x64x8xf32>
    %cst_66 = arith.constant dense<0.000000e+00> : vector<2x64xf32>
    %190 = vector.multi_reduction <add>, %189, %cst_66 [2] : vector<2x64x8xf32> to vector<2x64xf32>
    %191 = vector.shape_cast %190 : vector<2x64xf32> to vector<2x64x1xf32>
    %192 = tpu.reciprocal %191 {approx = true} : vector<2x64x1xf32> -> vector<2x64x1xf32>
    %193 = vector.broadcast %192 : vector<2x64x1xf32> to vector<2x64x8xf32>
    %194 = arith.mulf %189, %193 : vector<2x64x8xf32>
    %195 = arith.truncf %194 : vector<2x64x8xf32> to vector<2x64x8xbf16>
    %cst_67 = arith.constant dense<0.000000e+00> : vector<2x64x64xf32>
    %196 = tpu.matmul %195, %181, %cst_67 {dimension_numbers = #tpu.dot_dimension_numbers<[2], [1], [1], [2], [0, 0, 0, 1, 1, 2], [0], [0]>} : vector<2x64x8xbf16>, vector<2x8x64xbf16>, vector<2x64x64xf32> -> vector<2x64x64xf32>
    %c0_68 = arith.constant 0 : index
    %c64_69 = arith.constant 64 : index
    %c896_70 = arith.constant 896 : index
    %197 = vector.load %arg13[%c0_68, %c64_69, %c896_70] : memref<1x128x2048xbf16, #tpu.memory_space<vmem>>, vector<1x64x128xbf16>
    %198 = vector.shape_cast %197 : vector<1x64x128xbf16> to vector<64x128xbf16>
    %199 = vector.shape_cast %196 : vector<2x64x64xf32> to vector<128x64xf32>
    %200 = arith.truncf %199 : vector<128x64xf32> to vector<128x64xbf16>
    %cst_71 = arith.constant dense<0.000000e+00> : vector<128x128xf32>
    %201 = tpu.matmul %200, %198, %cst_71 {dimension_numbers = #tpu.dot_dimension_numbers<[1], [0], [0], [1], [0, 0, 1, 1], [], []>} : vector<128x64xbf16>, vector<64x128xbf16>, vector<128x128xf32> -> vector<128x128xf32>
    %202 = arith.addf %172, %201 : vector<128x128xf32>
    %203 = vector.broadcast %141 : vector<1x128xf32> to vector<128x128xf32>
    %204 = arith.addf %202, %203 : vector<128x128xf32>
    %205 = arith.addf %102, %204 : vector<128x128xf32>
    %c0_72 = arith.constant 0 : index
    %c4 = arith.constant 4 : index
    %c0_73 = arith.constant 0 : index
    %206 = vector.load %arg11[%c0_72, %c4, %c0_73] : memref<1x9x128xf32, #tpu.memory_space<vmem>>, vector<1x1x128xf32>
    %207 = vector.shape_cast %206 : vector<1x1x128xf32> to vector<1x128xf32>
    %c0_74 = arith.constant 0 : index
    %c5 = arith.constant 5 : index
    %c0_75 = arith.constant 0 : index
    %208 = vector.load %arg11[%c0_74, %c5, %c0_75] : memref<1x9x128xf32, #tpu.memory_space<vmem>>, vector<1x1x128xf32>
    %209 = vector.shape_cast %208 : vector<1x1x128xf32> to vector<1x128xf32>
    %cst_76 = arith.constant dense<0.000000e+00> : vector<128xf32>
    %210 = vector.multi_reduction <add>, %205, %cst_76 [1] : vector<128x128xf32> to vector<128xf32>
    %211 = vector.shape_cast %210 : vector<128xf32> to vector<128x1xf32>
    %cst_77 = arith.constant 1.280000e+02 : f32
    %212 = vector.broadcast %cst_77 : f32 to vector<128x1xf32>
    %213 = arith.divf %211, %212 : vector<128x1xf32>
    %214 = vector.broadcast %213 : vector<128x1xf32> to vector<128x128xf32>
    %215 = arith.subf %205, %214 : vector<128x128xf32>
    %216 = arith.mulf %215, %215 : vector<128x128xf32>
    %cst_78 = arith.constant dense<0.000000e+00> : vector<128xf32>
    %217 = vector.multi_reduction <add>, %216, %cst_78 [1] : vector<128x128xf32> to vector<128xf32>
    %218 = vector.shape_cast %217 : vector<128xf32> to vector<128x1xf32>
    %cst_79 = arith.constant 1.280000e+02 : f32
    %219 = vector.broadcast %cst_79 : f32 to vector<128x1xf32>
    %220 = arith.divf %218, %219 : vector<128x1xf32>
    %221 = vector.broadcast %213 : vector<128x1xf32> to vector<128x128xf32>
    %222 = arith.subf %205, %221 : vector<128x128xf32>
    %cst_80 = arith.constant 9.99999974E-6 : f32
    %223 = vector.broadcast %cst_80 : f32 to vector<128x1xf32>
    %224 = arith.addf %220, %223 : vector<128x1xf32>
    %225 = math.rsqrt %224 : vector<128x1xf32>
    %226 = vector.broadcast %225 : vector<128x1xf32> to vector<128x128xf32>
    %227 = arith.mulf %222, %226 : vector<128x128xf32>
    %228 = vector.broadcast %207 : vector<1x128xf32> to vector<128x128xf32>
    %229 = arith.mulf %227, %228 : vector<128x128xf32>
    %230 = vector.broadcast %209 : vector<1x128xf32> to vector<128x128xf32>
    %231 = arith.addf %229, %230 : vector<128x128xf32>
    %232 = arith.truncf %231 : vector<128x128xf32> to vector<128x128xbf16>
    %c0_81 = arith.constant 0 : index
    %c0_82 = arith.constant 0 : index
    %c1536 = arith.constant 1536 : index
    %233 = vector.load %arg13[%c0_81, %c0_82, %c1536] : memref<1x128x2048xbf16, #tpu.memory_space<vmem>>, vector<1x128x512xbf16>
    %234 = vector.shape_cast %233 : vector<1x128x512xbf16> to vector<128x512xbf16>
    %cst_83 = arith.constant dense<0.000000e+00> : vector<128x512xf32>
    %235 = tpu.matmul %232, %234, %cst_83 {dimension_numbers = #tpu.dot_dimension_numbers<[1], [0], [0], [1], [0, 0, 1, 1], [], []>} : vector<128x128xbf16>, vector<128x512xbf16>, vector<128x512xf32> -> vector<128x512xf32>
    %c0_84 = arith.constant 0 : index
    %c0_85 = arith.constant 0 : index
    %c512_86 = arith.constant 512 : index
    %236 = vector.load %arg12[%c0_84, %c0_85, %c512_86] : memref<1x1x1024xf32, #tpu.memory_space<vmem>>, vector<1x1x512xf32>
    %237 = vector.shape_cast %236 : vector<1x1x512xf32> to vector<1x512xf32>
    %238 = vector.broadcast %237 : vector<1x512xf32> to vector<128x512xf32>
    %239 = arith.addf %235, %238 : vector<128x512xf32>
    %cst_87 = arith.constant 5.000000e-01 : f32
    %240 = vector.broadcast %cst_87 : f32 to vector<128x512xf32>
    %241 = arith.mulf %240, %239 : vector<128x512xf32>
    %cst_88 = arith.constant 4.471500e-02 : f32
    %242 = vector.broadcast %cst_88 : f32 to vector<128x512xf32>
    %243 = arith.mulf %242, %239 : vector<128x512xf32>
    %244 = arith.mulf %243, %239 : vector<128x512xf32>
    %245 = arith.mulf %244, %239 : vector<128x512xf32>
    %246 = arith.addf %239, %245 : vector<128x512xf32>
    %cst_89 = arith.constant 0.797884583 : f32
    %247 = vector.broadcast %cst_89 : f32 to vector<128x512xf32>
    %248 = arith.mulf %247, %246 : vector<128x512xf32>
    %249 = math.tanh %248 : vector<128x512xf32>
    %cst_90 = arith.constant 1.000000e+00 : f32
    %250 = vector.broadcast %cst_90 : f32 to vector<128x512xf32>
    %251 = arith.addf %250, %249 : vector<128x512xf32>
    %252 = arith.mulf %241, %251 : vector<128x512xf32>
    %253 = arith.truncf %252 : vector<128x512xf32> to vector<128x512xbf16>
    %c0_91 = arith.constant 0 : index
    %c0_92 = arith.constant 0 : index
    %c1024 = arith.constant 1024 : index
    %254 = vector.load %arg13[%c0_91, %c0_92, %c1024] : memref<1x128x2048xbf16, #tpu.memory_space<vmem>>, vector<1x128x512xbf16>
    %255 = vector.shape_cast %254 : vector<1x128x512xbf16> to vector<128x512xbf16>
    %cst_93 = arith.constant dense<0.000000e+00> : vector<128x512xf32>
    %256 = tpu.matmul %232, %255, %cst_93 {dimension_numbers = #tpu.dot_dimension_numbers<[1], [0], [0], [1], [0, 0, 1, 1], [], []>} : vector<128x128xbf16>, vector<128x512xbf16>, vector<128x512xf32> -> vector<128x512xf32>
    %c0_94 = arith.constant 0 : index
    %c0_95 = arith.constant 0 : index
    %c0_96 = arith.constant 0 : index
    %257 = vector.load %arg12[%c0_94, %c0_95, %c0_96] : memref<1x1x1024xf32, #tpu.memory_space<vmem>>, vector<1x1x512xf32>
    %258 = vector.shape_cast %257 : vector<1x1x512xf32> to vector<1x512xf32>
    %259 = vector.broadcast %258 : vector<1x512xf32> to vector<128x512xf32>
    %260 = arith.addf %256, %259 : vector<128x512xf32>
    %261 = arith.extf %253 : vector<128x512xbf16> to vector<128x512xf32>
    %262 = arith.mulf %260, %261 : vector<128x512xf32>
    %263 = arith.truncf %262 : vector<128x512xf32> to vector<128x512xbf16>
    %c0_97 = arith.constant 0 : index
    %c0_98 = arith.constant 0 : index
    %c0_99 = arith.constant 0 : index
    %264 = vector.load %arg14[%c0_97, %c0_98, %c0_99] : memref<1x512x128xbf16, #tpu.memory_space<vmem>>, vector<1x512x128xbf16>
    %265 = vector.shape_cast %264 : vector<1x512x128xbf16> to vector<512x128xbf16>
    %cst_100 = arith.constant dense<0.000000e+00> : vector<128x128xf32>
    %266 = tpu.matmul %263, %265, %cst_100 {dimension_numbers = #tpu.dot_dimension_numbers<[1], [0], [0], [1], [0, 0, 1, 1], [], []>} : vector<128x512xbf16>, vector<512x128xbf16>, vector<128x128xf32> -> vector<128x128xf32>
    %c0_101 = arith.constant 0 : index
    %c8 = arith.constant 8 : index
    %c0_102 = arith.constant 0 : index
    %267 = vector.load %arg11[%c0_101, %c8, %c0_102] : memref<1x9x128xf32, #tpu.memory_space<vmem>>, vector<1x1x128xf32>
    %268 = vector.shape_cast %267 : vector<1x1x128xf32> to vector<1x128xf32>
    %269 = vector.broadcast %268 : vector<1x128xf32> to vector<128x128xf32>
    %270 = arith.addf %266, %269 : vector<128x128xf32>
    %271 = arith.addf %205, %270 : vector<128x128xf32>
    %c0_103 = arith.constant 0 : index
    %c0_104 = arith.constant 0 : index
    %272 = vector.load %arg16[%c0_103, %c0_104] : memref<128x128xf32, #tpu.memory_space<vmem>>, vector<128x128xf32>
    tpu.vector_store %arg16[%c0_103, %c0_104], %271 {strides = array<i32>} : memref<128x128xf32, #tpu.memory_space<vmem>>, vector<128x128xf32>,
    %c1_i32 = arith.constant 1 : i32
    %273 = arith.cmpi eq, %arg1, %c1_i32 : i32
    %274 = arith.extui %273 : i1 to i32
    %c0_i32_105 = arith.constant 0 : i32
    %275 = arith.cmpi ne, %274, %c0_i32_105 : i32
    scf.if %275 {
      %276 = arith.truncf %271 : vector<128x128xf32> to vector<128x128xbf16>
      %c0_106 = arith.constant 0 : index
      %c0_107 = arith.constant 0 : index
      %277 = vector.load %arg9[%c0_106, %c0_107] : memref<128x128xbf16, #tpu.memory_space<vmem>>, vector<128x128xbf16>
      %cst_108 = arith.constant dense<0.000000e+00> : vector<128x128xf32>
      %278 = tpu.matmul %276, %277, %cst_108 {dimension_numbers = #tpu.dot_dimension_numbers<[1], [0], [0], [1], [0, 0, 1, 1], [], []>} : vector<128x128xbf16>, vector<128x128xbf16>, vector<128x128xf32> -> vector<128x128xf32>
      %c0_109 = arith.constant 0 : index
      %c0_110 = arith.constant 0 : index
      %279 = vector.load %arg10[%c0_109, %c0_110] : memref<1x128xf32, #tpu.memory_space<vmem>>, vector<1x128xf32>
      %280 = vector.broadcast %279 : vector<1x128xf32> to vector<128x128xf32>
      %281 = arith.addf %278, %280 : vector<128x128xf32>
      %282 = vector.shape_cast %281 : vector<128x128xf32> to vector<2x64x128xf32>
      %c0_111 = arith.constant 0 : index
      %c0_112 = arith.constant 0 : index
      %c0_113 = arith.constant 0 : index
      %283 = vector.load %arg2[%c0_111, %c0_112, %c0_113] : memref<2x64x128xf32, #tpu.memory_space<vmem>>, vector<2x64x128xf32>
      %284 = arith.addf %282, %283 : vector<2x64x128xf32>
      %c0_114 = arith.constant 0 : index
      %c0_115 = arith.constant 0 : index
      %c0_116 = arith.constant 0 : index
      %285 = vector.load %arg15[%c0_114, %c0_115, %c0_116] : memref<2x64x128xf32, #tpu.memory_space<vmem>>, vector<2x64x128xf32>
      tpu.vector_store %arg15[%c0_114, %c0_115, %c0_116], %284 {strides = array<i32>} : memref<2x64x128xf32, #tpu.memory_space<vmem>>, vector<2x64x128xf32>,
    } else {
    }
    return
  }
  func.func @transform_0(%arg0: i32, %arg1: i32) -> (i32, i32, i32) {
    %c0_i32 = arith.constant 0 : i32
    %c0_i32_0 = arith.constant 0 : i32
    %c0_i32_1 = arith.constant 0 : i32
    return %arg0, %c0_i32, %c0_i32_0 : i32, i32, i32
  }
  func.func @transform_1(%arg0: i32, %arg1: i32) -> (i32, i32, i32) {
    %c0_i32 = arith.constant 0 : i32
    %c0_i32_0 = arith.constant 0 : i32
    %c0_i32_1 = arith.constant 0 : i32
    return %arg0, %c0_i32, %c0_i32_0 : i32, i32, i32
  }
  func.func @transform_2(%arg0: i32, %arg1: i32) -> (i32, i32) {
    %c0_i32 = arith.constant 0 : i32
    %c0_i32_0 = arith.constant 0 : i32
    %c0_i32_1 = arith.constant 0 : i32
    return %c0_i32, %c0_i32_0 : i32, i32
  }
  func.func @transform_3(%arg0: i32, %arg1: i32) -> (i32, i32) {
    %c0_i32 = arith.constant 0 : i32
    %c0_i32_0 = arith.constant 0 : i32
    %c0_i32_1 = arith.constant 0 : i32
    return %c0_i32, %c0_i32_0 : i32, i32
  }
  func.func @transform_4(%arg0: i32, %arg1: i32) -> (i32, i32) {
    %c0_i32 = arith.constant 0 : i32
    %c0_i32_0 = arith.constant 0 : i32
    %c0_i32_1 = arith.constant 0 : i32
    return %c0_i32, %c0_i32_0 : i32, i32
  }
  func.func @transform_5(%arg0: i32, %arg1: i32) -> (i32, i32) {
    %c0_i32 = arith.constant 0 : i32
    %c0_i32_0 = arith.constant 0 : i32
    %c0_i32_1 = arith.constant 0 : i32
    return %c0_i32, %c0_i32_0 : i32, i32
  }
  func.func @transform_6(%arg0: i32, %arg1: i32) -> (i32, i32) {
    %c0_i32 = arith.constant 0 : i32
    %c0_i32_0 = arith.constant 0 : i32
    %c0_i32_1 = arith.constant 0 : i32
    return %c0_i32, %c0_i32_0 : i32, i32
  }
  func.func @transform_7(%arg0: i32, %arg1: i32) -> (i32, i32) {
    %c0_i32 = arith.constant 0 : i32
    %c0_i32_0 = arith.constant 0 : i32
    %c0_i32_1 = arith.constant 0 : i32
    return %c0_i32, %c0_i32_0 : i32, i32
  }
  func.func @transform_8(%arg0: i32, %arg1: i32) -> (i32, i32) {
    %c0_i32 = arith.constant 0 : i32
    %c0_i32_0 = arith.constant 0 : i32
    %c0_i32_1 = arith.constant 0 : i32
    return %c0_i32, %c0_i32_0 : i32, i32
  }
  func.func @transform_9(%arg0: i32, %arg1: i32) -> (i32, i32, i32) {
    %c0_i32 = arith.constant 0 : i32
    %c0_i32_0 = arith.constant 0 : i32
    %c0_i32_1 = arith.constant 0 : i32
    return %arg1, %c0_i32, %c0_i32_0 : i32, i32, i32
  }
  func.func @transform_10(%arg0: i32, %arg1: i32) -> (i32, i32, i32) {
    %c0_i32 = arith.constant 0 : i32
    %c0_i32_0 = arith.constant 0 : i32
    %c0_i32_1 = arith.constant 0 : i32
    return %arg1, %c0_i32, %c0_i32_0 : i32, i32, i32
  }
  func.func @transform_11(%arg0: i32, %arg1: i32) -> (i32, i32, i32) {
    %c0_i32 = arith.constant 0 : i32
    %c0_i32_0 = arith.constant 0 : i32
    %c0_i32_1 = arith.constant 0 : i32
    return %arg1, %c0_i32, %c0_i32_0 : i32, i32, i32
  }
  func.func @transform_12(%arg0: i32, %arg1: i32) -> (i32, i32, i32) {
    %c0_i32 = arith.constant 0 : i32
    %c0_i32_0 = arith.constant 0 : i32
    %c0_i32_1 = arith.constant 0 : i32
    return %arg1, %c0_i32, %c0_i32_0 : i32, i32, i32
  }
  func.func @transform_13(%arg0: i32, %arg1: i32) -> (i32, i32, i32) {
    %c0_i32 = arith.constant 0 : i32
    %c0_i32_0 = arith.constant 0 : i32
    %c0_i32_1 = arith.constant 0 : i32
    return %arg0, %c0_i32, %c0_i32_0 : i32, i32, i32
  }
}

</mosaic_0001>

<bundles_post_ra>
// kernel: _lambda_.1
= control target key start
LH: loop header
LB: loop body
LE: loop exit
PB: predicated region body
PF: predicated region fallthrough
CT: control target
= control target key end

     0   :  { %s13035_s0 = inlined_call_operand.vmem [shape: f32[2,64,128], index: 0, kind: input, shape index: {}]   ;;  %s13036_s1 = inlined_call_operand.vmem [shape: bf16[2,8,128], index: 1, kind: input, shape index: {}]   ;;  %s13037_s2 = inlined_call_operand.vmem [shape: f32[128,32], index: 2, kind: input, shape index: {}]   ;;  %s13038_s3 = inlined_call_operand.vmem [shape: f32[32,128], index: 3, kind: input, shape index: {}]   ;;  %s13039_s4 = inlined_call_operand.vmem [shape: f32[2,128], index: 4, kind: input, shape index: {}]   ;;  %s13040_s5 = inlined_call_operand.vmem [shape: bf16[128,128], index: 5, kind: input, shape index: {}]   ;;  %s13041_s6 = inlined_call_operand.vmem [shape: f32[1,128], index: 6, kind: input, shape index: {}]   ;;  %s13042_s7 = inlined_call_operand.vmem [shape: bf16[128,128], index: 7, kind: input, shape index: {}]   ;;  %s13043_s8 = inlined_call_operand.vmem [shape: f32[1,128], index: 8, kind: input, shape index: {}]   ;;  %s13044_s9 = inlined_call_operand.vmem [shape: f32[2,9,128], index: 9, kind: input, shape index: {}]   ;;  %s13045_s10 = inlined_call_operand.vmem [shape: f32[2,1,1024], index: 10, kind: input, shape index: {}]   ;;  %s13046_s11 = inlined_call_operand.vmem [shape: bf16[2,128,2048], index: 11, kind: input, shape index: {}]   ;;  %s13047_s12 = inlined_call_operand.vmem [shape: bf16[2,512,128], index: 12, kind: input, shape index: {}]   ;;  %s13048_s13 = inlined_call_operand.hbm [shape: f32[2,64,128], index: 13, kind: output, shape index: {}]  }
   0x1   :  { %13077 = sst [smem:[#allocation44_spill]] %s13048_s13 }
   0x2   :  { %18 = vsyncpa [#allocation4], 0  ;;  %s9357_s25 = smov 0   ;;  %s9359_s26 = smov 0  }
   0x3   :  { %s9361_s27 = smov 0  }
   0x4 LB: > { %13078 = sst [smem:[#allocation6_spill]] %s9275_s26  ;;  %s33_s29 = sadd.s32 1, %s9275_s26  ;;  %s9279_s27 = sphi %s9361_s27, %s24_s27   ;;  %s9275_s26 = sphi %s9359_s26, %s13188_s26   ;;  %s9271_s25 = sphi %s9357_s25, %s13187_s25  }
   0x5   : > { %13079 = sst [smem:[#allocation7_spill]] %s9279_s27  ;;  %p34_p0 = scmp.ge.s32.totalorder %s33_s29, 2 }
   0x6   : > { %p7614_p1 = scmp.ge.s32.totalorder %s9279_s27, 1  ;;  %p452_p2 = scmp.lt.s32.totalorder %s9279_s27, 3 }
   0x7   : > { %s13190_s29 = smov (%p34_p0, %s33_s29), 0 }
   0x8   : > { %13080 = sst [smem:[#allocation8_spill]] %s13190_s29  ;;  %p453_p3 = pnand %p7614_p1, %p452_p2 }
   0xa   : > { %456 = sbr.rel (%p453_p3) target bundleno = 5253 (0x1485), region = 72 }
   0xf   : > { %p529_p4 = scmp.lt.s32.totalorder %s9271_s25, 1  ;;  %p7622_p5 = scmp.ne.s32.totalorder %s9271_s25, 0 }
  0x11   : > { %s530_s30 = scalar_select %p529_p4, %s9271_s25, 1 }
  0x12   : > { %553 = sbr.rel (%p7622_p5) target bundleno = 822 (0x336), region = 76 }
  0x13   : > { %s8434_s14 = sshll.u32 %s530_s30, 4  ;;  %s7617_s15 = sshll.u32 %s530_s30, 3 }
  0x14   : > { %s9383_s18 = scalar_lea.vmem %s13044_s9, %s8434_s14  ;;  %s9388_s21 = scalar_lea.vmem %s13045_s10, %s7617_s15 }
  0x15   : > { %s8435_s22 = sshll.u32 %s530_s30, 10  ;;  %s8436_s23 = sshll.u32 %s530_s30, 8 }
  0x16   : > { %s9393_s29 = scalar_lea.vmem %s13046_s11, %s8435_s22  ;;  %s9398_s27 = scalar_lea.vmem %s13047_s12, %s8436_s23 }
  0x17   : > { %v9404_v0 = vld [vmem:[%s13037_s2 + $0x78] sm:$0xff]  ;;  %v9409_v1 = vld [vmem:[%s13037_s2 + $0x70] sm:$0xff]  ;;  %v9415_v2 = vld [vmem:[%s13037_s2 + $0x68] sm:$0xff]  ;;  %v9281_v6 = vmov 64.0   ;;  %vm623_vm1 = vcmask 1041409   ;;  %vm651_vm2 = vcmask 261120  }
  0x18   : > { %626 = vmatpush.msra.mxu2 %v9404_v0  ;;  %v9421_v3 = vld [vmem:[%s13037_s2 + $0x60] sm:$0xff]  ;;  %v9432_v5 = vld [vmem:[%s13035_s0 + $0x8] sm:$0xff]  ;;  %8709 = vrcp.f32 %v9281_v6  ;;  %v9437_v7 = vld [vmem:[%s13037_s2 + $0x58] sm:$0xff] }
  0x19   : > { %v9427_v4 = vld [vmem:[%s13035_s0] sm:$0xff]  ;;  %v9442_v8 = vld [vmem:[%s13035_s0 + $0x10] sm:$0xff]  ;;  %v9455_v11 = vld [vmem:[%s13035_s0 + $0x18] sm:$0xff] }
  0x1a   : > { %627 = vmatpush.msra.mxu2 %v9409_v1  ;;  %v570_v9 = vadd.f32 %v9432_v5, %v9427_v4  ;;  %v9450_v10 = vld [vmem:[%s13037_s2 + $0x50] sm:$0xff]  ;;  %v9460_v12 = vld [vmem:[%s13035_s0 + $0x40] sm:$0xff]  ;;  %v9465_v13 = vld [vmem:[%s13035_s0 + $0x48] sm:$0xff] }
  0x1b   : > { %v9470_v14 = vld [vmem:[%s13035_s0 + $0x50] sm:$0xff]  ;;  %v9477_v16 = vld [vmem:[%s13037_s2 + $0x48] sm:$0xff]  ;;  %v9482_v17 = vld [vmem:[%s13035_s0 + $0x20] sm:$0xff]  ;;  %v583_v18 = vadd.f32 %v9465_v13, %v9460_v12 }
  0x1c   : > { %628 = vmatpush.msra.mxu2 %v9415_v2  ;;  %v571_v15 = vadd.f32 %v570_v9, %v9442_v8  ;;  %v9489_v19 = vld [vmem:[%s13035_s0 + $0x28] sm:$0xff]  ;;  %v9494_v20 = vld [vmem:[%s13035_s0 + $0x58] sm:$0xff]  ;;  %v9508_v25 = vld [vmem:[%s13038_s3 + $0x10] sm:$0xff] }
  0x1d   : > { %v9500_v22 = vld [vmem:[%s13038_s3 + $0x18] sm:$0xff]  ;;  %v584_v24 = vadd.f32 %v583_v18, %v9470_v14  ;;  %v9513_v26 = vld [vmem:[%s13037_s2 + $0x40] sm:$0xff]  ;;  %v9525_v29 = vld [vmem:[%s13035_s0 + $0x30] sm:$0xff] }
  0x1e   : > { %629 = vmatpush.msra.mxu2 %v9421_v3  ;;  %v572_v21 = vadd.f32 %v571_v15, %v9455_v11  ;;  %v8710_v23 = vpop.eup %8709  ;;  %667 = vmatpush.msra.mxu1 %v9500_v22  ;;  %v9518_v27 = vld [vmem:[%s13035_s0 + $0x60] sm:$0xff]  ;;  %v612_v31 = vld [vmem:[%s13037_s2 + $0x38] sm:$0xff]  ;;  %v9535_v32 = vld [vmem:[%s13035_s0 + $0x68] sm:$0xff] }
  0x1f   : > { %v585_v30 = vadd.f32 %v584_v24, %v9494_v20  ;;  %v597_v34 = vmul.f32 64.0, %v8710_v23  ;;  %v9542_v35 = vld [vmem:[%s13035_s0 + $0x38] sm:$0xff]  ;;  %v611_v37 = vld [vmem:[%s13037_s2 + $0x30] sm:$0xff]  ;;  %v610_v41 = vld [vmem:[%s13037_s2 + $0x28] sm:$0xff]  ;;  %vm601_vm0 = vweird.f32 %v8710_v23 }
  0x20   : > { %630 = vmatpush.msra.mxu2 %v9437_v7  ;;  %v573_v28 = vadd.f32 %v572_v21, %v9482_v17  ;;  %668 = vmatpush.msra.mxu1 %v9508_v25  ;;  %v9551_v38 = vld [vmem:[%s13035_s0 + $0x70] sm:$0xff]  ;;  %v9561_v42 = vld [vmem:[%s13035_s0 + $0x78] sm:$0xff]  ;;  %v609_v46 = vld [vmem:[%s13037_s2 + $0x20] sm:$0xff] }
  0x21   : > { %v586_v36 = vadd.f32 %v585_v30, %v9518_v27  ;;  %v598_v44 = vsub.f32 1.0, %v597_v34  ;;  %v608_v49 = vld [vmem:[%s13037_s2 + $0x18] sm:$0xff]  ;;  %v607_v53 = vld [vmem:[%s13037_s2 + $0x10] sm:$0xff]  ;;  %v606_v56 = vld [vmem:[%s13037_s2 + $0x8] sm:$0xff] }
  0x22   : > { %631 = vmatpush.msra.mxu2 %v9450_v10  ;;  %v574_v33 = vadd.f32 %v573_v28, %v9489_v19  ;;  %v605_v60 = vld [vmem:[%s13037_s2] sm:$0xff] }
  0x23   : > { %v587_v40 = vadd.f32 %v586_v36, %v9535_v32  ;;  %v599_v51 = vmul.f32 %v8710_v23, %v598_v44 }
  0x24   : > { %632 = vmatpush.msra.mxu2 %v9477_v16  ;;  %v575_v39 = vadd.f32 %v574_v33, %v9525_v29 }
  0x25   : > { %v588_v45 = vadd.f32 %v587_v40, %v9551_v38  ;;  %v600_v58 = vadd.f32 %v8710_v23, %v599_v51 }
  0x26   : > { %633 = vmatpush.msra.mxu2 %v9513_v26  ;;  %v576_v43 = vadd.f32 %v575_v39, %v9542_v35 }
  0x27   : > { %v589_v48 = vadd.f32 %v588_v45, %v9561_v42  ;;  %v9581_v6 = vsel %vm601_vm0, %v8710_v23, %v600_v58 }
  0x28   : > { %634 = vmatpush.msra.mxu2 %v612_v31  ;;  %v577_v47 = vrot.slane %v576_v43, 4 }
  0x29   : > { %v590_v52 = vrot.slane %v589_v48, 4 }
  0x2a   : > { %635 = vmatpush.msra.mxu2 %v611_v37  ;;  %v578_v50 = vadd.f32 %v577_v47, %v576_v43 }
  0x2b   : > { %v591_v55 = vadd.f32 %v590_v52, %v589_v48 }
  0x2c   : > { %636 = vmatpush.msra.mxu2 %v610_v41  ;;  %v579_v54 = vrot.slane %v578_v50, 2 }
  0x2d   : > { %v592_v59 = vrot.slane %v591_v55, 2 }
  0x2e   : > { %637 = vmatpush.msra.mxu2 %v609_v46  ;;  %v580_v57 = vadd.f32 %v579_v54, %v578_v50 }
  0x2f   : > { %v593_v62 = vadd.f32 %v592_v59, %v591_v55 }
  0x30   : > { %638 = vmatpush.msra.mxu2 %v608_v49  ;;  %v581_v61 = vrot.slane %v580_v57, 1 }
  0x31   : > { %v594_v9 = vrot.slane %v593_v62, 1 }
  0x32   : > { %639 = vmatpush.msra.mxu2 %v607_v53  ;;  %v582_v63 = vadd.f32 %v581_v61, %v580_v57 }
  0x33   : > { %v595_v15 = vadd.f32 %v594_v9, %v593_v62 }
  0x34   : > { %640 = vmatpush.msra.mxu2 %v606_v56  ;;  %v603_v18 = vmul.f32 %v9581_v6, %v582_v63 }
  0x35   : > { %v604_v21 = vmul.f32 %v9581_v6, %v595_v15 }
  0x36   : > { %641 = vmatpush.msra.mxu2 %v605_v60 }
  0x37   : > { %v624_v24 = vsel %vm623_vm1, %v604_v21, %v603_v18 }
  0x38   : > { %745 = vmatpush.msrb.mxu2 %v9404_v0  ;;  %v648_v0 = vld [vmem:[%s13038_s3 + $0x8] sm:$0xff] }
  0x39   : > { %642 = vmatmul.f32.vlgmr.msra.gmra.mxu2 %v624_v24  ;;  %669 = vmatpush.msra.mxu1 %v648_v0 }
  0x3a   : > { %746 = vmatpush.msrb.mxu2 %v9409_v1  ;;  %v647_v1 = vld [vmem:[%s13038_s3] sm:$0xff] }
  0x3b   : > { %670 = vmatpush.msra.mxu1 %v647_v1 }
  0x3c   : > { %747 = vmatpush.msrb.mxu2 %v9415_v2 }
  0x3d   : > { %781 = vmatpush.msrb.mxu1 %v9500_v22 }
  0x3e   : > { %748 = vmatpush.msrb.mxu2 %v9421_v3 }
  0x3f   : > { %782 = vmatpush.msrb.mxu1 %v9508_v25 }
  0x40   : > { %749 = vmatpush.msrb.mxu2 %v9437_v7 }
  0x41   : > { %783 = vmatpush.msrb.mxu1 %v648_v0 }
  0x42   : > { %750 = vmatpush.msrb.mxu2 %v9450_v10 }
  0x43   : > { %784 = vmatpush.msrb.mxu1 %v647_v1 }
  0x44   : > { %751 = vmatpush.msrb.mxu2 %v9477_v16 }
  0x46   : > { %752 = vmatpush.msrb.mxu2 %v9513_v26 }
  0x48   : > { %753 = vmatpush.msrb.mxu2 %v612_v31 }
  0x4a   : > { %754 = vmatpush.msrb.mxu2 %v611_v37 }
  0x4c   : > { %755 = vmatpush.msrb.mxu2 %v610_v41 }
  0x4e   : > { %756 = vmatpush.msrb.mxu2 %v609_v46 }
  0x50   : > { %757 = vmatpush.msrb.mxu2 %v608_v49 }
  0x52   : > { %758 = vmatpush.msrb.mxu2 %v607_v53 }
  0x54   : > { %759 = vmatpush.msrb.mxu2 %v606_v56 }
  0x56   : > { %760 = vmatpush.msrb.mxu2 %v605_v60 }
  0xbc   : > { %v643_v2 = vpop.f32.mrf.mxu2 }
  0xbd   : > { %v646_v3 = vmul.f32 0.25, %v643_v2 }
  0xbf   : > { %7623 = vmatmul.msk.f32.vlgmr.msra.gmra.mxu1 %vm651_vm2, %v646_v3 }
 0x13c   : > { %v672_v7 = vpop.f32.mrf.mxu1 }
 0x13d   : > { %v676_v10 = vrot.slane %v672_v7, 1  ;;  %v677_v16 = vperm.slane %v672_v7, 0 }
 0x13f   : > { %v678_v23 = vperm.slane %v676_v10, 0  ;;  %v9604_v26 = vsub.f32 %v9427_v4, %v677_v16  ;;  %v9607_v28 = vsub.f32 %v9432_v5, %v677_v16  ;;  %v9616_v30 = vsub.f32 %v9442_v8, %v677_v16 }
 0x140   : > { %v9626_v5 = vsub.f32 %v9455_v11, %v677_v16  ;;  %v9646_v39 = vsub.f32 %v9489_v19, %v677_v16  ;;  %v9656_v44 = vsub.f32 %v9525_v29, %v677_v16  ;;  %v9666_v48 = vsub.f32 %v9542_v35, %v677_v16 }
 0x141   : > { %v9610_v22 = vsub.f32 %v9460_v12, %v678_v23  ;;  %v9613_v25 = vsub.f32 %v9465_v13, %v678_v23  ;;  %v9619_v31 = vsub.f32 %v9470_v14, %v678_v23  ;;  %v697_v33 = vmul.f32 %v9604_v26, %v9604_v26 }
 0x142   : > { %v698_v4 = vmul.f32 %v9607_v28, %v9607_v28  ;;  %v9629_v12 = vsub.f32 %v9494_v20, %v678_v23  ;;  %v9636_v14 = vsub.f32 %v9482_v17, %v677_v16  ;;  %v9639_v34 = vsub.f32 %v9518_v27, %v678_v23 }
 0x143   : > { %v705_v13 = vmul.f32 %v9610_v22, %v9610_v22  ;;  %v706_v8 = vmul.f32 %v9613_v25, %v9613_v25  ;;  %v699_v36 = vmul.f32 %v9616_v30, %v9616_v30  ;;  %v707_v11 = vmul.f32 %v9619_v31, %v9619_v31 }
 0x144   : > { %v713_v20 = vadd.f32 %v698_v4, %v697_v33  ;;  %v9649_v40 = vsub.f32 %v9535_v32, %v678_v23  ;;  %v700_v17 = vmul.f32 %v9626_v5, %v9626_v5  ;;  %v708_v27 = vmul.f32 %v9629_v12, %v9629_v12  ;;  %v8444_v33 = vld [vmem:[%s13040_s5 + $0x38] sm:$0xff]  ;;  %v8443_v4 = vld [vmem:[%s13040_s5 + $0x30] sm:$0xff] }
 0x145   : > { %v726_v37 = vadd.f32 %v706_v8, %v705_v13  ;;  %v9659_v45 = vsub.f32 %v9551_v38, %v678_v23  ;;  %v701_v19 = vmul.f32 %v9636_v14, %v9636_v14  ;;  %v709_v32 = vmul.f32 %v9639_v34, %v9639_v34  ;;  %948 = vmatpush.bf16.msra.mxu0 %v8444_v33  ;;  %v8441_v13 = vld [vmem:[%s13040_s5 + $0x20] sm:$0xff]  ;;  %v8440_v8 = vld [vmem:[%s13040_s5 + $0x18] sm:$0xff] }
 0x146   : > { %v714_v41 = vadd.f32 %v713_v20, %v699_v36  ;;  %v9669_v49 = vsub.f32 %v9561_v42, %v678_v23  ;;  %v702_v29 = vmul.f32 %v9646_v39, %v9646_v39  ;;  %v710_v38 = vmul.f32 %v9649_v40, %v9649_v40  ;;  %8614 = vmatpush.bf16.msra.mxu1 %v8444_v33  ;;  %v8439_v36 = vld [vmem:[%s13040_s5 + $0x10] sm:$0xff]  ;;  %v8437_v20 = vld [vmem:[%s13040_s5] sm:$0xff] }
 0x147   : > { %v727_v43 = vadd.f32 %v726_v37, %v707_v11  ;;  %v703_v52 = vmul.f32 %v9656_v44, %v9656_v44  ;;  %v711_v53 = vmul.f32 %v9659_v45, %v9659_v45  ;;  %v704_v42 = vmul.f32 %v9666_v48, %v9666_v48  ;;  %8615 = vmatpush.bf16.msra.mxu3 %v8444_v33  ;;  %v8438_v11 = vld [vmem:[%s13040_s5 + $0x8] sm:$0xff] }
 0x148   : > { %v715_v46 = vadd.f32 %v714_v41, %v700_v17  ;;  %v712_v55 = vmul.f32 %v9669_v49, %v9669_v49 }
 0x149   : > { %v728_v47 = vadd.f32 %v727_v43, %v708_v27  ;;  %949 = vmatpush.bf16.msra.mxu0 %v8443_v4 }
 0x14a   : > { %v716_v50 = vadd.f32 %v715_v46, %v701_v19  ;;  %8616 = vmatpush.bf16.msra.mxu1 %v8443_v4 }
 0x14b   : > { %v729_v51 = vadd.f32 %v728_v47, %v709_v32  ;;  %8617 = vmatpush.bf16.msra.mxu3 %v8443_v4 }
 0x14c   : > { %v717_v54 = vadd.f32 %v716_v50, %v702_v29 }
 0x14d   : > { %v730_v35 = vadd.f32 %v729_v51, %v710_v38 }
 0x14e   : > { %v718_v56 = vadd.f32 %v717_v54, %v703_v52 }
 0x14f   : > { %v731_v57 = vadd.f32 %v730_v35, %v711_v53 }
 0x150   : > { %v719_v58 = vadd.f32 %v718_v56, %v704_v42 }
 0x151   : > { %v732_v59 = vadd.f32 %v731_v57, %v712_v55  ;;  %v8706_v55 = vld [vmem:[%s13039_s4] ss:$0 sm:$0xff] }
 0x152   : > { %v720_v60 = vrot.slane %v719_v58, 4 }
 0x153   : > { %v733_v61 = vrot.slane %v732_v59, 4 }
 0x154   : > { %v721_v62 = vadd.f32 %v720_v60, %v719_v58  ;;  %v8707_v60 = vld [vmem:[%s13039_s4 + $0x1] ss:$0 sm:$0xff] }
 0x155   : > { %v734_v63 = vadd.f32 %v733_v61, %v732_v59 }
 0x156   : > { %v722_v9 = vrot.slane %v721_v62, 2 }
 0x157   : > { %v735_v15 = vrot.slane %v734_v63, 2 }
 0x158   : > { %v723_v18 = vadd.f32 %v722_v9, %v721_v62 }
 0x159   : > { %v736_v21 = vadd.f32 %v735_v15, %v734_v63 }
 0x15a   : > { %v724_v24 = vrot.slane %v723_v18, 1 }
 0x15b   : > { %v737_v0 = vrot.slane %v736_v21, 1 }
 0x15c   : > { %v725_v1 = vadd.f32 %v724_v24, %v723_v18 }
 0x15d   : > { %v738_v2 = vadd.f32 %v737_v0, %v736_v21 }
 0x15e   : > { %v739_v3 = vmul.f32 %v725_v1, %v9581_v6 }
 0x15f   : > { %v740_v7 = vmul.f32 %v738_v2, %v9581_v6  ;;  %v8442_v6 = vld [vmem:[%s13040_s5 + $0x28] sm:$0xff] }
 0x160   : > { %950 = vmatpush.bf16.msra.mxu0 %v8442_v6  ;;  %8618 = vmatpush.bf16.msra.mxu1 %v8442_v6 }
 0x161   : > { %v743_v10 = vsel %vm623_vm1, %v740_v7, %v739_v3  ;;  %8619 = vmatpush.bf16.msra.mxu3 %v8442_v6 }
 0x162   : > { %761 = vmatmul.f32.vlgmr.msrb.gmra.mxu2 %v743_v10 }
 0x164   : > { %951 = vmatpush.bf16.msra.mxu0 %v8441_v13  ;;  %8620 = vmatpush.bf16.msra.mxu1 %v8441_v13 }
 0x165   : > { %8621 = vmatpush.bf16.msra.mxu3 %v8441_v13 }
 0x168   : > { %952 = vmatpush.bf16.msra.mxu0 %v8440_v8  ;;  %8622 = vmatpush.bf16.msra.mxu1 %v8440_v8 }
 0x169   : > { %8623 = vmatpush.bf16.msra.mxu3 %v8440_v8 }
 0x16c   : > { %953 = vmatpush.bf16.msra.mxu0 %v8439_v36  ;;  %8624 = vmatpush.bf16.msra.mxu1 %v8439_v36 }
 0x16d   : > { %8625 = vmatpush.bf16.msra.mxu3 %v8439_v36 }
 0x170   : > { %954 = vmatpush.bf16.msra.mxu0 %v8438_v11  ;;  %8626 = vmatpush.bf16.msra.mxu1 %v8438_v11 }
 0x171   : > { %8627 = vmatpush.bf16.msra.mxu3 %v8438_v11 }
 0x174   : > { %955 = vmatpush.bf16.msra.mxu0 %v8437_v20  ;;  %8628 = vmatpush.bf16.msra.mxu1 %v8437_v20 }
 0x175   : > { %8629 = vmatpush.bf16.msra.mxu3 %v8437_v20 }
 0x1e5   : > { %v762_v16 = vpop.f32.mrf.mxu2 }
 0x1e6   : > { %v765_v23 = vmul.f32 0.25, %v762_v16 }
 0x1e8   : > { %7624 = vmatmul.msk.f32.vlgmr.msrb.gmra.mxu1 %vm651_vm2, %v765_v23 }
 0x265   : > { %v786_v37 = vpop.f32.mrf.mxu1 }
 0x266   : > { %v790_v17 = vrot.slane %v786_v37, 1  ;;  %v792_v27 = vadd.f32 1e-06, %v786_v37 }
 0x268   : > { %v793_v41 = vadd.f32 1e-06, %v790_v17  ;;  %8711 = vrsqrt.f32 %v792_v27  ;;  %vm800_vm4 = vweird.f32 %v792_v27 }
 0x26a   : > { %8713 = vrsqrt.f32 %v793_v41  ;;  %vm810_vm7 = vweird.f32 %v793_v41 }
 0x26e   : > { %v8712_v43 = vpop.eup %8711 }
 0x26f   : > { %v795_v19 = vmul.f32 %v8712_v43, %v792_v27  ;;  %vm801_vm3 = vweird.f32 %v8712_v43 }
 0x270   : > { %v8714_v32 = vpop.eup %8713  ;;  %vm802_vm6 = vmor %vm800_vm4, %vm801_vm3 }
 0x271   : > { %v796_v46 = vmul.f32 %v8712_v43, %v795_v19  ;;  %v805_v47 = vmul.f32 %v8714_v32, %v793_v41  ;;  %vm811_vm5 = vweird.f32 %v8714_v32 }
 0x272   : > { %vm812_vm8 = vmor %vm810_vm7, %vm811_vm5 }
 0x273   : > { %v797_v29 = vmul.f32 0.5, %v796_v46  ;;  %v806_v38 = vmul.f32 %v8714_v32, %v805_v47 }
 0x275   : > { %v798_v50 = vsub.f32 1.5, %v797_v29  ;;  %v807_v51 = vmul.f32 0.5, %v806_v38 }
 0x277   : > { %v799_v52 = vmul.f32 %v8712_v43, %v798_v50  ;;  %v808_v53 = vsub.f32 1.5, %v807_v51 }
 0x279   : > { %v803_v54 = vsel %vm802_vm6, %v8712_v43, %v799_v52  ;;  %v809_v35 = vmul.f32 %v8714_v32, %v808_v53 }
 0x27a   : > { %v816_v42 = vperm.slane %v803_v54, 0 }
 0x27b   : > { %v813_v56 = vsel %vm812_vm8, %v8714_v32, %v809_v35 }
 0x27c   : > { %v817_v57 = vperm.slane %v813_v56, 0  ;;  %v820_v58 = vmul.f32 %v816_v42, %v9604_v26  ;;  %v821_v59 = vmul.f32 %v816_v42, %v9607_v28  ;;  %v826_v61 = vmul.f32 %v816_v42, %v9656_v44 }
 0x27d   : > { %v827_v62 = vmul.f32 %v816_v42, %v9666_v48  ;;  %v822_v23 = vmul.f32 %v816_v42, %v9616_v30 }
 0x27e   : > { %v838_v63 = vmul.f32 %v8706_v55, %v820_v58  ;;  %v839_v9 = vmul.f32 %v8706_v55, %v821_v59  ;;  %v844_v15 = vmul.f32 %v8706_v55, %v826_v61  ;;  %v830_v18 = vmul.f32 %v817_v57, %v9619_v31 }
 0x27f   : > { %v845_v21 = vmul.f32 %v8706_v55, %v827_v62  ;;  %v831_v24 = vmul.f32 %v817_v57, %v9629_v12  ;;  %v823_v31 = vmul.f32 %v816_v42, %v9626_v5  ;;  %v828_v12 = vmul.f32 %v817_v57, %v9610_v22 }
 0x280   : > { %v856_v0 = vadd.f32 %v8707_v60, %v838_v63  ;;  %v857_v26 = vadd.f32 %v8707_v60, %v839_v9  ;;  %v862_v1 = vadd.f32 %v8707_v60, %v844_v15  ;;  %v848_v28 = vmul.f32 %v8706_v55, %v830_v18 }
 0x281   : > { %v863_v2 = vadd.f32 %v8707_v60, %v845_v21  ;;  %v849_v3 = vmul.f32 %v8706_v55, %v831_v24  ;;  %v829_v33 = vmul.f32 %v817_v57, %v9613_v25  ;;  %v832_v4 = vmul.f32 %v817_v57, %v9639_v34 }
 0x282   : > { %v872_v7 = vpack.c.bf16 %v857_v26, %v856_v0  ;;  %v866_v10 = vadd.f32 %v8707_v60, %v848_v28  ;;  %v833_v6 = vmul.f32 %v817_v57, %v9649_v40  ;;  %v840_v13 = vmul.f32 %v8706_v55, %v822_v23 }
 0x283   : > { %v875_v16 = vpack.c.bf16 %v863_v2, %v862_v1  ;;  %v867_v44 = vadd.f32 %v8707_v60, %v849_v3  ;;  %v841_v8 = vmul.f32 %v8706_v55, %v823_v31  ;;  %v846_v36 = vmul.f32 %v8706_v55, %v828_v12 }
 0x284   : > { %956 = vmatmul.bf16.vlgmr.msra.gmra.mxu0 %v872_v7  ;;  %v847_v11 = vmul.f32 %v8706_v55, %v829_v33  ;;  %v850_v20 = vmul.f32 %v8706_v55, %v832_v4  ;;  %v851_v37 = vmul.f32 %v8706_v55, %v833_v6  ;;  %v858_v17 = vadd.f32 %v8707_v60, %v840_v13 }
 0x285   : > { %971 = vmatmul.bf16.vlgmr.msra.gmra.mxu1 %v875_v16  ;;  %v877_v48 = vpack.c.bf16 %v867_v44, %v866_v10  ;;  %v859_v27 = vadd.f32 %v8707_v60, %v841_v8  ;;  %v864_v30 = vadd.f32 %v8707_v60, %v846_v36  ;;  %v824_v34 = vmul.f32 %v816_v42, %v9636_v14  ;;  %v8708_v14 = vld [vmem:[%s13041_s6] ss:$0 sm:$0xff] }
 0x286   : > { %v865_v41 = vadd.f32 %v8707_v60, %v847_v11  ;;  %v868_v5 = vadd.f32 %v8707_v60, %v850_v20  ;;  %v869_v43 = vadd.f32 %v8707_v60, %v851_v37  ;;  %v825_v40 = vmul.f32 %v816_v42, %v9646_v39 }
 0x287   : > { %981 = vmatmul.bf16.vlgmr.msra.gmra.mxu3 %v877_v48  ;;  %v873_v19 = vpack.c.bf16 %v859_v27, %v858_v17  ;;  %v834_v32 = vmul.f32 %v817_v57, %v9659_v45  ;;  %v835_v46 = vmul.f32 %v817_v57, %v9669_v49  ;;  %v842_v47 = vmul.f32 %v8706_v55, %v824_v34 }
 0x288   : > { %v876_v22 = vpack.c.bf16 %v865_v41, %v864_v30  ;;  %v878_v25 = vpack.c.bf16 %v869_v43, %v868_v5  ;;  %v843_v29 = vmul.f32 %v8706_v55, %v825_v40 }
 0x289   : > { %v852_v38 = vmul.f32 %v8706_v55, %v834_v32  ;;  %v853_v50 = vmul.f32 %v8706_v55, %v835_v46  ;;  %v860_v51 = vadd.f32 %v8707_v60, %v842_v47 }
 0x28a   : > { %v861_v52 = vadd.f32 %v8707_v60, %v843_v29 }
 0x28b   : > { %v870_v53 = vadd.f32 %v8707_v60, %v852_v38  ;;  %v871_v54 = vadd.f32 %v8707_v60, %v853_v50 }
 0x28c   : > { %v874_v35 = vpack.c.bf16 %v861_v52, %v860_v51 }
 0x28d   : > { %v879_v56 = vpack.c.bf16 %v871_v54, %v870_v53 }
 0x294   : > { %961 = vmatmul.bf16.gmra.mxu0 %v873_v19 }
 0x295   : > { %976 = vmatmul.bf16.gmra.mxu1 %v876_v22 }
 0x297   : > { %986 = vmatmul.bf16.gmra.mxu3 %v878_v25 }
 0x2a4   : > { %966 = vmatmul.bf16.gmra.mxu0 %v874_v35 }
 0x2a7   : > { %991 = vmatmul.bf16.gmra.mxu3 %v879_v56 }
 0x301   : > { %v957_v39 = vpop.f32.mrf.mxu0 }
 0x302   : > { %v958_v45 = vadd.f32 %v8708_v14, %v957_v39  ;;  %v972_v42 = vpop.f32.mrf.mxu1 }
 0x303   : > { %v973_v49 = vadd.f32 %v8708_v14, %v972_v42 }
 0x304   : > { %997 = vst [vmem:[#allocation2 + $0x30] sm:$0xff] %v958_v45 }
 0x305   : > { %1003 = vst [vmem:[#allocation2 + $0x8] sm:$0xff] %v973_v49 }
 0x309   : > { %v959_v57 = vpop.f32.mrf.mxu0 }
 0x30a   : > { %v960_v55 = vadd.f32 %v8708_v14, %v959_v57  ;;  %v974_v58 = vpop.f32.mrf.mxu1  ;;  %v982_v59 = vpop.f32.mrf.mxu3 }
 0x30b   : > { %v975_v61 = vadd.f32 %v8708_v14, %v974_v58  ;;  %v983_v60 = vadd.f32 %v8708_v14, %v982_v59 }
 0x30c   : > { %998 = vst [vmem:[#allocation2] sm:$0xff] %v960_v55 }
 0x30d   : > { %1004 = vst [vmem:[#allocation2 + $0x48] sm:$0xff] %v975_v61 }
 0x30e   : > { %1007 = vst [vmem:[#allocation2 + $0x10] sm:$0xff] %v983_v60 }
 0x311   : > { %v962_v62 = vpop.f32.mrf.mxu0 }
 0x312   : > { %v963_v63 = vadd.f32 %v8708_v14, %v962_v62  ;;  %v977_v9 = vpop.f32.mrf.mxu1  ;;  %v984_v15 = vpop.f32.mrf.mxu3 }
 0x313   : > { %v978_v18 = vadd.f32 %v8708_v14, %v977_v9  ;;  %v985_v21 = vadd.f32 %v8708_v14, %v984_v15 }
 0x314   : > { %999 = vst [vmem:[#allocation2 + $0x58] sm:$0xff] %v963_v63 }
 0x315   : > { %1005 = vst [vmem:[#allocation2 + $0x40] sm:$0xff] %v978_v18 }
 0x316   : > { %1008 = vst [vmem:[#allocation2 + $0x38] sm:$0xff] %v985_v21 }
 0x319   : > { %v964_v24 = vpop.f32.mrf.mxu0 }
 0x31a   : > { %v965_v0 = vadd.f32 %v8708_v14, %v964_v24  ;;  %v979_v26 = vpop.f32.mrf.mxu1  ;;  %v987_v1 = vpop.f32.mrf.mxu3 }
 0x31b   : > { %v980_v28 = vadd.f32 %v8708_v14, %v979_v26  ;;  %v988_v2 = vadd.f32 %v8708_v14, %v987_v1 }
 0x31c   : > { %1000 = vst [vmem:[#allocation2 + $0x18] sm:$0xff] %v965_v0 }
 0x31d   : > { %1006 = vst [vmem:[#allocation2 + $0x20] sm:$0xff] %v980_v28 }
 0x31e   : > { %1009 = vst [vmem:[#allocation2 + $0x60] sm:$0xff] %v988_v2 }
 0x321   : > { %v967_v3 = vpop.f32.mrf.mxu0 }
 0x322   : > { %v968_v7 = vadd.f32 %v8708_v14, %v967_v3  ;;  %v989_v10 = vpop.f32.mrf.mxu3 }
 0x323   : > { %v990_v16 = vadd.f32 %v8708_v14, %v989_v10 }
 0x324   : > { %1001 = vst [vmem:[#allocation2 + $0x50] sm:$0xff] %v968_v7 }
 0x325   : > { %1010 = vst [vmem:[#allocation2 + $0x70] sm:$0xff] %v990_v16 }
 0x329   : > { %v969_v44 = vpop.f32.mrf.mxu0 }
 0x32a   : > { %v970_v48 = vadd.f32 %v8708_v14, %v969_v44  ;;  %v992_v23 = vpop.f32.mrf.mxu3 }
 0x32b   : > { %v993_v31 = vadd.f32 %v8708_v14, %v992_v23 }
 0x32c   : > { %1002 = vst [vmem:[#allocation2 + $0x68] sm:$0xff] %v970_v48 }
 0x32d   : > { %1011 = vst [vmem:[#allocation2 + $0x78] sm:$0xff] %v993_v31 }
 0x332   : > { %v994_v12 = vpop.f32.mrf.mxu3 }
 0x333   : > { %v995_v33 = vadd.f32 %v8708_v14, %v994_v12 }
 0x335   : > { %1012 = vst [vmem:[#allocation2 + $0x28] sm:$0xff] %v995_v33 }
 0x336 PF: > { %v1015_v4 = vld [vmem:[#allocation2 + $0x58] sm:$0xff]  ;;  %v1013_v6 = vld [vmem:[#allocation2 + $0x30] sm:$0xff]  ;;  %v1014_v36 = vld [vmem:[#allocation2] sm:$0xff]  ;;  %v9282_v37 = vmov 128.0   ;;  %s9283_s30 = smov 64   ;;  %p8397_p6 = scmp.ne.s32.totalorder %s9271_s25, 1 }
 0x337   : > { %1035 = vadd.xlane.f32.xlu1 %v1015_v4  ;;  %1031 = vadd.xlane.f32.xlu0 %v1013_v6  ;;  %v1017_v13 = vld [vmem:[#allocation2 + $0x50] sm:$0xff]  ;;  %v1016_v8 = vld [vmem:[#allocation2 + $0x18] sm:$0xff]  ;;  %v1018_v11 = vld [vmem:[#allocation2 + $0x68] sm:$0xff]  ;;  %8724 = vrcp.f32 %v9282_v37 }
 0x338   : > { %1039 = vadd.xlane.f32.xlu2 %v1017_v13  ;;  %v1019_v20 = vld [vmem:[#allocation2 + $0x8] sm:$0xff]  ;;  %v9765_v57 = vld [vmem:[#allocation2 + $0x40] sm:$0xff]  ;;  %v9775_v62 = vld [vmem:[#allocation2 + $0x38] sm:$0xff] }
 0x339   : > { %v9751_v54 = vld [vmem:[#allocation2 + $0x48] sm:$0xff]  ;;  %v9777_v63 = vld [vmem:[#allocation2 + $0x20] sm:$0xff]  ;;  %v9787_v21 = vld [vmem:[#allocation2 + $0x10] sm:$0xff] }
 0x33a   : > { %v9785_v18 = vld [vmem:[#allocation2 + $0x60] sm:$0xff]  ;;  %v9791_v24 = vld [vmem:[#allocation2 + $0x70] sm:$0xff]  ;;  %v9794_v0 = vld [vmem:[#allocation2 + $0x78] sm:$0xff] }
 0x33b   : > { %v7743_v26 = vld [vmem:[%s9393_s29 + $0x380] sm:$0xf]  ;;  %v8466_v44 = vld [vmem:[%s9393_s29 + $0x384] sm:$0xf] }
 0x33c   : > { %v8467_v1 = vld [vmem:[%s9393_s29 + $0x3bc] sm:$0xf0]  ;;  %v7745_v23 = vld [vmem:[%s9393_s29 + $0x3c0] sm:$0xf0] }
 0x33d   : > { %v8725_v17 = vpop.eup %8724  ;;  %v7744_v28 = vor.u32 %v8467_v1, %v7743_v26  ;;  %v7731_v2 = vld [vmem:[%s9393_s29 + $0x300] sm:$0xf]  ;;  %v7748_v31 = vor.u32 %v8466_v44, %v7745_v23  ;;  %v7673_v26 = vld [vmem:[%s9393_s29 + $0xc0] sm:$0xf0] }
 0x33e   : > { %v1064_v27 = vmul.f32 128.0, %v8725_v17  ;;  %vm1068_vm9 = vweird.f32 %v8725_v17  ;;  %v8464_v3 = vld [vmem:[%s9393_s29 + $0x33c] sm:$0xf0] }
 0x33f   : > { %1037 = vadd.xlane.f32.xlu1 %v1016_v8  ;;  %1033 = vadd.xlane.f32.xlu0 %v1014_v36  ;;  %v7732_v7 = vor.u32 %v8464_v3, %v7731_v2  ;;  %v7719_v10 = vld [vmem:[%s9393_s29 + $0x280] sm:$0xf] }
 0x340   : > { %1041 = vadd.xlane.f32.xlu2 %v1018_v11  ;;  %v1065_v30 = vsub.f32 1.0, %v1064_v27  ;;  %1560 = vmatpush.bf16.msra.mxu0 %v7744_v28  ;;  %v8461_v16 = vld [vmem:[%s9393_s29 + $0x2bc] sm:$0xf0] }
 0x341   : > { %v7720_v48 = vor.u32 %v8461_v16, %v7719_v10  ;;  %8630 = vmatpush.bf16.msra.mxu1 %v7748_v31  ;;  %v7707_v12 = vld [vmem:[%s9393_s29 + $0x200] sm:$0xf] }
 0x342   : > { %v1066_v41 = vmul.f32 %v8725_v17, %v1065_v30  ;;  %v8458_v33 = vld [vmem:[%s9393_s29 + $0x23c] sm:$0xf0] }
 0x343   : > { %v7683_v30 = vld [vmem:[%s9393_s29 + $0x100] sm:$0xf] }
 0x344   : > { %v1067_v5 = vadd.f32 %v8725_v17, %v1066_v41  ;;  %1561 = vmatpush.bf16.msra.mxu0 %v7732_v7  ;;  %v8452_v41 = vld [vmem:[%s9393_s29 + $0x13c] sm:$0xf0] }
 0x346   : > { %v9736_v43 = vsel %vm1068_vm9, %v8725_v17, %v1067_v5  ;;  %v7721_v17 = vld [vmem:[%s9393_s29 + $0x2c0] sm:$0xf0] }
 0x347   : > { %v8457_v5 = vld [vmem:[%s9393_s29 + $0x204] sm:$0xf] }
 0x348   : > { %1043 = vadd.xlane.f32.xlu2 %v1019_v20  ;;  %1562 = vmatpush.bf16.msra.mxu0 %v7720_v48 }
 0x3aa   : > { %v1036_v19 = vpop.xlane.xlu1 %1035  ;;  %v1032_v22 = vpop.xlane.xlu0 %1031 }
 0x3ab   : > { %v1070_v25 = vmul.f32 %v9736_v43, %v1032_v22  ;;  %v1040_v40 = vpop.xlane.xlu2 %1039  ;;  %v1072_v53 = vmul.f32 %v9736_v43, %v1036_v19  ;;  %v7684_v19 = vor.u32 %v8452_v41, %v7683_v30  ;;  %v7709_v22 = vld [vmem:[%s9393_s29 + $0x240] sm:$0xf0] }
 0x3ac   : > { %v1074_v52 = vmul.f32 %v9736_v43, %v1040_v40  ;;  %v7671_v40 = vld [vmem:[%s9393_s29 + $0x80] sm:$0xf] }
 0x3ad   : > { %v9739_v34 = vsub.f32 %v1013_v6, %v1070_v25  ;;  %v9760_v45 = vsub.f32 %v1015_v4, %v1072_v53  ;;  %v8463_v4 = vld [vmem:[%s9393_s29 + $0x304] sm:$0xf]  ;;  %v7708_v6 = vor.u32 %v8458_v33, %v7707_v12  ;;  %v9817_v25 = vor.u32 %v8457_v5, %v7709_v22 }
 0x3ae   : > { %v9758_v39 = vsub.f32 %v1017_v13, %v1074_v52  ;;  %v7733_v13 = vld [vmem:[%s9393_s29 + $0x340] sm:$0xf0] }
 0x3af   : > { %v1102_v32 = vmul.f32 %v9739_v34, %v9739_v34  ;;  %v1104_v55 = vmul.f32 %v9760_v45, %v9760_v45  ;;  %1563 = vmatpush.bf16.msra.mxu0 %v7708_v6  ;;  %v7661_v12 = vld [vmem:[%s9393_s29 + $0x40] sm:$0xf0] }
 0x3b0   : > { %v1106_v42 = vmul.f32 %v9758_v39, %v9758_v39 }
 0x3b1   : > { %1118 = vadd.xlane.f32.xlu0 %v1102_v32  ;;  %v8449_v32 = vld [vmem:[%s9393_s29 + $0xbc] sm:$0xf0] }
 0x3b2   : > { %v1038_v46 = vpop.xlane.xlu1 %1037  ;;  %v1034_v47 = vpop.xlane.xlu0 %1033 }
 0x3b3   : > { %v1073_v29 = vmul.f32 %v9736_v43, %v1038_v46  ;;  %v1071_v38 = vmul.f32 %v9736_v43, %v1034_v47  ;;  %v1042_v14 = vpop.xlane.xlu2 %1041  ;;  %v8454_v46 = vld [vmem:[%s9393_s29 + $0x184] sm:$0xf] }
 0x3b4   : > { %v1075_v49 = vmul.f32 %v9736_v43, %v1042_v14  ;;  %v8446_v14 = vld [vmem:[%s9393_s29 + $0x3c] sm:$0xf0] }
 0x3b5   : > { %v9745_v50 = vsub.f32 %v1016_v8, %v1073_v29  ;;  %v9747_v51 = vsub.f32 %v1014_v36, %v1071_v38  ;;  %v7736_v8 = vor.u32 %v8463_v4, %v7733_v13  ;;  %v7695_v36 = vld [vmem:[%s9393_s29 + $0x180] sm:$0xf]  ;;  %v7672_v29 = vor.u32 %v8449_v32, %v7671_v40  ;;  %v7697_v38 = vld [vmem:[%s9393_s29 + $0x1c0] sm:$0xf0] }
 0x3b6   : > { %v9770_v58 = vsub.f32 %v1018_v11, %v1075_v49  ;;  %v8455_v11 = vld [vmem:[%s9393_s29 + $0x1bc] sm:$0xf0]  ;;  %v9825_v53 = vor.u32 %v8454_v46, %v7697_v38  ;;  %v8451_v49 = vld [vmem:[%s9393_s29 + $0x104] sm:$0xf] }
 0x3b7   : > { %v1105_v35 = vmul.f32 %v9745_v50, %v9745_v50  ;;  %v1103_v56 = vmul.f32 %v9747_v51, %v9747_v51  ;;  %8631 = vmatpush.bf16.msra.mxu1 %v7736_v8  ;;  %v7696_v37 = vor.u32 %v8455_v11, %v7695_v36 }
 0x3b8   : > { %v1107_v61 = vmul.f32 %v9770_v58, %v9770_v58 }
 0x3b9   : > { %1124 = vadd.xlane.f32.xlu2 %v1105_v35  ;;  %1045 = vadd.xlane.f32.xlu0 %v9751_v54 }
 0x3ba   : > { %1120 = vadd.xlane.f32.xlu1 %v1103_v56  ;;  %1564 = vmatpush.bf16.msra.mxu0 %v7696_v37  ;;  %v7659_v56 = vld [vmem:[%s9393_s29] sm:$0xf] }
 0x3bb   : > { %v1044_v59 = vpop.xlane.xlu2 %1043 }
 0x3bc   : > { %v1076_v60 = vmul.f32 %v9736_v43, %v1044_v59 }
 0x3be   : > { %v9780_v9 = vsub.f32 %v1019_v20, %v1076_v60  ;;  %v8460_v20 = vld [vmem:[%s9393_s29 + $0x284] sm:$0xf]  ;;  %1565 = vmatpush.bf16.msra.mxu0 %v7684_v19 }
 0x3bf   : > { %v7724_v27 = vor.u32 %v8460_v20, %v7721_v17 }
 0x3c0   : > { %v1108_v15 = vmul.f32 %v9780_v9, %v9780_v9 }
 0x3c1   : > { %1126 = vadd.xlane.f32.xlu2 %v1106_v42  ;;  %1047 = vadd.xlane.f32.xlu0 %v9765_v57  ;;  %v7660_v42 = vor.u32 %v8446_v14, %v7659_v56 }
 0x3c2   : > { %1122 = vadd.xlane.f32.xlu1 %v1104_v55  ;;  %8632 = vmatpush.bf16.msra.mxu1 %v7724_v27  ;;  %v7685_v55 = vld [vmem:[%s9393_s29 + $0x140] sm:$0xf0] }
 0x3c3   : > { %1566 = vmatpush.bf16.msra.mxu0 %v7672_v29  ;;  %v9832_v59 = vor.u32 %v8451_v49, %v7685_v55 }
 0x3c6   : > { %8633 = vmatpush.bf16.msra.mxu1 %v9817_v25 }
 0x3c7   : > { %1567 = vmatpush.bf16.msra.mxu0 %v7660_v42 }
 0x3c9   : > { %1053 = vadd.xlane.f32.xlu2 %v9775_v62  ;;  %1128 = vadd.xlane.f32.xlu0 %v1107_v61 }
 0x3ca   : > { %1049 = vadd.xlane.f32.xlu1 %v9777_v63  ;;  %8634 = vmatpush.bf16.msra.mxu1 %v9825_v53 }
 0x3cb   : > { %1609 = vmatpush.bf16.msrb.mxu0 %v7748_v31  ;;  %v8445_v31 = vld [vmem:[%s9393_s29 + $0x4] sm:$0xf] }
 0x3cc   : > { %v9856_v4 = vor.u32 %v8445_v31, %v7661_v12 }
 0x3ce   : > { %8635 = vmatpush.bf16.msra.mxu1 %v9832_v59 }
 0x3cf   : > { %1610 = vmatpush.bf16.msrb.mxu0 %v7736_v8 }
 0x3d1   : > { %1055 = vadd.xlane.f32.xlu2 %v9785_v18  ;;  %1130 = vadd.xlane.f32.xlu0 %v1108_v15  ;;  %v8448_v15 = vld [vmem:[%s9393_s29 + $0x84] sm:$0xf] }
 0x3d2   : > { %1051 = vadd.xlane.f32.xlu1 %v9787_v21  ;;  %v9839_v3 = vor.u32 %v8448_v15, %v7673_v26 }
 0x3d3   : > { %1611 = vmatpush.bf16.msrb.mxu0 %v7724_v27 }
 0x3d4   : > { %8636 = vmatpush.bf16.msra.mxu1 %v9839_v3 }
 0x3d7   : > { %1612 = vmatpush.bf16.msrb.mxu0 %v9817_v25 }
 0x3d8   : > { %8637 = vmatpush.bf16.msra.mxu1 %v9856_v4 }
 0x3d9   : > { %1057 = vadd.xlane.f32.xlu0 %v9791_v24 }
 0x3db   : > { %1613 = vmatpush.bf16.msrb.mxu0 %v9825_v53 }
 0x3df   : > { %1614 = vmatpush.bf16.msrb.mxu0 %v9832_v59  ;;  %v9931_v59 = vld [vmem:[#allocation2 + $0x28] sm:$0xff] }
 0x3e1   : > { %1059 = vadd.xlane.f32.xlu0 %v9794_v0 }
 0x3e3   : > { %1615 = vmatpush.bf16.msrb.mxu0 %v9839_v3 }
 0x3e7   : > { %1616 = vmatpush.bf16.msrb.mxu0 %v9856_v4 }
 0x424   : > { %v1119_v47 = vpop.xlane.xlu0 %1118 }
 0x425   : > { %v1150_v52 = vmul.f32 %v1119_v47, %v9736_v43 }
 0x427   : > { %v1166_v35 = vadd.f32 1e-05, %v1150_v52 }
 0x429   : > { %8726 = vrsqrt.f32 %v1166_v35  ;;  %vm1188_vm11 = vweird.f32 %v1166_v35 }
 0x42c   : > { %v1125_v61 = vpop.xlane.xlu2 %1124  ;;  %v1046_v60 = vpop.xlane.xlu0 %1045 }
 0x42d   : > { %v1153_v1 = vmul.f32 %v1125_v61, %v9736_v43  ;;  %v1121_v28 = vpop.xlane.xlu1 %1120  ;;  %v1077_v2 = vmul.f32 %v9736_v43, %v1046_v60 }
 0x42e   : > { %v1151_v7 = vmul.f32 %v1121_v28, %v9736_v43 }
 0x42f   : > { %v9842_v10 = vpop.eup %8726  ;;  %v9844_v16 = vadd.f32 1e-05, %v1153_v1  ;;  %v9847_v44 = vsub.f32 %v9751_v54, %v1077_v2 }
 0x430   : > { %v1183_v48 = vmul.f32 %v9842_v10, %v1166_v35  ;;  %v1167_v23 = vadd.f32 1e-05, %v1151_v7  ;;  %vm1189_vm10 = vweird.f32 %v9842_v10 }
 0x431   : > { %8728 = vrsqrt.f32 %v9844_v16  ;;  %v1109_v33 = vmul.f32 %v9847_v44, %v9847_v44  ;;  %vm9882_vm12 = vmor %vm1188_vm11, %vm1189_vm10  ;;  %vm1218_vm15 = vweird.f32 %v9844_v16 }
 0x432   : > { %v1184_v6 = vmul.f32 %v9842_v10, %v1183_v48  ;;  %8730 = vrsqrt.f32 %v1167_v23  ;;  %vm1198_vm13 = vweird.f32 %v1167_v23  ;;  %v9914_v48 = vld [vmem:[%s9383_s18] ss:$0 sm:$0xff] }
 0x433   : > { %1132 = vadd.xlane.f32.xlu1 %v1109_v33 }
 0x434   : > { %v1185_v54 = vmul.f32 0.5, %v1184_v6  ;;  %v1127_v13 = vpop.xlane.xlu2 %1126  ;;  %v1048_v8 = vpop.xlane.xlu0 %1047 }
 0x435   : > { %v1154_v36 = vmul.f32 %v1127_v13, %v9736_v43  ;;  %v1123_v11 = vpop.xlane.xlu1 %1122  ;;  %v1078_v20 = vmul.f32 %v9736_v43, %v1048_v8 }
 0x436   : > { %v1186_v37 = vsub.f32 1.5, %v1185_v54  ;;  %v1152_v17 = vmul.f32 %v1123_v11, %v9736_v43 }
 0x437   : > { %v9863_v30 = vpop.eup %8728  ;;  %v9865_v41 = vadd.f32 1e-05, %v1154_v36  ;;  %v9868_v5 = vsub.f32 %v9765_v57, %v1078_v20 }
 0x438   : > { %v8731_v19 = vpop.eup %8730  ;;  %v1213_v22 = vmul.f32 %v9863_v30, %v9844_v16  ;;  %v9872_v27 = vadd.f32 1e-05, %v1152_v17  ;;  %v1187_v40 = vmul.f32 %v9842_v10, %v1186_v37  ;;  %vm1219_vm0 = vweird.f32 %v9863_v30 }
 0x439   : > { %v1193_v32 = vmul.f32 %v8731_v19, %v1167_v23  ;;  %8732 = vrsqrt.f32 %v9865_v41  ;;  %v1110_v47 = vmul.f32 %v9868_v5, %v9868_v5  ;;  %vm1199_vm14 = vweird.f32 %v8731_v19  ;;  %vm9925_vm2 = vmor %vm1218_vm15, %vm1219_vm0 }
 0x43a   : > { %v1214_v46 = vmul.f32 %v9863_v30, %v1213_v22  ;;  %8734 = vrsqrt.f32 %v9872_v27  ;;  %v1191_v56 = vsel %vm9882_vm12, %v9842_v10, %v1187_v40  ;;  %vm9905_vm1 = vmor %vm1198_vm13, %vm1199_vm14  ;;  %vm1208_vm3 = vweird.f32 %v9872_v27 }
 0x43b   : > { %v1194_v57 = vmul.f32 %v8731_v19, %v1193_v32  ;;  %1134 = vadd.xlane.f32.xlu1 %v1110_v47  ;;  %v1342_v10 = vmul.f32 %v1191_v56, %v9739_v34  ;;  %vm1228_vm8 = vweird.f32 %v9865_v41 }
 0x43c   : > { %v1215_v25 = vmul.f32 0.5, %v1214_v46  ;;  %v1054_v38 = vpop.xlane.xlu2 %1053  ;;  %v1129_v52 = vpop.xlane.xlu0 %1128 }
 0x43d   : > { %v1195_v35 = vmul.f32 0.5, %v1194_v57  ;;  %v1081_v14 = vmul.f32 %v9736_v43, %v1054_v38  ;;  %v1050_v42 = vpop.xlane.xlu1 %1049  ;;  %v1155_v49 = vmul.f32 %v1129_v52, %v9736_v43  ;;  %v1359_v8 = vmul.f32 %v9914_v48, %v1342_v10 }
 0x43e   : > { %v1216_v55 = vsub.f32 1.5, %v1215_v25  ;;  %v1079_v61 = vmul.f32 %v9736_v43, %v1050_v42 }
 0x43f   : > { %v9894_v60 = vpop.eup %8732  ;;  %v1196_v53 = vsub.f32 1.5, %v1195_v35  ;;  %v9897_v15 = vadd.f32 1e-05, %v1155_v49  ;;  %v9900_v26 = vsub.f32 %v9775_v62, %v1081_v14 }
 0x440   : > { %v8735_v1 = vpop.eup %8734  ;;  %v1217_v28 = vmul.f32 %v9863_v30, %v1216_v55  ;;  %v9910_v7 = vsub.f32 %v9777_v63, %v1079_v61  ;;  %v1223_v31 = vmul.f32 %v9894_v60, %v9865_v41  ;;  %v7751_v61 = vld [vmem:[%s9393_s29 + $0x388] sm:$0xf]  ;;  %vm1229_vm9 = vweird.f32 %v9894_v60 }
 0x441   : > { %v1197_v62 = vmul.f32 %v8731_v19, %v1196_v53  ;;  %v1203_v12 = vmul.f32 %v8735_v1, %v9872_v27  ;;  %8736 = vrsqrt.f32 %v9897_v15  ;;  %v1113_v34 = vmul.f32 %v9900_v26, %v9900_v26  ;;  %v8468_v53 = vld [vmem:[%s9393_s29 + $0x3c4] sm:$0xf0]  ;;  %vm1230_vm11 = vmor %vm1228_vm8, %vm1229_vm9 }
 0x442   : > { %v1111_v6 = vmul.f32 %v9910_v7, %v9910_v7  ;;  %vm1209_vm4 = vweird.f32 %v8735_v1  ;;  %v1221_v36 = vsel %vm9925_vm2, %v9863_v30, %v1217_v28  ;;  %v1224_v11 = vmul.f32 %v9894_v60, %v1223_v31 }
 0x443   : > { %v1201_v23 = vsel %vm9905_vm1, %v8731_v19, %v1197_v62  ;;  %v1204_v33 = vmul.f32 %v8735_v1, %v1203_v12  ;;  %1140 = vadd.xlane.f32.xlu0 %v1113_v34  ;;  %1061 = vadd.xlane.f32.xlu1 %v9931_v59  ;;  %v9950_v19 = vld [vmem:[%s9383_s18 + $0x1] ss:$0 sm:$0xff]  ;;  %vm9960_vm5 = vmor %vm1208_vm3, %vm1209_vm4  ;;  %v1345_v47 = vmul.f32 %v1221_v36, %v9745_v50  ;;  %vm1238_vm6 = vweird.f32 %v9897_v15 }
 0x444   : > { %v1056_v16 = vpop.xlane.xlu2 %1055  ;;  %v9938_v54 = vpop.xlane.xlu0 %1130  ;;  %v1343_v13 = vmul.f32 %v1201_v23, %v9747_v51  ;;  %1136 = vadd.xlane.f32.xlu2 %v1111_v6  ;;  %v1225_v29 = vmul.f32 0.5, %v1224_v11  ;;  %v7752_v2 = vor.u32 %v8468_v53, %v7751_v61  ;;  %v8465_v11 = vld [vmem:[%s9393_s29 + $0x344] sm:$0xf0] }
 0x445   : > { %v1205_v20 = vmul.f32 0.5, %v1204_v33  ;;  %v1082_v37 = vmul.f32 %v9736_v43, %v1056_v16  ;;  %v1052_v17 = vpop.xlane.xlu1 %1051  ;;  %v1362_v42 = vmul.f32 %v9914_v48, %v1345_v47  ;;  %v8456_v47 = vld [vmem:[%s9393_s29 + $0x1c4] sm:$0xf0] }
 0x446   : > { %v1080_v51 = vmul.f32 %v9736_v43, %v1052_v17  ;;  %v1360_v22 = vmul.f32 %v9914_v48, %v1343_v13  ;;  %v1226_v49 = vsub.f32 1.5, %v1225_v29  ;;  %8638 = vmatpush.bf16.msra.mxu2 %v7752_v2  ;;  %1658 = vmatpush.bf16.msrb.mxu1 %v7752_v2  ;;  %v8462_v17 = vld [vmem:[%s9393_s29 + $0x2c4] sm:$0xf0] }
 0x447   : > { %v8737_v3 = vpop.eup %8736  ;;  %v1206_v40 = vsub.f32 1.5, %v1205_v20  ;;  %v9955_v32 = vsub.f32 %v9785_v18, %v1082_v37  ;;  %v1376_v18 = vadd.f32 %v9950_v19, %v1359_v8  ;;  %v1379_v31 = vadd.f32 %v9950_v19, %v1362_v42  ;;  %v7727_v37 = vld [vmem:[%s9393_s29 + $0x288] sm:$0xf] }
 0x448   : > { %v1233_v46 = vmul.f32 %v8737_v3, %v9897_v15  ;;  %v9966_v57 = vsub.f32 %v9787_v21, %v1080_v51  ;;  %v1377_v38 = vadd.f32 %v9950_v19, %v1360_v22  ;;  %vm1239_vm7 = vweird.f32 %v8737_v3  ;;  %v7715_v22 = vld [vmem:[%s9393_s29 + $0x208] sm:$0xf] }
 0x449   : > { %v1207_v25 = vmul.f32 %v8735_v1, %v1206_v40  ;;  %v1114_v21 = vmul.f32 %v9955_v32, %v9955_v32  ;;  %vm1240_vm10 = vmor %vm1238_vm6, %vm1239_vm7  ;;  %v1227_v12 = vmul.f32 %v9894_v60, %v1226_v49  ;;  %v7728_v51 = vor.u32 %v8462_v17, %v7727_v37 }
 0x44a   : > { %v1234_v27 = vmul.f32 %v8737_v3, %v1233_v46  ;;  %v1112_v52 = vmul.f32 %v9966_v57, %v9966_v57  ;;  %v9978_v56 = vpack.c.bf16 %v1377_v38, %v1376_v18  ;;  %v1156_v40 = vmul.f32 %v9938_v54, %v9736_v43  ;;  %v7703_v46 = vld [vmem:[%s9393_s29 + $0x188] sm:$0xf] }
 0x44b   : > { %v1211_v50 = vsel %vm9960_vm5, %v8735_v1, %v1207_v25  ;;  %1142 = vadd.xlane.f32.xlu1 %v1114_v21  ;;  %v1231_v15 = vsel %vm1230_vm11, %v9894_v60, %v1227_v12  ;;  %v7704_v25 = vor.u32 %v8456_v47, %v7703_v46  ;;  %v7691_v18 = vld [vmem:[%s9393_s29 + $0x108] sm:$0xf] }
 0x44c   : > { %v1235_v4 = vmul.f32 0.5, %v1234_v27  ;;  %v1058_v35 = vpop.xlane.xlu0 %1057  ;;  %v1344_v14 = vmul.f32 %v1211_v50, %v9760_v45  ;;  %1138 = vadd.xlane.f32.xlu2 %v1112_v52  ;;  %1568 = vmatmul.bf16.vlgmr.msra.gmra.mxu0 %v9978_v56  ;;  %v1346_v16 = vmul.f32 %v1231_v15, %v9758_v39  ;;  %v7739_v39 = vld [vmem:[%s9393_s29 + $0x308] sm:$0xf]  ;;  %v1172_v29 = vadd.f32 1e-05, %v1156_v40 }
 0x44d   : > { %v1083_v55 = vmul.f32 %v9736_v43, %v1058_v35  ;;  %v7740_v20 = vor.u32 %v8465_v11, %v7739_v39  ;;  %v8453_v38 = vld [vmem:[%s9393_s29 + $0x144] sm:$0xf0] }
 0x44e   : > { %v1236_v1 = vsub.f32 1.5, %v1235_v4  ;;  %v1361_v28 = vmul.f32 %v9914_v48, %v1344_v14  ;;  %v1363_v60 = vmul.f32 %v9914_v48, %v1346_v16  ;;  %8738 = vrsqrt.f32 %v1172_v29  ;;  %v7679_v54 = vld [vmem:[%s9393_s29 + $0x88] sm:$0xf] }
 0x44f   : > { %v9991_v45 = vsub.f32 %v9791_v24, %v1083_v55  ;;  %8639 = vmatpush.bf16.msra.mxu2 %v7740_v20  ;;  %1659 = vmatpush.bf16.msrb.mxu1 %v7740_v20  ;;  %v7692_v27 = vor.u32 %v8453_v38, %v7691_v18  ;;  %v8450_v52 = vld [vmem:[%s9393_s29 + $0xc4] sm:$0xf0]  ;;  %vm1248_vm12 = vweird.f32 %v1172_v29 }
 0x450   : > { %v1237_v10 = vmul.f32 %v8737_v3, %v1236_v1  ;;  %v1378_v62 = vadd.f32 %v9950_v19, %v1361_v28  ;;  %v7680_v21 = vor.u32 %v8450_v52, %v7679_v54  ;;  %v7667_v4 = vld [vmem:[%s9393_s29 + $0x8] sm:$0xf] }
 0x451   : > { %v1115_v41 = vmul.f32 %v9991_v45, %v9991_v45  ;;  %v8447_v35 = vld [vmem:[%s9393_s29 + $0x44] sm:$0xf0] }
 0x452   : > { %v10000_v63 = vpack.c.bf16 %v1379_v31, %v1378_v62  ;;  %v1241_v24 = vsel %vm1240_vm10, %v8737_v3, %v1237_v10  ;;  %v8459_v3 = vld [vmem:[%s9393_s29 + $0x244] sm:$0xf0]  ;;  %v7668_v14 = vor.u32 %v8447_v35, %v7667_v4 }
 0x453   : > { %v1347_v33 = vmul.f32 %v1241_v24, %v9770_v58  ;;  %8640 = vmatpush.bf16.msra.mxu2 %v7728_v51  ;;  %1660 = vmatpush.bf16.msrb.mxu1 %v7728_v51  ;;  %v7716_v30 = vor.u32 %v8459_v3, %v7715_v22 }
 0x454   : > { %1622 = vmatmul.bf16.vlgmr.msra.gmra.mxu1 %v10000_v63  ;;  %v1060_v34 = vpop.xlane.xlu0 %1059  ;;  %1144 = vadd.xlane.f32.xlu2 %v1115_v41  ;;  %v8739_v50 = vpop.eup %8738 }
 0x455   : > { %v1084_v23 = vmul.f32 %v9736_v43, %v1060_v34  ;;  %v1364_v8 = vmul.f32 %v9914_v48, %v1347_v33  ;;  %v1243_v42 = vmul.f32 %v8739_v50, %v1172_v29  ;;  %vm1249_vm13 = vweird.f32 %v8739_v50 }
 0x456   : > { %vm10039_vm14 = vmor %vm1248_vm12, %vm1249_vm13 }
 0x457   : > { %v10007_v6 = vsub.f32 %v9794_v0, %v1084_v23  ;;  %v1381_v58 = vadd.f32 %v9950_v19, %v1364_v8  ;;  %v1380_v0 = vadd.f32 %v9950_v19, %v1363_v60  ;;  %8641 = vmatpush.bf16.msra.mxu2 %v7716_v30  ;;  %1661 = vmatpush.bf16.msrb.mxu1 %v7716_v30 }
 0x458   : > { %v1244_v61 = vmul.f32 %v8739_v50, %v1243_v42 }
 0x459   : > { %v1116_v13 = vmul.f32 %v10007_v6, %v10007_v6  ;;  %v10017_v36 = vpack.c.bf16 %v1381_v58, %v1380_v0 }
 0x45a   : > { %v1245_v1 = vmul.f32 0.5, %v1244_v61 }
 0x45b   : > { %1146 = vadd.xlane.f32.xlu0 %v1116_v13  ;;  %8642 = vmatpush.bf16.msra.mxu2 %v7704_v25 }
 0x45c   : > { %1573 = vmatmul.bf16.gmra.mxu0 %v10000_v63  ;;  %1662 = vmatpush.bf16.msrb.mxu1 %v7704_v25  ;;  %v1246_v28 = vsub.f32 1.5, %v1245_v1 }
 0x45e   : > { %v1247_v41 = vmul.f32 %v8739_v50, %v1246_v28 }
 0x45f   : > { %8643 = vmatpush.bf16.msra.mxu2 %v7692_v27 }
 0x460   : > { %1663 = vmatpush.bf16.msrb.mxu1 %v7692_v27  ;;  %v1251_v33 = vsel %vm10039_vm14, %v8739_v50, %v1247_v41 }
 0x461   : > { %v1348_v51 = vmul.f32 %v1251_v33, %v9780_v9 }
 0x463   : > { %8644 = vmatpush.bf16.msra.mxu2 %v7680_v21  ;;  %v1365_v47 = vmul.f32 %v9914_v48, %v1348_v51 }
 0x464   : > { %1627 = vmatmul.bf16.gmra.mxu1 %v10017_v36 }
 0x465   : > { %1664 = vmatpush.bf16.msrb.mxu1 %v7680_v21  ;;  %v1382_v50 = vadd.f32 %v9950_v19, %v1365_v47 }
 0x467   : > { %8645 = vmatpush.bf16.msra.mxu2 %v7668_v14 }
 0x469   : > { %1665 = vmatpush.bf16.msrb.mxu1 %v7668_v14 }
 0x46c   : > { %1578 = vmatmul.bf16.gmra.mxu0 %v10017_v36 }
 0x4a6   : > { %v1133_v49 = vpop.xlane.xlu1 %1132 }
 0x4a7   : > { %v1157_v55 = vmul.f32 %v1133_v49, %v9736_v43 }
 0x4a9   : > { %v1173_v53 = vadd.f32 1e-05, %v1157_v55 }
 0x4ab   : > { %8740 = vrsqrt.f32 %v1173_v53  ;;  %vm1258_vm0 = vweird.f32 %v1173_v53 }
 0x4ae   : > { %v1135_v2 = vpop.xlane.xlu1 %1134 }
 0x4af   : > { %v1158_v62 = vmul.f32 %v1135_v2, %v9736_v43 }
 0x4b1   : > { %v8741_v10 = vpop.eup %8740  ;;  %v1174_v12 = vadd.f32 1e-05, %v1158_v62 }
 0x4b2   : > { %v1253_v31 = vmul.f32 %v8741_v10, %v1173_v53  ;;  %vm1259_vm15 = vweird.f32 %v8741_v10 }
 0x4b3   : > { %8742 = vrsqrt.f32 %v1174_v12  ;;  %vm1260_vm1 = vmor %vm1258_vm0, %vm1259_vm15  ;;  %vm1268_vm3 = vweird.f32 %v1174_v12 }
 0x4b4   : > { %v1254_v24 = vmul.f32 %v8741_v10, %v1253_v31 }
 0x4b6   : > { %v1255_v15 = vmul.f32 0.5, %v1254_v24  ;;  %v1141_v23 = vpop.xlane.xlu0 %1140  ;;  %v1062_v8 = vpop.xlane.xlu1 %1061 }
 0x4b7   : > { %v1137_v13 = vpop.xlane.xlu2 %1136  ;;  %v1161_v60 = vmul.f32 %v1141_v23, %v9736_v43  ;;  %v1085_v0 = vmul.f32 %v9736_v43, %v1062_v8 }
 0x4b8   : > { %v1256_v16 = vsub.f32 1.5, %v1255_v15  ;;  %v1159_v58 = vmul.f32 %v1137_v13, %v9736_v43 }
 0x4b9   : > { %v10048_v11 = vadd.f32 1e-05, %v1161_v60  ;;  %v8743_v20 = vpop.eup %8742  ;;  %v10051_v17 = vsub.f32 %v9931_v59, %v1085_v0 }
 0x4ba   : > { %v1257_v39 = vmul.f32 %v8741_v10, %v1256_v16  ;;  %v1175_v37 = vadd.f32 1e-05, %v1159_v58  ;;  %v1263_v3 = vmul.f32 %v8743_v20, %v1174_v12  ;;  %vm1269_vm2 = vweird.f32 %v8743_v20 }
 0x4bb   : > { %8744 = vrsqrt.f32 %v10048_v11  ;;  %v1117_v40 = vmul.f32 %v10051_v17, %v10051_v17  ;;  %vm1270_vm6 = vmor %vm1268_vm3, %vm1269_vm2  ;;  %vm1298_vm10 = vweird.f32 %v10048_v11 }
 0x4bc   : > { %v1261_v22 = vsel %vm1260_vm1, %v8741_v10, %v1257_v39  ;;  %8746 = vrsqrt.f32 %v1175_v37  ;;  %v1264_v30 = vmul.f32 %v8743_v20, %v1263_v3  ;;  %vm1278_vm4 = vweird.f32 %v1175_v37 }
 0x4bd   : > { %v1349_v46 = vmul.f32 %v1261_v22, %v9847_v44  ;;  %1148 = vadd.xlane.f32.xlu1 %v1117_v40 }
 0x4be   : > { %v1265_v29 = vmul.f32 0.5, %v1264_v30  ;;  %v1143_v18 = vpop.xlane.xlu1 %1142 }
 0x4bf   : > { %v1139_v25 = vpop.xlane.xlu2 %1138  ;;  %v1366_v59 = vmul.f32 %v9914_v48, %v1349_v46  ;;  %v1162_v4 = vmul.f32 %v1143_v18, %v9736_v43 }
 0x4c0   : > { %v1160_v9 = vmul.f32 %v1139_v25, %v9736_v43  ;;  %v1266_v27 = vsub.f32 1.5, %v1265_v29 }
 0x4c1   : > { %v10061_v38 = vpop.eup %8744  ;;  %v1383_v54 = vadd.f32 %v9950_v19, %v1366_v59  ;;  %v10068_v61 = vadd.f32 1e-05, %v1162_v4 }
 0x4c2   : > { %v8747_v52 = vpop.eup %8746  ;;  %v1176_v21 = vadd.f32 1e-05, %v1160_v9  ;;  %v1267_v14 = vmul.f32 %v8743_v20, %v1266_v27  ;;  %v1293_v49 = vmul.f32 %v10061_v38, %v10048_v11  ;;  %vm1299_vm11 = vweird.f32 %v10061_v38 }
 0x4c3   : > { %v1273_v44 = vmul.f32 %v8747_v52, %v1175_v37  ;;  %v1395_v35 = vpack.c.bf16 %v1383_v54, %v1382_v50  ;;  %vm1279_vm5 = vweird.f32 %v8747_v52  ;;  %vm1300_vm13 = vmor %vm1298_vm10, %vm1299_vm11  ;;  %vm1308_vm0 = vweird.f32 %v10068_v61 }
 0x4c4   : > { %8748 = vrsqrt.f32 %v1176_v21  ;;  %v1271_v28 = vsel %vm1270_vm6, %v8743_v20, %v1267_v14  ;;  %v1294_v10 = vmul.f32 %v10061_v38, %v1293_v49  ;;  %vm1280_vm7 = vmor %vm1278_vm4, %vm1279_vm5  ;;  %vm1288_vm8 = vweird.f32 %v1176_v21 }
 0x4c5   : > { %v1274_v42 = vmul.f32 %v8747_v52, %v1273_v44  ;;  %1583 = vmatmul.bf16.gmra.mxu0 %v1395_v35  ;;  %1632 = vmatmul.bf16.gmra.mxu1 %v1395_v35  ;;  %8750 = vrsqrt.f32 %v10068_v61  ;;  %v1350_v24 = vmul.f32 %v1271_v28, %v9868_v5  ;;  %vm1796_vm10 = vcmask 523264  }
 0x4c6   : > { %1681 = vmatmul.bf16.vlgmr.msra.gmra.mxu2 %v1395_v35  ;;  %v1295_v15 = vmul.f32 0.5, %v1294_v10 }
 0x4c7   : > { %v1275_v55 = vmul.f32 0.5, %v1274_v42  ;;  %v1145_v53 = vpop.xlane.xlu2 %1144  ;;  %v1367_v8 = vmul.f32 %v9914_v48, %v1350_v24 }
 0x4c8   : > { %v1163_v1 = vmul.f32 %v1145_v53, %v9736_v43  ;;  %v1296_v0 = vsub.f32 1.5, %v1295_v15 }
 0x4c9   : > { %v1276_v2 = vsub.f32 1.5, %v1275_v55 }
 0x4ca   : > { %v8749_v62 = vpop.eup %8748  ;;  %v1179_v31 = vadd.f32 1e-05, %v1163_v1  ;;  %v1297_v22 = vmul.f32 %v10061_v38, %v1296_v0 }
 0x4cb   : > { %v1277_v12 = vmul.f32 %v8747_v52, %v1276_v2  ;;  %v1283_v41 = vmul.f32 %v8749_v62, %v1176_v21  ;;  %v8751_v58 = vpop.eup %8750  ;;  %vm1289_vm9 = vweird.f32 %v8749_v62 }
 0x4cc   : > { %8752 = vrsqrt.f32 %v1179_v31  ;;  %vm1290_vm12 = vmor %vm1288_vm8, %vm1289_vm9  ;;  %v1303_v3 = vmul.f32 %v8751_v58, %v10068_v61  ;;  %v1301_v47 = vsel %vm1300_vm13, %v10061_v38, %v1297_v22  ;;  %vm1318_vm14 = vweird.f32 %v1179_v31 }
 0x4cd   : > { %v1281_v34 = vsel %vm1280_vm7, %v8747_v52, %v1277_v12  ;;  %v1284_v23 = vmul.f32 %v8749_v62, %v1283_v41  ;;  %v1353_v9 = vmul.f32 %v1301_v47, %v9900_v26  ;;  %vm1309_vm1 = vweird.f32 %v8751_v58 }
 0x4ce   : > { %v1351_v33 = vmul.f32 %v1281_v34, %v9910_v7  ;;  %v1384_v7 = vadd.f32 %v9950_v19, %v1367_v8  ;;  %v1304_v29 = vmul.f32 %v8751_v58, %v1303_v3  ;;  %vm1310_vm3 = vmor %vm1308_vm0, %vm1309_vm1 }
 0x4cf   : > { %v1285_v16 = vmul.f32 0.5, %v1284_v23  ;;  %v1370_v21 = vmul.f32 %v9914_v48, %v1353_v9 }
 0x4d0   : > { %v1368_v60 = vmul.f32 %v9914_v48, %v1351_v33  ;;  %v1305_v18 = vmul.f32 0.5, %v1304_v29 }
 0x4d1   : > { %v10075_v13 = vpop.f32.mrf.mxu1  ;;  %v1286_v39 = vsub.f32 1.5, %v1285_v16 }
 0x4d2   : > { %v8753_v20 = vpop.eup %8752  ;;  %v1385_v51 = vadd.f32 %v9950_v19, %v1368_v60  ;;  %v1306_v50 = vsub.f32 1.5, %v1305_v18 }
 0x4d3   : > { %v1287_v5 = vmul.f32 %v8749_v62, %v1286_v39  ;;  %v1313_v37 = vmul.f32 %v8753_v20, %v1179_v31  ;;  %vm1319_vm15 = vweird.f32 %v8753_v20 }
 0x4d4   : > { %v1396_v40 = vpack.c.bf16 %v1385_v51, %v1384_v7  ;;  %vm1320_vm2 = vmor %vm1318_vm14, %vm1319_vm15  ;;  %v1307_v26 = vmul.f32 %v8751_v58, %v1306_v50 }
 0x4d5   : > { %v1291_v30 = vsel %vm1290_vm12, %v8749_v62, %v1287_v5  ;;  %v1314_v46 = vmul.f32 %v8753_v20, %v1313_v37 }
 0x4d6   : > { %1588 = vmatmul.bf16.gmra.mxu0 %v1396_v40  ;;  %1637 = vmatmul.bf16.gmra.mxu1 %v1396_v40  ;;  %v1352_v25 = vmul.f32 %v1291_v30, %v9966_v57  ;;  %v1387_v57 = vadd.f32 %v9950_v19, %v1370_v21  ;;  %v1311_v49 = vsel %vm1310_vm3, %v8751_v58, %v1307_v26 }
 0x4d7   : > { %1686 = vmatmul.bf16.gmra.mxu2 %v1396_v40  ;;  %v1315_v59 = vmul.f32 0.5, %v1314_v46  ;;  %v1354_v28 = vmul.f32 %v1311_v49, %v9955_v32  ;;  %v10108_v40 = vpop.f32.mrf.mxu0 }
 0x4d8   : > { %v1369_v27 = vmul.f32 %v9914_v48, %v1352_v25 }
 0x4d9   : > { %v10085_v11 = vpop.f32.mrf.mxu1  ;;  %v1316_v54 = vsub.f32 1.5, %v1315_v59  ;;  %v1371_v62 = vmul.f32 %v9914_v48, %v1354_v28 }
 0x4da   : > { %v1386_v44 = vadd.f32 %v9950_v19, %v1369_v27 }
 0x4db   : > { %v1317_v38 = vmul.f32 %v8753_v20, %v1316_v54  ;;  %v1388_v12 = vadd.f32 %v9950_v19, %v1371_v62 }
 0x4dc   : > { %v1397_v4 = vpack.c.bf16 %v1387_v57, %v1386_v44 }
 0x4dd   : > { %v1321_v35 = vsel %vm1320_vm2, %v8753_v20, %v1317_v38 }
 0x4de   : > { %v1355_v53 = vmul.f32 %v1321_v35, %v9991_v45  ;;  %v1147_v45 = vpop.xlane.xlu0 %1146 }
 0x4df   : > { %v1164_v32 = vmul.f32 %v1147_v45, %v9736_v43  ;;  %v10115_v50 = vpop.f32.mrf.mxu0 }
 0x4e0   : > { %v1372_v10 = vmul.f32 %v9914_v48, %v1355_v53 }
 0x4e1   : > { %v1628_v52 = vpop.f32.mrf.mxu1  ;;  %v1180_v24 = vadd.f32 1e-05, %v1164_v32 }
 0x4e2   : > { %v1728_v14 = vpack.c.bf16 %v1628_v52, %v1628_v52  ;;  %v1389_v31 = vadd.f32 %v9950_v19, %v1372_v10 }
 0x4e3   : > { %8754 = vrsqrt.f32 %v1180_v24  ;;  %vm1328_vm4 = vweird.f32 %v1180_v24 }
 0x4e4   : > { %v1788_v1 = vunpack.c.l.b16 %v1728_v14  ;;  %v1398_v41 = vpack.c.bf16 %v1389_v31, %v1388_v12 }
 0x4e6   : > { %1593 = vmatmul.bf16.gmra.mxu0 %v1397_v4  ;;  %1642 = vmatmul.bf16.gmra.mxu1 %v1397_v4 }
 0x4e7   : > { %1691 = vmatmul.bf16.gmra.mxu2 %v1397_v4  ;;  %v10123_v38 = vpop.f32.mrf.mxu0 }
 0x4e9   : > { %v1630_v42 = vpop.f32.mrf.mxu1  ;;  %v8755_v34 = vpop.eup %8754 }
 0x4ea   : > { %v1729_v55 = vpack.c.bf16 %v1630_v42, %v1630_v42  ;;  %v1323_v15 = vmul.f32 %v8755_v34, %v1180_v24  ;;  %vm1329_vm5 = vweird.f32 %v8755_v34 }
 0x4eb   : > { %vm1330_vm6 = vmor %vm1328_vm4, %vm1329_vm5 }
 0x4ec   : > { %v1789_v61 = vunpack.c.l.b16 %v1729_v55  ;;  %v1324_v23 = vmul.f32 %v8755_v34, %v1323_v15 }
 0x4ee   : > { %v10097_v2 = vpack.c.b16 %v1789_v61, %v1788_v1  ;;  %v1325_v60 = vmul.f32 0.5, %v1324_v23 }
 0x4ef   : > { %v10133_v14 = vpop.f32.mrf.mxu0 }
 0x4f0   : > { %2349 = vrot.lane.b32.xlu0 %v10097_v2, %s9283_s30  ;;  %v1326_v58 = vsub.f32 1.5, %v1325_v60  ;;  %v1816_v26 = vsel %vm1796_vm10, %v10097_v2, 0 }
 0x4f2   : > { %v1327_v39 = vmul.f32 %v8755_v34, %v1326_v58 }
 0x4f4   : > { %v1331_v37 = vsel %vm1330_vm6, %v8755_v34, %v1327_v39 }
 0x4f5   : > { %v1356_v3 = vmul.f32 %v1331_v37, %v10007_v6 }
 0x4f6   : > { %1598 = vmatmul.bf16.gmra.mxu0 %v1398_v41  ;;  %1647 = vmatmul.bf16.gmra.mxu1 %v1398_v41 }
 0x4f7   : > { %1696 = vmatmul.bf16.gmra.mxu2 %v1398_v41  ;;  %v1373_v29 = vmul.f32 %v9914_v48, %v1356_v3 }
 0x4f9   : > { %v1390_v27 = vadd.f32 %v9950_v19, %v1373_v29 }
 0x530   : > { %v1149_v33 = vpop.xlane.xlu1 %1148 }
 0x531   : > { %v1165_v16 = vmul.f32 %v1149_v33, %v9736_v43 }
 0x533   : > { %v1181_v8 = vadd.f32 1e-05, %v1165_v16 }
 0x535   : > { %8756 = vrsqrt.f32 %v1181_v8  ;;  %vm1338_vm8 = vweird.f32 %v1181_v8 }
 0x53b   : > { %v8757_v0 = vpop.eup %8756 }
 0x53c   : > { %v1333_v20 = vmul.f32 %v8757_v0, %v1181_v8  ;;  %vm1339_vm7 = vweird.f32 %v8757_v0 }
 0x53d   : > { %vm1340_vm9 = vmor %vm1338_vm8, %vm1339_vm7 }
 0x53e   : > { %v1334_v5 = vmul.f32 %v8757_v0, %v1333_v20 }
 0x540   : > { %v1335_v7 = vmul.f32 0.5, %v1334_v5 }
 0x542   : > { %v1336_v51 = vsub.f32 1.5, %v1335_v7  ;;  %v1633_v22 = vpop.f32.mrf.mxu1 }
 0x543   : > { %v1730_v25 = vpack.c.bf16 %v1633_v22, %v1633_v22 }
 0x544   : > { %v1337_v30 = vmul.f32 %v8757_v0, %v1336_v51 }
 0x545   : > { %v1790_v6 = vunpack.c.l.b16 %v1730_v25 }
 0x546   : > { %v1341_v46 = vsel %vm1340_vm9, %v8757_v0, %v1337_v30 }
 0x547   : > { %v1357_v47 = vmul.f32 %v1341_v46, %v10051_v17  ;;  %v1727_v17 = vpack.c.bf16 %v10085_v11, %v10085_v11 }
 0x549   : > { %v1374_v59 = vmul.f32 %v9914_v48, %v1357_v47  ;;  %v1787_v57 = vunpack.c.l.b16 %v1727_v17  ;;  %v10143_v55 = vpop.f32.mrf.mxu2 }
 0x54a   : > { %v1635_v9 = vpop.f32.mrf.mxu1 }
 0x54b   : > { %v1731_v18 = vpack.c.bf16 %v1635_v9, %v1635_v9  ;;  %v1391_v54 = vadd.f32 %v9950_v19, %v1374_v59  ;;  %v1726_v19 = vpack.c.bf16 %v10075_v13, %v10075_v13  ;;  %v10135_v13 = vpop.f32.mrf.mxu0 }
 0x54d   : > { %v1791_v52 = vunpack.c.l.b16 %v1731_v18  ;;  %v1399_v21 = vpack.c.bf16 %v1391_v54, %v1390_v27  ;;  %v1786_v4 = vunpack.c.l.b16 %v1726_v19 }
 0x54f   : > { %1603 = vmatmul.bf16.gmra.mxu0 %v1399_v21  ;;  %1652 = vmatmul.bf16.gmra.mxu1 %v1399_v21  ;;  %v1795_v44 = vpack.c.b16 %v1791_v52, %v1790_v6  ;;  %v10127_v35 = vpack.c.b16 %v1787_v57, %v1786_v4 }
 0x550   : > { %1701 = vmatmul.bf16.gmra.mxu2 %v1399_v21 }
 0x551   : > { %2351 = vrot.lane.b32.xlu2 %v1795_v44, %s9283_s30  ;;  %v1819_v48 = vsel %vm1796_vm10, %v1795_v44, 0  ;;  %v1813_v11 = vsel %vm1796_vm10, %v10127_v35, 0 }
 0x552   : > { %1825 = vmatpush.bf16.xpose.msra.mxu3 %v1819_v48 }
 0x553   : > { %v10138_v42 = vpop.f32.mrf.mxu0  ;;  %v10151_v61 = vpop.f32.mrf.mxu1 }
 0x55a   : > { %1826 = vmatpush.bf16.xpose.msra.mxu3 %v1816_v26 }
 0x55b   : > { %v10140_v49 = vpop.f32.mrf.mxu0 }
 0x55f   : > { %1617 = vmatmul.bf16.vlgmr.msrb.gmra.mxu0 %v9978_v56  ;;  %1666 = vmatmul.bf16.vlgmr.msrb.gmra.mxu1 %v9978_v56  ;;  %v10147_v56 = vpop.f32.mrf.mxu2 }
 0x562   : > { %1827 = vmatpush.bf16.xpose.msra.mxu3 %v1813_v11  ;;  %v2350_v24 = vpop.permute.xlu0 %2349 }
 0x563   : > { %v10145_v53 = vpop.f32.mrf.mxu0  ;;  %v2372_v34 = vsel %vm1796_vm10, %v2350_v24, 0 }
 0x567   : > { %v10153_v28 = vpop.f32.mrf.mxu2 }
 0x568   : > { %v1748_v11 = vpack.c.bf16 %v10153_v28, %v10153_v28  ;;  %v1708_v28 = vpack.c.bf16 %v10108_v40, %v10108_v40 }
 0x56b   : > { %v10149_v1 = vpop.f32.mrf.mxu0 }
 0x56f   : > { %1671 = vmatmul.bf16.gmra.mxu1 %v10000_v63  ;;  %v10157_v63 = vpop.f32.mrf.mxu1  ;;  %v1689_v10 = vpop.f32.mrf.mxu2 }
 0x570   : > { %v1749_v44 = vpack.c.bf16 %v1689_v10, %v1689_v10 }
 0x573   : > { %v10155_v2 = vpop.f32.mrf.mxu0 }
 0x577   : > { %v1692_v41 = vpop.f32.mrf.mxu2 }
 0x578   : > { %v1750_v54 = vpack.c.bf16 %v1692_v41, %v1692_v41 }
 0x57b   : > { %v10159_v62 = vpop.f32.mrf.mxu0 }
 0x57f   : > { %1676 = vmatmul.bf16.gmra.mxu1 %v10017_v36  ;;  %v10161_v36 = vpop.f32.mrf.mxu1  ;;  %v1694_v15 = vpop.f32.mrf.mxu2 }
 0x580   : > { %v1751_v59 = vpack.c.bf16 %v1694_v15, %v1694_v15 }
 0x582   : > { %v2267_v48 = vunpack.c.l.b16 %v1751_v59 }
 0x583   : > { %v10164_v45 = vpop.f32.mrf.mxu0 }
 0x587   : > { %v10166_v32 = vpop.f32.mrf.mxu1  ;;  %v1697_v16 = vpop.f32.mrf.mxu2 }
 0x588   : > { %v1752_v47 = vpack.c.bf16 %v1697_v16, %v1697_v16  ;;  %v1735_v40 = vpack.c.bf16 %v10166_v32, %v10166_v32  ;;  %v1733_v32 = vpack.c.bf16 %v10157_v63, %v10157_v63 }
 0x58a   : > { %v2268_v6 = vunpack.c.l.b16 %v1752_v47  ;;  %v1881_v59 = vunpack.c.l.b16 %v1735_v40 }
 0x58b   : > { %v10169_v23 = vpop.f32.mrf.mxu0 }
 0x58f   : > { %v1648_v33 = vpop.f32.mrf.mxu1  ;;  %v1699_v58 = vpop.f32.mrf.mxu2 }
 0x590   : > { %v1753_v22 = vpack.c.bf16 %v1699_v58, %v1699_v58  ;;  %v1709_v58 = vpack.c.bf16 %v10115_v50, %v10115_v50 }
 0x592   : > { %v2269_v9 = vunpack.c.l.b16 %v1753_v22  ;;  %v1765_v50 = vunpack.c.l.b16 %v1709_v58 }
 0x593   : > { %v10171_v8 = vpop.f32.mrf.mxu0 }
 0x594   : > { %v10184_v26 = vpack.c.b16 %v2269_v9, %v2268_v6 }
 0x597   : > { %v1650_v60 = vpop.f32.mrf.mxu1 }
 0x598   : > { %v1737_v15 = vpack.c.bf16 %v1650_v60, %v1650_v60 }
 0x59a   : > { %v1883_v60 = vunpack.c.l.b16 %v1737_v15 }
 0x5ab   : > { %v2352_v31 = vpop.permute.xlu2 %2351 }
 0x5ac   : > { %v2375_v12 = vsel %vm1796_vm10, %v2352_v31, 0  ;;  %v2266_v31 = vunpack.c.l.b16 %v1750_v54 }
 0x5ad   : > { %2381 = vmatpush.bf16.xpose.msrb.mxu2 %v2375_v12 }
 0x5ae   : > { %v10189_v10 = vpack.c.b16 %v2267_v48, %v2266_v31  ;;  %v1879_v48 = vunpack.c.l.b16 %v1733_v32  ;;  %v1717_v32 = vpack.c.bf16 %v10155_v2, %v10155_v2  ;;  %v1720_v2 = vpack.c.bf16 %v10169_v23, %v10169_v23 }
 0x5b5   : > { %2382 = vmatpush.bf16.xpose.msrb.mxu2 %v2372_v34  ;;  %v2265_v34 = vunpack.c.l.b16 %v1749_v44  ;;  %v1747_v44 = vpack.c.bf16 %v10147_v56, %v10147_v56 }
 0x5b7   : > { %v2186_v31 = vunpack.c.l.b16 %v1747_v44 }
 0x5cc   : > { %v10173_v0 = vpop.f32.mrf.mxu0  ;;  %v1653_v39 = vpop.f32.mrf.mxu1 }
 0x5cd   : > { %v1738_v52 = vpack.c.bf16 %v1653_v39, %v1653_v39 }
 0x5cf   : > { %v1884_v12 = vunpack.c.l.b16 %v1738_v52  ;;  %v1711_v52 = vpack.c.bf16 %v10133_v14, %v10133_v14 }
 0x5d1   : > { %v1767_v63 = vunpack.c.l.b16 %v1711_v52  ;;  %v1716_v52 = vpack.c.bf16 %v10149_v1, %v10149_v1  ;;  %v1721_v1 = vpack.c.bf16 %v10171_v8, %v10171_v8 }
 0x5d3   : > { %v1702_v20 = vpop.f32.mrf.mxu2 }
 0x5d4   : > { %v10175_v5 = vpop.f32.mrf.mxu0  ;;  %v1655_v37 = vpop.f32.mrf.mxu1  ;;  %v1754_v7 = vpack.c.bf16 %v1702_v20, %v1702_v20  ;;  %v2264_v20 = vunpack.c.l.b16 %v1748_v11 }
 0x5d5   : > { %v1739_v18 = vpack.c.bf16 %v1655_v37, %v1655_v37  ;;  %v1736_v37 = vpack.c.bf16 %v1648_v33, %v1648_v33 }
 0x5d6   : > { %v2270_v29 = vunpack.c.l.b16 %v1754_v7 }
 0x5d7   : > { %v1885_v17 = vunpack.c.l.b16 %v1739_v18  ;;  %v1882_v33 = vunpack.c.l.b16 %v1736_v37  ;;  %v1713_v37 = vpack.c.bf16 %v10138_v42, %v10138_v42 }
 0x5d9   : > { %v10191_v16 = vpack.c.b16 %v1885_v17, %v1884_v12  ;;  %v10207_v47 = vpack.c.b16 %v1883_v60, %v1882_v33  ;;  %v1769_v33 = vunpack.c.l.b16 %v1713_v37 }
 0x5db   : > { %v1704_v51 = vpop.f32.mrf.mxu2  ;;  %v1912_v22 = vsel %vm1796_vm10, %v10191_v16, 0  ;;  %v1909_v18 = vsel %vm1796_vm10, %v10207_v47, 0 }
 0x5dc   : > { %v1755_v3 = vpack.c.bf16 %v1704_v51, %v1704_v51  ;;  %v1618_v30 = vpop.f32.mrf.mxu0  ;;  %v10177_v46 = vpop.f32.mrf.mxu1 }
 0x5dd   : > { %v1724_v21 = vpack.c.bf16 %v1618_v30, %v1618_v30  ;;  %v1764_v30 = vunpack.c.l.b16 %v1708_v28 }
 0x5de   : > { %v2271_v25 = vunpack.c.l.b16 %v1755_v3  ;;  %v10202_v3 = vpack.c.b16 %v2265_v34, %v2264_v20 }
 0x5df   : > { %v1784_v41 = vunpack.c.l.b16 %v1724_v21  ;;  %v1710_v21 = vpack.c.bf16 %v10123_v38, %v10123_v38 }
 0x5e0   : > { %v10179_v27 = vpack.c.b16 %v2271_v25, %v2270_v29  ;;  %v10209_v29 = vpack.c.b16 %v1765_v50, %v1764_v30  ;;  %v1734_v25 = vpack.c.bf16 %v10161_v36, %v10161_v36  ;;  %v1732_v36 = vpack.c.bf16 %v10151_v61, %v10151_v61 }
 0x5e1   : > { %v1766_v11 = vunpack.c.l.b16 %v1710_v21  ;;  %v1858_v21 = vunpack.c.l.b16 %v1716_v52 }
 0x5e2   : > { %2296 = vmatpush.bf16.msra.mxu1 %v10179_v27  ;;  %v1880_v54 = vunpack.c.l.b16 %v1734_v25  ;;  %v1878_v14 = vunpack.c.l.b16 %v1732_v36  ;;  %v1859_v36 = vunpack.c.l.b16 %v1717_v32 }
 0x5e3   : > { %v10235_v12 = vpack.c.b16 %v1767_v63, %v1766_v11  ;;  %v1863_v63 = vunpack.c.l.b16 %v1721_v1 }
 0x5e4   : > { %v1620_v19 = vpop.f32.mrf.mxu0  ;;  %v10182_v57 = vpop.f32.mrf.mxu1  ;;  %v10219_v6 = vpack.c.b16 %v1881_v59, %v1880_v54  ;;  %v10233_v61 = vpack.c.b16 %v1879_v48, %v1878_v14  ;;  %v10277_v44 = vpack.c.b16 %v1859_v36, %v1858_v21 }
 0x5e5   : > { %v1725_v4 = vpack.c.bf16 %v1620_v19, %v1620_v19  ;;  %v1741_v60 = vpack.c.bf16 %v10182_v57, %v10182_v57 }
 0x5e6   : > { %2297 = vmatpush.bf16.msra.mxu1 %v10184_v26  ;;  %v1906_v19 = vsel %vm1796_vm10, %v10219_v6, 0  ;;  %v1903_v34 = vsel %vm1796_vm10, %v10233_v61, 0 }
 0x5e7   : > { %v1785_v24 = vunpack.c.l.b16 %v1725_v4  ;;  %v1746_v4 = vpack.c.bf16 %v10143_v55, %v10143_v55  ;;  %v2180_v40 = vunpack.c.l.b16 %v1741_v60 }
 0x5e9   : > { %v1792_v39 = vpack.c.b16 %v1785_v24, %v1784_v41  ;;  %v2185_v38 = vunpack.c.l.b16 %v1746_v4  ;;  %v1862_v4 = vunpack.c.l.b16 %v1720_v2 }
 0x5ea   : > { %2298 = vmatpush.bf16.msra.mxu1 %v10189_v10 }
 0x5eb   : > { %2345 = vrot.lane.b32.xlu1 %v1792_v39, %s9283_s30  ;;  %v1810_v7 = vsel %vm1796_vm10, %v1792_v39, 0  ;;  %v10239_v56 = vpack.c.b16 %v2186_v31, %v2185_v38  ;;  %v10293_v14 = vpack.c.b16 %v1863_v63, %v1862_v4 }
 0x5ec   : > { %v1672_v51 = vpop.f32.mrf.mxu1  ;;  %1828 = vmatpush.bf16.xpose.msra.mxu3 %v1810_v7 }
 0x5ed   : > { %v1742_v58 = vpack.c.bf16 %v1672_v51, %v1672_v51  ;;  %v1740_v51 = vpack.c.bf16 %v10177_v46, %v10177_v46  ;;  %v1714_v46 = vpack.c.bf16 %v10140_v49, %v10140_v49  ;;  %v1719_v49 = vpack.c.bf16 %v10164_v45, %v10164_v45 }
 0x5ee   : > { %2299 = vmatpush.bf16.msra.mxu1 %v10202_v3  ;;  %v1722_v45 = vpack.c.bf16 %v10173_v0, %v10173_v0 }
 0x5ef   : > { %v2181_v50 = vunpack.c.l.b16 %v1742_v58  ;;  %v2179_v25 = vunpack.c.l.b16 %v1740_v51  ;;  %v1861_v48 = vunpack.c.l.b16 %v1719_v49 }
 0x5f0   : > { %v1864_v31 = vunpack.c.l.b16 %v1722_v45 }
 0x5f1   : > { %v10260_v57 = vpack.c.b16 %v2180_v40, %v2179_v25 }
 0x5f3   : > { %7753 = vmatmul.msk.bf16.vlgmr.msra.gmra.mxu3 %vm1796_vm10, %v10209_v29 }
 0x5f4   : > { %1918 = vmatpush.bf16.xpose.msrb.mxu3 %v1912_v22  ;;  %v1674_v9 = vpop.f32.mrf.mxu1  ;;  %v1712_v22 = vpack.c.bf16 %v10135_v13, %v10135_v13  ;;  %v1715_v13 = vpack.c.bf16 %v10145_v53, %v10145_v53  ;;  %v1718_v53 = vpack.c.bf16 %v10159_v62, %v10159_v62  ;;  %v1723_v62 = vpack.c.bf16 %v10175_v5, %v10175_v5 }
 0x5f5   : > { %v1743_v15 = vpack.c.bf16 %v1674_v9, %v1674_v9 }
 0x5f6   : > { %v1768_v42 = vunpack.c.l.b16 %v1712_v22  ;;  %v1771_v9 = vunpack.c.l.b16 %v1715_v13  ;;  %v1865_v11 = vunpack.c.l.b16 %v1723_v62 }
 0x5f7   : > { %v2182_v28 = vunpack.c.l.b16 %v1743_v15 }
 0x5f8   : > { %v10258_v59 = vpack.c.b16 %v1769_v33, %v1768_v42  ;;  %v10301_v38 = vpack.c.b16 %v1865_v11, %v1864_v31 }
 0x5f9   : > { %v10255_v30 = vpack.c.b16 %v2182_v28, %v2181_v50 }
 0x5fc   : > { %1919 = vmatpush.bf16.xpose.msrb.mxu3 %v1909_v18  ;;  %v1677_v17 = vpop.f32.mrf.mxu1  ;;  %v1770_v18 = vunpack.c.l.b16 %v1714_v46 }
 0x5fd   : > { %v1744_v41 = vpack.c.bf16 %v1677_v17, %v1677_v17  ;;  %v1860_v17 = vunpack.c.l.b16 %v1718_v53 }
 0x5fe   : > { %v10269_v54 = vpack.c.b16 %v1771_v9, %v1770_v18 }
 0x5ff   : > { %v2183_v39 = vunpack.c.l.b16 %v1744_v41 }
 0x603   : > { %7754 = vmatmul.msk.bf16.gmra.mxu3 %vm1796_vm10, %v10235_v12 }
 0x604   : > { %1920 = vmatpush.bf16.xpose.msrb.mxu3 %v1906_v19  ;;  %v1679_v24 = vpop.f32.mrf.mxu1  ;;  %v10285_v19 = vpack.c.b16 %v1861_v48, %v1860_v17 }
 0x605   : > { %v1745_v55 = vpack.c.bf16 %v1679_v24, %v1679_v24 }
 0x607   : > { %v2184_v20 = vunpack.c.l.b16 %v1745_v55 }
 0x609   : > { %v10246_v7 = vpack.c.b16 %v2184_v20, %v2183_v39 }
 0x60c   : > { %1921 = vmatpush.bf16.xpose.msrb.mxu3 %v1903_v34 }
 0x613   : > { %7755 = vmatmul.msk.bf16.gmra.mxu3 %vm1796_vm10, %v10258_v59 }
 0x614   : > { %2211 = vmatpush.bf16.msra.mxu3 %v10239_v56 }
 0x618   : > { %2212 = vmatpush.bf16.msra.mxu3 %v10246_v7 }
 0x61c   : > { %2213 = vmatpush.bf16.msra.mxu3 %v10255_v30 }
 0x620   : > { %2214 = vmatpush.bf16.msra.mxu3 %v10260_v57 }
 0x623   : > { %7756 = vmatmul.msk.bf16.gmra.mxu3 %vm1796_vm10, %v10269_v54 }
 0x633   : > { %7757 = vmatmul.msk.bf16.vlgmr.msrb.gmra.mxu3 %vm1796_vm10, %v10277_v44 }
 0x643   : > { %7758 = vmatmul.msk.bf16.gmra.mxu3 %vm1796_vm10, %v10285_v19 }
 0x653   : > { %7759 = vmatmul.msk.bf16.gmra.mxu3 %vm1796_vm10, %v10293_v14 }
 0x65d   : > { %v2346_v32 = vpop.permute.xlu1 %2345 }
 0x663   : > { %7760 = vmatmul.msk.bf16.gmra.mxu3 %vm1796_vm10, %v10301_v38 }
 0x676   : > { %v1830_v23 = vpop.f32.mrf.mxu3 }
 0x677   : > { %v1943_v8 = vmul.f32 0.125, %v1830_v23 }
 0x679   : > { %v1959_v41 = vsel %vm1796_vm10, %v1943_v8, -inf }
 0x67a   : > { %1960 = vmax.xlane.f32.xlu2 %v1959_v41 }
 0x67e   : > { %v1832_v24 = vpop.f32.mrf.mxu3 }
 0x67f   : > { %v1944_v34 = vmul.f32 0.125, %v1832_v24  ;;  %v2366_v24 = vsel %vm1796_vm10, %v2346_v32, 0 }
 0x681   : > { %v1962_v15 = vsel %vm1796_vm10, %v1944_v34, -inf }
 0x682   : > { %1963 = vmax.xlane.f32.xlu0 %v1962_v15 }
 0x686   : > { %v1835_v5 = vpop.f32.mrf.mxu3 }
 0x687   : > { %v1945_v55 = vmul.f32 0.125, %v1835_v5 }
 0x689   : > { %v1965_v0 = vsel %vm1796_vm10, %v1945_v55, -inf }
 0x68a   : > { %1966 = vmax.xlane.f32.xlu1 %v1965_v0 }
 0x68e   : > { %v1837_v58 = vpop.f32.mrf.mxu3 }
 0x68f   : > { %v1946_v39 = vmul.f32 0.125, %v1837_v58 }
 0x691   : > { %v1968_v20 = vsel %vm1796_vm10, %v1946_v39, -inf }
 0x692   : > { %1969 = vmax.xlane.f32.xlu2 %v1968_v20 }
 0x696   : > { %2347 = vrot.lane.b32.xlu0 %v10127_v35, %s9283_s30  ;;  %v1840_v37 = vpop.f32.mrf.mxu3 }
 0x697   : > { %v1947_v25 = vmul.f32 0.125, %v1840_v37 }
 0x699   : > { %v1971_v13 = vsel %vm1796_vm10, %v1947_v25, -inf }
 0x69e   : > { %v1842_v28 = vpop.f32.mrf.mxu3 }
 0x69f   : > { %v10311_v60 = vmul.f32 0.125, %v1842_v28 }
 0x6a1   : > { %v1974_v22 = vsel %vm1796_vm10, %v10311_v60, -inf }
 0x6a2   : > { %1975 = vmax.xlane.f32.xlu1 %v1974_v22 }
 0x6a6   : > { %v1845_v50 = vpop.f32.mrf.mxu3 }
 0x6a7   : > { %v10315_v51 = vmul.f32 0.125, %v1845_v50 }
 0x6a9   : > { %v1977_v33 = vsel %vm1796_vm10, %v10315_v51, -inf }
 0x6aa   : > { %2337 = vrot.lane.b32.xlu2 %v10209_v29, %s9283_s30  ;;  %1978 = vmax.xlane.f32.xlu1 %v1977_v33 }
 0x6ae   : > { %v1847_v40 = vpop.f32.mrf.mxu3 }
 0x6af   : > { %v1950_v35 = vmul.f32 0.125, %v1847_v40 }
 0x6b1   : > { %v1980_v42 = vsel %vm1796_vm10, %v1950_v35, -inf }
 0x6b2   : > { %1981 = vmax.xlane.f32.xlu1 %v1980_v42 }
 0x6c0   : > { %1972 = vmax.xlane.f32.xlu0 %v1971_v13 }
 0x6ed   : > { %v1961_v46 = vpop.xlane.xlu2 %1960 }
 0x6ee   : > { %v2007_v9 = vsub.f32 %v1943_v8, %v1961_v46 }
 0x6f0   : > { %v2023_v18 = vmul.f32 1.442695, %v2007_v9 }
 0x6f2   : > { %8758 = vpow2.f32 %v2023_v18 }
 0x6f5   : > { %v1964_v52 = vpop.xlane.xlu0 %1963 }
 0x6f6   : > { %v2008_v36 = vsub.f32 %v1944_v34, %v1964_v52 }
 0x6f8   : > { %v10323_v21 = vpop.eup %8758  ;;  %v2025_v29 = vmul.f32 1.442695, %v2008_v36 }
 0x6f9   : > { %v2055_v49 = vsel %vm1796_vm10, %v10323_v21, 0.0 }
 0x6fa   : > { %8760 = vpow2.f32 %v2025_v29  ;;  %2056 = vadd.xlane.f32.xlu1 %v2055_v49 }
 0x6fd   : > { %v1967_v53 = vpop.xlane.xlu1 %1966 }
 0x6fe   : > { %v2009_v48 = vsub.f32 %v1945_v55, %v1967_v53 }
 0x700   : > { %v10327_v17 = vpop.eup %8760  ;;  %v2027_v1 = vmul.f32 1.442695, %v2009_v48 }
 0x701   : > { %v2058_v2 = vsel %vm1796_vm10, %v10327_v17, 0.0 }
 0x702   : > { %8762 = vpow2.f32 %v2027_v1  ;;  %2059 = vadd.xlane.f32.xlu2 %v2058_v2 }
 0x705   : > { %v1970_v63 = vpop.xlane.xlu2 %1969 }
 0x706   : > { %v2010_v4 = vsub.f32 %v1946_v39, %v1970_v63 }
 0x708   : > { %v10331_v62 = vpop.eup %8762  ;;  %v2029_v45 = vmul.f32 1.442695, %v2010_v4  ;;  %v2348_v11 = vpop.permute.xlu0 %2347 }
 0x709   : > { %v2061_v31 = vsel %vm1796_vm10, %v10331_v62, 0.0  ;;  %v2369_v23 = vsel %vm1796_vm10, %v2348_v11, 0 }
 0x70a   : > { %8764 = vpow2.f32 %v2029_v45  ;;  %2062 = vadd.xlane.f32.xlu0 %v2061_v31  ;;  %2383 = vmatpush.bf16.xpose.msrb.mxu2 %v2369_v23 }
 0x70d   : > { %v2338_v34 = vpop.permute.xlu2 %2337 }
 0x710   : > { %v10336_v8 = vpop.eup %8764 }
 0x711   : > { %v2064_v41 = vsel %vm1796_vm10, %v10336_v8, 0.0 }
 0x712   : > { %2065 = vadd.xlane.f32.xlu1 %v2064_v41  ;;  %2384 = vmatpush.bf16.xpose.msrb.mxu2 %v2366_v24 }
 0x715   : > { %v1976_v15 = vpop.xlane.xlu1 %1975 }
 0x716   : > { %v2012_v37 = vsub.f32 %v10311_v60, %v1976_v15 }
 0x718   : > { %v2033_v22 = vmul.f32 1.442695, %v2012_v37 }
 0x719   : > { %7769 = vmatmul.msk.bf16.vlgmr.msrb.gmra.mxu2 %vm1796_vm10, %v2338_v34 }
 0x71a   : > { %2339 = vrot.lane.b32.xlu2 %v10235_v12, %s9283_s30 }
 0x71d   : > { %v1979_v5 = vpop.xlane.xlu1 %1978 }
 0x725   : > { %v1982_v55 = vpop.xlane.xlu1 %1981 }
 0x726   : > { %v2014_v0 = vsub.f32 %v1950_v35, %v1982_v55 }
 0x728   : > { %v2037_v20 = vmul.f32 1.442695, %v2014_v0 }
 0x72b   : > { %2341 = vrot.lane.b32.xlu1 %v10258_v59, %s9283_s30  ;;  %v2013_v59 = vsub.f32 %v10315_v51, %v1979_v5 }
 0x72d   : > { %v2035_v33 = vmul.f32 1.442695, %v2013_v59 }
 0x733   : > { %2343 = vrot.lane.b32.xlu1 %v10269_v54, %s9283_s30  ;;  %v1973_v58 = vpop.xlane.xlu0 %1972 }
 0x734   : > { %v2011_v39 = vsub.f32 %v1947_v25, %v1973_v58 }
 0x736   : > { %v2031_v28 = vmul.f32 1.442695, %v2011_v39 }
 0x738   : > { %8766 = vpow2.f32 %v2031_v28 }
 0x739   : > { %8768 = vpow2.f32 %v2037_v20 }
 0x73a   : > { %8770 = vpow2.f32 %v2033_v22 }
 0x73b   : > { %2414 = vrot.lane.b32.xlu1 %v10233_v61, %s9283_s30  ;;  %8772 = vpow2.f32 %v2035_v33 }
 0x73e   : > { %v10351_v12 = vpop.eup %8766 }
 0x73f   : > { %v10354_v50 = vpop.eup %8768  ;;  %v2067_v54 = vsel %vm1796_vm10, %v10351_v12, 0.0 }
 0x740   : > { %2068 = vadd.xlane.f32.xlu0 %v2067_v54  ;;  %v2076_v60 = vsel %vm1796_vm10, %v10354_v50, 0.0  ;;  %v10362_v61 = vpop.eup %8770 }
 0x741   : > { %v2070_v51 = vsel %vm1796_vm10, %v10362_v61, 0.0  ;;  %v10366_v40 = vpop.eup %8772 }
 0x742   : > { %v2073_v35 = vsel %vm1796_vm10, %v10366_v40, 0.0 }
 0x743   : > { %2410 = vrot.lane.b32.xlu1 %v10293_v14, %s9283_s30  ;;  %2077 = vadd.xlane.f32.xlu2 %v2076_v60  ;;  %v1923_v14 = vpop.f32.mrf.mxu3 }
 0x744   : > { %v10374_v42 = vmul.f32 0.125, %v1923_v14 }
 0x746   : > { %v1983_v25 = vsel %vm1796_vm10, %v10374_v42, -inf }
 0x748   : > { %2071 = vadd.xlane.f32.xlu0 %v2070_v51 }
 0x74b   : > { %v1925_v45 = vpop.f32.mrf.mxu3 }
 0x74c   : > { %v10402_v5 = vmul.f32 0.125, %v1925_v45 }
 0x74e   : > { %v1986_v58 = vsel %vm1796_vm10, %v10402_v5, -inf }
 0x750   : > { %2074 = vadd.xlane.f32.xlu0 %v2073_v35 }
 0x753   : > { %v1928_v31 = vpop.f32.mrf.mxu3 }
 0x754   : > { %v10411_v37 = vmul.f32 0.125, %v1928_v31 }
 0x756   : > { %v1989_v59 = vsel %vm1796_vm10, %v10411_v37, -inf }
 0x75b   : > { %2408 = vrot.lane.b32.xlu2 %v10285_v19, %s9283_s30  ;;  %v1930_v34 = vpop.f32.mrf.mxu3 }
 0x75c   : > { %v10404_v55 = vmul.f32 0.125, %v1930_v34 }
 0x75e   : > { %v1992_v39 = vsel %vm1796_vm10, %v10404_v55, -inf }
 0x763   : > { %v1933_v20 = vpop.f32.mrf.mxu3 }
 0x764   : > { %2420 = vrot.lane.b32.xlu0 %v10191_v16, %s9283_s30  ;;  %v10413_v28 = vmul.f32 0.125, %v1933_v20  ;;  %v8471_v20 = vld [vmem:[%s9393_s29 + $0x148] sm:$0xf0] }
 0x766   : > { %v1995_v54 = vsel %vm1796_vm10, %v10413_v28, -inf }
 0x76b   : > { %v1935_v45 = vpop.f32.mrf.mxu3 }
 0x76c   : > { %2418 = vrot.lane.b32.xlu0 %v10207_v47, %s9283_s30 }
 0x76d   : > { %v2057_v13 = vpop.xlane.xlu1 %2056  ;;  %1984 = vmax.xlane.f32.xlu1 %v1983_v25 }
 0x76e   : > { %8774 = vrcp.f32 %v2057_v13 }
 0x774   : > { %2416 = vrot.lane.b32.xlu0 %v10219_v6, %s9283_s30  ;;  %v8775_v19 = vpop.eup %8774 }
 0x775   : > { %v2060_v46 = vpop.xlane.xlu2 %2059  ;;  %v2119_v16 = vmul.f32 %v8775_v19, %v10323_v21 }
 0x776   : > { %8776 = vrcp.f32 %v2060_v46 }
 0x777   : > { %v2135_v18 = vpack.c.bf16 %v2119_v16, %v2119_v16 }
 0x779   : > { %v2159_v29 = vunpack.c.l.b16 %v2135_v18 }
 0x77c   : > { %v8777_v9 = vpop.eup %8776  ;;  %2406 = vrot.lane.b32.xlu0 %v10277_v44, %s9283_s30 }
 0x77d   : > { %v2120_v47 = vmul.f32 %v8777_v9, %v10327_v17  ;;  %v2340_v32 = vpop.permute.xlu2 %2339  ;;  %v2063_v52 = vpop.xlane.xlu0 %2062 }
 0x77e   : > { %7770 = vmatmul.msk.bf16.gmra.mxu2 %vm1796_vm10, %v2340_v32  ;;  %8778 = vrcp.f32 %v2063_v52 }
 0x77f   : > { %v2136_v36 = vpack.c.bf16 %v2120_v47, %v2120_v47 }
 0x781   : > { %v2160_v6 = vunpack.c.l.b16 %v2136_v36 }
 0x783   : > { %v2167_v49 = vpack.c.b16 %v2160_v6, %v2159_v29 }
 0x784   : > { %2412 = vrot.lane.b32.xlu0 %v10301_v38, %s9283_s30  ;;  %v8779_v53 = vpop.eup %8778 }
 0x785   : > { %v2066_v21 = vpop.xlane.xlu1 %2065  ;;  %7761 = vmatmul.msk.bf16.vlgmr.msra.gmra.mxu3 %vm1796_vm10, %v2167_v49  ;;  %v2121_v44 = vmul.f32 %v8779_v53, %v10331_v62 }
 0x786   : > { %8780 = vrcp.f32 %v2066_v21 }
 0x787   : > { %v2137_v1 = vpack.c.bf16 %v2121_v44, %v2121_v44 }
 0x789   : > { %v2161_v63 = vunpack.c.l.b16 %v2137_v1 }
 0x78c   : > { %v8781_v48 = vpop.eup %8780 }
 0x78d   : > { %v2122_v17 = vmul.f32 %v8781_v48, %v10336_v8 }
 0x78f   : > { %v2138_v2 = vpack.c.bf16 %v2122_v17, %v2122_v17 }
 0x791   : > { %v2162_v4 = vunpack.c.l.b16 %v2138_v2 }
 0x793   : > { %v2168_v11 = vpack.c.b16 %v2162_v4, %v2161_v63 }
 0x795   : > { %7762 = vmatmul.msk.bf16.gmra.mxu3 %vm1796_vm10, %v2168_v11 }
 0x79c   : > { %v2386_v38 = vpop.f32.mrf.mxu2 }
 0x79d   : > { %v10393_v23 = vmul.f32 0.125, %v2386_v38  ;;  %v2342_v41 = vpop.permute.xlu1 %2341  ;;  %v10435_v38 = vmul.f32 0.125, %v1935_v45 }
 0x79e   : > { %7771 = vmatmul.msk.bf16.gmra.mxu2 %vm1796_vm10, %v2342_v41  ;;  %v7823_v41 = vld [vmem:[%s9393_s29 + $0x18c] sm:$0xf] }
 0x79f   : > { %v2491_v62 = vsel %vm1796_vm10, %v10393_v23, -inf }
 0x7a0   : > { %2492 = vmax.xlane.f32.xlu2 %v2491_v62  ;;  %v8472_v62 = vld [vmem:[%s9393_s29 + $0x1c8] sm:$0xf0] }
 0x7a1   : > { %v7824_v34 = vor.u32 %v8472_v62, %v7823_v41 }
 0x7a4   : > { %v2388_v8 = vpop.f32.mrf.mxu2 }
 0x7a5   : > { %v10398_v24 = vmul.f32 0.125, %v2388_v8  ;;  %v2344_v0 = vpop.permute.xlu1 %2343 }
 0x7a7   : > { %v2494_v15 = vsel %vm1796_vm10, %v10398_v24, -inf }
 0x7a8   : > { %2495 = vmax.xlane.f32.xlu1 %v2494_v15 }
 0x7ae   : > { %7772 = vmatmul.msk.bf16.gmra.mxu2 %vm1796_vm10, %v2344_v0  ;;  %1987 = vmax.xlane.f32.xlu0 %v1986_v58  ;;  %v1998_v0 = vsel %vm1796_vm10, %v10435_v38, -inf }
 0x7b0   : > { %1993 = vmax.xlane.f32.xlu1 %v1992_v39  ;;  %v7819_v39 = vld [vmem:[%s9393_s29 + $0x10c] sm:$0xf] }
 0x7b3   : > { %v2069_v22 = vpop.xlane.xlu0 %2068 }
 0x7b4   : > { %8782 = vrcp.f32 %v2069_v22  ;;  %v1938_v22 = vpop.f32.mrf.mxu3 }
 0x7b6   : > { %1990 = vmax.xlane.f32.xlu0 %v1989_v59  ;;  %v2078_v14 = vpop.xlane.xlu2 %2077  ;;  %v7820_v59 = vor.u32 %v8471_v20, %v7819_v39 }
 0x7b8   : > { %1996 = vmax.xlane.f32.xlu1 %v1995_v54  ;;  %v10447_v54 = vmul.f32 0.125, %v1938_v22 }
 0x7ba   : > { %v8783_v60 = vpop.eup %8782 }
 0x7bb   : > { %v2072_v33 = vpop.xlane.xlu0 %2071  ;;  %v2123_v51 = vmul.f32 %v8783_v60, %v10351_v12  ;;  %v8470_v60 = vld [vmem:[%s9393_s29 + $0xc8] sm:$0xf0] }
 0x7bc   : > { %8784 = vrcp.f32 %v2072_v33  ;;  %v7815_v33 = vld [vmem:[%s9393_s29 + $0x8c] sm:$0xf] }
 0x7bd   : > { %v2139_v46 = vpack.c.bf16 %v2123_v51, %v2123_v51  ;;  %v7816_v51 = vor.u32 %v8470_v60, %v7815_v33 }
 0x7be   : > { %v2409_v31 = vpop.permute.xlu2 %2408 }
 0x7bf   : > { %v2163_v16 = vunpack.c.l.b16 %v2139_v46 }
 0x7c2   : > { %v8785_v35 = vpop.eup %8784 }
 0x7c3   : > { %v2075_v25 = vpop.xlane.xlu0 %2074  ;;  %v2124_v13 = vmul.f32 %v8785_v35, %v10362_v61  ;;  %v7811_v35 = vld [vmem:[%s9393_s29 + $0xc] sm:$0xf] }
 0x7c4   : > { %8786 = vrcp.f32 %v2075_v25  ;;  %v2001_v25 = vsel %vm1796_vm10, %v10447_v54, -inf }
 0x7c5   : > { %v2140_v19 = vpack.c.bf16 %v2124_v13, %v2124_v13  ;;  %8788 = vrcp.f32 %v2078_v14  ;;  %v8469_v14 = vld [vmem:[%s9393_s29 + $0x48] sm:$0xf0] }
 0x7c6   : > { %v7812_v13 = vor.u32 %v8469_v14, %v7811_v35 }
 0x7c7   : > { %v2164_v9 = vunpack.c.l.b16 %v2140_v19  ;;  %v1940_v19 = vpop.f32.mrf.mxu3 }
 0x7c9   : > { %v2169_v18 = vpack.c.b16 %v2164_v9, %v2163_v16 }
 0x7ca   : > { %v8787_v47 = vpop.eup %8786 }
 0x7cb   : > { %7763 = vmatmul.msk.bf16.gmra.mxu3 %vm1796_vm10, %v2169_v18  ;;  %v8789_v32 = vpop.eup %8788  ;;  %v2125_v52 = vmul.f32 %v8787_v47, %v10366_v40 }
 0x7cc   : > { %v2126_v12 = vmul.f32 %v8789_v32, %v10354_v50  ;;  %v2415_v50 = vpop.permute.xlu1 %2414 }
 0x7cd   : > { %v2141_v36 = vpack.c.bf16 %v2125_v52, %v2125_v52  ;;  %v2435_v1 = vsel %vm1796_vm10, %v2415_v50, 0  ;;  %v10461_v52 = vmul.f32 0.125, %v1940_v19 }
 0x7ce   : > { %v2142_v29 = vpack.c.bf16 %v2126_v12, %v2126_v12 }
 0x7cf   : > { %v2165_v6 = vunpack.c.l.b16 %v2141_v36 }
 0x7d0   : > { %v2166_v21 = vunpack.c.l.b16 %v2142_v29 }
 0x7d2   : > { %v2170_v53 = vpack.c.b16 %v2166_v21, %v2165_v6  ;;  %v2004_v6 = vsel %vm1796_vm10, %v10461_v52, -inf }
 0x7d4   : > { %v2411_v46 = vpop.permute.xlu1 %2410 }
 0x7d6   : > { %v2421_v49 = vpop.permute.xlu0 %2420 }
 0x7d7   : > { %v2444_v61 = vsel %vm1796_vm10, %v2421_v49, 0 }
 0x7d8   : > { %2450 = vmatpush.bf16.xpose.msrb.mxu3 %v2444_v61 }
 0x7db   : > { %7764 = vmatmul.msk.bf16.gmra.mxu3 %vm1796_vm10, %v2170_v53 }
 0x7de   : > { %v2419_v44 = vpop.permute.xlu0 %2418 }
 0x7df   : > { %v2441_v48 = vsel %vm1796_vm10, %v2419_v44, 0 }
 0x7e0   : > { %2451 = vmatpush.bf16.xpose.msrb.mxu3 %v2441_v48  ;;  %v1985_v45 = vpop.xlane.xlu1 %1984 }
 0x7e1   : > { %v2015_v41 = vsub.f32 %v10374_v42, %v1985_v45 }
 0x7e3   : > { %v2039_v62 = vmul.f32 1.442695, %v2015_v41 }
 0x7e5   : > { %8790 = vpow2.f32 %v2039_v62 }
 0x7e6   : > { %v2417_v17 = vpop.permute.xlu0 %2416 }
 0x7e7   : > { %v2438_v40 = vsel %vm1796_vm10, %v2417_v17, 0 }
 0x7e8   : > { %2452 = vmatpush.bf16.xpose.msrb.mxu3 %v2438_v40 }
 0x7ee   : > { %v2407_v2 = vpop.permute.xlu0 %2406 }
 0x7f0   : > { %2453 = vmatpush.bf16.xpose.msrb.mxu3 %v2435_v1 }
 0x7f6   : > { %v2413_v32 = vpop.permute.xlu0 %2412 }
 0x7f7   : > { %7773 = vmatmul.msk.bf16.vlgmr.msrb.gmra.mxu3 %vm1796_vm10, %v2407_v2 }
 0x7f8   : > { %2994 = vmatpush.bf16.msra.mxu3 %v7824_v34 }
 0x7fc   : > { %2995 = vmatpush.bf16.msra.mxu3 %v7820_v59 }
 0x800   : > { %2996 = vmatpush.bf16.msra.mxu3 %v7816_v51 }
 0x801   : > { %v2391_v63 = vpop.f32.mrf.mxu2 }
 0x802   : > { %v10430_v4 = vmul.f32 0.125, %v2391_v63 }
 0x804   : > { %v2497_v11 = vsel %vm1796_vm10, %v10430_v4, -inf  ;;  %2997 = vmatpush.bf16.msra.mxu3 %v7812_v13 }
 0x805   : > { %2498 = vmax.xlane.f32.xlu2 %v2497_v11 }
 0x807   : > { %7774 = vmatmul.msk.bf16.gmra.mxu3 %vm1796_vm10, %v2409_v31 }
 0x808   : > { %v2216_v18 = vpop.f32.mrf.mxu3 }
 0x809   : > { %v2393_v8 = vpop.f32.mrf.mxu2 }
 0x80a   : > { %v10439_v15 = vmul.f32 0.125, %v2393_v8 }
 0x80c   : > { %v2500_v58 = vsel %vm1796_vm10, %v10439_v15, -inf }
 0x80d   : > { %1999 = vmax.xlane.f32.xlu2 %v1998_v0  ;;  %2501 = vmax.xlane.f32.xlu0 %v2500_v58  ;;  %v10494_v0 = vpop.eup %8790 }
 0x810   : > { %v2218_v49 = vpop.f32.mrf.mxu3 }
 0x811   : > { %v2329_v44 = vpack.c.bf16 %v2218_v49, %v2216_v18 }
 0x813   : > { %v2493_v22 = vpop.xlane.xlu2 %2492 }
 0x815   : > { %2002 = vmax.xlane.f32.xlu2 %v2001_v25 }
 0x817   : > { %7775 = vmatmul.msk.bf16.gmra.mxu3 %vm1796_vm10, %v2411_v46 }
 0x818   : > { %v2221_v48 = vpop.f32.mrf.mxu3 }
 0x81b   : > { %v10489_v8 = vpop.xlane.xlu1 %2495 }
 0x820   : > { %v2223_v1 = vpop.f32.mrf.mxu3 }
 0x821   : > { %v2396_v16 = vpop.f32.mrf.mxu2  ;;  %v2330_v2 = vpack.c.bf16 %v2223_v1, %v2221_v48 }
 0x822   : > { %v10456_v9 = vmul.f32 0.125, %v2396_v16 }
 0x823   : > { %v1994_v58 = vpop.xlane.xlu1 %1993 }
 0x824   : > { %v2503_v47 = vsel %vm1796_vm10, %v10456_v9, -inf  ;;  %v2018_v20 = vsub.f32 %v10404_v55, %v1994_v58 }
 0x825   : > { %2504 = vmax.xlane.f32.xlu0 %v2503_v47 }
 0x826   : > { %v2045_v59 = vmul.f32 1.442695, %v2018_v20 }
 0x827   : > { %7776 = vmatmul.msk.bf16.gmra.mxu3 %vm1796_vm10, %v2413_v32  ;;  %v2539_v32 = vsub.f32 %v10393_v23, %v2493_v22 }
 0x829   : > { %v2398_v12 = vpop.f32.mrf.mxu2 }
 0x82a   : > { %v10463_v36 = vmul.f32 0.125, %v2398_v12  ;;  %v2555_v12 = vmul.f32 1.442695, %v2539_v32 }
 0x82c   : > { %v2506_v29 = vsel %vm1796_vm10, %v10463_v36, -inf }
 0x82d   : > { %2507 = vmax.xlane.f32.xlu1 %v2506_v29  ;;  %2005 = vmax.xlane.f32.xlu0 %v2004_v6 }
 0x831   : > { %v2401_v61 = vpop.f32.mrf.mxu2 }
 0x832   : > { %v10469_v21 = vmul.f32 0.125, %v2401_v61 }
 0x834   : > { %v2509_v53 = vsel %vm1796_vm10, %v10469_v21, -inf }
 0x835   : > { %2510 = vmax.xlane.f32.xlu1 %v2509_v53 }
 0x837   : > { %7825 = vmatmul.msk.bf16.vlgmr.msra.gmra.mxu3 %vm1796_vm10, %v2329_v44 }
 0x839   : > { %v2403_v17 = vpop.f32.mrf.mxu2 }
 0x83a   : > { %v10474_v40 = vmul.f32 0.125, %v2403_v17 }
 0x83c   : > { %v2512_v50 = vsel %vm1796_vm10, %v10474_v40, -inf }
 0x83d   : > { %2513 = vmax.xlane.f32.xlu2 %v2512_v50 }
 0x841   : > { %2705 = vrot.lane.b32.xlu0 %v10255_v30, %s9283_s30 }
 0x847   : > { %7826 = vmatmul.msk.bf16.gmra.mxu3 %vm1796_vm10, %v2330_v2 }
 0x84e   : > { %2709 = vrot.lane.b32.xlu1 %v10239_v56, %s9283_s30  ;;  %v2226_v63 = vpop.f32.mrf.mxu3  ;;  %v1988_v56 = vpop.xlane.xlu0 %1987 }
 0x855   : > { %2707 = vrot.lane.b32.xlu2 %v10246_v7, %s9283_s30  ;;  %v2016_v7 = vsub.f32 %v10402_v5, %v1988_v56 }
 0x856   : > { %v2228_v11 = vpop.f32.mrf.mxu3  ;;  %v1991_v35 = vpop.xlane.xlu0 %1990 }
 0x857   : > { %v2331_v31 = vpack.c.bf16 %v2228_v11, %v2226_v63  ;;  %v2041_v39 = vmul.f32 1.442695, %v2016_v7  ;;  %v2017_v55 = vsub.f32 %v10411_v37, %v1991_v35 }
 0x859   : > { %7827 = vmatmul.msk.bf16.gmra.mxu3 %vm1796_vm10, %v2331_v31  ;;  %8792 = vpow2.f32 %v2041_v39  ;;  %v2043_v46 = vmul.f32 1.442695, %v2017_v55 }
 0x85a   : > { %8794 = vpow2.f32 %v2045_v59 }
 0x85d   : > { %2703 = vrot.lane.b32.xlu2 %v10260_v57, %s9283_s30  ;;  %v2079_v57 = vsel %vm1796_vm10, %v10494_v0, 0.0 }
 0x85e   : > { %v2231_v30 = vpop.f32.mrf.mxu3 }
 0x85f   : > { %v10500_v33 = vpop.eup %8792 }
 0x860   : > { %v2082_v60 = vsel %vm1796_vm10, %v10500_v33, 0.0  ;;  %v10507_v25 = vpop.eup %8794 }
 0x861   : > { %v2088_v13 = vsel %vm1796_vm10, %v10507_v25, 0.0 }
 0x865   : > { %2782 = vrot.lane.b32.xlu2 %v10179_v27, %s9283_s30  ;;  %v1997_v27 = vpop.xlane.xlu1 %1996 }
 0x866   : > { %v2233_v34 = vpop.f32.mrf.mxu3  ;;  %v2019_v5 = vsub.f32 %v10413_v28, %v1997_v27 }
 0x867   : > { %v2332_v42 = vpack.c.bf16 %v2233_v34, %v2231_v30 }
 0x868   : > { %v2047_v14 = vmul.f32 1.442695, %v2019_v5 }
 0x869   : > { %7828 = vmatmul.msk.bf16.gmra.mxu3 %vm1796_vm10, %v2332_v42 }
 0x86a   : > { %8796 = vpow2.f32 %v2047_v14 }
 0x86b   : > { %2080 = vadd.xlane.f32.xlu0 %v2079_v57  ;;  %8798 = vpow2.f32 %v2043_v46 }
 0x870   : > { %v10515_v47 = vpop.eup %8796 }
 0x871   : > { %v2091_v37 = vsel %vm1796_vm10, %v10515_v47, 0.0  ;;  %v10521_v61 = vpop.eup %8798 }
 0x872   : > { %v2085_v17 = vsel %vm1796_vm10, %v10521_v61, 0.0 }
 0x878   : > { %v10505_v51 = vpop.xlane.xlu2 %2498  ;;  %2083 = vadd.xlane.f32.xlu1 %v2082_v60 }
 0x87a   : > { %v10512_v19 = vpop.f32.mrf.mxu3 }
 0x880   : > { %v2000_v28 = vpop.xlane.xlu2 %1999  ;;  %2089 = vadd.xlane.f32.xlu1 %v2088_v13  ;;  %v2502_v29 = vpop.xlane.xlu0 %2501 }
 0x881   : > { %v2020_v16 = vsub.f32 %v10435_v38, %v2000_v28  ;;  %v2542_v44 = vsub.f32 %v10439_v15, %v2502_v29 }
 0x882   : > { %v10523_v53 = vpop.f32.mrf.mxu3 }
 0x883   : > { %v2049_v18 = vmul.f32 1.442695, %v2020_v16 }
 0x885   : > { %8800 = vpow2.f32 %v2049_v18 }
 0x886   : > { %8802 = vpow2.f32 %v2555_v12 }
 0x888   : > { %v2003_v6 = vpop.xlane.xlu2 %2002  ;;  %2092 = vadd.xlane.f32.xlu1 %v2091_v37 }
 0x889   : > { %v2021_v49 = vsub.f32 %v10447_v54, %v2003_v6  ;;  %v2561_v54 = vmul.f32 1.442695, %v2542_v44  ;;  %v10588_v44 = vmul.f32 0.125, %v10512_v19 }
 0x88a   : > { %v10536_v2 = vpop.f32.mrf.mxu3 }
 0x88b   : > { %v10525_v38 = vpop.eup %8800  ;;  %v2051_v23 = vmul.f32 1.442695, %v2021_v49 }
 0x88c   : > { %v2094_v48 = vsel %vm1796_vm10, %v10525_v38, 0.0  ;;  %v10532_v50 = vpop.eup %8802 }
 0x88d   : > { %8804 = vpow2.f32 %v2051_v23  ;;  %2095 = vadd.xlane.f32.xlu0 %v2094_v48  ;;  %v2587_v63 = vsel %vm1796_vm10, %v10532_v50, 0.0 }
 0x88e   : > { %2086 = vadd.xlane.f32.xlu2 %v2085_v17  ;;  %8806 = vpow2.f32 %v2561_v54  ;;  %v10591_v17 = vmul.f32 0.125, %v10523_v53 }
 0x890   : > { %v2518_v19 = vsel %vm1796_vm10, %v10591_v17, -inf }
 0x892   : > { %v2462_v30 = vpop.f32.mrf.mxu3 }
 0x893   : > { %v10534_v1 = vpop.eup %8804  ;;  %v10575_v18 = vmul.f32 0.125, %v2462_v30 }
 0x894   : > { %v2097_v15 = vsel %vm1796_vm10, %v10534_v1, 0.0  ;;  %v10542_v11 = vpop.eup %8806 }
 0x895   : > { %2098 = vadd.xlane.f32.xlu1 %v2097_v15  ;;  %v2596_v62 = vsel %vm1796_vm10, %v10542_v11, 0.0  ;;  %v2524_v6 = vsel %vm1796_vm10, %v10575_v18, -inf  ;;  %v2515_v15 = vsel %vm1796_vm10, %v10588_v44, -inf }
 0x896   : > { %2588 = vadd.xlane.f32.xlu2 %v2587_v63 }
 0x898   : > { %v2505_v45 = vpop.xlane.xlu0 %2504 }
 0x899   : > { %v2543_v31 = vsub.f32 %v10456_v9, %v2505_v45  ;;  %v2540_v9 = vsub.f32 %v10398_v24, %v10489_v8  ;;  %v2541_v24 = vsub.f32 %v10430_v4, %v10505_v51 }
 0x89a   : > { %v2465_v59 = vpop.f32.mrf.mxu3 }
 0x89b   : > { %v2563_v41 = vmul.f32 1.442695, %v2543_v31  ;;  %v2557_v22 = vmul.f32 1.442695, %v2540_v9  ;;  %v2559_v14 = vmul.f32 1.442695, %v2541_v24 }
 0x89d   : > { %8808 = vpow2.f32 %v2563_v41  ;;  %2597 = vadd.xlane.f32.xlu1 %v2596_v62  ;;  %v10602_v41 = vmul.f32 0.125, %v10536_v2 }
 0x8a0   : > { %v2508_v56 = vpop.xlane.xlu1 %2507  ;;  %v2006_v7 = vpop.xlane.xlu0 %2005 }
 0x8a1   : > { %v2544_v34 = vsub.f32 %v10463_v36, %v2508_v56  ;;  %v2022_v42 = vsub.f32 %v10461_v52, %v2006_v7  ;;  %v2521_v56 = vsel %vm1796_vm10, %v10602_v41, -inf  ;;  %v10610_v7 = vmul.f32 0.125, %v2465_v59 }
 0x8a2   : > { %v2467_v46 = vpop.f32.mrf.mxu3 }
 0x8a3   : > { %v10549_v58 = vpop.eup %8808  ;;  %v2565_v39 = vmul.f32 1.442695, %v2544_v34  ;;  %v2053_v57 = vmul.f32 1.442695, %v2022_v42  ;;  %v10593_v54 = vmul.f32 0.125, %v2467_v46  ;;  %v2527_v34 = vsel %vm1796_vm10, %v10610_v7, -inf }
 0x8a4   : > { %v2599_v20 = vsel %vm1796_vm10, %v10549_v58, 0.0 }
 0x8a5   : > { %8810 = vpow2.f32 %v2565_v39  ;;  %2600 = vadd.xlane.f32.xlu2 %v2599_v20  ;;  %v2530_v63 = vsel %vm1796_vm10, %v10593_v54, -inf }
 0x8a6   : > { %8812 = vpow2.f32 %v2053_v57 }
 0x8a7   : > { %8814 = vpow2.f32 %v2557_v22 }
 0x8a8   : > { %v2511_v27 = vpop.xlane.xlu1 %2510 }
 0x8a9   : > { %v2545_v36 = vsub.f32 %v10469_v21, %v2511_v27 }
 0x8aa   : > { %v2470_v12 = vpop.f32.mrf.mxu3 }
 0x8ab   : > { %v10556_v5 = vpop.eup %8810  ;;  %v2567_v52 = vmul.f32 1.442695, %v2545_v36  ;;  %v10614_v2 = vmul.f32 0.125, %v2470_v12 }
 0x8ac   : > { %v10558_v60 = vpop.eup %8812  ;;  %v2602_v8 = vsel %vm1796_vm10, %v10556_v5, 0.0 }
 0x8ad   : > { %8816 = vpow2.f32 %v2567_v52  ;;  %2603 = vadd.xlane.f32.xlu1 %v2602_v8  ;;  %v2100_v35 = vsel %vm1796_vm10, %v10558_v60, 0.0  ;;  %v10567_v13 = vpop.eup %8814  ;;  %v2533_v42 = vsel %vm1796_vm10, %v10614_v2, -inf }
 0x8ae   : > { %2101 = vadd.xlane.f32.xlu0 %v2100_v35  ;;  %8818 = vpow2.f32 %v2559_v14  ;;  %v2590_v51 = vsel %vm1796_vm10, %v10567_v13, 0.0 }
 0x8b0   : > { %v2514_v21 = vpop.xlane.xlu2 %2513 }
 0x8b1   : > { %v2546_v55 = vsub.f32 %v10474_v40, %v2514_v21 }
 0x8b2   : > { %v2472_v45 = vpop.f32.mrf.mxu3 }
 0x8b3   : > { %v10569_v28 = vpop.eup %8816  ;;  %v2569_v16 = vmul.f32 1.442695, %v2546_v55  ;;  %v2706_v31 = vpop.permute.xlu0 %2705  ;;  %v10604_v62 = vmul.f32 0.125, %v2472_v45 }
 0x8b4   : > { %v2605_v4 = vsel %vm1796_vm10, %v10569_v28, 0.0  ;;  %v10577_v40 = vpop.eup %8818 }
 0x8b5   : > { %8820 = vpow2.f32 %v2569_v16  ;;  %2606 = vadd.xlane.f32.xlu2 %v2605_v4  ;;  %v2593_v49 = vsel %vm1796_vm10, %v10577_v40, 0.0  ;;  %v2536_v30 = vsel %vm1796_vm10, %v10604_v62, -inf }
 0x8b6   : > { %2591 = vadd.xlane.f32.xlu0 %v2590_v51 }
 0x8b8   : > { %v2708_v32 = vpop.permute.xlu2 %2707 }
 0x8bb   : > { %v10579_v37 = vpop.eup %8820 }
 0x8bc   : > { %v2608_v29 = vsel %vm1796_vm10, %v10579_v37, 0.0 }
 0x8bd   : > { %2609 = vadd.xlane.f32.xlu1 %v2608_v29  ;;  %2525 = vmax.xlane.f32.xlu2 %v2524_v6 }
 0x8be   : > { %2594 = vadd.xlane.f32.xlu0 %v2593_v49 }
 0x8c0   : > { %v2710_v23 = vpop.permute.xlu1 %2709  ;;  %v2704_v48 = vpop.permute.xlu2 %2703 }
 0x8c1   : > { %2731 = vmatpush.bf16.msra.mxu0 %v2710_v23 }
 0x8c5   : > { %2732 = vmatpush.bf16.msra.mxu0 %v2708_v32  ;;  %2516 = vmax.xlane.f32.xlu1 %v2515_v15 }
 0x8c6   : > { %2531 = vmax.xlane.f32.xlu2 %v2530_v63  ;;  %2519 = vmax.xlane.f32.xlu0 %v2518_v19 }
 0x8c8   : > { %v2783_v53 = vpop.permute.xlu2 %2782 }
 0x8c9   : > { %2733 = vmatpush.bf16.msra.mxu0 %v2706_v31  ;;  %2804 = vmatpush.bf16.msrb.mxu1 %v2783_v53 }
 0x8cd   : > { %2734 = vmatpush.bf16.msra.mxu0 %v2704_v48 }
 0x8ce   : > { %2537 = vmax.xlane.f32.xlu2 %v2536_v30  ;;  %2522 = vmax.xlane.f32.xlu0 %v2521_v56 }
 0x8d6   : > { %2528 = vmax.xlane.f32.xlu0 %v2527_v34 }
 0x8de   : > { %2534 = vmax.xlane.f32.xlu0 %v2533_v42  ;;  %v2081_v39 = vpop.xlane.xlu0 %2080 }
 0x8df   : > { %8822 = vrcp.f32 %v2081_v39 }
 0x8e5   : > { %v8823_v9 = vpop.eup %8822 }
 0x8e6   : > { %2776 = vrot.lane.b32.xlu2 %v10202_v3, %s9283_s30  ;;  %v2127_v20 = vmul.f32 %v8823_v9, %v10494_v0 }
 0x8e8   : > { %v2143_v59 = vpack.c.bf16 %v2127_v20, %v2127_v20 }
 0x8ea   : > { %v2244_v52 = vunpack.c.l.b16 %v2143_v59 }
 0x8eb   : > { %v2084_v57 = vpop.xlane.xlu1 %2083 }
 0x8ec   : > { %8824 = vrcp.f32 %v2084_v57 }
 0x8f2   : > { %v8825_v22 = vpop.eup %8824 }
 0x8f3   : > { %v2128_v27 = vmul.f32 %v8825_v22, %v10500_v33  ;;  %v2090_v35 = vpop.xlane.xlu1 %2089 }
 0x8f4   : > { %8826 = vrcp.f32 %v2090_v35 }
 0x8f5   : > { %v2144_v36 = vpack.c.bf16 %v2128_v27, %v2128_v27 }
 0x8f7   : > { %v2245_v24 = vunpack.c.l.b16 %v2144_v36 }
 0x8f9   : > { %v2252_v8 = vpack.c.b16 %v2245_v24, %v2244_v52 }
 0x8fa   : > { %v8827_v21 = vpop.eup %8826 }
 0x8fb   : > { %7765 = vmatmul.msk.bf16.vlgmr.msra.gmra.mxu1 %vm1796_vm10, %v2252_v8  ;;  %v2130_v3 = vmul.f32 %v8827_v21, %v10507_v25  ;;  %v2093_v0 = vpop.xlane.xlu1 %2092 }
 0x8fd   : > { %v2146_v4 = vpack.c.bf16 %v2130_v3, %v2130_v3 }
 0x8ff   : > { %v2247_v32 = vunpack.c.l.b16 %v2146_v4 }
 0x900   : > { %v2096_v55 = vpop.xlane.xlu0 %2095 }
 0x901   : > { %v2087_v14 = vpop.xlane.xlu2 %2086 }
 0x902   : > { %8828 = vrcp.f32 %v2087_v14 }
 0x903   : > { %8830 = vrcp.f32 %v2096_v55 }
 0x904   : > { %8832 = vrcp.f32 %v2093_v0 }
 0x908   : > { %v8829_v46 = vpop.eup %8828  ;;  %v2099_v23 = vpop.xlane.xlu1 %2098 }
 0x909   : > { %v2129_v16 = vmul.f32 %v8829_v46, %v10521_v61  ;;  %v8831_v29 = vpop.eup %8830  ;;  %v2589_v63 = vpop.xlane.xlu2 %2588  ;;  %8834 = vrcp.f32 %v2099_v23 }
 0x90a   : > { %v8833_v6 = vpop.eup %8832  ;;  %v2132_v49 = vmul.f32 %v8831_v29, %v10525_v38 }
 0x90b   : > { %v2145_v33 = vpack.c.bf16 %v2129_v16, %v2129_v16  ;;  %v2131_v25 = vmul.f32 %v8833_v6, %v10515_v47 }
 0x90c   : > { %v2148_v48 = vpack.c.bf16 %v2132_v49, %v2132_v49 }
 0x90d   : > { %v2246_v51 = vunpack.c.l.b16 %v2145_v33  ;;  %v2147_v15 = vpack.c.bf16 %v2131_v25, %v2131_v25 }
 0x90e   : > { %v2249_v61 = vunpack.c.l.b16 %v2148_v48 }
 0x90f   : > { %v2253_v12 = vpack.c.b16 %v2247_v32, %v2246_v51  ;;  %v2248_v19 = vunpack.c.l.b16 %v2147_v15  ;;  %v8835_v30 = vpop.eup %8834 }
 0x910   : > { %v2598_v31 = vpop.xlane.xlu1 %2597  ;;  %v2133_v38 = vmul.f32 %v8835_v30, %v10534_v1 }
 0x911   : > { %7766 = vmatmul.msk.bf16.gmra.mxu1 %vm1796_vm10, %v2253_v12  ;;  %v2254_v45 = vpack.c.b16 %v2249_v61, %v2248_v19 }
 0x912   : > { %v2149_v42 = vpack.c.bf16 %v2133_v38, %v2133_v38 }
 0x914   : > { %v2250_v27 = vunpack.c.l.b16 %v2149_v42 }
 0x918   : > { %v2601_v56 = vpop.xlane.xlu2 %2600 }
 0x920   : > { %v2604_v47 = vpop.xlane.xlu1 %2603 }
 0x921   : > { %v2102_v53 = vpop.xlane.xlu0 %2101  ;;  %7767 = vmatmul.msk.bf16.gmra.mxu1 %vm1796_vm10, %v2254_v45 }
 0x922   : > { %8836 = vrcp.f32 %v2102_v53 }
 0x923   : > { %8838 = vrcp.f32 %v2589_v63 }
 0x928   : > { %v8837_v34 = vpop.eup %8836  ;;  %v2607_v22 = vpop.xlane.xlu2 %2606 }
 0x929   : > { %v2134_v39 = vmul.f32 %v8837_v34, %v10558_v60  ;;  %v2592_v57 = vpop.xlane.xlu0 %2591  ;;  %v8839_v9 = vpop.eup %8838 }
 0x92a   : > { %8840 = vrcp.f32 %v2592_v57  ;;  %v2651_v59 = vmul.f32 %v8839_v9, %v10532_v50 }
 0x92b   : > { %v2150_v20 = vpack.c.bf16 %v2134_v39, %v2134_v39 }
 0x92c   : > { %v2667_v35 = vpack.c.bf16 %v2651_v59, %v2651_v59 }
 0x92d   : > { %v2251_v36 = vunpack.c.l.b16 %v2150_v20 }
 0x92e   : > { %v2691_v21 = vunpack.c.l.b16 %v2667_v35 }
 0x92f   : > { %v2255_v52 = vpack.c.b16 %v2251_v36, %v2250_v27 }
 0x930   : > { %v8841_v24 = vpop.eup %8840  ;;  %v2610_v8 = vpop.xlane.xlu1 %2609 }
 0x931   : > { %v2652_v1 = vmul.f32 %v8841_v24, %v10567_v13  ;;  %v2595_v14 = vpop.xlane.xlu0 %2594  ;;  %7768 = vmatmul.msk.bf16.gmra.mxu1 %vm1796_vm10, %v2255_v52  ;;  %v10634_v55 = vpop.xlane.xlu2 %2525 }
 0x932   : > { %8842 = vrcp.f32 %v2595_v14 }
 0x933   : > { %v2668_v60 = vpack.c.bf16 %v2652_v1, %v2652_v1  ;;  %8844 = vrcp.f32 %v2598_v31 }
 0x935   : > { %v2692_v3 = vunpack.c.l.b16 %v2668_v60 }
 0x937   : > { %v2699_v46 = vpack.c.b16 %v2692_v3, %v2691_v21 }
 0x938   : > { %v8843_v50 = vpop.eup %8842  ;;  %v2517_v0 = vpop.xlane.xlu1 %2516 }
 0x939   : > { %v2547_v16 = vsub.f32 %v10588_v44, %v2517_v0  ;;  %7777 = vmatmul.msk.bf16.vlgmr.msra.gmra.mxu0 %vm1796_vm10, %v2699_v46  ;;  %v2520_v4 = vpop.xlane.xlu0 %2519  ;;  %v8845_v33 = vpop.eup %8844  ;;  %v2653_v32 = vmul.f32 %v8843_v50, %v10577_v40 }
 0x93a   : > { %v2548_v13 = vsub.f32 %v10591_v17, %v2520_v4  ;;  %v2654_v29 = vmul.f32 %v8845_v33, %v10542_v11  ;;  %v10641_v6 = vpop.xlane.xlu2 %2531 }
 0x93b   : > { %v2571_v51 = vmul.f32 1.442695, %v2547_v16  ;;  %v2669_v49 = vpack.c.bf16 %v2653_v32, %v2653_v32  ;;  %v2552_v21 = vsub.f32 %v10593_v54, %v10641_v6  ;;  %v8476_v32 = vld [vmem:[%s9393_s29 + $0x3c8] sm:$0xf0] }
 0x93c   : > { %v2573_v12 = vmul.f32 1.442695, %v2548_v13  ;;  %v2670_v23 = vpack.c.bf16 %v2654_v29, %v2654_v29  ;;  %v7795_v6 = vld [vmem:[%s9393_s29 + $0x30c] sm:$0xf] }
 0x93d   : > { %8846 = vpow2.f32 %v2571_v51  ;;  %v2693_v48 = vunpack.c.l.b16 %v2669_v49  ;;  %v2581_v46 = vmul.f32 1.442695, %v2552_v21  ;;  %v7799_v51 = vld [vmem:[%s9393_s29 + $0x38c] sm:$0xf] }
 0x93e   : > { %8848 = vpow2.f32 %v2573_v12  ;;  %v2694_v40 = vunpack.c.l.b16 %v2670_v23  ;;  %v7800_v29 = vor.u32 %v8476_v32, %v7799_v51  ;;  %v8475_v49 = vld [vmem:[%s9393_s29 + $0x348] sm:$0xf0] }
 0x93f   : > { %8850 = vrcp.f32 %v2604_v47  ;;  %v7796_v23 = vor.u32 %v8475_v49, %v7795_v6 }
 0x940   : > { %8852 = vrcp.f32 %v2601_v56  ;;  %v2700_v63 = vpack.c.b16 %v2694_v40, %v2693_v48  ;;  %2897 = vmatpush.bf16.msra.mxu2 %v7800_v29  ;;  %v8474_v40 = vld [vmem:[%s9393_s29 + $0x2c8] sm:$0xf0] }
 0x941   : > { %v2523_v25 = vpop.xlane.xlu0 %2522 }
 0x942   : > { %v2538_v19 = vpop.xlane.xlu2 %2537 }
 0x943   : > { %v10643_v44 = vpop.eup %8846  ;;  %v2554_v56 = vsub.f32 %v10604_v62, %v2538_v19 }
 0x944   : > { %v2611_v17 = vsel %vm1796_vm10, %v10643_v44, 0.0  ;;  %v10647_v15 = vpop.eup %8848  ;;  %2898 = vmatpush.bf16.msra.mxu2 %v7796_v23 }
 0x945   : > { %2612 = vadd.xlane.f32.xlu1 %v2611_v17  ;;  %v2614_v11 = vsel %vm1796_vm10, %v10647_v15, 0.0  ;;  %v8851_v61 = vpop.eup %8850  ;;  %v2585_v42 = vmul.f32 1.442695, %v2554_v56  ;;  %v7791_v17 = vld [vmem:[%s9393_s29 + $0x28c] sm:$0xf] }
 0x946   : > { %2615 = vadd.xlane.f32.xlu0 %v2614_v11  ;;  %v8853_v31 = vpop.eup %8852  ;;  %v2656_v30 = vmul.f32 %v8851_v61, %v10556_v5  ;;  %v7792_v11 = vor.u32 %v8474_v40, %v7791_v17  ;;  %v8473_v61 = vld [vmem:[%s9393_s29 + $0x248] sm:$0xf0] }
 0x947   : > { %v2655_v34 = vmul.f32 %v8853_v31, %v10549_v58 }
 0x948   : > { %v2672_v47 = vpack.c.bf16 %v2656_v30, %v2656_v30  ;;  %2899 = vmatpush.bf16.msra.mxu2 %v7792_v11 }
 0x949   : > { %7778 = vmatmul.msk.bf16.gmra.mxu0 %vm1796_vm10, %v2700_v63  ;;  %v2529_v45 = vpop.xlane.xlu0 %2528  ;;  %v2671_v39 = vpack.c.bf16 %v2655_v34, %v2655_v34  ;;  %v7787_v63 = vld [vmem:[%s9393_s29 + $0x20c] sm:$0xf] }
 0x94a   : > { %v2551_v53 = vsub.f32 %v10610_v7, %v2529_v45  ;;  %v2696_v57 = vunpack.c.l.b16 %v2672_v47  ;;  %v7788_v45 = vor.u32 %v8473_v61, %v7787_v63 }
 0x94b   : > { %v2695_v20 = vunpack.c.l.b16 %v2671_v39 }
 0x94c   : > { %v2579_v38 = vmul.f32 1.442695, %v2551_v53  ;;  %2900 = vmatpush.bf16.msra.mxu2 %v7788_v45 }
 0x94d   : > { %v2701_v5 = vpack.c.b16 %v2696_v57, %v2695_v20 }
 0x94e   : > { %8854 = vpow2.f32 %v2579_v38 }
 0x94f   : > { %8856 = vrcp.f32 %v2610_v8 }
 0x950   : > { %8858 = vrcp.f32 %v2607_v22 }
 0x951   : > { %8860 = vpow2.f32 %v2585_v42 }
 0x954   : > { %v10656_v9 = vpop.eup %8854 }
 0x955   : > { %v2623_v7 = vsel %vm1796_vm10, %v10656_v9, 0.0  ;;  %v8857_v62 = vpop.eup %8856 }
 0x956   : > { %2624 = vadd.xlane.f32.xlu2 %v2623_v7  ;;  %v8859_v59 = vpop.eup %8858  ;;  %v2658_v27 = vmul.f32 %v8857_v62, %v10579_v37  ;;  %v2549_v37 = vsub.f32 %v10602_v41, %v2523_v25 }
 0x957   : > { %v10661_v58 = vpop.eup %8860  ;;  %v2657_v22 = vmul.f32 %v8859_v59, %v10569_v28 }
 0x958   : > { %v2632_v36 = vsel %vm1796_vm10, %v10661_v58, 0.0  ;;  %v2674_v52 = vpack.c.bf16 %v2658_v27, %v2658_v27  ;;  %v2575_v28 = vmul.f32 1.442695, %v2549_v37 }
 0x959   : > { %7779 = vmatmul.msk.bf16.gmra.mxu0 %vm1796_vm10, %v2701_v5  ;;  %v2673_v24 = vpack.c.bf16 %v2657_v22, %v2657_v22 }
 0x95a   : > { %2778 = vrot.lane.b32.xlu0 %v10189_v10, %s9283_s30  ;;  %v2698_v8 = vunpack.c.l.b16 %v2674_v52  ;;  %v2550_v10 = vsub.f32 %v10575_v18, %v10634_v55  ;;  %8862 = vpow2.f32 %v2575_v28 }
 0x95b   : > { %v2697_v35 = vunpack.c.l.b16 %v2673_v24 }
 0x95c   : > { %v2577_v60 = vmul.f32 1.442695, %v2550_v10  ;;  %v2777_v10 = vpop.permute.xlu2 %2776 }
 0x95d   : > { %v2702_v1 = vpack.c.b16 %v2698_v8, %v2697_v35 }
 0x95e   : > { %2633 = vadd.xlane.f32.xlu2 %v2632_v36  ;;  %2780 = vrot.lane.b32.xlu1 %v10184_v26, %s9283_s30  ;;  %v2535_v26 = vpop.xlane.xlu0 %2534  ;;  %8864 = vpow2.f32 %v2577_v60 }
 0x95f   : > { %v2553_v3 = vsub.f32 %v10614_v2, %v2535_v26  ;;  %8866 = vpow2.f32 %v2581_v46 }
 0x960   : > { %v10678_v0 = vpop.eup %8862 }
 0x961   : > { %v2583_v16 = vmul.f32 1.442695, %v2553_v3  ;;  %v2617_v54 = vsel %vm1796_vm10, %v10678_v0, 0.0 }
 0x963   : > { %8868 = vpow2.f32 %v2583_v16 }
 0x964   : > { %v10681_v18 = vpop.eup %8864 }
 0x965   : > { %v2620_v2 = vsel %vm1796_vm10, %v10681_v18, 0.0  ;;  %v10687_v55 = vpop.eup %8866 }
 0x966   : > { %v2626_v33 = vsel %vm1796_vm10, %v10687_v55, 0.0 }
 0x969   : > { %7780 = vmatmul.msk.bf16.gmra.mxu0 %vm1796_vm10, %v2702_v1  ;;  %v10689_v4 = vpop.eup %8868 }
 0x96a   : > { %v2629_v12 = vsel %vm1796_vm10, %v10689_v4, 0.0 }
 0x978   : > { %v2301_v14 = vpop.f32.mrf.mxu1 }
 0x980   : > { %v2303_v50 = vpop.f32.mrf.mxu1 }
 0x981   : > { %v2333_v41 = vpack.c.bf16 %v2303_v50, %v2301_v14 }
 0x983   : > { %7829 = vmatmul.msk.bf16.gmra.mxu3 %vm1796_vm10, %v2333_v41 }
 0x984   : > { %2618 = vadd.xlane.f32.xlu0 %v2617_v54 }
 0x988   : > { %2621 = vadd.xlane.f32.xlu1 %v2620_v2 }
 0x98c   : > { %2627 = vadd.xlane.f32.xlu0 %v2626_v33 }
 0x98e   : > { %v2306_v13 = vpop.f32.mrf.mxu1 }
 0x990   : > { %2630 = vadd.xlane.f32.xlu1 %v2629_v12 }
 0x996   : > { %v2308_v25 = vpop.f32.mrf.mxu1 }
 0x997   : > { %v2334_v48 = vpack.c.bf16 %v2308_v25, %v2306_v13 }
 0x999   : > { %7830 = vmatmul.msk.bf16.gmra.mxu3 %vm1796_vm10, %v2334_v48 }
 0x99e   : > { %v2311_v19 = vpop.f32.mrf.mxu1 }
 0x9a6   : > { %v2313_v31 = vpop.f32.mrf.mxu1 }
 0x9a7   : > { %v2335_v53 = vpack.c.bf16 %v2313_v31, %v2311_v19 }
 0x9a9   : > { %7831 = vmatmul.msk.bf16.gmra.mxu3 %vm1796_vm10, %v2335_v53 }
 0x9ae   : > { %v2316_v30 = vpop.f32.mrf.mxu1 }
 0x9b6   : > { %v2736_v56 = vpop.f32.mrf.mxu0  ;;  %v2318_v38 = vpop.f32.mrf.mxu1 }
 0x9b7   : > { %v2336_v34 = vpack.c.bf16 %v2318_v38, %v2316_v30  ;;  %v10723_v38 = vld [vmem:[%s9383_s18 + $0x6] ss:$0 sm:$0xff] }
 0x9b8   : > { %v2613_v39 = vpop.xlane.xlu1 %2612 }
 0x9b9   : > { %7832 = vmatmul.msk.bf16.gmra.mxu3 %vm1796_vm10, %v2336_v34  ;;  %v2616_v57 = vpop.xlane.xlu0 %2615  ;;  %8870 = vrcp.f32 %v2613_v39 }
 0x9ba   : > { %8872 = vrcp.f32 %v2616_v57  ;;  %v9206_v57 = vld [vmem:[#allocation2 + $0x30] sm:$0xff] }
 0x9be   : > { %v2738_v47 = vpop.f32.mrf.mxu0 }
 0x9bf   : > { %v2837_v42 = vpack.c.bf16 %v2738_v47, %v2736_v56  ;;  %v8871_v20 = vpop.eup %8870  ;;  %v2999_v56 = vpop.f32.mrf.mxu3 }
 0x9c0   : > { %v8873_v5 = vpop.eup %8872  ;;  %v2659_v62 = vmul.f32 %v8871_v20, %v10643_v44 }
 0x9c1   : > { %7801 = vmatmul.msk.bf16.vlgmr.msra.gmra.mxu2 %vm1796_vm10, %v2837_v42  ;;  %v2660_v59 = vmul.f32 %v8873_v5, %v10647_v15 }
 0x9c2   : > { %v2675_v52 = vpack.c.bf16 %v2659_v62, %v2659_v62  ;;  %v9207_v62 = vld [vmem:[#allocation2] sm:$0xff] }
 0x9c3   : > { %v2676_v24 = vpack.c.bf16 %v2660_v59, %v2660_v59 }
 0x9c4   : > { %v2764_v35 = vunpack.c.l.b16 %v2675_v52 }
 0x9c5   : > { %v2765_v1 = vunpack.c.l.b16 %v2676_v24 }
 0x9c6   : > { %v2741_v7 = vpop.f32.mrf.mxu0 }
 0x9c7   : > { %v2772_v28 = vpack.c.b16 %v2765_v1, %v2764_v35  ;;  %v3001_v34 = vpop.f32.mrf.mxu3 }
 0x9c9   : > { %v2625_v54 = vpop.xlane.xlu2 %2624 }
 0x9cc   : > { %v2779_v8 = vpop.permute.xlu0 %2778 }
 0x9ce   : > { %v2743_v27 = vpop.f32.mrf.mxu0 }
 0x9cf   : > { %v2838_v22 = vpack.c.bf16 %v2743_v27, %v2741_v7  ;;  %v3004_v20 = vpop.f32.mrf.mxu3 }
 0x9d0   : > { %v2781_v36 = vpop.permute.xlu1 %2780 }
 0x9d1   : > { %7802 = vmatmul.msk.bf16.gmra.mxu2 %vm1796_vm10, %v2838_v22  ;;  %2805 = vmatpush.bf16.msrb.mxu1 %v2781_v36  ;;  %v2634_v17 = vpop.xlane.xlu2 %2633 }
 0x9d5   : > { %2806 = vmatpush.bf16.msrb.mxu1 %v2779_v8  ;;  %v9208_v8 = vld [vmem:[#allocation2 + $0x58] sm:$0xff] }
 0x9d6   : > { %v2746_v37 = vpop.f32.mrf.mxu0 }
 0x9d7   : > { %v3006_v52 = vpop.f32.mrf.mxu3 }
 0x9d9   : > { %2807 = vmatpush.bf16.msrb.mxu1 %v2777_v10 }
 0x9dc   : > { %7781 = vmatmul.msk.bf16.vlgmr.msrb.gmra.mxu1 %vm1796_vm10, %v2772_v28 }
 0x9de   : > { %v2748_v44 = vpop.f32.mrf.mxu0 }
 0x9df   : > { %v2839_v15 = vpack.c.bf16 %v2748_v44, %v2746_v37  ;;  %v3009_v28 = vpop.f32.mrf.mxu3 }
 0x9e1   : > { %7803 = vmatmul.msk.bf16.gmra.mxu2 %vm1796_vm10, %v2839_v15  ;;  %v9209_v15 = vld [vmem:[#allocation2 + $0x18] sm:$0xff] }
 0x9e6   : > { %v2751_v14 = vpop.f32.mrf.mxu0 }
 0x9ee   : > { %v2753_v60 = vpop.f32.mrf.mxu0 }
 0x9ef   : > { %v2840_v21 = vpack.c.bf16 %v2753_v60, %v2751_v14 }
 0x9f1   : > { %7804 = vmatmul.msk.bf16.gmra.mxu2 %vm1796_vm10, %v2840_v21 }
 0x9f7   : > { %v2619_v26 = vpop.xlane.xlu0 %2618 }
 0x9f8   : > { %8874 = vrcp.f32 %v2619_v26 }
 0x9fb   : > { %v2622_v3 = vpop.xlane.xlu1 %2621 }
 0x9fc   : > { %8876 = vrcp.f32 %v2622_v3 }
 0x9fe   : > { %v8875_v46 = vpop.eup %8874 }
 0x9ff   : > { %v2661_v50 = vmul.f32 %v8875_v46, %v10678_v0  ;;  %v2628_v41 = vpop.xlane.xlu0 %2627  ;;  %v9210_v46 = vld [vmem:[#allocation2 + $0x50] sm:$0xff] }
 0xa00   : > { %8878 = vrcp.f32 %v2628_v41  ;;  %v3011_v41 = vpop.f32.mrf.mxu3 }
 0xa01   : > { %v2677_v2 = vpack.c.bf16 %v2661_v50, %v2661_v50  ;;  %8880 = vrcp.f32 %v2625_v54 }
 0xa02   : > { %v8877_v16 = vpop.eup %8876 }
 0xa03   : > { %v2662_v33 = vmul.f32 %v8877_v16, %v10681_v18  ;;  %v2766_v32 = vunpack.c.l.b16 %v2677_v2  ;;  %v2631_v23 = vpop.xlane.xlu1 %2630 }
 0xa04   : > { %8882 = vrcp.f32 %v2631_v23 }
 0xa05   : > { %v2678_v13 = vpack.c.bf16 %v2662_v33, %v2662_v33  ;;  %8884 = vrcp.f32 %v2634_v17  ;;  %v9211_v33 = vld [vmem:[#allocation2 + $0x68] sm:$0xff] }
 0xa06   : > { %v8879_v29 = vpop.eup %8878 }
 0xa07   : > { %v2767_v51 = vunpack.c.l.b16 %v2678_v13  ;;  %v8881_v6 = vpop.eup %8880  ;;  %v2664_v49 = vmul.f32 %v8879_v29, %v10687_v55 }
 0xa08   : > { %v2663_v0 = vmul.f32 %v8881_v6, %v10656_v9  ;;  %v9212_v6 = vld [vmem:[#allocation2 + $0x8] sm:$0xff] }
 0xa09   : > { %v2773_v12 = vpack.c.b16 %v2767_v51, %v2766_v32  ;;  %v2680_v25 = vpack.c.bf16 %v2664_v49, %v2664_v49  ;;  %v3014_v51 = vpop.f32.mrf.mxu3 }
 0xa0a   : > { %v2679_v48 = vpack.c.bf16 %v2663_v0, %v2663_v0  ;;  %v8883_v63 = vpop.eup %8882 }
 0xa0b   : > { %7782 = vmatmul.msk.bf16.gmra.mxu1 %vm1796_vm10, %v2773_v12  ;;  %v2769_v18 = vunpack.c.l.b16 %v2680_v25  ;;  %v8885_v61 = vpop.eup %8884  ;;  %v2665_v19 = vmul.f32 %v8883_v63, %v10689_v4 }
 0xa0c   : > { %v2768_v40 = vunpack.c.l.b16 %v2679_v48  ;;  %v2666_v55 = vmul.f32 %v8885_v61, %v10661_v58 }
 0xa0d   : > { %v2681_v45 = vpack.c.bf16 %v2665_v19, %v2665_v19 }
 0xa0e   : > { %v2774_v11 = vpack.c.b16 %v2769_v18, %v2768_v40  ;;  %v2682_v9 = vpack.c.bf16 %v2666_v55, %v2666_v55 }
 0xa0f   : > { %v2770_v31 = vunpack.c.l.b16 %v2681_v45 }
 0xa10   : > { %v2771_v53 = vunpack.c.l.b16 %v2682_v9 }
 0xa11   : > { %v3016_v9 = vpop.f32.mrf.mxu3 }
 0xa12   : > { %v2775_v30 = vpack.c.b16 %v2771_v53, %v2770_v31 }
 0xa1b   : > { %7783 = vmatmul.msk.bf16.gmra.mxu1 %vm1796_vm10, %v2774_v11 }
 0xa2b   : > { %7784 = vmatmul.msk.bf16.gmra.mxu1 %vm1796_vm10, %v2775_v30 }
 0xa44   : > { %v2902_v47 = vpop.f32.mrf.mxu2 }
 0xa45   : > { %v3000_v42 = vadd.f32 %v2999_v56, %v2902_v47 }
 0xa47   : > { %v3040_v39 = vadd.f32 %v10723_v38, %v3000_v42 }
 0xa49   : > { %v10726_v7 = vadd.f32 %v9206_v57, %v3040_v39  ;;  %v9213_v39 = vld [vmem:[#allocation2 + $0x48] sm:$0xff] }
 0xa4b   : > { %3074 = vadd.xlane.f32.xlu0 %v10726_v7 }
 0xa4c   : > { %v2904_v58 = vpop.f32.mrf.mxu2 }
 0xa4d   : > { %v3002_v4 = vadd.f32 %v3001_v34, %v2904_v58 }
 0xa4f   : > { %v3041_v5 = vadd.f32 %v10723_v38, %v3002_v4 }
 0xa51   : > { %v10730_v59 = vadd.f32 %v9207_v62, %v3041_v5 }
 0xa53   : > { %3076 = vadd.xlane.f32.xlu1 %v10730_v59 }
 0xa54   : > { %v2907_v27 = vpop.f32.mrf.mxu2 }
 0xa55   : > { %v3005_v22 = vadd.f32 %v3004_v20, %v2907_v27 }
 0xa57   : > { %v3042_v36 = vadd.f32 %v10723_v38, %v3005_v22 }
 0xa59   : > { %v2809_v24 = vpop.f32.mrf.mxu1  ;;  %v10734_v35 = vadd.f32 %v9208_v8, %v3042_v36 }
 0xa5b   : > { %3078 = vadd.xlane.f32.xlu2 %v10734_v35 }
 0xa5c   : > { %v2909_v1 = vpop.f32.mrf.mxu2 }
 0xa5d   : > { %v3007_v37 = vadd.f32 %v3006_v52, %v2909_v1 }
 0xa5f   : > { %v3043_v10 = vadd.f32 %v10723_v38, %v3007_v37  ;;  %v3019_v37 = vpop.f32.mrf.mxu3 }
 0xa61   : > { %v2811_v44 = vpop.f32.mrf.mxu1  ;;  %v10738_v14 = vadd.f32 %v9209_v15, %v3043_v10 }
 0xa62   : > { %v2841_v60 = vpack.c.bf16 %v2811_v44, %v2809_v24 }
 0xa63   : > { %3080 = vadd.xlane.f32.xlu0 %v10738_v14 }
 0xa64   : > { %v2912_v21 = vpop.f32.mrf.mxu2  ;;  %7805 = vmatmul.msk.bf16.gmra.mxu2 %vm1796_vm10, %v2841_v60 }
 0xa65   : > { %v3010_v26 = vadd.f32 %v3009_v28, %v2912_v21  ;;  %v9214_v21 = vld [vmem:[#allocation2 + $0x40] sm:$0xff] }
 0xa67   : > { %v3044_v3 = vadd.f32 %v10723_v38, %v3010_v26 }
 0xa69   : > { %v10743_v50 = vadd.f32 %v9210_v46, %v3044_v3  ;;  %v3021_v3 = vpop.f32.mrf.mxu3 }
 0xa6b   : > { %3082 = vadd.xlane.f32.xlu1 %v10743_v50 }
 0xa6c   : > { %v2914_v16 = vpop.f32.mrf.mxu2 }
 0xa6d   : > { %v3012_v54 = vadd.f32 %v3011_v41, %v2914_v16 }
 0xa6f   : > { %v3045_v2 = vadd.f32 %v10723_v38, %v3012_v54 }
 0xa71   : > { %v10747_v13 = vadd.f32 %v9211_v33, %v3045_v2 }
 0xa73   : > { %3084 = vadd.xlane.f32.xlu2 %v10747_v13 }
 0xa74   : > { %v2917_v32 = vpop.f32.mrf.mxu2 }
 0xa75   : > { %v3015_v12 = vadd.f32 %v3014_v51, %v2917_v32  ;;  %v9215_v51 = vld [vmem:[#allocation2 + $0x20] sm:$0xff] }
 0xa77   : > { %v3046_v29 = vadd.f32 %v10723_v38, %v3015_v12 }
 0xa79   : > { %v10751_v49 = vadd.f32 %v9212_v6, %v3046_v29 }
 0xa7b   : > { %3086 = vadd.xlane.f32.xlu2 %v10751_v49 }
 0xa7c   : > { %v2919_v55 = vpop.f32.mrf.mxu2 }
 0xa7d   : > { %v3017_v31 = vadd.f32 %v3016_v9, %v2919_v55 }
 0xa7f   : > { %v3047_v56 = vadd.f32 %v10723_v38, %v3017_v31 }
 0xa81   : > { %v10770_v57 = vadd.f32 %v9213_v39, %v3047_v56  ;;  %v7859_v56 = vld [vmem:[%s9393_s29 + $0x310] sm:$0xf] }
 0xa88   : > { %v2814_v0 = vpop.f32.mrf.mxu1 }
 0xa90   : > { %v2816_v25 = vpop.f32.mrf.mxu1 }
 0xa91   : > { %v2842_v23 = vpack.c.bf16 %v2816_v25, %v2814_v0  ;;  %v3024_v0 = vpop.f32.mrf.mxu3 }
 0xa93   : > { %7806 = vmatmul.msk.bf16.gmra.mxu2 %vm1796_vm10, %v2842_v23 }
 0xa98   : > { %v2819_v48 = vpop.f32.mrf.mxu1 }
 0xaa0   : > { %v2821_v17 = vpop.f32.mrf.mxu1 }
 0xaa1   : > { %v2843_v18 = vpack.c.bf16 %v2821_v17, %v2819_v48  ;;  %v3026_v48 = vpop.f32.mrf.mxu3 }
 0xaa3   : > { %7807 = vmatmul.msk.bf16.gmra.mxu2 %vm1796_vm10, %v2843_v18  ;;  %v9216_v18 = vld [vmem:[#allocation2 + $0x10] sm:$0xff] }
 0xaa8   : > { %v2824_v40 = vpop.f32.mrf.mxu1 }
 0xaa9   : > { %v3029_v31 = vpop.f32.mrf.mxu3 }
 0xab0   : > { %v2826_v11 = vpop.f32.mrf.mxu1 }
 0xab1   : > { %v2844_v63 = vpack.c.bf16 %v2826_v11, %v2824_v40 }
 0xab3   : > { %7808 = vmatmul.msk.bf16.gmra.mxu2 %vm1796_vm10, %v2844_v63 }
 0xabe   : > { %v3075_v61 = vpop.xlane.xlu0 %3074 }
 0xabf   : > { %v3106_v19 = vmul.f32 %v3075_v61, %v9736_v43  ;;  %v7863_v61 = vld [vmem:[%s9393_s29 + $0x390] sm:$0xf] }
 0xac1   : > { %v10759_v45 = vsub.f32 %v10726_v7, %v3106_v19  ;;  %v8484_v19 = vld [vmem:[%s9393_s29 + $0x3cc] sm:$0xf0] }
 0xac2   : > { %v7864_v55 = vor.u32 %v8484_v19, %v7863_v61  ;;  %v7895_v61 = vld [vmem:[%s9393_s29 + $0x194] sm:$0xf] }
 0xac3   : > { %v3138_v53 = vmul.f32 %v10759_v45, %v10759_v45 }
 0xac4   : > { %3500 = vmatpush.bf16.msrb.mxu0 %v7864_v55  ;;  %v8493_v55 = vld [vmem:[%s9393_s29 + $0x1d0] sm:$0xf0] }
 0xac5   : > { %3154 = vadd.xlane.f32.xlu0 %v3138_v53  ;;  %v9217_v53 = vld [vmem:[#allocation2 + $0x38] sm:$0xff] }
 0xac6   : > { %v3077_v30 = vpop.xlane.xlu1 %3076 }
 0xac7   : > { %v3107_v34 = vmul.f32 %v3077_v30, %v9736_v43 }
 0xac9   : > { %v10766_v47 = vsub.f32 %v10730_v59, %v3107_v34  ;;  %v8483_v34 = vld [vmem:[%s9393_s29 + $0x34c] sm:$0xf0] }
 0xaca   : > { %v7860_v39 = vor.u32 %v8483_v34, %v7859_v56  ;;  %v7839_v34 = vld [vmem:[%s9393_s29 + $0x90] sm:$0xf] }
 0xacb   : > { %v3139_v42 = vmul.f32 %v10766_v47, %v10766_v47 }
 0xacc   : > { %3501 = vmatpush.bf16.msrb.mxu0 %v7860_v39  ;;  %v7887_v39 = vld [vmem:[%s9393_s29 + $0x114] sm:$0xf] }
 0xacd   : > { %3156 = vadd.xlane.f32.xlu1 %v3139_v42  ;;  %3088 = vadd.xlane.f32.xlu0 %v10770_v57  ;;  %v7927_v42 = vld [vmem:[%s9393_s29 + $0x394] sm:$0xf] }
 0xace   : > { %v3079_v58 = vpop.xlane.xlu2 %3078 }
 0xacf   : > { %v3108_v4 = vmul.f32 %v3079_v58, %v9736_v43  ;;  %v8501_v58 = vld [vmem:[%s9393_s29 + $0x3d0] sm:$0xf0] }
 0xad1   : > { %v10775_v20 = vsub.f32 %v10734_v35, %v3108_v4  ;;  %v7928_v4 = vor.u32 %v8501_v58, %v7927_v42  ;;  %v8478_v42 = vld [vmem:[%s9393_s29 + $0xcc] sm:$0xf0] }
 0xad3   : > { %v3140_v5 = vmul.f32 %v10775_v20, %v10775_v20  ;;  %3653 = vmatpush.bf16.msra.mxu1 %v7928_v4  ;;  %v7840_v4 = vor.u32 %v8478_v42, %v7839_v34 }
 0xad5   : > { %3158 = vadd.xlane.f32.xlu1 %v3140_v5 }
 0xad6   : > { %v3081_v62 = vpop.xlane.xlu0 %3080 }
 0xad7   : > { %v3109_v27 = vmul.f32 %v3081_v62, %v9736_v43 }
 0xad9   : > { %v10781_v22 = vsub.f32 %v10738_v14, %v3109_v27  ;;  %v7855_v27 = vld [vmem:[%s9393_s29 + $0x290] sm:$0xf] }
 0xadb   : > { %v3141_v36 = vmul.f32 %v10781_v22, %v10781_v22 }
 0xadd   : > { %3160 = vadd.xlane.f32.xlu2 %v3141_v36  ;;  %v8482_v36 = vld [vmem:[%s9393_s29 + $0x2cc] sm:$0xf0] }
 0xade   : > { %v3083_v52 = vpop.xlane.xlu1 %3082 }
 0xadf   : > { %v3110_v24 = vmul.f32 %v3083_v52, %v9736_v43  ;;  %v7919_v52 = vld [vmem:[%s9393_s29 + $0x314] sm:$0xf] }
 0xae1   : > { %v10787_v8 = vsub.f32 %v10743_v50, %v3110_v24  ;;  %v7856_v24 = vor.u32 %v8482_v36, %v7855_v27 }
 0xae3   : > { %v3142_v1 = vmul.f32 %v10787_v8, %v10787_v8  ;;  %3502 = vmatpush.bf16.msrb.mxu0 %v7856_v24  ;;  %v9220_v24 = vld [vmem:[#allocation2 + $0x78] sm:$0xff] }
 0xae5   : > { %3162 = vadd.xlane.f32.xlu2 %v3142_v1  ;;  %v8499_v1 = vld [vmem:[%s9393_s29 + $0x350] sm:$0xf0] }
 0xae6   : > { %v3085_v10 = vpop.xlane.xlu2 %3084 }
 0xae7   : > { %v2922_v28 = vpop.f32.mrf.mxu2  ;;  %v3111_v60 = vmul.f32 %v3085_v10, %v9736_v43  ;;  %v7920_v10 = vor.u32 %v8499_v1, %v7919_v52 }
 0xae8   : > { %v3020_v44 = vadd.f32 %v3019_v37, %v2922_v28  ;;  %v9218_v28 = vld [vmem:[#allocation2 + $0x60] sm:$0xff] }
 0xae9   : > { %v10797_v41 = vsub.f32 %v10747_v13, %v3111_v60  ;;  %3654 = vmatpush.bf16.msra.mxu1 %v7920_v10  ;;  %v8481_v60 = vld [vmem:[%s9393_s29 + $0x24c] sm:$0xf0] }
 0xaea   : > { %v3048_v15 = vadd.f32 %v10723_v38, %v3020_v44  ;;  %v8477_v10 = vld [vmem:[%s9393_s29 + $0x4c] sm:$0xf0] }
 0xaeb   : > { %v3143_v12 = vmul.f32 %v10797_v41, %v10797_v41 }
 0xaec   : > { %v10793_v26 = vadd.f32 %v9214_v21, %v3048_v15  ;;  %v7851_v15 = vld [vmem:[%s9393_s29 + $0x210] sm:$0xf]  ;;  %v7911_v21 = vld [vmem:[%s9393_s29 + $0x294] sm:$0xf] }
 0xaee   : > { %3090 = vadd.xlane.f32.xlu0 %v10793_v26  ;;  %v3087_v54 = vpop.xlane.xlu2 %3086 }
 0xaef   : > { %v2924_v46 = vpop.f32.mrf.mxu2  ;;  %v3112_v33 = vmul.f32 %v3087_v54, %v9736_v43 }
 0xaf0   : > { %v3022_v16 = vadd.f32 %v3021_v3, %v2924_v46  ;;  %v3031_v3 = vpop.f32.mrf.mxu3  ;;  %v7852_v46 = vor.u32 %v8481_v60, %v7851_v15  ;;  %v7879_v15 = vld [vmem:[%s9393_s29 + $0x94] sm:$0xf] }
 0xaf1   : > { %v10807_v29 = vsub.f32 %v10751_v49, %v3112_v33  ;;  %v8489_v60 = vld [vmem:[%s9393_s29 + $0xd0] sm:$0xf0] }
 0xaf2   : > { %v3049_v2 = vadd.f32 %v10723_v38, %v3022_v16  ;;  %v8497_v16 = vld [vmem:[%s9393_s29 + $0x2d0] sm:$0xf0]  ;;  %3503 = vmatpush.bf16.msrb.mxu0 %v7852_v46 }
 0xaf3   : > { %v3144_v6 = vmul.f32 %v10807_v29, %v10807_v29  ;;  %v7912_v54 = vor.u32 %v8497_v16, %v7911_v21  ;;  %v7880_v21 = vor.u32 %v8489_v60, %v7879_v15  ;;  %v8487_v46 = vld [vmem:[%s9393_s29 + $0x50] sm:$0xf0]  ;;  %v10885_v15 = vld [vmem:[%s9383_s18 + $0x3] ss:$0 sm:$0xff] }
 0xaf4   : > { %v10801_v32 = vadd.f32 %v9215_v51, %v3049_v2  ;;  %v7847_v51 = vld [vmem:[%s9393_s29 + $0x190] sm:$0xf] }
 0xaf5   : > { %3655 = vmatpush.bf16.msra.mxu1 %v7912_v54 }
 0xaf6   : > { %3092 = vadd.xlane.f32.xlu1 %v10801_v32  ;;  %3164 = vadd.xlane.f32.xlu0 %v3143_v12  ;;  %v8480_v12 = vld [vmem:[%s9393_s29 + $0x1cc] sm:$0xf0] }
 0xafe   : > { %3166 = vadd.xlane.f32.xlu0 %v3144_v6  ;;  %v7903_v6 = vld [vmem:[%s9393_s29 + $0x214] sm:$0xf] }
 0xb16   : > { %v2927_v25 = vpop.f32.mrf.mxu2 }
 0xb17   : > { %v3025_v23 = vadd.f32 %v3024_v0, %v2927_v25  ;;  %v7848_v0 = vor.u32 %v8480_v12, %v7847_v51  ;;  %v8495_v25 = vld [vmem:[%s9393_s29 + $0x250] sm:$0xf0] }
 0xb19   : > { %v3050_v17 = vadd.f32 %v10723_v38, %v3025_v23  ;;  %3504 = vmatpush.bf16.msrb.mxu0 %v7848_v0 }
 0xb1b   : > { %v10812_v40 = vadd.f32 %v9216_v18, %v3050_v17  ;;  %v9219_v17 = vld [vmem:[#allocation2 + $0x70] sm:$0xff] }
 0xb1d   : > { %3094 = vadd.xlane.f32.xlu1 %v10812_v40 }
 0xb1e   : > { %v2929_v11 = vpop.f32.mrf.mxu2 }
 0xb1f   : > { %v3027_v63 = vadd.f32 %v3026_v48, %v2929_v11  ;;  %v7904_v48 = vor.u32 %v8495_v25, %v7903_v6  ;;  %v7843_v11 = vld [vmem:[%s9393_s29 + $0x110] sm:$0xf]  ;;  %v10872_v25 = vld [vmem:[%s13036_s1] sm:$0xff] }
 0xb21   : > { %v3051_v9 = vadd.f32 %v10723_v38, %v3027_v63  ;;  %3656 = vmatpush.bf16.msra.mxu1 %v7904_v48  ;;  %v8479_v63 = vld [vmem:[%s9393_s29 + $0x14c] sm:$0xf0] }
 0xb22   : > { %v7844_v19 = vor.u32 %v8479_v63, %v7843_v11 }
 0xb23   : > { %v10818_v30 = vadd.f32 %v9217_v53, %v3051_v9  ;;  %v7896_v9 = vor.u32 %v8493_v55, %v7895_v61 }
 0xb24   : > { %3505 = vmatpush.bf16.msrb.mxu0 %v7844_v19 }
 0xb25   : > { %3096 = vadd.xlane.f32.xlu2 %v10818_v30  ;;  %3657 = vmatpush.bf16.msra.mxu1 %v7896_v9 }
 0xb26   : > { %v2932_v5 = vpop.f32.mrf.mxu2 }
 0xb27   : > { %v3030_v62 = vadd.f32 %v3029_v31, %v2932_v5  ;;  %v3034_v31 = vpop.f32.mrf.mxu3  ;;  %v8491_v5 = vld [vmem:[%s9393_s29 + $0x150] sm:$0xf0] }
 0xb28   : > { %v7888_v36 = vor.u32 %v8491_v5, %v7887_v39  ;;  %3506 = vmatpush.bf16.msrb.mxu0 %v7840_v4 }
 0xb29   : > { %v3052_v37 = vadd.f32 %v10723_v38, %v3030_v62 }
 0xb2a   : > { %3658 = vmatpush.bf16.msra.mxu1 %v7888_v36 }
 0xb2b   : > { %v10830_v44 = vadd.f32 %v9218_v28, %v3052_v37  ;;  %v7835_v37 = vld [vmem:[%s9393_s29 + $0x10] sm:$0xf] }
 0xb2c   : > { %v7836_v28 = vor.u32 %v8477_v10, %v7835_v37 }
 0xb2d   : > { %3098 = vadd.xlane.f32.xlu2 %v10830_v44 }
 0xb2e   : > { %v2934_v2 = vpop.f32.mrf.mxu2  ;;  %3507 = vmatpush.bf16.msrb.mxu0 %v7836_v28  ;;  %3659 = vmatpush.bf16.msra.mxu1 %v7880_v21 }
 0xb2f   : > { %v3032_v33 = vadd.f32 %v3031_v3, %v2934_v2  ;;  %v7871_v3 = vld [vmem:[%s9393_s29 + $0x14] sm:$0xf] }
 0xb30   : > { %v7872_v2 = vor.u32 %v8487_v46, %v7871_v3 }
 0xb31   : > { %v3053_v23 = vadd.f32 %v10723_v38, %v3032_v33 }
 0xb32   : > { %3660 = vmatpush.bf16.msra.mxu1 %v7872_v2 }
 0xb33   : > { %v10842_v18 = vadd.f32 %v9219_v17, %v3053_v23 }
 0xb35   : > { %3100 = vadd.xlane.f32.xlu0 %v10842_v18  ;;  %3661 = vmatmul.bf16.vlgmr.msra.gmra.mxu1 %v10872_v25 }
 0xb36   : > { %v2937_v53 = vpop.f32.mrf.mxu2 }
 0xb37   : > { %v3035_v56 = vadd.f32 %v3034_v31, %v2937_v53 }
 0xb38   : > { %v3155_v58 = vpop.xlane.xlu0 %3154 }
 0xb39   : > { %v3054_v62 = vadd.f32 %v10723_v38, %v3035_v56  ;;  %v3186_v27 = vmul.f32 %v3155_v58, %v9736_v43 }
 0xb3b   : > { %v3202_v52 = vadd.f32 1e-05, %v3186_v27  ;;  %v10855_v1 = vadd.f32 %v9220_v24, %v3054_v62  ;;  %v10880_v62 = vld [vmem:[%s9383_s18 + $0x2] ss:$0 sm:$0xff] }
 0xb3d   : > { %8886 = vrsqrt.f32 %v3202_v52  ;;  %3102 = vadd.xlane.f32.xlu0 %v10855_v1  ;;  %vm3224_vm12 = vweird.f32 %v3202_v52 }
 0xb40   : > { %v3157_v16 = vpop.xlane.xlu1 %3156  ;;  %v3089_v54 = vpop.xlane.xlu0 %3088 }
 0xb41   : > { %v3187_v33 = vmul.f32 %v3157_v16, %v9736_v43  ;;  %v3113_v51 = vmul.f32 %v3089_v54, %v9736_v43 }
 0xb43   : > { %v8887_v12 = vpop.eup %8886  ;;  %v3203_v6 = vadd.f32 1e-05, %v3187_v33  ;;  %v10867_v0 = vsub.f32 %v10770_v57, %v3113_v51 }
 0xb44   : > { %v3219_v23 = vmul.f32 %v8887_v12, %v3202_v52  ;;  %vm3225_vm11 = vweird.f32 %v8887_v12 }
 0xb45   : > { %8888 = vrsqrt.f32 %v3203_v6  ;;  %v3145_v48 = vmul.f32 %v10867_v0, %v10867_v0  ;;  %vm3226_vm13 = vmor %vm3224_vm12, %vm3225_vm11  ;;  %vm3234_vm15 = vweird.f32 %v3203_v6 }
 0xb46   : > { %v3220_v17 = vmul.f32 %v8887_v12, %v3219_v23 }
 0xb47   : > { %3168 = vadd.xlane.f32.xlu1 %v3145_v48 }
 0xb48   : > { %v3221_v11 = vmul.f32 0.5, %v3220_v17  ;;  %v3159_v63 = vpop.xlane.xlu1 %3158 }
 0xb49   : > { %v3188_v61 = vmul.f32 %v3159_v63, %v9736_v43 }
 0xb4a   : > { %v3222_v19 = vsub.f32 1.5, %v3221_v11 }
 0xb4b   : > { %v8889_v55 = vpop.eup %8888  ;;  %v3204_v9 = vadd.f32 1e-05, %v3188_v61 }
 0xb4c   : > { %v3223_v31 = vmul.f32 %v8887_v12, %v3222_v19  ;;  %v3229_v53 = vmul.f32 %v8889_v55, %v3203_v6  ;;  %vm3235_vm14 = vweird.f32 %v8889_v55 }
 0xb4d   : > { %8890 = vrsqrt.f32 %v3204_v9  ;;  %vm3236_vm0 = vmor %vm3234_vm15, %vm3235_vm14  ;;  %vm3244_vm2 = vweird.f32 %v3204_v9 }
 0xb4e   : > { %v3230_v56 = vmul.f32 %v8889_v55, %v3229_v53  ;;  %v3227_v34 = vsel %vm3226_vm13, %v8887_v12, %v3223_v31 }
 0xb4f   : > { %v3378_v27 = vmul.f32 %v3227_v34, %v10759_v45 }
 0xb50   : > { %v3231_v42 = vmul.f32 0.5, %v3230_v56  ;;  %v3161_v39 = vpop.xlane.xlu2 %3160 }
 0xb51   : > { %v3189_v58 = vmul.f32 %v3161_v39, %v9736_v43  ;;  %v3395_v28 = vmul.f32 %v10880_v62, %v3378_v27 }
 0xb52   : > { %v3232_v4 = vsub.f32 1.5, %v3231_v42 }
 0xb53   : > { %v8891_v5 = vpop.eup %8890  ;;  %v3205_v36 = vadd.f32 1e-05, %v3189_v58  ;;  %v3412_v51 = vadd.f32 %v10885_v15, %v3395_v28 }
 0xb54   : > { %v3233_v24 = vmul.f32 %v8889_v55, %v3232_v4  ;;  %v3239_v37 = vmul.f32 %v8891_v5, %v3204_v9  ;;  %vm3245_vm1 = vweird.f32 %v8891_v5  ;;  %v3036_v9 = vpop.f32.mrf.mxu3 }
 0xb55   : > { %8892 = vrsqrt.f32 %v3205_v36  ;;  %vm3246_vm3 = vmor %vm3244_vm2, %vm3245_vm1  ;;  %vm3254_vm5 = vweird.f32 %v3205_v36 }
 0xb56   : > { %v3237_v52 = vsel %vm3236_vm0, %v8889_v55, %v3233_v24  ;;  %v3240_v10 = vmul.f32 %v8891_v5, %v3239_v37  ;;  %v2939_v55 = vpop.f32.mrf.mxu2 }
 0xb57   : > { %v3379_v60 = vmul.f32 %v3237_v52, %v10766_v47  ;;  %v3037_v42 = vadd.f32 %v3036_v9, %v2939_v55 }
 0xb58   : > { %v3241_v21 = vmul.f32 0.5, %v3240_v10  ;;  %v3163_v3 = vpop.xlane.xlu2 %3162 }
 0xb59   : > { %v3396_v46 = vmul.f32 %v10880_v62, %v3379_v60  ;;  %v3190_v45 = vmul.f32 %v3163_v3, %v9736_v43  ;;  %v3055_v37 = vadd.f32 %v10723_v38, %v3037_v42 }
 0xb5a   : > { %v3242_v16 = vsub.f32 1.5, %v3241_v21 }
 0xb5b   : > { %v8893_v54 = vpop.eup %8892  ;;  %v3413_v2 = vadd.f32 %v10885_v15, %v3396_v46  ;;  %v3206_v33 = vadd.f32 1e-05, %v3190_v45 }
 0xb5c   : > { %v3243_v12 = vmul.f32 %v8891_v5, %v3242_v16  ;;  %v3249_v6 = vmul.f32 %v8893_v54, %v3205_v36  ;;  %vm3255_vm4 = vweird.f32 %v8893_v54  ;;  %v9221_v16 = vld [vmem:[#allocation2 + $0x28] sm:$0xff] }
 0xb5d   : > { %8894 = vrsqrt.f32 %v3206_v33  ;;  %v3428_v23 = vpack.c.bf16 %v3413_v2, %v3412_v51  ;;  %vm3256_vm6 = vmor %vm3254_vm5, %vm3255_vm4  ;;  %v10912_v38 = vadd.f32 %v9221_v16, %v3055_v37  ;;  %vm3264_vm8 = vweird.f32 %v3206_v33 }
 0xb5e   : > { %v3250_v47 = vmul.f32 %v8893_v54, %v3249_v6  ;;  %v3247_v48 = vsel %vm3246_vm3, %v8891_v5, %v3243_v12 }
 0xb5f   : > { %3508 = vmatmul.bf16.vlgmr.msrb.gmra.mxu0 %v3428_v23  ;;  %v3380_v31 = vmul.f32 %v3247_v48, %v10775_v20 }
 0xb60   : > { %v3251_v17 = vmul.f32 0.5, %v3250_v47 }
 0xb61   : > { %v3091_v11 = vpop.xlane.xlu0 %3090  ;;  %v3397_v5 = vmul.f32 %v10880_v62, %v3380_v31 }
 0xb62   : > { %v3252_v63 = vsub.f32 1.5, %v3251_v17  ;;  %v3114_v61 = vmul.f32 %v3091_v11, %v9736_v43 }
 0xb63   : > { %v8895_v19 = vpop.eup %8894  ;;  %v3414_v28 = vadd.f32 %v10885_v15, %v3397_v5  ;;  %v7929_v5 = vld [vmem:[%s9393_s29 + $0x3d4] sm:$0xf0] }
 0xb64   : > { %v3253_v53 = vmul.f32 %v8893_v54, %v3252_v63  ;;  %v10895_v56 = vsub.f32 %v10793_v26, %v3114_v61  ;;  %v3259_v34 = vmul.f32 %v8895_v19, %v3206_v33  ;;  %vm3265_vm7 = vweird.f32 %v8895_v19 }
 0xb65   : > { %vm3266_vm9 = vmor %vm3264_vm8, %vm3265_vm7 }
 0xb66   : > { %v3257_v39 = vsel %vm3256_vm6, %v8893_v54, %v3253_v53  ;;  %v3146_v58 = vmul.f32 %v10895_v56, %v10895_v56  ;;  %v3260_v27 = vmul.f32 %v8895_v19, %v3259_v34 }
 0xb67   : > { %v3381_v4 = vmul.f32 %v3257_v39, %v10781_v22 }
 0xb68   : > { %3170 = vadd.xlane.f32.xlu1 %v3146_v58  ;;  %v3261_v3 = vmul.f32 0.5, %v3260_v27 }
 0xb69   : > { %v3093_v20 = vpop.xlane.xlu1 %3092  ;;  %v3165_v24 = vpop.xlane.xlu0 %3164  ;;  %v3398_v36 = vmul.f32 %v10880_v62, %v3381_v4  ;;  %v8500_v4 = vld [vmem:[%s9393_s29 + $0x398] sm:$0xf] }
 0xb6a   : > { %v3115_v52 = vmul.f32 %v3093_v20, %v9736_v43  ;;  %v3191_v10 = vmul.f32 %v3165_v24, %v9736_v43  ;;  %v3262_v54 = vsub.f32 1.5, %v3261_v3  ;;  %v7932_v27 = vor.u32 %v8500_v4, %v7929_v5  ;;  %v8498_v24 = vld [vmem:[%s9393_s29 + $0x318] sm:$0xf] }
 0xb6b   : > { %v3415_v60 = vadd.f32 %v10885_v15, %v3398_v36  ;;  %v7921_v36 = vld [vmem:[%s9393_s29 + $0x354] sm:$0xf0] }
 0xb6c   : > { %v10908_v22 = vsub.f32 %v10801_v32, %v3115_v52  ;;  %v3207_v21 = vadd.f32 1e-05, %v3191_v10  ;;  %v3263_v51 = vmul.f32 %v8895_v19, %v3262_v54  ;;  %3667 = vmatpush.bf16.msrb.mxu1 %v7932_v27  ;;  %v7924_v10 = vor.u32 %v8498_v24, %v7921_v36  ;;  %v7913_v3 = vld [vmem:[%s9393_s29 + $0x2d4] sm:$0xf0] }
 0xb6d   : > { %v3429_v46 = vpack.c.bf16 %v3415_v60, %v3414_v28  ;;  %v8494_v54 = vld [vmem:[%s9393_s29 + $0x218] sm:$0xf] }
 0xb6e   : > { %8896 = vrsqrt.f32 %v3207_v21  ;;  %v3147_v45 = vmul.f32 %v10908_v22, %v10908_v22  ;;  %v3267_v23 = vsel %vm3266_vm9, %v8895_v19, %v3263_v51  ;;  %vm3274_vm12 = vweird.f32 %v3207_v21  ;;  %v7873_v4 = vld [vmem:[%s9393_s29 + $0x54] sm:$0xf0] }
 0xb6f   : > { %3513 = vmatmul.bf16.gmra.mxu0 %v3429_v46  ;;  %v3382_v17 = vmul.f32 %v3267_v23, %v10787_v8 }
 0xb70   : > { %3172 = vadd.xlane.f32.xlu2 %v3147_v45  ;;  %3104 = vadd.xlane.f32.xlu1 %v10912_v38 }
 0xb71   : > { %v3399_v55 = vmul.f32 %v10880_v62, %v3382_v17  ;;  %v3167_v37 = vpop.xlane.xlu0 %3166  ;;  %3668 = vmatpush.bf16.msrb.mxu1 %v7924_v10  ;;  %v7897_v17 = vld [vmem:[%s9393_s29 + $0x1d4] sm:$0xf0] }
 0xb72   : > { %v3192_v45 = vmul.f32 %v3167_v37, %v9736_v43 }
 0xb73   : > { %v3416_v31 = vadd.f32 %v10885_v15, %v3399_v55  ;;  %v7889_v55 = vld [vmem:[%s9393_s29 + $0x154] sm:$0xf0] }
 0xb74   : > { %v8897_v2 = vpop.eup %8896 }
 0xb75   : > { %v3269_v12 = vmul.f32 %v8897_v2, %v3207_v21  ;;  %vm3275_vm11 = vweird.f32 %v8897_v2  ;;  %v8496_v21 = vld [vmem:[%s9393_s29 + $0x298] sm:$0xf] }
 0xb76   : > { %vm3276_vm13 = vmor %vm3274_vm12, %vm3275_vm11  ;;  %v7916_v46 = vor.u32 %v8496_v21, %v7913_v3 }
 0xb77   : > { %v3270_v6 = vmul.f32 %v8897_v2, %v3269_v12 }
 0xb78   : > { %3669 = vmatpush.bf16.msrb.mxu1 %v7916_v46 }
 0xb79   : > { %v3271_v47 = vmul.f32 0.5, %v3270_v6  ;;  %v3208_v6 = vadd.f32 1e-05, %v3192_v45 }
 0xb7b   : > { %v3272_v48 = vsub.f32 1.5, %v3271_v47  ;;  %8898 = vrsqrt.f32 %v3208_v6  ;;  %vm3284_vm15 = vweird.f32 %v3208_v6 }
 0xb7d   : > { %v3273_v11 = vmul.f32 %v8897_v2, %v3272_v48  ;;  %v8492_v48 = vld [vmem:[%s9393_s29 + $0x198] sm:$0xf] }
 0xb7f   : > { %v3277_v63 = vsel %vm3276_vm13, %v8897_v2, %v3273_v11  ;;  %v7905_v2 = vld [vmem:[%s9393_s29 + $0x254] sm:$0xf0]  ;;  %v7900_v11 = vor.u32 %v8492_v48, %v7897_v17 }
 0xb80   : > { %v3383_v61 = vmul.f32 %v3277_v63, %v10797_v41  ;;  %v7908_v12 = vor.u32 %v8494_v54, %v7905_v2 }
 0xb82   : > { %v3400_v33 = vmul.f32 %v10880_v62, %v3383_v61  ;;  %3670 = vmatpush.bf16.msrb.mxu1 %v7908_v12  ;;  %v8490_v61 = vld [vmem:[%s9393_s29 + $0x118] sm:$0xf] }
 0xb84   : > { %v3417_v19 = vadd.f32 %v10885_v15, %v3400_v33 }
 0xb86   : > { %v3430_v53 = vpack.c.bf16 %v3417_v19, %v3416_v31  ;;  %3671 = vmatpush.bf16.msrb.mxu1 %v7900_v11  ;;  %v7892_v31 = vor.u32 %v8490_v61, %v7889_v55 }
 0xb88   : > { %3518 = vmatmul.bf16.gmra.mxu0 %v3430_v53  ;;  %v8488_v53 = vld [vmem:[%s9393_s29 + $0x98] sm:$0xf] }
 0xb8a   : > { %3672 = vmatpush.bf16.msrb.mxu1 %v7892_v31 }
 0xb90   : > { %v3095_v8 = vpop.xlane.xlu1 %3094 }
 0xb91   : > { %v3116_v9 = vmul.f32 %v3095_v8, %v9736_v43  ;;  %v7881_v8 = vld [vmem:[%s9393_s29 + $0xd4] sm:$0xf0] }
 0xb93   : > { %v10923_v34 = vsub.f32 %v10812_v40, %v3116_v9  ;;  %v7884_v9 = vor.u32 %v8488_v53, %v7881_v8 }
 0xb95   : > { %v3148_v41 = vmul.f32 %v10923_v34, %v10923_v34  ;;  %3673 = vmatpush.bf16.msrb.mxu1 %v7884_v9 }
 0xb97   : > { %3174 = vadd.xlane.f32.xlu2 %v3148_v41  ;;  %v8899_v41 = vpop.eup %8898 }
 0xb98   : > { %v3097_v42 = vpop.xlane.xlu2 %3096  ;;  %v3279_v27 = vmul.f32 %v8899_v41, %v3208_v6  ;;  %vm3285_vm14 = vweird.f32 %v8899_v41 }
 0xb99   : > { %v3117_v39 = vmul.f32 %v3097_v42, %v9736_v43  ;;  %vm3286_vm0 = vmor %vm3284_vm15, %vm3285_vm14 }
 0xb9a   : > { %v3280_v24 = vmul.f32 %v8899_v41, %v3279_v27 }
 0xb9b   : > { %v10929_v58 = vsub.f32 %v10818_v30, %v3117_v39  ;;  %v8486_v39 = vld [vmem:[%s9393_s29 + $0x18] sm:$0xf] }
 0xb9c   : > { %v3281_v10 = vmul.f32 0.5, %v3280_v24 }
 0xb9d   : > { %v3149_v20 = vmul.f32 %v10929_v58, %v10929_v58 }
 0xb9f   : > { %3176 = vadd.xlane.f32.xlu0 %v3149_v20  ;;  %v7876_v20 = vor.u32 %v8486_v39, %v7873_v4 }
 0xba0   : > { %v3099_v52 = vpop.xlane.xlu2 %3098 }
 0xba1   : > { %v3118_v28 = vmul.f32 %v3099_v52, %v9736_v43  ;;  %3674 = vmatpush.bf16.msrb.mxu1 %v7876_v20 }
 0xba3   : > { %v10939_v60 = vsub.f32 %v10830_v44, %v3118_v28  ;;  %v3282_v28 = vsub.f32 1.5, %v3281_v10 }
 0xba4   : > { %3675 = vmatmul.bf16.vlgmr.msrb.gmra.mxu1 %v10872_v25 }
 0xba5   : > { %v3150_v16 = vmul.f32 %v10939_v60, %v10939_v60  ;;  %v3283_v45 = vmul.f32 %v8899_v41, %v3282_v28 }
 0xba7   : > { %3178 = vadd.xlane.f32.xlu1 %v3150_v16 }
 0xba8   : > { %v3101_v51 = vpop.xlane.xlu0 %3100 }
 0xba9   : > { %v3119_v23 = vmul.f32 %v3101_v51, %v9736_v43  ;;  %v3287_v51 = vsel %vm3286_vm0, %v8899_v41, %v3283_v45 }
 0xbaa   : > { %v3384_v25 = vmul.f32 %v3287_v51, %v10807_v29 }
 0xbab   : > { %v10950_v47 = vsub.f32 %v10842_v18, %v3119_v23 }
 0xbad   : > { %v3151_v63 = vmul.f32 %v10950_v47, %v10950_v47 }
 0xbaf   : > { %3180 = vadd.xlane.f32.xlu2 %v3151_v63  ;;  %v3401_v63 = vmul.f32 %v10880_v62, %v3384_v25 }
 0xbb0   : > { %v3103_v33 = vpop.xlane.xlu0 %3102 }
 0xbb1   : > { %v3120_v19 = vmul.f32 %v3103_v33, %v9736_v43  ;;  %v3418_v33 = vadd.f32 %v10885_v15, %v3401_v63 }
 0xbb2   : > { %v3662_v21 = vpop.f32.mrf.mxu1 }
 0xbb3   : > { %v10962_v42 = vsub.f32 %v10855_v1, %v3120_v19  ;;  %v3698_v3 = vpack.c.bf16 %v3662_v21, %v3662_v21 }
 0xbb5   : > { %v3152_v5 = vmul.f32 %v10962_v42, %v10962_v42  ;;  %v3735_v54 = vsel %vm1796_vm10, %v3698_v3, 0  ;;  %v4193_v61 = vunpack.c.l.b16 %v3698_v3 }
 0xbb6   : > { %3744 = vmatpush.bf16.xpose.msra.mxu1 %v3735_v54 }
 0xbb7   : > { %3182 = vadd.xlane.f32.xlu0 %v3152_v5  ;;  %v4194_v6 = vpack.c.b16 %v4193_v61, %v4193_v61 }
 0xbba   : > { %v3169_v36 = vpop.xlane.xlu1 %3168 }
 0xbbb   : > { %v3193_v37 = vmul.f32 %v3169_v36, %v9736_v43 }
 0xbbd   : > { %v3209_v52 = vadd.f32 1e-05, %v3193_v37 }
 0xbbf   : > { %8900 = vrsqrt.f32 %v3209_v52  ;;  %vm3294_vm2 = vweird.f32 %v3209_v52 }
 0xbc5   : > { %v8901_v46 = vpop.eup %8900 }
 0xbc6   : > { %v3289_v16 = vmul.f32 %v8901_v46, %v3209_v52  ;;  %vm3295_vm1 = vweird.f32 %v8901_v46 }
 0xbc7   : > { %vm3296_vm3 = vmor %vm3294_vm2, %vm3295_vm1  ;;  %4195 = vrot.lane.b32.xlu2 %v4194_v6, %s9283_s30 }
 0xbc8   : > { %v3290_v2 = vmul.f32 %v8901_v46, %v3289_v16 }
 0xbca   : > { %v3291_v12 = vmul.f32 0.5, %v3290_v2 }
 0xbcc   : > { %v3292_v23 = vsub.f32 1.5, %v3291_v12 }
 0xbce   : > { %v3293_v48 = vmul.f32 %v8901_v46, %v3292_v23 }
 0xbd0   : > { %v3297_v17 = vsel %vm3296_vm3, %v8901_v46, %v3293_v48 }
 0xbd1   : > { %v3385_v11 = vmul.f32 %v3297_v17, %v10867_v0 }
 0xbd3   : > { %v3402_v55 = vmul.f32 %v10880_v62, %v3385_v11 }
 0xbd5   : > { %v3419_v31 = vadd.f32 %v10885_v15, %v3402_v55 }
 0xbd7   : > { %v3431_v19 = vpack.c.bf16 %v3419_v31, %v3418_v33 }
 0xbd9   : > { %3523 = vmatmul.bf16.gmra.mxu0 %v3431_v19 }
 0xbdb   : > { %v3171_v29 = vpop.xlane.xlu1 %3170 }
 0xbdc   : > { %v3509_v53 = vpop.f32.mrf.mxu0  ;;  %v3194_v8 = vmul.f32 %v3171_v29, %v9736_v43 }
 0xbdd   : > { %v3682_v0 = vpack.c.bf16 %v3509_v53, %v3509_v53 }
 0xbde   : > { %v3210_v9 = vadd.f32 1e-05, %v3194_v8 }
 0xbdf   : > { %v3710_v52 = vunpack.c.l.b16 %v3682_v0 }
 0xbe0   : > { %8902 = vrsqrt.f32 %v3210_v9  ;;  %vm3304_vm5 = vweird.f32 %v3210_v9 }
 0xbe3   : > { %v3173_v41 = vpop.xlane.xlu2 %3172  ;;  %v3105_v39 = vpop.xlane.xlu1 %3104 }
 0xbe4   : > { %v3195_v4 = vmul.f32 %v3173_v41, %v9736_v43  ;;  %v3511_v5 = vpop.f32.mrf.mxu0  ;;  %v3121_v27 = vmul.f32 %v3105_v39, %v9736_v43 }
 0xbe5   : > { %v3683_v20 = vpack.c.bf16 %v3511_v5, %v3511_v5 }
 0xbe6   : > { %v8903_v24 = vpop.eup %8902  ;;  %v3211_v36 = vadd.f32 1e-05, %v3195_v4  ;;  %v10982_v37 = vsub.f32 %v10912_v38, %v3121_v27 }
 0xbe7   : > { %v3299_v10 = vmul.f32 %v8903_v24, %v3210_v9  ;;  %v3711_v28 = vunpack.c.l.b16 %v3683_v20  ;;  %vm3305_vm4 = vweird.f32 %v8903_v24 }
 0xbe8   : > { %8904 = vrsqrt.f32 %v3211_v36  ;;  %v3153_v21 = vmul.f32 %v10982_v37, %v10982_v37  ;;  %vm3306_vm6 = vmor %vm3304_vm5, %vm3305_vm4  ;;  %vm3314_vm8 = vweird.f32 %v3211_v36 }
 0xbe9   : > { %v3300_v3 = vmul.f32 %v8903_v24, %v3299_v10  ;;  %v3718_v46 = vpack.c.b16 %v3711_v28, %v3710_v52 }
 0xbea   : > { %3184 = vadd.xlane.f32.xlu1 %v3153_v21 }
 0xbeb   : > { %v3301_v45 = vmul.f32 0.5, %v3300_v3  ;;  %7933 = vmatmul.msk.bf16.vlgmr.msra.gmra.mxu1 %vm1796_vm10, %v3718_v46  ;;  %4184 = vrot.lane.b32.xlu0 %v3718_v46, %s9283_s30 }
 0xbec   : > { %v3514_v16 = vpop.f32.mrf.mxu0 }
 0xbed   : > { %v3302_v54 = vsub.f32 1.5, %v3301_v45  ;;  %v3684_v17 = vpack.c.bf16 %v3514_v16, %v3514_v16 }
 0xbee   : > { %v8905_v2 = vpop.eup %8904 }
 0xbef   : > { %v3303_v51 = vmul.f32 %v8903_v24, %v3302_v54  ;;  %v3309_v12 = vmul.f32 %v8905_v2, %v3211_v36  ;;  %vm3315_vm7 = vweird.f32 %v8905_v2  ;;  %v3712_v33 = vunpack.c.l.b16 %v3684_v17 }
 0xbf0   : > { %vm3316_vm9 = vmor %vm3314_vm8, %vm3315_vm7  ;;  %vm4071_vm7 = vcmask 1043456  }
 0xbf1   : > { %v3310_v23 = vmul.f32 %v8905_v2, %v3309_v12  ;;  %v3307_v25 = vsel %vm3306_vm6, %v8903_v24, %v3303_v51 }
 0xbf2   : > { %v3386_v55 = vmul.f32 %v3307_v25, %v10895_v56 }
 0xbf3   : > { %v3311_v48 = vmul.f32 0.5, %v3310_v23 }
 0xbf4   : > { %v3516_v11 = vpop.f32.mrf.mxu0  ;;  %v3403_v8 = vmul.f32 %v10880_v62, %v3386_v55 }
 0xbf5   : > { %v3312_v63 = vsub.f32 1.5, %v3311_v48  ;;  %v3685_v61 = vpack.c.bf16 %v3516_v11, %v3516_v11 }
 0xbf6   : > { %v3420_v0 = vadd.f32 %v10885_v15, %v3403_v8 }
 0xbf7   : > { %v3313_v6 = vmul.f32 %v8905_v2, %v3312_v63  ;;  %v3713_v31 = vunpack.c.l.b16 %v3685_v61  ;;  %v3664_v63 = vpop.f32.mrf.mxu1 }
 0xbf9   : > { %v3317_v19 = vsel %vm3316_vm9, %v8905_v2, %v3313_v6  ;;  %v3719_v29 = vpack.c.b16 %v3713_v31, %v3712_v33  ;;  %v3699_v33 = vpack.c.bf16 %v3664_v63, %v3664_v63 }
 0xbfa   : > { %v3387_v53 = vmul.f32 %v3317_v19, %v10908_v22 }
 0xbfb   : > { %7934 = vmatmul.msk.bf16.gmra.mxu1 %vm1796_vm10, %v3719_v29 }
 0xbfc   : > { %v3404_v9 = vmul.f32 %v10880_v62, %v3387_v53 }
 0xbfe   : > { %v3421_v41 = vadd.f32 %v10885_v15, %v3404_v9 }
 0xc00   : > { %v3432_v56 = vpack.c.bf16 %v3421_v41, %v3420_v0 }
 0xc02   : > { %3528 = vmatmul.bf16.gmra.mxu0 %v3432_v56 }
 0xc03   : > { %4186 = vrot.lane.b32.xlu1 %v3719_v29, %s9283_s30  ;;  %v4250_v29 = vunpack.c.l.b16 %v3699_v33 }
 0xc05   : > { %v3519_v39 = vpop.f32.mrf.mxu0  ;;  %v4251_v56 = vpack.c.b16 %v4250_v29, %v4250_v29  ;;  %v3799_v29 = vsel %vm1796_vm10, %v3699_v33, 0 }
 0xc06   : > { %v3686_v27 = vpack.c.bf16 %v3519_v39, %v3519_v39  ;;  %3808 = vmatpush.bf16.xpose.msrb.mxu2 %v3799_v29 }
 0xc08   : > { %v3714_v36 = vunpack.c.l.b16 %v3686_v27 }
 0xc0a   : > { %v3175_v4 = vpop.xlane.xlu2 %3174 }
 0xc0b   : > { %v3196_v5 = vmul.f32 %v3175_v4, %v9736_v43 }
 0xc0d   : > { %v3212_v22 = vadd.f32 1e-05, %v3196_v5  ;;  %v3521_v20 = vpop.f32.mrf.mxu0 }
 0xc0e   : > { %v3687_v24 = vpack.c.bf16 %v3521_v20, %v3521_v20 }
 0xc0f   : > { %8906 = vrsqrt.f32 %v3212_v22  ;;  %vm3324_vm12 = vweird.f32 %v3212_v22 }
 0xc10   : > { %v3715_v52 = vunpack.c.l.b16 %v3687_v24 }
 0xc12   : > { %v3720_v10 = vpack.c.b16 %v3715_v52, %v3714_v36  ;;  %v3177_v28 = vpop.xlane.xlu0 %3176 }
 0xc13   : > { %v3197_v21 = vmul.f32 %v3177_v28, %v9736_v43 }
 0xc14   : > { %7935 = vmatmul.msk.bf16.gmra.mxu1 %vm1796_vm10, %v3720_v10  ;;  %4188 = vrot.lane.b32.xlu0 %v3720_v10, %s9283_s30 }
 0xc15   : > { %v8907_v3 = vpop.eup %8906  ;;  %v3213_v46 = vadd.f32 1e-05, %v3197_v21 }
 0xc16   : > { %v3319_v45 = vmul.f32 %v8907_v3, %v3212_v22  ;;  %vm3325_vm11 = vweird.f32 %v8907_v3 }
 0xc17   : > { %8908 = vrsqrt.f32 %v3213_v46  ;;  %vm3326_vm13 = vmor %vm3324_vm12, %vm3325_vm11  ;;  %vm3334_vm15 = vweird.f32 %v3213_v46 }
 0xc18   : > { %v3320_v16 = vmul.f32 %v8907_v3, %v3319_v45 }
 0xc1a   : > { %v3321_v54 = vmul.f32 0.5, %v3320_v16  ;;  %v3179_v2 = vpop.xlane.xlu1 %3178 }
 0xc1b   : > { %v3198_v51 = vmul.f32 %v3179_v2, %v9736_v43 }
 0xc1c   : > { %v3322_v12 = vsub.f32 1.5, %v3321_v54  ;;  %4252 = vrot.lane.b32.xlu0 %v4251_v56, %s9283_s30 }
 0xc1d   : > { %v8909_v23 = vpop.eup %8908  ;;  %v3214_v25 = vadd.f32 1e-05, %v3198_v51 }
 0xc1e   : > { %v3323_v48 = vmul.f32 %v8907_v3, %v3322_v12  ;;  %v3329_v17 = vmul.f32 %v8909_v23, %v3213_v46  ;;  %vm3335_vm14 = vweird.f32 %v8909_v23 }
 0xc1f   : > { %8910 = vrsqrt.f32 %v3214_v25  ;;  %vm3336_vm0 = vmor %vm3334_vm15, %vm3335_vm14  ;;  %vm3344_vm2 = vweird.f32 %v3214_v25  ;;  %vm3846_vm15 = vcmask 64512  }
 0xc20   : > { %v3330_v11 = vmul.f32 %v8909_v23, %v3329_v17  ;;  %v3327_v61 = vsel %vm3326_vm13, %v8907_v3, %v3323_v48 }
 0xc21   : > { %v3388_v8 = vmul.f32 %v3327_v61, %v10923_v34 }
 0xc22   : > { %v3331_v55 = vmul.f32 0.5, %v3330_v11  ;;  %v3181_v6 = vpop.xlane.xlu2 %3180 }
 0xc23   : > { %v3199_v31 = vmul.f32 %v3181_v6, %v9736_v43  ;;  %v3405_v27 = vmul.f32 %v10880_v62, %v3388_v8 }
 0xc24   : > { %v3332_v19 = vsub.f32 1.5, %v3331_v55 }
 0xc25   : > { %v8911_v53 = vpop.eup %8910  ;;  %v3215_v9 = vadd.f32 1e-05, %v3199_v31  ;;  %v3422_v36 = vadd.f32 %v10885_v15, %v3405_v27 }
 0xc26   : > { %v3333_v0 = vmul.f32 %v8909_v23, %v3332_v19  ;;  %v3339_v41 = vmul.f32 %v8911_v53, %v3214_v25  ;;  %vm3345_vm1 = vweird.f32 %v8911_v53 }
 0xc27   : > { %8912 = vrsqrt.f32 %v3215_v9  ;;  %vm3346_vm3 = vmor %vm3344_vm2, %vm3345_vm1  ;;  %vm3354_vm5 = vweird.f32 %v3215_v9 }
 0xc28   : > { %v3337_v39 = vsel %vm3336_vm0, %v8909_v23, %v3333_v0  ;;  %v3340_v4 = vmul.f32 %v8911_v53, %v3339_v41  ;;  %v3676_v23 = vpop.f32.mrf.mxu1 }
 0xc29   : > { %v3389_v5 = vmul.f32 %v3337_v39, %v10929_v58  ;;  %v11013_v48 = vpack.c.bf16 %v3676_v23, %v3676_v23 }
 0xc2a   : > { %v3341_v22 = vmul.f32 0.5, %v3340_v4  ;;  %v3183_v61 = vpop.xlane.xlu0 %3182 }
 0xc2b   : > { %v3406_v20 = vmul.f32 %v10880_v62, %v3389_v5 }
 0xc2c   : > { %v3342_v24 = vsub.f32 1.5, %v3341_v22  ;;  %v4196_v22 = vpop.permute.xlu2 %4195 }
 0xc2d   : > { %v8913_v34 = vpop.eup %8912  ;;  %v3423_v52 = vadd.f32 %v10885_v15, %v3406_v20 }
 0xc2e   : > { %v3343_v10 = vmul.f32 %v8911_v53, %v3342_v24  ;;  %v3349_v28 = vmul.f32 %v8913_v34, %v3215_v9  ;;  %vm3355_vm4 = vweird.f32 %v8913_v34  ;;  %v4210_v24 = vsel %vm1796_vm10, %v4196_v22, 0 }
 0xc2f   : > { %v3433_v21 = vpack.c.bf16 %v3423_v52, %v3422_v36  ;;  %vm3356_vm6 = vmor %vm3354_vm5, %vm3355_vm4  ;;  %4219 = vmatpush.bf16.xpose.msra.mxu0 %v4210_v24 }
 0xc30   : > { %v3350_v3 = vmul.f32 %v8913_v34, %v3349_v28  ;;  %v3347_v58 = vsel %vm3346_vm3, %v8911_v53, %v3343_v10 }
 0xc31   : > { %3533 = vmatmul.bf16.gmra.mxu0 %v3433_v21  ;;  %v3390_v16 = vmul.f32 %v3347_v58, %v10939_v60  ;;  %v4073_v60 = vsel %vm4071_vm7, %v11013_v48, 0 }
 0xc32   : > { %v3351_v46 = vmul.f32 0.5, %v3350_v3  ;;  %4082 = vmatpush.bf16.msrb.mxu3 %v4073_v60 }
 0xc33   : > { %v3407_v12 = vmul.f32 %v10880_v62, %v3390_v16 }
 0xc34   : > { %v3352_v45 = vsub.f32 1.5, %v3351_v46 }
 0xc35   : > { %v3424_v17 = vadd.f32 %v10885_v15, %v3407_v12 }
 0xc36   : > { %v3353_v54 = vmul.f32 %v8913_v34, %v3352_v45 }
 0xc38   : > { %v3357_v2 = vsel %vm3356_vm6, %v8913_v34, %v3353_v54 }
 0xc39   : > { %v3391_v51 = vmul.f32 %v3357_v2, %v10950_v47  ;;  %v3200_v47 = vmul.f32 %v3183_v61, %v9736_v43 }
 0xc3b   : > { %v3408_v25 = vmul.f32 %v10880_v62, %v3391_v51  ;;  %v3216_v55 = vadd.f32 1e-05, %v3200_v47 }
 0xc3d   : > { %v3425_v11 = vadd.f32 %v10885_v15, %v3408_v25  ;;  %8914 = vrsqrt.f32 %v3216_v55  ;;  %vm3364_vm9 = vweird.f32 %v3216_v55 }
 0xc3f   : > { %v3434_v63 = vpack.c.bf16 %v3425_v11, %v3424_v17 }
 0xc41   : > { %3538 = vmatmul.bf16.gmra.mxu0 %v3434_v63 }
 0xc43   : > { %v8915_v6 = vpop.eup %8914 }
 0xc44   : > { %v3359_v19 = vmul.f32 %v8915_v6, %v3216_v55  ;;  %vm3365_vm8 = vweird.f32 %v8915_v6 }
 0xc45   : > { %vm3366_vm11 = vmor %vm3364_vm9, %vm3365_vm8 }
 0xc46   : > { %v3360_v53 = vmul.f32 %v8915_v6, %v3359_v19 }
 0xc48   : > { %v3361_v4 = vmul.f32 0.5, %v3360_v53 }
 0xc4a   : > { %v3362_v34 = vsub.f32 1.5, %v3361_v4 }
 0xc4c   : > { %v3363_v36 = vmul.f32 %v8915_v6, %v3362_v34 }
 0xc4e   : > { %v3367_v28 = vsel %vm3366_vm11, %v8915_v6, %v3363_v36 }
 0xc4f   : > { %v3392_v58 = vmul.f32 %v3367_v28, %v10962_v42  ;;  %v3678_v42 = vpop.f32.mrf.mxu1 }
 0xc50   : > { %v11049_v28 = vpack.c.bf16 %v3678_v42, %v3678_v42 }
 0xc51   : > { %v3409_v54 = vmul.f32 %v10880_v62, %v3392_v58 }
 0xc52   : > { %v4137_v58 = vsel %vm4071_vm7, %v11049_v28, 0 }
 0xc53   : > { %v3426_v51 = vadd.f32 %v10885_v15, %v3409_v54  ;;  %4146 = vmatpush.bf16.msrb.mxu1 %v4137_v58 }
 0xc56   : > { %v3524_v31 = vpop.f32.mrf.mxu0 }
 0xc57   : > { %v3688_v8 = vpack.c.bf16 %v3524_v31, %v3524_v31 }
 0xc59   : > { %v3716_v5 = vunpack.c.l.b16 %v3688_v8 }
 0xc5d   : > { %v3185_v9 = vpop.xlane.xlu1 %3184  ;;  %v4185_v47 = vpop.permute.xlu0 %4184 }
 0xc5e   : > { %v3201_v0 = vmul.f32 %v3185_v9, %v9736_v43  ;;  %v3526_v41 = vpop.f32.mrf.mxu0 }
 0xc5f   : > { %v3689_v56 = vpack.c.bf16 %v3526_v41, %v3526_v41 }
 0xc60   : > { %v3217_v39 = vadd.f32 1e-05, %v3201_v0 }
 0xc61   : > { %v3717_v27 = vunpack.c.l.b16 %v3689_v56 }
 0xc62   : > { %8916 = vrsqrt.f32 %v3217_v39  ;;  %vm3374_vm13 = vweird.f32 %v3217_v39 }
 0xc63   : > { %v3721_v20 = vpack.c.b16 %v3717_v27, %v3716_v5 }
 0xc65   : > { %7936 = vmatmul.msk.bf16.gmra.mxu1 %vm1796_vm10, %v3721_v20  ;;  %4190 = vrot.lane.b32.xlu2 %v3721_v20, %s9283_s30 }
 0xc68   : > { %v8917_v33 = vpop.eup %8916 }
 0xc69   : > { %v3369_v52 = vmul.f32 %v8917_v33, %v3217_v39  ;;  %vm3375_vm12 = vweird.f32 %v8917_v33 }
 0xc6a   : > { %vm3376_vm14 = vmor %vm3374_vm13, %vm3375_vm12 }
 0xc6b   : > { %v3370_v10 = vmul.f32 %v8917_v33, %v3369_v52 }
 0xc6d   : > { %v3371_v21 = vmul.f32 0.5, %v3370_v10 }
 0xc6f   : > { %v3372_v3 = vsub.f32 1.5, %v3371_v21 }
 0xc71   : > { %v3373_v46 = vmul.f32 %v8917_v33, %v3372_v3 }
 0xc73   : > { %v3377_v45 = vsel %vm3376_vm14, %v8917_v33, %v3373_v46 }
 0xc74   : > { %v3393_v16 = vmul.f32 %v3377_v45, %v10982_v37 }
 0xc75   : > { %v4187_v37 = vpop.permute.xlu1 %4186 }
 0xc76   : > { %v3410_v2 = vmul.f32 %v10880_v62, %v3393_v16  ;;  %v3746_v62 = vpop.f32.mrf.mxu1 }
 0xc77   : > { %v11038_v53 = vmul.f32 0.125, %v3746_v62 }
 0xc78   : > { %v3427_v12 = vadd.f32 %v10885_v15, %v3410_v2 }
 0xc79   : > { %v3847_v41 = vsel %vm3846_vm15, %v11038_v53, -inf }
 0xc7a   : > { %v3435_v23 = vpack.c.bf16 %v3427_v12, %v3426_v51 }
 0xc7c   : > { %3543 = vmatmul.bf16.gmra.mxu0 %v3435_v23 }
 0xc7e   : > { %v3748_v15 = vpop.f32.mrf.mxu1 }
 0xc7f   : > { %v3529_v25 = vpop.f32.mrf.mxu0  ;;  %v11056_v16 = vmul.f32 0.125, %v3748_v15 }
 0xc80   : > { %v3690_v17 = vpack.c.bf16 %v3529_v25, %v3529_v25 }
 0xc81   : > { %v3850_v12 = vsel %vm3846_vm15, %v11056_v16, -inf }
 0xc82   : > { %v3774_v63 = vunpack.c.l.b16 %v3690_v17 }
 0xc86   : > { %v11035_v6 = vpop.f32.mrf.mxu1  ;;  %v4189_v31 = vpop.permute.xlu0 %4188 }
 0xc87   : > { %v3531_v11 = vpop.f32.mrf.mxu0 }
 0xc88   : > { %v3691_v60 = vpack.c.bf16 %v3531_v11, %v3531_v11 }
 0xc8a   : > { %v3775_v61 = vunpack.c.l.b16 %v3691_v60 }
 0xc8c   : > { %v3782_v55 = vpack.c.b16 %v3775_v61, %v3774_v63  ;;  %7949 = vmatmul.msk.bf16.vlgmr.msra.gmra.mxu0 %vm1796_vm10, %v4185_v47 }
 0xc8e   : > { %4241 = vrot.lane.b32.xlu1 %v3782_v55, %s9283_s30  ;;  %7937 = vmatmul.msk.bf16.vlgmr.msrb.gmra.mxu2 %vm1796_vm10, %v3782_v55  ;;  %v3753_v29 = vpop.f32.mrf.mxu1  ;;  %v4253_v3 = vpop.permute.xlu0 %4252 }
 0xc8f   : > { %v4267_v46 = vsel %vm1796_vm10, %v4253_v3, 0  ;;  %v11064_v23 = vmul.f32 0.125, %v3753_v29 }
 0xc90   : > { %4276 = vmatpush.bf16.xpose.msra.mxu2 %v4267_v46 }
 0xc91   : > { %v3856_v25 = vsel %vm3846_vm15, %v11064_v23, -inf }
 0xc96   : > { %v3756_v56 = vpop.f32.mrf.mxu1 }
 0xc97   : > { %v11042_v5 = vmul.f32 0.125, %v3756_v56 }
 0xc99   : > { %v3859_v24 = vsel %vm3846_vm15, %v11042_v5, -inf }
 0xc9c   : > { %7950 = vmatmul.msk.bf16.gmra.mxu0 %vm1796_vm10, %v4187_v37 }
 0xc9e   : > { %v3758_v45 = vpop.f32.mrf.mxu1 }
 0xc9f   : > { %v11068_v17 = vmul.f32 0.125, %v3758_v45 }
 0xca1   : > { %v3862_v11 = vsel %vm3846_vm15, %v11068_v17, -inf }
 0xcac   : > { %7951 = vmatmul.msk.bf16.gmra.mxu0 %vm1796_vm10, %v4189_v31 }
 0xcae   : > { %v3534_v19 = vpop.f32.mrf.mxu0 }
 0xcaf   : > { %v3692_v8 = vpack.c.bf16 %v3534_v19, %v3534_v19 }
 0xcb1   : > { %v3776_v39 = vunpack.c.l.b16 %v3692_v8 }
 0xcb6   : > { %v3536_v9 = vpop.f32.mrf.mxu0 }
 0xcb7   : > { %v3693_v0 = vpack.c.bf16 %v3536_v9, %v3536_v9 }
 0xcb8   : > { %3848 = vmax.xlane.f32.xlu1 %v3847_v41  ;;  %v11082_v41 = vmul.f32 0.125, %v11035_v6 }
 0xcb9   : > { %v3777_v4 = vunpack.c.l.b16 %v3693_v0 }
 0xcbb   : > { %v3783_v27 = vpack.c.b16 %v3777_v4, %v3776_v39  ;;  %v3853_v39 = vsel %vm3846_vm15, %v11082_v41, -inf }
 0xcbd   : > { %4243 = vrot.lane.b32.xlu2 %v3783_v27, %s9283_s30  ;;  %7938 = vmatmul.msk.bf16.gmra.mxu2 %vm1796_vm10, %v3783_v27 }
 0xcbe   : > { %v3539_v22 = vpop.f32.mrf.mxu0 }
 0xcbf   : > { %v4191_v20 = vpop.permute.xlu2 %4190  ;;  %v3694_v34 = vpack.c.bf16 %v3539_v22, %v3539_v22 }
 0xcc0   : > { %7952 = vmatmul.msk.bf16.gmra.mxu0 %vm1796_vm10, %v4191_v20  ;;  %3860 = vmax.xlane.f32.xlu1 %v3859_v24 }
 0xcc1   : > { %v3778_v52 = vunpack.c.l.b16 %v3694_v34 }
 0xcc6   : > { %v3541_v33 = vpop.f32.mrf.mxu0 }
 0xcc7   : > { %v3695_v36 = vpack.c.bf16 %v3541_v33, %v3541_v33 }
 0xcc9   : > { %v3779_v10 = vunpack.c.l.b16 %v3695_v36 }
 0xccb   : > { %v3784_v21 = vpack.c.b16 %v3779_v10, %v3778_v52 }
 0xccd   : > { %4245 = vrot.lane.b32.xlu0 %v3784_v21, %s9283_s30  ;;  %7939 = vmatmul.msk.bf16.gmra.mxu2 %vm1796_vm10, %v3784_v21 }
 0xce2   : > { %v3761_v54 = vpop.f32.mrf.mxu1 }
 0xce3   : > { %v11058_v2 = vmul.f32 0.125, %v3761_v54 }
 0xce5   : > { %v3865_v51 = vsel %vm3846_vm15, %v11058_v2, -inf }
 0xce6   : > { %3866 = vmax.xlane.f32.xlu1 %v3865_v51  ;;  %3851 = vmax.xlane.f32.xlu2 %v3850_v12 }
 0xcea   : > { %v3763_v4 = vpop.f32.mrf.mxu1 }
 0xceb   : > { %v11088_v22 = vmul.f32 0.125, %v3763_v4 }
 0xced   : > { %v3868_v6 = vsel %vm3846_vm15, %v11088_v22, -inf }
 0xcee   : > { %3857 = vmax.xlane.f32.xlu2 %v3856_v25 }
 0xcf6   : > { %3863 = vmax.xlane.f32.xlu2 %v3862_v11 }
 0xcf9   : > { %v3544_v42 = vpop.f32.mrf.mxu0 }
 0xcfa   : > { %v3696_v60 = vpack.c.bf16 %v3544_v42, %v3544_v42 }
 0xcfc   : > { %v3780_v47 = vunpack.c.l.b16 %v3696_v60 }
 0xd00   : > { %v4242_v31 = vpop.permute.xlu1 %4241 }
 0xd01   : > { %v3546_v63 = vpop.f32.mrf.mxu0 }
 0xd02   : > { %v3697_v61 = vpack.c.bf16 %v3546_v63, %v3546_v63 }
 0xd04   : > { %v3781_v55 = vunpack.c.l.b16 %v3697_v61 }
 0xd06   : > { %v3785_v62 = vpack.c.b16 %v3781_v55, %v3780_v47 }
 0xd08   : > { %4247 = vrot.lane.b32.xlu0 %v3785_v62, %s9283_s30  ;;  %7940 = vmatmul.msk.bf16.gmra.mxu2 %vm1796_vm10, %v3785_v62 }
 0xd09   : > { %v11074_v37 = vpop.f32.mrf.mxu0 }
 0xd11   : > { %v4223_v15 = vpop.f32.mrf.mxu0  ;;  %v3810_v52 = vpop.f32.mrf.mxu2 }
 0xd12   : > { %v11118_v60 = vmul.f32 0.125, %v3810_v52 }
 0xd14   : > { %v3871_v47 = vsel %vm3846_vm15, %v11118_v60, -inf }
 0xd17   : > { %v4244_v29 = vpop.permute.xlu2 %4243 }
 0xd18   : > { %7953 = vmatmul.msk.bf16.vlgmr.msra.gmra.mxu2 %vm1796_vm10, %v4242_v31 }
 0xd19   : > { %v11077_v19 = vpop.f32.mrf.mxu0  ;;  %v11109_v46 = vpop.f32.mrf.mxu2 }
 0xd21   : > { %v4228_v8 = vpop.f32.mrf.mxu0 }
 0xd22   : > { %v11101_v10 = vmul.f32 0.125, %v4228_v8 }
 0xd24   : > { %v4323_v3 = vsel %vm3846_vm15, %v11101_v10, -inf }
 0xd28   : > { %7954 = vmatmul.msk.bf16.gmra.mxu2 %vm1796_vm10, %v4244_v29 }
 0xd29   : > { %v11086_v27 = vpop.f32.mrf.mxu0 }
 0xd2b   : > { %v3849_v9 = vpop.xlane.xlu1 %3848 }
 0xd2c   : > { %v3895_v0 = vsub.f32 %v11038_v53, %v3849_v9  ;;  %v11096_v53 = vmul.f32 0.125, %v4223_v15 }
 0xd2e   : > { %v3911_v56 = vmul.f32 1.442695, %v3895_v0  ;;  %v4317_v36 = vsel %vm3846_vm15, %v11096_v53, -inf }
 0xd30   : > { %8918 = vpow2.f32 %v3911_v56 }
 0xd31   : > { %v4233_v34 = vpop.f32.mrf.mxu0 }
 0xd32   : > { %3854 = vmax.xlane.f32.xlu0 %v3853_v39  ;;  %v11107_v58 = vmul.f32 0.125, %v4233_v34 }
 0xd34   : > { %v4329_v45 = vsel %vm3846_vm15, %v11107_v58, -inf }
 0xd36   : > { %v11090_v20 = vpop.eup %8918 }
 0xd37   : > { %v3943_v24 = vsel %vm3846_vm15, %v11090_v20, 0.0 }
 0xd38   : > { %3944 = vadd.xlane.f32.xlu2 %v3943_v24 }
 0xd3a   : > { %3869 = vmax.xlane.f32.xlu0 %v3868_v6 }
 0xd3d   : > { %v11103_v21 = vpop.f32.mrf.mxu0 }
 0xd3f   : > { %v4246_v33 = vpop.permute.xlu0 %4245 }
 0xd40   : > { %4318 = vmax.xlane.f32.xlu2 %v4317_v36  ;;  %7955 = vmatmul.msk.bf16.gmra.mxu2 %vm1796_vm10, %v4246_v33  ;;  %v3815_v12 = vpop.f32.mrf.mxu2 }
 0xd41   : > { %v11125_v15 = vmul.f32 0.125, %v3815_v12 }
 0xd43   : > { %v3877_v8 = vsel %vm3846_vm15, %v11125_v15, -inf }
 0xd45   : > { %v4238_v54 = vpop.f32.mrf.mxu0 }
 0xd46   : > { %v11113_v51 = vmul.f32 0.125, %v4238_v54  ;;  %v3861_v54 = vpop.xlane.xlu1 %3860 }
 0xd48   : > { %4324 = vmax.xlane.f32.xlu2 %v4323_v3  ;;  %v4335_v25 = vsel %vm3846_vm15, %v11113_v51, -inf  ;;  %v11120_v61 = vpop.f32.mrf.mxu2 }
 0xd50   : > { %4330 = vmax.xlane.f32.xlu2 %v4329_v45  ;;  %v3820_v9 = vpop.f32.mrf.mxu2 }
 0xd51   : > { %v11134_v39 = vmul.f32 0.125, %v3820_v9 }
 0xd53   : > { %v3883_v6 = vsel %vm3846_vm15, %v11134_v39, -inf }
 0xd58   : > { %4336 = vmax.xlane.f32.xlu2 %v4335_v25  ;;  %v11147_v36 = vpop.f32.mrf.mxu2 }
 0xd59   : > { %v3852_v11 = vpop.xlane.xlu2 %3851 }
 0xd5a   : > { %v3896_v42 = vsub.f32 %v11056_v16, %v3852_v11  ;;  %v3899_v11 = vsub.f32 %v11042_v5, %v3861_v54 }
 0xd5c   : > { %v3913_v63 = vmul.f32 1.442695, %v3896_v42 }
 0xd5e   : > { %8920 = vpow2.f32 %v3913_v63 }
 0xd60   : > { %3872 = vmax.xlane.f32.xlu2 %v3871_v47  ;;  %v3919_v47 = vmul.f32 1.442695, %v3899_v11  ;;  %v11184_v11 = vmul.f32 0.125, %v11109_v46 }
 0xd61   : > { %v3858_v55 = vpop.xlane.xlu2 %3857 }
 0xd62   : > { %v3898_v62 = vsub.f32 %v11064_v23, %v3858_v55  ;;  %v3867_v55 = vpop.xlane.xlu1 %3866 }
 0xd64   : > { %v3917_v31 = vmul.f32 1.442695, %v3898_v62  ;;  %v11127_v29 = vpop.eup %8920 }
 0xd65   : > { %v3946_v16 = vsel %vm3846_vm15, %v11127_v29, 0.0 }
 0xd66   : > { %8922 = vpow2.f32 %v3917_v31  ;;  %3947 = vadd.xlane.f32.xlu1 %v3946_v16 }
 0xd68   : > { %3878 = vmax.xlane.f32.xlu2 %v3877_v8  ;;  %v3901_v8 = vsub.f32 %v11058_v2, %v3867_v55  ;;  %v3874_v55 = vsel %vm3846_vm15, %v11184_v11, -inf }
 0xd69   : > { %v3864_v0 = vpop.xlane.xlu2 %3863 }
 0xd6a   : > { %v3900_v56 = vsub.f32 %v11068_v17, %v3864_v0 }
 0xd6c   : > { %v11136_v23 = vpop.eup %8922  ;;  %v3921_v4 = vmul.f32 1.442695, %v3900_v56  ;;  %v3923_v56 = vmul.f32 1.442695, %v3901_v8 }
 0xd6d   : > { %v3952_v24 = vsel %vm3846_vm15, %v11136_v23, 0.0 }
 0xd6e   : > { %8924 = vpow2.f32 %v3921_v4  ;;  %3953 = vadd.xlane.f32.xlu0 %v3952_v24 }
 0xd70   : > { %3884 = vmax.xlane.f32.xlu2 %v3883_v6 }
 0xd74   : > { %v11142_v34 = vpop.eup %8924 }
 0xd75   : > { %v3958_v33 = vsel %vm3846_vm15, %v11142_v34, 0.0 }
 0xd76   : > { %3959 = vadd.xlane.f32.xlu0 %v3958_v33 }
 0xd7a   : > { %v4248_v17 = vpop.permute.xlu0 %4247 }
 0xd7b   : > { %7956 = vmatmul.msk.bf16.gmra.mxu2 %vm1796_vm10, %v4248_v17 }
 0xd8b   : > { %v3825_v52 = vpop.f32.mrf.mxu2 }
 0xd8c   : > { %v11149_v3 = vmul.f32 0.125, %v3825_v52  ;;  %v11175_v52 = vmul.f32 0.125, %v11074_v37 }
 0xd8e   : > { %v3889_v45 = vsel %vm3846_vm15, %v11149_v3, -inf }
 0xd8f   : > { %3890 = vmax.xlane.f32.xlu2 %v3889_v45 }
 0xda5   : > { %v3855_v12 = vpop.xlane.xlu0 %3854 }
 0xda6   : > { %v3897_v25 = vsub.f32 %v11082_v41, %v3855_v12  ;;  %v11161_v41 = vpop.f32.mrf.mxu2 }
 0xda8   : > { %v3915_v42 = vmul.f32 1.442695, %v3897_v25  ;;  %v4314_v25 = vsel %vm3846_vm15, %v11175_v52, -inf }
 0xdaa   : > { %8926 = vpow2.f32 %v3915_v42 }
 0xdab   : > { %v3945_v63 = vpop.xlane.xlu2 %3944  ;;  %8928 = vpow2.f32 %v3919_v47 }
 0xdad   : > { %v3870_v62 = vpop.xlane.xlu0 %3869 }
 0xdae   : > { %v3902_v31 = vsub.f32 %v11088_v22, %v3870_v62  ;;  %v11171_v33 = vpop.f32.mrf.mxu2 }
 0xdb0   : > { %v11156_v16 = vpop.eup %8926  ;;  %v3925_v9 = vmul.f32 1.442695, %v3902_v31  ;;  %v11203_v31 = vmul.f32 0.125, %v11120_v61  ;;  %v11215_v61 = vmul.f32 0.125, %v11103_v21 }
 0xdb1   : > { %v3949_v0 = vsel %vm3846_vm15, %v11156_v16, 0.0  ;;  %v11163_v4 = vpop.eup %8928 }
 0xdb2   : > { %8930 = vpow2.f32 %v3925_v9  ;;  %3950 = vadd.xlane.f32.xlu1 %v3949_v0  ;;  %v3955_v22 = vsel %vm3846_vm15, %v11163_v4, 0.0 }
 0xdb3   : > { %v4319_v5 = vpop.xlane.xlu2 %4318  ;;  %8932 = vpow2.f32 %v3923_v56  ;;  %v3880_v56 = vsel %vm3846_vm15, %v11203_v31, -inf }
 0xdb4   : > { %v4363_v0 = vsub.f32 %v11096_v53, %v4319_v5 }
 0xdb6   : > { %v4280_v42 = vpop.f32.mrf.mxu2 }
 0xdb7   : > { %v11197_v46 = vmul.f32 0.125, %v4280_v42 }
 0xdb8   : > { %v11165_v24 = vpop.eup %8930 }
 0xdb9   : > { %v3964_v2 = vsel %vm3846_vm15, %v11165_v24, 0.0  ;;  %v11177_v45 = vpop.eup %8932  ;;  %v4341_v8 = vsel %vm3846_vm15, %v11197_v46, -inf }
 0xdba   : > { %3956 = vadd.xlane.f32.xlu1 %v3955_v22  ;;  %3965 = vadd.xlane.f32.xlu0 %v3964_v2  ;;  %v3961_v12 = vsel %vm3846_vm15, %v11177_v45, 0.0  ;;  %v4380_v2 = vmul.f32 1.442695, %v4363_v0 }
 0xdbb   : > { %v4325_v6 = vpop.xlane.xlu2 %4324 }
 0xdbc   : > { %v4365_v17 = vsub.f32 %v11101_v10, %v4325_v6  ;;  %v11187_v10 = vmul.f32 0.125, %v11077_v19  ;;  %v11200_v19 = vmul.f32 0.125, %v11086_v27  ;;  %v11218_v6 = vmul.f32 0.125, %v11147_v36 }
 0xdbe   : > { %v4384_v54 = vmul.f32 1.442695, %v4365_v17  ;;  %v4320_v62 = vsel %vm3846_vm15, %v11187_v10, -inf  ;;  %v4283_v9 = vpop.f32.mrf.mxu2  ;;  %v4326_v22 = vsel %vm3846_vm15, %v11200_v19, -inf  ;;  %v3886_v5 = vsel %vm3846_vm15, %v11218_v6, -inf }
 0xdbf   : > { %v11212_v27 = vmul.f32 0.125, %v4283_v9  ;;  %v4332_v17 = vsel %vm3846_vm15, %v11215_v61, -inf }
 0xdc0   : > { %8934 = vpow2.f32 %v4384_v54 }
 0xdc1   : > { %8936 = vrcp.f32 %v3945_v63  ;;  %v4344_v53 = vsel %vm3846_vm15, %v11212_v27, -inf }
 0xdc2   : > { %3962 = vadd.xlane.f32.xlu1 %v3961_v12  ;;  %4315 = vmax.xlane.f32.xlu0 %v4314_v25  ;;  %8938 = vpow2.f32 %v4380_v2 }
 0xdc6   : > { %v11189_v37 = vpop.eup %8934 }
 0xdc7   : > { %v4419_v47 = vsel %vm3846_vm15, %v11189_v37, 0.0  ;;  %v8937_v21 = vpop.eup %8936 }
 0xdc8   : > { %4420 = vadd.xlane.f32.xlu2 %v4419_v47  ;;  %v11226_v12 = vpop.eup %8938  ;;  %v4007_v36 = vmul.f32 %v8937_v21, %v11090_v20  ;;  %v11235_v21 = vpop.xlane.xlu2 %4330 }
 0xdc9   : > { %v4413_v25 = vsel %vm3846_vm15, %v11226_v12, 0.0 }
 0xdca   : > { %3875 = vmax.xlane.f32.xlu1 %v3874_v55  ;;  %4321 = vmax.xlane.f32.xlu0 %v4320_v62  ;;  %v4023_v42 = vpack.c.bf16 %v4007_v36, %v4007_v36 }
 0xdcc   : > { %v4047_v62 = vunpack.c.l.b16 %v4023_v42 }
 0xdd0   : > { %4342 = vmax.xlane.f32.xlu2 %v4341_v8 }
 0xdd2   : > { %3881 = vmax.xlane.f32.xlu1 %v3880_v56  ;;  %4327 = vmax.xlane.f32.xlu0 %v4326_v22 }
 0xdd8   : > { %4345 = vmax.xlane.f32.xlu2 %v4344_v53 }
 0xdd9   : > { %v3948_v54 = vpop.xlane.xlu1 %3947 }
 0xdda   : > { %3887 = vmax.xlane.f32.xlu1 %v3886_v5  ;;  %4333 = vmax.xlane.f32.xlu0 %v4332_v17  ;;  %8940 = vrcp.f32 %v3948_v54 }
 0xde0   : > { %v8941_v63 = vpop.eup %8940 }
 0xde1   : > { %v4008_v47 = vmul.f32 %v8941_v63, %v11127_v29  ;;  %v3954_v0 = vpop.xlane.xlu0 %3953 }
 0xde2   : > { %4414 = vadd.xlane.f32.xlu0 %v4413_v25  ;;  %8942 = vrcp.f32 %v3954_v0 }
 0xde3   : > { %v4024_v55 = vpack.c.bf16 %v4008_v47, %v4008_v47 }
 0xde5   : > { %v4048_v8 = vunpack.c.l.b16 %v4024_v55 }
 0xde7   : > { %v4055_v9 = vpack.c.b16 %v4048_v8, %v4047_v62 }
 0xde8   : > { %v8943_v2 = vpop.eup %8942 }
 0xde9   : > { %7941 = vmatmul.msk.bf16.vlgmr.msrb.gmra.mxu3 %vm3846_vm15, %v4055_v9  ;;  %v3960_v56 = vpop.xlane.xlu0 %3959  ;;  %v4010_v20 = vmul.f32 %v8943_v2, %v11136_v23  ;;  %v11240_v9 = vpop.xlane.xlu2 %4336 }
 0xdeb   : > { %v4026_v5 = vpack.c.bf16 %v4010_v20, %v4010_v20 }
 0xded   : > { %v4050_v63 = vunpack.c.l.b16 %v4026_v5 }
 0xe25   : > { %v3951_v22 = vpop.xlane.xlu1 %3950 }
 0xe26   : > { %8944 = vrcp.f32 %v3951_v22 }
 0xe2c   : > { %v8945_v53 = vpop.eup %8944 }
 0xe2d   : > { %v4009_v17 = vmul.f32 %v8945_v53, %v11156_v16  ;;  %v3957_v29 = vpop.xlane.xlu1 %3956  ;;  %v3966_v54 = vpop.xlane.xlu0 %3965 }
 0xe2e   : > { %8946 = vrcp.f32 %v3957_v29 }
 0xe2f   : > { %v4025_v36 = vpack.c.bf16 %v4009_v17, %v4009_v17  ;;  %8948 = vrcp.f32 %v3960_v56 }
 0xe31   : > { %v4049_v25 = vunpack.c.l.b16 %v4025_v36 }
 0xe33   : > { %v4056_v42 = vpack.c.b16 %v4050_v63, %v4049_v25  ;;  %v3873_v25 = vpop.xlane.xlu2 %3872 }
 0xe34   : > { %v8947_v47 = vpop.eup %8946 }
 0xe35   : > { %v3963_v55 = vpop.xlane.xlu1 %3962  ;;  %7942 = vmatmul.msk.bf16.gmra.mxu3 %vm3846_vm15, %v4056_v42  ;;  %v4316_v62 = vpop.xlane.xlu0 %4315  ;;  %v4011_v16 = vmul.f32 %v8947_v47, %v11163_v4 }
 0xe36   : > { %v8949_v23 = vpop.eup %8948  ;;  %v4362_v8 = vsub.f32 %v11175_v52, %v4316_v62 }
 0xe37   : > { %v4012_v22 = vmul.f32 %v8949_v23, %v11142_v34  ;;  %v4027_v56 = vpack.c.bf16 %v4011_v16, %v4011_v16 }
 0xe38   : > { %v4378_v0 = vmul.f32 1.442695, %v4362_v8 }
 0xe39   : > { %v4028_v2 = vpack.c.bf16 %v4012_v22, %v4012_v22  ;;  %v4051_v52 = vunpack.c.l.b16 %v4027_v56  ;;  %v3903_v22 = vsub.f32 %v11118_v60, %v3873_v25  ;;  %v8504_v60 = vld [vmem:[%s9393_s29 + $0x158] sm:$0xf0] }
 0xe3a   : > { %8950 = vpow2.f32 %v4378_v0 }
 0xe3b   : > { %8952 = vrcp.f32 %v3963_v55  ;;  %v4052_v63 = vunpack.c.l.b16 %v4028_v2  ;;  %v8505_v55 = vld [vmem:[%s9393_s29 + $0x1d8] sm:$0xf0] }
 0xe3c   : > { %8954 = vrcp.f32 %v3966_v54 }
 0xe3d   : > { %v3876_v20 = vpop.xlane.xlu1 %3875  ;;  %v4322_v53 = vpop.xlane.xlu0 %4321  ;;  %v4057_v42 = vpack.c.b16 %v4052_v63, %v4051_v52  ;;  %v8503_v63 = vld [vmem:[%s9393_s29 + $0xd8] sm:$0xf0] }
 0xe3e   : > { %v3904_v5 = vsub.f32 %v11184_v11, %v3876_v20  ;;  %v4364_v17 = vsub.f32 %v11187_v10, %v4322_v53  ;;  %v8003_v11 = vld [vmem:[%s9393_s29 + $0x19c] sm:$0xf]  ;;  %v11252_v10 = vmul.f32 0.125, %v11161_v41  ;;  %v3879_v53 = vpop.xlane.xlu2 %3878 }
 0xe3f   : > { %v8004_v62 = vor.u32 %v8505_v55, %v8003_v11  ;;  %v4367_v55 = vsub.f32 %v11107_v58, %v11235_v21 }
 0xe40   : > { %v11245_v29 = vpop.eup %8950  ;;  %v3929_v4 = vmul.f32 1.442695, %v3904_v5  ;;  %v4382_v36 = vmul.f32 1.442695, %v4364_v17  ;;  %v3892_v2 = vsel %vm3846_vm15, %v11252_v10, -inf }
 0xe41   : > { %v4410_v34 = vsel %vm3846_vm15, %v11245_v29, 0.0  ;;  %v8953_v47 = vpop.eup %8952  ;;  %4809 = vmatpush.bf16.msrb.mxu2 %v8004_v62  ;;  %v7999_v5 = vld [vmem:[%s9393_s29 + $0x11c] sm:$0xf]  ;;  %v3927_v17 = vmul.f32 1.442695, %v3903_v22 }
 0xe42   : > { %8956 = vpow2.f32 %v3929_v4  ;;  %4411 = vadd.xlane.f32.xlu1 %v4410_v34  ;;  %v8955_v23 = vpop.eup %8954  ;;  %v4013_v8 = vmul.f32 %v8953_v47, %v11177_v45  ;;  %v8000_v4 = vor.u32 %v8504_v60, %v7999_v5  ;;  %v11275_v34 = vmul.f32 0.125, %v11171_v33 }
 0xe43   : > { %8958 = vpow2.f32 %v4382_v36  ;;  %v4014_v41 = vmul.f32 %v8955_v23, %v11165_v24  ;;  %v7995_v36 = vld [vmem:[%s9393_s29 + $0x9c] sm:$0xf] }
 0xe44   : > { %v4029_v20 = vpack.c.bf16 %v4013_v8, %v4013_v8  ;;  %v7996_v11 = vor.u32 %v8503_v63, %v7995_v36  ;;  %8960 = vpow2.f32 %v3927_v17  ;;  %v4338_v33 = vsel %vm3846_vm15, %v11275_v34, -inf }
 0xe45   : > { %7943 = vmatmul.msk.bf16.gmra.mxu3 %vm3846_vm15, %v4057_v42  ;;  %v11255_v54 = vpop.xlane.xlu0 %4327  ;;  %v4030_v52 = vpack.c.bf16 %v4014_v41, %v4014_v41  ;;  %v3882_v25 = vpop.xlane.xlu1 %3881  ;;  %4810 = vmatpush.bf16.msrb.mxu2 %v8000_v4  ;;  %v7991_v41 = vld [vmem:[%s9393_s29 + $0x1c] sm:$0xf]  ;;  %v4527_v63 = vunpack.c.l.b16 %v11013_v48 }
 0xe46   : > { %v4053_v47 = vunpack.c.l.b16 %v4029_v20  ;;  %v3906_v8 = vsub.f32 %v11203_v31, %v3882_v25  ;;  %v3885_v58 = vpop.xlane.xlu2 %3884  ;;  %v4285_v20 = vpop.f32.mrf.mxu2  ;;  %v3905_v31 = vsub.f32 %v11125_v15, %v3879_v53 }
 0xe47   : > { %v4054_v23 = vunpack.c.l.b16 %v4030_v52  ;;  %v3907_v60 = vsub.f32 %v11134_v39, %v3885_v58  ;;  %v4528_v39 = vpack.c.b16 %v4527_v63, %v4527_v63 }
 0xe48   : > { %v11258_v16 = vpop.eup %8956 }
 0xe49   : > { %v11260_v0 = vpop.eup %8958  ;;  %v3970_v56 = vsel %vm3846_vm15, %v11258_v16, 0.0  ;;  %v4058_v22 = vpack.c.b16 %v4054_v23, %v4053_v47  ;;  %4811 = vmatpush.bf16.msrb.mxu2 %v7996_v11  ;;  %v3935_v4 = vmul.f32 1.442695, %v3907_v60 }
 0xe4a   : > { %3971 = vadd.xlane.f32.xlu2 %v3970_v56  ;;  %3893 = vmax.xlane.f32.xlu1 %v3892_v2  ;;  %v4416_v45 = vsel %vm3846_vm15, %v11260_v0, 0.0  ;;  %v8502_v56 = vld [vmem:[%s9393_s29 + $0x58] sm:$0xf0]  ;;  %v3933_v2 = vmul.f32 1.442695, %v3906_v8  ;;  %v11286_v21 = vpop.eup %8960 }
 0xe4b   : > { %4417 = vadd.xlane.f32.xlu0 %v4416_v45  ;;  %v7992_v45 = vor.u32 %v8502_v56, %v7991_v41  ;;  %v3967_v17 = vsel %vm3846_vm15, %v11286_v21, 0.0 }
 0xe4d   : > { %v4334_v24 = vpop.xlane.xlu0 %4333  ;;  %4812 = vmatpush.bf16.msrb.mxu2 %v7992_v45  ;;  %v3888_v48 = vpop.xlane.xlu1 %3887 }
 0xe4e   : > { %v4368_v42 = vsub.f32 %v11215_v61, %v4334_v24  ;;  %v4388_v61 = vmul.f32 1.442695, %v4367_v55  ;;  %v3931_v24 = vmul.f32 1.442695, %v3905_v31  ;;  %v4288_v53 = vpop.f32.mrf.mxu2  ;;  %v3891_v47 = vpop.xlane.xlu2 %3890  ;;  %v3908_v8 = vsub.f32 %v11218_v6, %v3888_v48 }
 0xe4f   : > { %v11318_v45 = vmul.f32 0.125, %v4288_v53  ;;  %v4366_v53 = vsub.f32 %v11200_v19, %v11255_v54 }
 0xe50   : > { %v4390_v62 = vmul.f32 1.442695, %v4368_v42  ;;  %v3937_v41 = vmul.f32 1.442695, %v3908_v8 }
 0xe51   : > { %v4350_v31 = vsel %vm3846_vm15, %v11318_v45, -inf }
 0xe52   : > { %8962 = vpow2.f32 %v4390_v62  ;;  %v3909_v62 = vsub.f32 %v11149_v3, %v3891_v47  ;;  %v4369_v3 = vsub.f32 %v11113_v51, %v11240_v9 }
 0xe53   : > { %4339 = vmax.xlane.f32.xlu0 %v4338_v33  ;;  %8964 = vpow2.f32 %v4388_v61 }
 0xe54   : > { %8966 = vpow2.f32 %v3933_v2  ;;  %v3939_v61 = vmul.f32 1.442695, %v3909_v62  ;;  %v11316_v2 = vmul.f32 0.125, %v4285_v20  ;;  %v4392_v60 = vmul.f32 1.442695, %v4369_v3 }
 0xe55   : > { %7944 = vmatmul.msk.bf16.gmra.mxu3 %vm3846_vm15, %v4058_v22  ;;  %8968 = vpow2.f32 %v3931_v24 }
 0xe56   : > { %8970 = vpow2.f32 %v3935_v4  ;;  %v4290_v23 = vpop.f32.mrf.mxu2  ;;  %v4347_v58 = vsel %vm3846_vm15, %v11316_v2, -inf  ;;  %v11335_v63 = vpop.xlane.xlu2 %4420 }
 0xe57   : > { %8972 = vpow2.f32 %v3939_v61  ;;  %v11347_v62 = vmul.f32 0.125, %v4290_v23 }
 0xe58   : > { %v11289_v5 = vpop.eup %8962  ;;  %8974 = vpow2.f32 %v3937_v41 }
 0xe59   : > { %v4428_v52 = vsel %vm3846_vm15, %v11289_v5, 0.0  ;;  %v11296_v36 = vpop.eup %8964  ;;  %8976 = vpow2.f32 %v4392_v60  ;;  %v4353_v54 = vsel %vm3846_vm15, %v11347_v62, -inf }
 0xe5a   : > { %4429 = vadd.xlane.f32.xlu2 %v4428_v52  ;;  %v11299_v15 = vpop.eup %8966  ;;  %v4425_v25 = vsel %vm3846_vm15, %v11296_v36, 0.0 }
 0xe5b   : > { %3968 = vadd.xlane.f32.xlu0 %v3967_v17  ;;  %v3976_v42 = vsel %vm3846_vm15, %v11299_v15, 0.0  ;;  %v11306_v11 = vpop.eup %8968 }
 0xe5c   : > { %v11308_v55 = vpop.eup %8970  ;;  %v3973_v33 = vsel %vm3846_vm15, %v11306_v11, 0.0 }
 0xe5d   : > { %v3979_v22 = vsel %vm3846_vm15, %v11308_v55, 0.0  ;;  %v11326_v20 = vpop.eup %8972 }
 0xe5e   : > { %v4293_v6 = vpop.f32.mrf.mxu2  ;;  %v11328_v24 = vpop.eup %8974  ;;  %v3985_v9 = vsel %vm3846_vm15, %v11326_v20, 0.0 }
 0xe5f   : > { %v3982_v51 = vsel %vm3846_vm15, %v11328_v24, 0.0  ;;  %v4343_v8 = vpop.xlane.xlu2 %4342  ;;  %v11356_v41 = vmul.f32 0.125, %v4293_v6  ;;  %v4415_v6 = vpop.xlane.xlu0 %4414 }
 0xe61   : > { %v4356_v23 = vsel %vm3846_vm15, %v11356_v41, -inf }
 0xe62   : > { %3977 = vadd.xlane.f32.xlu2 %v3976_v42  ;;  %v4386_v42 = vmul.f32 1.442695, %v4366_v53 }
 0xe63   : > { %4426 = vadd.xlane.f32.xlu0 %v4425_v25  ;;  %4529 = vrot.lane.b32.xlu1 %v4528_v39, %s9283_s30  ;;  %v11341_v25 = vpop.eup %8976 }
 0xe64   : > { %v4431_v47 = vsel %vm3846_vm15, %v11341_v25, 0.0  ;;  %8978 = vpow2.f32 %v4386_v42 }
 0xe66   : > { %v4295_v4 = vpop.f32.mrf.mxu2 }
 0xe67   : > { %v11339_v39 = vmul.f32 0.125, %v4295_v4 }
 0xe69   : > { %v4359_v48 = vsel %vm3846_vm15, %v11339_v39, -inf }
 0xe6a   : > { %3980 = vadd.xlane.f32.xlu2 %v3979_v22  ;;  %v11350_v19 = vpop.eup %8978 }
 0xe6b   : > { %3974 = vadd.xlane.f32.xlu0 %v3973_v33  ;;  %v4371_v33 = vsub.f32 %v11197_v46, %v4343_v8  ;;  %v4422_v61 = vsel %vm3846_vm15, %v11350_v19, 0.0  ;;  %v4596_v46 = vunpack.c.l.b16 %v11049_v28 }
 0xe6c   : > { %v4084_v56 = vpop.f32.mrf.mxu3 }
 0xe6d   : > { %v4396_v22 = vmul.f32 1.442695, %v4371_v33  ;;  %v4597_v3 = vpack.c.b16 %v4596_v46, %v4596_v46 }
 0xe6f   : > { %8980 = vpow2.f32 %v4396_v22 }
 0xe72   : > { %4351 = vmax.xlane.f32.xlu2 %v4350_v31 }
 0xe73   : > { %4348 = vmax.xlane.f32.xlu0 %v4347_v58 }
 0xe74   : > { %v4086_v17 = vpop.f32.mrf.mxu3 }
 0xe75   : > { %v4176_v52 = vpack.c.bf16 %v4086_v17, %v4084_v56  ;;  %v11361_v56 = vpop.eup %8980 }
 0xe76   : > { %v4437_v58 = vsel %vm3846_vm15, %v11361_v56, 0.0 }
 0xe77   : > { %8005 = vmatmul.msk.bf16.vlgmr.msrb.gmra.mxu2 %vm1796_vm10, %v4176_v52  ;;  %v4346_v52 = vpop.xlane.xlu2 %4345 }
 0xe7a   : > { %3986 = vadd.xlane.f32.xlu2 %v3985_v9 }
 0xe7b   : > { %3983 = vadd.xlane.f32.xlu0 %v3982_v51 }
 0xe82   : > { %4360 = vmax.xlane.f32.xlu2 %v4359_v48 }
 0xe83   : > { %4432 = vadd.xlane.f32.xlu0 %v4431_v47 }
 0xe8b   : > { %4354 = vmax.xlane.f32.xlu0 %v4353_v54  ;;  %v4372_v54 = vsub.f32 %v11212_v27, %v4346_v52 }
 0xe8d   : > { %4423 = vadd.xlane.f32.xlu1 %v4422_v61  ;;  %v4398_v46 = vmul.f32 1.442695, %v4372_v54 }
 0xe93   : > { %4357 = vmax.xlane.f32.xlu0 %v4356_v23 }
 0xe9a   : > { %4598 = vrot.lane.b32.xlu2 %v4597_v3, %s9283_s30 }
 0xe9b   : > { %4438 = vadd.xlane.f32.xlu0 %v4437_v58 }
 0xeb5   : > { %v4412_v31 = vpop.xlane.xlu1 %4411 }
 0xeb8   : > { %v4089_v60 = vpop.f32.mrf.mxu3 }
 0xebd   : > { %v3894_v17 = vpop.xlane.xlu1 %3893  ;;  %v3972_v42 = vpop.xlane.xlu2 %3971 }
 0xebe   : > { %v3910_v51 = vsub.f32 %v11252_v10, %v3894_v17  ;;  %v4418_v9 = vpop.xlane.xlu0 %4417 }
 0xec0   : > { %v3941_v4 = vmul.f32 1.442695, %v3910_v51  ;;  %v4091_v53 = vpop.f32.mrf.mxu3 }
 0xec1   : > { %v4177_v28 = vpack.c.bf16 %v4091_v53, %v4089_v60 }
 0xec2   : > { %8982 = vpow2.f32 %v3941_v4 }
 0xec3   : > { %8006 = vmatmul.msk.bf16.gmra.mxu2 %vm1796_vm10, %v4177_v28  ;;  %8984 = vrcp.f32 %v4412_v31 }
 0xec4   : > { %8986 = vrcp.f32 %v4415_v6 }
 0xec5   : > { %8988 = vrcp.f32 %v3972_v42 }
 0xec6   : > { %v4340_v47 = vpop.xlane.xlu0 %4339 }
 0xec7   : > { %v4370_v48 = vsub.f32 %v11275_v34, %v4340_v47 }
 0xec8   : > { %v11369_v8 = vpop.eup %8982  ;;  %v4094_v33 = vpop.f32.mrf.mxu3 }
 0xec9   : > { %v4394_v22 = vmul.f32 1.442695, %v4370_v48  ;;  %v3988_v10 = vsel %vm3846_vm15, %v11369_v8, 0.0  ;;  %v8985_v61 = vpop.eup %8984 }
 0xeca   : > { %3989 = vadd.xlane.f32.xlu1 %v3988_v10  ;;  %v8987_v23 = vpop.eup %8986  ;;  %v4474_v3 = vmul.f32 %v8985_v61, %v11245_v29 }
 0xecb   : > { %8990 = vpow2.f32 %v4394_v22  ;;  %v4475_v31 = vmul.f32 %v8987_v23, %v11226_v12  ;;  %v8989_v6 = vpop.eup %8988 }
 0xecc   : > { %v4490_v17 = vpack.c.bf16 %v4474_v3, %v4474_v3  ;;  %v4016_v53 = vmul.f32 %v8989_v6, %v11258_v16 }
 0xecd   : > { %v11375_v58 = vpop.xlane.xlu2 %4429  ;;  %v4491_v4 = vpack.c.bf16 %v4475_v31, %v4475_v31 }
 0xece   : > { %v3969_v34 = vpop.xlane.xlu0 %3968  ;;  %v4514_v29 = vunpack.c.l.b16 %v4490_v17 }
 0xecf   : > { %8992 = vrcp.f32 %v3969_v34  ;;  %v4515_v48 = vunpack.c.l.b16 %v4491_v4 }
 0xed0   : > { %v4096_v27 = vpop.f32.mrf.mxu3  ;;  %8994 = vpow2.f32 %v4398_v46 }
 0xed1   : > { %v11378_v60 = vpop.eup %8990  ;;  %v4178_v52 = vpack.c.bf16 %v4096_v27, %v4094_v33  ;;  %8996 = vrcp.f32 %v4418_v9  ;;  %v4032_v33 = vpack.c.bf16 %v4016_v53, %v4016_v53  ;;  %v4522_v61 = vpack.c.b16 %v4515_v48, %v4514_v29 }
 0xed2   : > { %v4434_v51 = vsel %vm3846_vm15, %v11378_v60, 0.0  ;;  %8998 = vrcp.f32 %v11335_v63 }
 0xed3   : > { %4435 = vadd.xlane.f32.xlu1 %v4434_v51  ;;  %8007 = vmatmul.msk.bf16.gmra.mxu2 %vm1796_vm10, %v4178_v52  ;;  %v4113_v46 = vunpack.c.l.b16 %v4032_v33 }
 0xed5   : > { %v8993_v12 = vpop.eup %8992  ;;  %v4530_v28 = vpop.permute.xlu1 %4529 }
 0xed6   : > { %v3978_v42 = vpop.xlane.xlu2 %3977  ;;  %v11385_v47 = vpop.eup %8994  ;;  %v4015_v54 = vmul.f32 %v8993_v12, %v11286_v21  ;;  %v4544_v22 = vsel %vm4071_vm7, %v4530_v28, 0 }
 0xed7   : > { %v11389_v10 = vpop.xlane.xlu0 %4426  ;;  %4553 = vmatpush.bf16.msra.mxu3 %v4544_v22  ;;  %v8997_v23 = vpop.eup %8996  ;;  %9000 = vrcp.f32 %v3978_v42  ;;  %v4440_v63 = vsel %vm3846_vm15, %v11385_v47, 0.0 }
 0xed8   : > { %v4099_v16 = vpop.f32.mrf.mxu3  ;;  %v4031_v9 = vpack.c.bf16 %v4015_v54, %v4015_v54  ;;  %v8999_v34 = vpop.eup %8998  ;;  %v4476_v21 = vmul.f32 %v8997_v23, %v11260_v0 }
 0xed9   : > { %v4477_v27 = vmul.f32 %v8999_v34, %v11189_v37 }
 0xeda   : > { %v4112_v3 = vunpack.c.l.b16 %v4031_v9  ;;  %7957 = vmatmul.msk.bf16.vlgmr.msra.gmra.mxu3 %vm3846_vm15, %v4522_v61  ;;  %v4492_v4 = vpack.c.bf16 %v4476_v21, %v4476_v21 }
 0xedb   : > { %4441 = vadd.xlane.f32.xlu1 %v4440_v63  ;;  %v4493_v29 = vpack.c.bf16 %v4477_v27, %v4477_v27 }
 0xedc   : > { %v4120_v31 = vpack.c.b16 %v4113_v46, %v4112_v3  ;;  %v4516_v28 = vunpack.c.l.b16 %v4492_v4 }
 0xedd   : > { %v9001_v52 = vpop.eup %9000  ;;  %v4517_v48 = vunpack.c.l.b16 %v4493_v29 }
 0xede   : > { %v3981_v6 = vpop.xlane.xlu2 %3980  ;;  %7945 = vmatmul.msk.bf16.vlgmr.msrb.gmra.mxu1 %vm3846_vm15, %v4120_v31  ;;  %v4018_v12 = vmul.f32 %v9001_v52, %v11299_v15 }
 0xedf   : > { %v3975_v17 = vpop.xlane.xlu0 %3974 }
 0xee0   : > { %9002 = vrcp.f32 %v3975_v17  ;;  %v4101_v51 = vpop.f32.mrf.mxu3  ;;  %v4034_v33 = vpack.c.bf16 %v4018_v12, %v4018_v12 }
 0xee1   : > { %v4179_v53 = vpack.c.bf16 %v4101_v51, %v4099_v16  ;;  %v4523_v16 = vpack.c.b16 %v4517_v48, %v4516_v28  ;;  %9004 = vrcp.f32 %v3981_v6 }
 0xee2   : > { %v4115_v15 = vunpack.c.l.b16 %v4034_v33 }
 0xee3   : > { %8008 = vmatmul.msk.bf16.gmra.mxu2 %vm1796_vm10, %v4179_v53 }
 0xee6   : > { %v9003_v42 = vpop.eup %9002  ;;  %v4352_v0 = vpop.xlane.xlu2 %4351 }
 0xee7   : > { %v4017_v37 = vmul.f32 %v9003_v42, %v11306_v11  ;;  %v4374_v54 = vsub.f32 %v11318_v45, %v4352_v0  ;;  %v4349_v22 = vpop.xlane.xlu0 %4348  ;;  %v9005_v45 = vpop.eup %9004 }
 0xee8   : > { %v4373_v61 = vsub.f32 %v11316_v2, %v4349_v22  ;;  %v4019_v6 = vmul.f32 %v9005_v45, %v11308_v55 }
 0xee9   : > { %v4033_v9 = vpack.c.bf16 %v4017_v37, %v4017_v37  ;;  %v4402_v23 = vmul.f32 1.442695, %v4374_v54 }
 0xeea   : > { %v4400_v63 = vmul.f32 1.442695, %v4373_v61  ;;  %7958 = vmatmul.msk.bf16.gmra.mxu3 %vm3846_vm15, %v4523_v16  ;;  %v4035_v51 = vpack.c.bf16 %v4019_v6, %v4019_v6 }
 0xeeb   : > { %v4114_v46 = vunpack.c.l.b16 %v4033_v9  ;;  %9006 = vpow2.f32 %v4402_v23 }
 0xeec   : > { %9008 = vpow2.f32 %v4400_v63  ;;  %v4116_v12 = vunpack.c.l.b16 %v4035_v51 }
 0xeed   : > { %v4121_v3 = vpack.c.b16 %v4115_v15, %v4114_v46 }
 0xeee   : > { %v11403_v34 = vpop.xlane.xlu2 %3986 }
 0xeef   : > { %7946 = vmatmul.msk.bf16.gmra.mxu1 %vm3846_vm15, %v4121_v3  ;;  %v3984_v11 = vpop.xlane.xlu0 %3983 }
 0xef0   : > { %9010 = vrcp.f32 %v3984_v11 }
 0xef1   : > { %v11406_v2 = vpop.eup %9006  ;;  %9012 = vrcp.f32 %v11389_v10 }
 0xef2   : > { %v11408_v21 = vpop.eup %9008  ;;  %v4446_v31 = vsel %vm3846_vm15, %v11406_v2, 0.0 }
 0xef3   : > { %4447 = vadd.xlane.f32.xlu1 %v4446_v31  ;;  %v4443_v27 = vsel %vm3846_vm15, %v11408_v21, 0.0 }
 0xef4   : > { %4444 = vadd.xlane.f32.xlu0 %v4443_v27 }
 0xef6   : > { %v9011_v17 = vpop.eup %9010  ;;  %v4361_v52 = vpop.xlane.xlu2 %4360 }
 0xef7   : > { %v4020_v4 = vmul.f32 %v9011_v17, %v11328_v24  ;;  %v4433_v53 = vpop.xlane.xlu0 %4432  ;;  %v9013_v54 = vpop.eup %9012  ;;  %v4377_v24 = vsub.f32 %v11339_v39, %v4361_v52 }
 0xef8   : > { %v4479_v61 = vmul.f32 %v9013_v54, %v11296_v36  ;;  %v8507_v54 = vld [vmem:[%s9393_s29 + $0x2d8] sm:$0xf0] }
 0xef9   : > { %v4036_v29 = vpack.c.bf16 %v4020_v4, %v4020_v4  ;;  %v4408_v10 = vmul.f32 1.442695, %v4377_v24 }
 0xefa   : > { %v4495_v63 = vpack.c.bf16 %v4479_v61, %v4479_v61 }
 0xefb   : > { %v4117_v28 = vunpack.c.l.b16 %v4036_v29 }
 0xefc   : > { %v4519_v36 = vunpack.c.l.b16 %v4495_v63 }
 0xefd   : > { %v4122_v42 = vpack.c.b16 %v4117_v28, %v4116_v12  ;;  %v8509_v28 = vld [vmem:[%s9393_s29 + $0x3d8] sm:$0xf0] }
 0xefe   : > { %v4599_v0 = vpop.permute.xlu2 %4598 }
 0xeff   : > { %v4613_v55 = vsel %vm4071_vm7, %v4599_v0, 0  ;;  %7947 = vmatmul.msk.bf16.gmra.mxu1 %vm3846_vm15, %v4122_v42  ;;  %v4355_v48 = vpop.xlane.xlu0 %4354 }
 0xf00   : > { %v4375_v33 = vsub.f32 %v11347_v62, %v4355_v48  ;;  %4622 = vmatpush.bf16.msra.mxu1 %v4613_v55  ;;  %v4424_v37 = vpop.xlane.xlu1 %4423  ;;  %v7975_v55 = vld [vmem:[%s9393_s29 + $0x31c] sm:$0xf] }
 0xf01   : > { %9014 = vrcp.f32 %v4424_v37  ;;  %v7971_v37 = vld [vmem:[%s9393_s29 + $0x29c] sm:$0xf] }
 0xf02   : > { %v4404_v22 = vmul.f32 1.442695, %v4375_v33  ;;  %v7972_v24 = vor.u32 %v8507_v54, %v7971_v37 }
 0xf04   : > { %9016 = vpow2.f32 %v4404_v22 }
 0xf05   : > { %9018 = vrcp.f32 %v4433_v53 }
 0xf06   : > { %9020 = vpow2.f32 %v4408_v10 }
 0xf07   : > { %v4358_v9 = vpop.xlane.xlu0 %4357  ;;  %v9015_v23 = vpop.eup %9014  ;;  %9022 = vrcp.f32 %v11375_v58 }
 0xf08   : > { %v4376_v16 = vsub.f32 %v11356_v41, %v4358_v9  ;;  %v4478_v15 = vmul.f32 %v9015_v23, %v11350_v19  ;;  %v7967_v23 = vld [vmem:[%s9393_s29 + $0x21c] sm:$0xf] }
 0xf0a   : > { %v11424_v62 = vpop.eup %9016  ;;  %v4406_v46 = vmul.f32 1.442695, %v4376_v16  ;;  %v4494_v39 = vpack.c.bf16 %v4478_v15, %v4478_v15  ;;  %v8506_v16 = vld [vmem:[%s9393_s29 + $0x258] sm:$0xf0] }
 0xf0b   : > { %v4449_v3 = vsel %vm3846_vm15, %v11424_v62, 0.0  ;;  %v9019_v45 = vpop.eup %9018  ;;  %v7968_v15 = vor.u32 %v8506_v16, %v7967_v23 }
 0xf0c   : > { %9024 = vpow2.f32 %v4406_v46  ;;  %4450 = vadd.xlane.f32.xlu0 %v4449_v3  ;;  %v4518_v11 = vunpack.c.l.b16 %v4494_v39  ;;  %v11429_v31 = vpop.eup %9020  ;;  %v4481_v58 = vmul.f32 %v9019_v45, %v11341_v25  ;;  %v7979_v25 = vld [vmem:[%s9393_s29 + $0x39c] sm:$0xf] }
 0xf0d   : > { %v9023_v6 = vpop.eup %9022  ;;  %v4455_v27 = vsel %vm3846_vm15, %v11429_v31, 0.0  ;;  %9026 = vrcp.f32 %v11403_v34  ;;  %v7980_v42 = vor.u32 %v8509_v28, %v7979_v25 }
 0xf0e   : > { %v4524_v41 = vpack.c.b16 %v4519_v36, %v4518_v11  ;;  %v4480_v52 = vmul.f32 %v9023_v6, %v11289_v5  ;;  %v4497_v51 = vpack.c.bf16 %v4481_v58, %v4481_v58  ;;  %v8508_v5 = vld [vmem:[%s9393_s29 + $0x358] sm:$0xf0] }
 0xf0f   : > { %4712 = vmatpush.bf16.msrb.mxu0 %v7980_v42  ;;  %v7976_v33 = vor.u32 %v8508_v5, %v7975_v55  ;;  %v4439_v10 = vpop.xlane.xlu0 %4438 }
 0xf10   : > { %7959 = vmatmul.msk.bf16.gmra.mxu3 %vm3846_vm15, %v4524_v41  ;;  %v4496_v4 = vpack.c.bf16 %v4480_v52, %v4480_v52  ;;  %v4521_v53 = vunpack.c.l.b16 %v4497_v51 }
 0xf12   : > { %v11432_v19 = vpop.eup %9024  ;;  %v4520_v29 = vunpack.c.l.b16 %v4496_v4 }
 0xf13   : > { %v4452_v17 = vsel %vm3846_vm15, %v11432_v19, 0.0  ;;  %v9027_v48 = vpop.eup %9026  ;;  %4713 = vmatpush.bf16.msrb.mxu0 %v7976_v33 }
 0xf14   : > { %4456 = vadd.xlane.f32.xlu0 %v4455_v27  ;;  %4453 = vadd.xlane.f32.xlu1 %v4452_v17  ;;  %v4525_v12 = vpack.c.b16 %v4521_v53, %v4520_v29  ;;  %v4021_v22 = vmul.f32 %v9027_v48, %v11326_v20 }
 0xf16   : > { %v4037_v34 = vpack.c.bf16 %v4021_v22, %v4021_v22 }
 0xf17   : > { %4714 = vmatpush.bf16.msrb.mxu0 %v7972_v24 }
 0xf18   : > { %v4118_v39 = vunpack.c.l.b16 %v4037_v34 }
 0xf1b   : > { %4715 = vmatpush.bf16.msrb.mxu0 %v7968_v15 }
 0xf20   : > { %7960 = vmatmul.msk.bf16.gmra.mxu3 %vm3846_vm15, %v4525_v12 }
 0xf3d   : > { %v3990_v0 = vpop.xlane.xlu1 %3989 }
 0xf3e   : > { %9028 = vrcp.f32 %v3990_v0 }
 0xf44   : > { %v9029_v61 = vpop.eup %9028 }
 0xf45   : > { %v4022_v9 = vmul.f32 %v9029_v61, %v11369_v8 }
 0xf46   : > { %v4436_v63 = vpop.xlane.xlu1 %4435 }
 0xf47   : > { %v4038_v46 = vpack.c.bf16 %v4022_v9, %v4022_v9  ;;  %9030 = vrcp.f32 %v4436_v63 }
 0xf48   : > { %9032 = vrcp.f32 %v4439_v10 }
 0xf49   : > { %v4119_v3 = vunpack.c.l.b16 %v4038_v46 }
 0xf4b   : > { %v4123_v36 = vpack.c.b16 %v4119_v3, %v4118_v39 }
 0xf4d   : > { %v9031_v11 = vpop.eup %9030  ;;  %7948 = vmatmul.msk.bf16.gmra.mxu1 %vm3846_vm15, %v4123_v36 }
 0xf4e   : > { %v9033_v20 = vpop.eup %9032  ;;  %v4482_v45 = vmul.f32 %v9031_v11, %v11378_v60  ;;  %v4442_v4 = vpop.xlane.xlu1 %4441 }
 0xf4f   : > { %v4483_v41 = vmul.f32 %v9033_v20, %v11361_v56  ;;  %9034 = vrcp.f32 %v4442_v4 }
 0xf50   : > { %v4498_v8 = vpack.c.bf16 %v4482_v45, %v4482_v45 }
 0xf51   : > { %v4499_v6 = vpack.c.bf16 %v4483_v41, %v4483_v41 }
 0xf52   : > { %v4583_v58 = vunpack.c.l.b16 %v4498_v8 }
 0xf53   : > { %v4584_v27 = vunpack.c.l.b16 %v4499_v6 }
 0xf55   : > { %v4591_v17 = vpack.c.b16 %v4584_v27, %v4583_v58  ;;  %v9035_v28 = vpop.eup %9034 }
 0xf56   : > { %v4484_v56 = vmul.f32 %v9035_v28, %v11385_v47 }
 0xf58   : > { %v4500_v5 = vpack.c.bf16 %v4484_v56, %v4484_v56 }
 0xf5a   : > { %v4585_v37 = vunpack.c.l.b16 %v4500_v5 }
 0xf5b   : > { %v4148_v52 = vpop.f32.mrf.mxu1 }
 0xf5d   : > { %7961 = vmatmul.msk.bf16.vlgmr.msra.gmra.mxu1 %vm3846_vm15, %v4591_v17  ;;  %v4555_v51 = vpop.f32.mrf.mxu3 }
 0xf63   : > { %v4150_v53 = vpop.f32.mrf.mxu1 }
 0xf64   : > { %v4180_v29 = vpack.c.bf16 %v4150_v53, %v4148_v52 }
 0xf65   : > { %v4557_v12 = vpop.f32.mrf.mxu3 }
 0xf66   : > { %v4652_v25 = vpack.c.bf16 %v4557_v12, %v4555_v51  ;;  %8009 = vmatmul.msk.bf16.gmra.mxu2 %vm1796_vm10, %v4180_v29  ;;  %v4448_v10 = vpop.xlane.xlu1 %4447 }
 0xf67   : > { %v4445_v60 = vpop.xlane.xlu0 %4444 }
 0xf68   : > { %9036 = vrcp.f32 %v4445_v60  ;;  %7981 = vmatmul.msk.bf16.vlgmr.msrb.gmra.mxu0 %vm1796_vm10, %v4652_v25 }
 0xf69   : > { %9038 = vrcp.f32 %v4448_v10 }
 0xf6c   : > { %v4153_v42 = vpop.f32.mrf.mxu1 }
 0xf6d   : > { %v4560_v55 = vpop.f32.mrf.mxu3 }
 0xf6e   : > { %v9037_v0 = vpop.eup %9036 }
 0xf6f   : > { %v4485_v48 = vmul.f32 %v9037_v0, %v11408_v21  ;;  %v9039_v16 = vpop.eup %9038  ;;  %v4814_v0 = vpop.f32.mrf.mxu2 }
 0xf70   : > { %v4486_v21 = vmul.f32 %v9039_v16, %v11406_v2 }
 0xf71   : > { %v4501_v33 = vpack.c.bf16 %v4485_v48, %v4485_v48  ;;  %v11474_v48 = vld [vmem:[%s9383_s18 + $0x7] ss:$0 sm:$0xff] }
 0xf72   : > { %v4502_v39 = vpack.c.bf16 %v4486_v21, %v4486_v21 }
 0xf73   : > { %v4586_v54 = vunpack.c.l.b16 %v4501_v33 }
 0xf74   : > { %v4155_v24 = vpop.f32.mrf.mxu1  ;;  %v4587_v45 = vunpack.c.l.b16 %v4502_v39 }
 0xf75   : > { %v4181_v22 = vpack.c.bf16 %v4155_v24, %v4153_v42  ;;  %v4592_v61 = vpack.c.b16 %v4586_v54, %v4585_v37  ;;  %v4562_v34 = vpop.f32.mrf.mxu3 }
 0xf76   : > { %v4653_v9 = vpack.c.bf16 %v4562_v34, %v4560_v55 }
 0xf77   : > { %7962 = vmatmul.msk.bf16.gmra.mxu1 %vm3846_vm15, %v4592_v61  ;;  %8010 = vmatmul.msk.bf16.gmra.mxu2 %vm1796_vm10, %v4181_v22  ;;  %v4816_v22 = vpop.f32.mrf.mxu2 }
 0xf78   : > { %7982 = vmatmul.msk.bf16.gmra.mxu0 %vm1796_vm10, %v4653_v9 }
 0xf7c   : > { %v4158_v47 = vpop.f32.mrf.mxu1 }
 0xf7f   : > { %v4451_v23 = vpop.xlane.xlu0 %4450 }
 0xf80   : > { %9040 = vrcp.f32 %v4451_v23 }
 0xf84   : > { %v4160_v63 = vpop.f32.mrf.mxu1 }
 0xf85   : > { %v4182_v15 = vpack.c.bf16 %v4160_v63, %v4158_v47  ;;  %v4819_v47 = vpop.f32.mrf.mxu2 }
 0xf86   : > { %v9041_v46 = vpop.eup %9040 }
 0xf87   : > { %v4487_v3 = vmul.f32 %v9041_v46, %v11424_v62  ;;  %8011 = vmatmul.msk.bf16.gmra.mxu2 %vm1796_vm10, %v4182_v15  ;;  %v4454_v36 = vpop.xlane.xlu1 %4453  ;;  %v4457_v11 = vpop.xlane.xlu0 %4456 }
 0xf88   : > { %9042 = vrcp.f32 %v4454_v36 }
 0xf89   : > { %v4503_v20 = vpack.c.bf16 %v4487_v3, %v4487_v3  ;;  %9044 = vrcp.f32 %v4457_v11 }
 0xf8b   : > { %v4588_v41 = vunpack.c.l.b16 %v4503_v20 }
 0xf8d   : > { %v4593_v8 = vpack.c.b16 %v4588_v41, %v4587_v45  ;;  %v4821_v39 = vpop.f32.mrf.mxu2 }
 0xf8e   : > { %v9043_v6 = vpop.eup %9042 }
 0xf8f   : > { %v9045_v58 = vpop.eup %9044  ;;  %7963 = vmatmul.msk.bf16.gmra.mxu1 %vm3846_vm15, %v4593_v8  ;;  %v4488_v2 = vmul.f32 %v9043_v6, %v11432_v19 }
 0xf90   : > { %v4489_v27 = vmul.f32 %v9045_v58, %v11429_v31 }
 0xf91   : > { %v4504_v62 = vpack.c.bf16 %v4488_v2, %v4488_v2 }
 0xf92   : > { %v4505_v52 = vpack.c.bf16 %v4489_v27, %v4489_v27 }
 0xf93   : > { %v4565_v17 = vpop.f32.mrf.mxu3  ;;  %v4589_v51 = vunpack.c.l.b16 %v4504_v62 }
 0xf94   : > { %v4590_v4 = vunpack.c.l.b16 %v4505_v52 }
 0xf95   : > { %v4824_v41 = vpop.f32.mrf.mxu2 }
 0xf96   : > { %v4594_v12 = vpack.c.b16 %v4590_v4, %v4589_v51 }
 0xf9b   : > { %v4567_v53 = vpop.f32.mrf.mxu3 }
 0xf9c   : > { %v4654_v29 = vpack.c.bf16 %v4567_v53, %v4565_v17 }
 0xf9d   : > { %v4826_v17 = vpop.f32.mrf.mxu2 }
 0xf9e   : > { %7983 = vmatmul.msk.bf16.gmra.mxu0 %vm1796_vm10, %v4654_v29 }
 0xf9f   : > { %7964 = vmatmul.msk.bf16.gmra.mxu1 %vm3846_vm15, %v4594_v12 }
 0xfa3   : > { %v4570_v25 = vpop.f32.mrf.mxu3 }
 0xfa5   : > { %v4829_v29 = vpop.f32.mrf.mxu2 }
 0xfab   : > { %v4572_v60 = vpop.f32.mrf.mxu3 }
 0xfac   : > { %v4655_v28 = vpack.c.bf16 %v4572_v60, %v4570_v25 }
 0xfad   : > { %v4831_v25 = vpop.f32.mrf.mxu2 }
 0xfae   : > { %7984 = vmatmul.msk.bf16.gmra.mxu0 %vm1796_vm10, %v4655_v28 }
 0xfca   : > { %v4163_v19 = vpop.f32.mrf.mxu1 }
 0xfd2   : > { %v4165_v31 = vpop.f32.mrf.mxu1 }
 0xfd3   : > { %v4183_v56 = vpack.c.bf16 %v4165_v31, %v4163_v19 }
 0xfd5   : > { %8012 = vmatmul.msk.bf16.gmra.mxu2 %vm1796_vm10, %v4183_v56 }
 0xfda   : > { %v4624_v42 = vpop.f32.mrf.mxu1 }
 0xfe2   : > { %v4626_v55 = vpop.f32.mrf.mxu1 }
 0xfe3   : > { %v4656_v5 = vpack.c.bf16 %v4626_v55, %v4624_v42 }
 0xfe5   : > { %7985 = vmatmul.msk.bf16.gmra.mxu0 %vm1796_vm10, %v4656_v5  ;;  %v4717_v33 = vpop.f32.mrf.mxu0 }
 0xfe6   : > { %v4815_v37 = vadd.f32 %v4814_v0, %v4717_v33 }
 0xfe8   : > { %v4855_v54 = vadd.f32 %v11474_v48, %v4815_v37 }
 0xfea   : > { %v11479_v24 = vadd.f32 %v4855_v54, %v10726_v7 }
 0xfec   : > { %13091 = vst [vmem:[#allocation9_spill] sm:$0xff] %v11479_v24  ;;  %4889 = vadd.xlane.f32.xlu2 %v11479_v24 }
 0xfed   : > { %v4719_v61 = vpop.f32.mrf.mxu0 }
 0xfee   : > { %v4817_v34 = vadd.f32 %v4816_v22, %v4719_v61 }
 0xff0   : > { %v4856_v10 = vadd.f32 %v11474_v48, %v4817_v34 }
 0xff2   : > { %v11484_v9 = vadd.f32 %v4856_v10, %v10730_v59 }
 0xff4   : > { %13092 = vst [vmem:[#allocation10_spill] sm:$0xff] %v11484_v9  ;;  %v4629_v23 = vpop.f32.mrf.mxu1  ;;  %4891 = vadd.xlane.f32.xlu1 %v11484_v9 }
 0xff5   : > { %v4722_v16 = vpop.f32.mrf.mxu0 }
 0xff6   : > { %v4820_v21 = vadd.f32 %v4819_v47, %v4722_v16 }
 0xff8   : > { %v4857_v63 = vadd.f32 %v11474_v48, %v4820_v21 }
 0xffa   : > { %v11489_v7 = vadd.f32 %v4857_v63, %v10734_v35 }
 0xffc   : > { %13093 = vst [vmem:[#allocation11_spill] sm:$0xff] %v11489_v7  ;;  %v4631_v15 = vpop.f32.mrf.mxu1  ;;  %4893 = vadd.xlane.f32.xlu0 %v11489_v7 }
 0xffd   : > { %v4657_v46 = vpack.c.bf16 %v4631_v15, %v4629_v23  ;;  %v4724_v3 = vpop.f32.mrf.mxu0 }
 0xffe   : > { %v4822_v36 = vadd.f32 %v4821_v39, %v4724_v3 }
 0xfff   : > { %7986 = vmatmul.msk.bf16.gmra.mxu0 %vm1796_vm10, %v4657_v46 }
0x1000   : > { %v4858_v59 = vadd.f32 %v11474_v48, %v4822_v36 }
0x1002   : > { %v11495_v11 = vadd.f32 %v4858_v59, %v10738_v14 }
0x1004   : > { %13094 = vst [vmem:[#allocation12_spill] sm:$0xff] %v11495_v11  ;;  %4895 = vadd.xlane.f32.xlu1 %v11495_v11 }
0x100c   : > { %v4634_v20 = vpop.f32.mrf.mxu1 }
0x1014   : > { %v4636_v45 = vpop.f32.mrf.mxu1 }
0x1015   : > { %v4658_v35 = vpack.c.bf16 %v4636_v45, %v4634_v20 }
0x1017   : > { %7987 = vmatmul.msk.bf16.gmra.mxu0 %vm1796_vm10, %v4658_v35 }
0x101b   : > { %v4727_v6 = vpop.f32.mrf.mxu0 }
0x101c   : > { %v4639_v8 = vpop.f32.mrf.mxu1  ;;  %v4825_v58 = vadd.f32 %v4824_v41, %v4727_v6 }
0x101e   : > { %v4859_v2 = vadd.f32 %v11474_v48, %v4825_v58 }
0x1020   : > { %v11501_v27 = vadd.f32 %v4859_v2, %v10743_v50 }
0x1022   : > { %13095 = vst [vmem:[#allocation13_spill] sm:$0xff] %v11501_v27  ;;  %4897 = vadd.xlane.f32.xlu0 %v11501_v27 }
0x1023   : > { %v4729_v62 = vpop.f32.mrf.mxu0 }
0x1024   : > { %v4641_v14 = vpop.f32.mrf.mxu1  ;;  %v4827_v51 = vadd.f32 %v4826_v17, %v4729_v62 }
0x1025   : > { %v4659_v52 = vpack.c.bf16 %v4641_v14, %v4639_v8 }
0x1026   : > { %v4860_v4 = vadd.f32 %v11474_v48, %v4827_v51 }
0x1027   : > { %7988 = vmatmul.msk.bf16.gmra.mxu0 %vm1796_vm10, %v4659_v52 }
0x1028   : > { %v11507_v53 = vadd.f32 %v4860_v4, %v10747_v13  ;;  %v4834_v13 = vpop.f32.mrf.mxu2 }
0x102a   : > { %13096 = vst [vmem:[#allocation14_spill] sm:$0xff] %v11507_v53  ;;  %4899 = vadd.xlane.f32.xlu1 %v11507_v53 }
0x102b   : > { %v4732_v12 = vpop.f32.mrf.mxu0 }
0x102c   : > { %v4830_v31 = vadd.f32 %v4829_v29, %v4732_v12 }
0x102e   : > { %v4861_v0 = vadd.f32 %v11474_v48, %v4830_v31 }
0x1030   : > { %v11522_v54 = vadd.f32 %v4861_v0, %v10751_v49  ;;  %v4836_v47 = vpop.f32.mrf.mxu2  ;;  %v8538_v0 = vld [vmem:[%s9393_s29 + $0x3b4] sm:$0xf] }
0x1032   : > { %13097 = vst [vmem:[#allocation15_spill] sm:$0xff] %v11522_v54 }
0x1033   : > { %v4734_v60 = vpop.f32.mrf.mxu0 }
0x1034   : > { %v4832_v37 = vadd.f32 %v4831_v25, %v4734_v60 }
0x1036   : > { %v4862_v34 = vadd.f32 %v11474_v48, %v4832_v37  ;;  %v8541_v37 = vld [vmem:[%s9393_s29 + $0x3f4] sm:$0xf0] }
0x1038   : > { %v11533_v49 = vadd.f32 %v4862_v34, %v10770_v57  ;;  %v4839_v57 = vpop.f32.mrf.mxu2  ;;  %v8539_v34 = vld [vmem:[%s9393_s29 + $0x3bc] sm:$0xf] }
0x103a   : > { %13098 = vst [vmem:[#allocation16_spill] sm:$0xff] %v11533_v49 }
0x1040   : > { %v4841_v17 = vpop.f32.mrf.mxu2 }
0x105f   : > { %v4890_v50 = vpop.xlane.xlu2 %4889 }
0x1060   : > { %v4921_v28 = vmul.f32 %v4890_v50, %v9736_v43  ;;  %v4844_v50 = vpop.f32.mrf.mxu2 }
0x1062   : > { %v11512_v19 = vsub.f32 %v11479_v24, %v4921_v28  ;;  %v4737_v55 = vpop.f32.mrf.mxu0 }
0x1063   : > { %v4835_v21 = vadd.f32 %v4834_v13, %v4737_v55  ;;  %v8540_v13 = vld [vmem:[%s9393_s29 + $0x3ec] sm:$0xf0] }
0x1064   : > { %v4953_v56 = vmul.f32 %v11512_v19, %v11512_v19 }
0x1065   : > { %v4863_v39 = vadd.f32 %v11474_v48, %v4835_v21  ;;  %v8534_v21 = vld [vmem:[%s9393_s29 + $0x334] sm:$0xf] }
0x1066   : > { %4969 = vadd.xlane.f32.xlu0 %v4953_v56 }
0x1067   : > { %v4892_v42 = vpop.xlane.xlu1 %4891  ;;  %v11547_v35 = vadd.f32 %v4863_v39, %v10793_v26  ;;  %v8537_v39 = vld [vmem:[%s9393_s29 + $0x374] sm:$0xf0] }
0x1068   : > { %v4922_v5 = vmul.f32 %v4892_v42, %v9736_v43  ;;  %v8127_v42 = vld [vmem:[%s9393_s29 + $0x3b0] sm:$0xf] }
0x1069   : > { %13099 = vst [vmem:[#allocation17_spill] sm:$0xff] %v11547_v35  ;;  %v8128_v55 = vor.u32 %v8540_v13, %v8127_v42  ;;  %v8081_v42 = vld [vmem:[%s9393_s29 + $0x270] sm:$0xf0]  ;;  %v8087_v13 = vld [vmem:[%s9393_s29 + $0x238] sm:$0xf] }
0x106a   : > { %v11519_v33 = vsub.f32 %v11484_v9, %v4922_v5  ;;  %v4739_v23 = vpop.f32.mrf.mxu0  ;;  %v8135_v5 = vld [vmem:[%s9393_s29 + $0x3b8] sm:$0xf] }
0x106b   : > { %v4837_v15 = vadd.f32 %v4836_v47, %v4739_v23  ;;  %5453 = vmatpush.bf16.msrb.mxu3 %v8128_v55  ;;  %v8111_v47 = vld [vmem:[%s9393_s29 + $0x330] sm:$0xf] }
0x106c   : > { %v4954_v22 = vmul.f32 %v11519_v33, %v11519_v33  ;;  %v8536_v23 = vld [vmem:[%s9393_s29 + $0x36c] sm:$0xf0] }
0x106d   : > { %v4864_v36 = vadd.f32 %v11474_v48, %v4837_v15  ;;  %v8113_v15 = vld [vmem:[%s9393_s29 + $0x370] sm:$0xf0] }
0x106e   : > { %4901 = vadd.xlane.f32.xlu0 %v11522_v54  ;;  %4971 = vadd.xlane.f32.xlu1 %v4954_v22 }
0x106f   : > { %v4894_v61 = vpop.xlane.xlu0 %4893  ;;  %v11550_v8 = vadd.f32 %v4864_v36, %v10801_v32 }
0x1070   : > { %v4923_v10 = vmul.f32 %v4894_v61, %v9736_v43  ;;  %v8136_v61 = vor.u32 %v8541_v37, %v8135_v5  ;;  %v8527_v5 = vld [vmem:[%s9393_s29 + $0x23c] sm:$0xf] }
0x1071   : > { %13100 = vst [vmem:[#allocation18_spill] sm:$0xff] %v11550_v8  ;;  %v8089_v37 = vld [vmem:[%s9393_s29 + $0x278] sm:$0xf0] }
0x1072   : > { %v11530_v16 = vsub.f32 %v11489_v7, %v4923_v10  ;;  %5551 = vmatpush.bf16.msra.mxu0 %v8136_v61  ;;  %v8063_v61 = vld [vmem:[%s9393_s29 + $0x1b0] sm:$0xf] }
0x1074   : > { %v4955_v63 = vmul.f32 %v11530_v16, %v11530_v16 }
0x1076   : > { %4903 = vadd.xlane.f32.xlu1 %v11533_v49  ;;  %4973 = vadd.xlane.f32.xlu0 %v4955_v63  ;;  %v8112_v63 = vor.u32 %v8536_v23, %v8111_v47  ;;  %v8065_v47 = vld [vmem:[%s9393_s29 + $0x1f0] sm:$0xf0]  ;;  %v8071_v23 = vld [vmem:[%s9393_s29 + $0x1b8] sm:$0xf] }
0x1077   : > { %v4896_v46 = vpop.xlane.xlu1 %4895 }
0x1078   : > { %v4924_v3 = vmul.f32 %v4896_v46, %v9736_v43  ;;  %v8119_v46 = vld [vmem:[%s9393_s29 + $0x338] sm:$0xf]  ;;  %5454 = vmatpush.bf16.msrb.mxu3 %v8112_v63 }
0x1079   : > { %v8120_v36 = vor.u32 %v8537_v39, %v8119_v46  ;;  %v8523_v46 = vld [vmem:[%s9393_s29 + $0x1bc] sm:$0xf] }
0x107a   : > { %v11542_v59 = vsub.f32 %v11495_v11, %v4924_v3  ;;  %v8116_v3 = vor.u32 %v8534_v21, %v8113_v15  ;;  %v8525_v21 = vld [vmem:[%s9393_s29 + $0x1f4] sm:$0xf0]  ;;  %v8073_v39 = vld [vmem:[%s9393_s29 + $0x1f8] sm:$0xf0] }
0x107b   : > { %5552 = vmatpush.bf16.msra.mxu0 %v8120_v36  ;;  %v8072_v15 = vor.u32 %v8525_v21, %v8071_v23  ;;  %v8047_v36 = vld [vmem:[%s9393_s29 + $0x130] sm:$0xf] }
0x107c   : > { %v4742_v20 = vpop.f32.mrf.mxu0  ;;  %v4956_v45 = vmul.f32 %v11542_v59, %v11542_v59 }
0x107d   : > { %v4840_v41 = vadd.f32 %v4839_v57, %v4742_v20  ;;  %v8535_v20 = vld [vmem:[%s9393_s29 + $0x33c] sm:$0xf] }
0x107e   : > { %4975 = vadd.xlane.f32.xlu2 %v4956_v45  ;;  %4905 = vadd.xlane.f32.xlu1 %v11547_v35  ;;  %v8121_v57 = vld [vmem:[%s9393_s29 + $0x378] sm:$0xf0] }
0x107f   : > { %4907 = vadd.xlane.f32.xlu0 %v11550_v8  ;;  %v4865_v6 = vadd.f32 %v11474_v48, %v4840_v41  ;;  %v8124_v45 = vor.u32 %v8535_v20, %v8121_v57  ;;  %v8095_v41 = vld [vmem:[%s9393_s29 + $0x2b0] sm:$0xf]  ;;  %v8518_v57 = vld [vmem:[%s9393_s29 + $0x134] sm:$0xf] }
0x1080   : > { %v8520_v20 = vld [vmem:[%s9393_s29 + $0x16c] sm:$0xf0] }
0x1081   : > { %v11556_v58 = vadd.f32 %v4865_v6, %v10812_v40  ;;  %v8532_v6 = vld [vmem:[%s9393_s29 + $0x2ec] sm:$0xf0] }
0x1083   : > { %13101 = vst [vmem:[#allocation19_spill] sm:$0xff] %v11556_v58 }
0x1084   : > { %v4744_v14 = vpop.f32.mrf.mxu0 }
0x1085   : > { %v4842_v62 = vadd.f32 %v4841_v17, %v4744_v14  ;;  %v8097_v17 = vld [vmem:[%s9393_s29 + $0x2f0] sm:$0xf0]  ;;  %v8103_v14 = vld [vmem:[%s9393_s29 + $0x2b8] sm:$0xf] }
0x1087   : > { %4909 = vadd.xlane.f32.xlu0 %v11556_v58  ;;  %v4866_v40 = vadd.f32 %v11474_v48, %v4842_v62  ;;  %v8533_v62 = vld [vmem:[%s9393_s29 + $0x2f4] sm:$0xf0] }
0x1089   : > { %v11573_v28 = vadd.f32 %v4866_v40, %v10818_v30  ;;  %v8129_v30 = vld [vmem:[%s9393_s29 + $0x3f0] sm:$0xf0]  ;;  %v8531_v40 = vld [vmem:[%s9393_s29 + $0x2bc] sm:$0xf] }
0x108a   : > { %v8132_v22 = vor.u32 %v8538_v0, %v8129_v30  ;;  %v8529_v0 = vld [vmem:[%s9393_s29 + $0x274] sm:$0xf0] }
0x108b   : > { %13102 = vst [vmem:[#allocation20_spill] sm:$0xff] %v11573_v28  ;;  %v8088_v30 = vor.u32 %v8529_v0, %v8087_v13 }
0x108c   : > { %5502 = vmatpush.bf16.msrb.mxu1 %v8132_v22  ;;  %v8092_v22 = vor.u32 %v8527_v5, %v8089_v37 }
0x1090   : > { %5503 = vmatpush.bf16.msrb.mxu1 %v8116_v3  ;;  %v8076_v3 = vor.u32 %v8523_v46, %v8073_v39  ;;  %v8025_v46 = vld [vmem:[%s9393_s29 + $0x78] sm:$0xf0] }
0x1094   : > { %v4747_v29 = vpop.f32.mrf.mxu0 }
0x1095   : > { %v4898_v2 = vpop.xlane.xlu0 %4897  ;;  %v4845_v25 = vadd.f32 %v4844_v50, %v4747_v29  ;;  %v8079_v50 = vld [vmem:[%s9393_s29 + $0x230] sm:$0xf] }
0x1096   : > { %v4925_v26 = vmul.f32 %v4898_v2, %v9736_v43  ;;  %v8530_v2 = vld [vmem:[%s9393_s29 + $0x2b4] sm:$0xf] }
0x1097   : > { %v4867_v31 = vadd.f32 %v11474_v48, %v4845_v25  ;;  %v8528_v25 = vld [vmem:[%s9393_s29 + $0x26c] sm:$0xf0] }
0x1098   : > { %v11561_v32 = vsub.f32 %v11501_v27, %v4925_v26  ;;  %v8096_v26 = vor.u32 %v8532_v6, %v8095_v41  ;;  %v8049_v41 = vld [vmem:[%s9393_s29 + $0x170] sm:$0xf0]  ;;  %v8055_v6 = vld [vmem:[%s9393_s29 + $0x138] sm:$0xf] }
0x1099   : > { %v11578_v56 = vadd.f32 %v4867_v31, %v10830_v44  ;;  %v8137_v44 = vld [vmem:[%s9393_s29 + $0x3f8] sm:$0xf0]  ;;  %v8080_v31 = vor.u32 %v8528_v25, %v8079_v50  ;;  %v8033_v25 = vld [vmem:[%s9393_s29 + $0xf0] sm:$0xf0] }
0x109a   : > { %v4957_v52 = vmul.f32 %v11561_v32, %v11561_v32  ;;  %v8140_v10 = vor.u32 %v8539_v34, %v8137_v44  ;;  %5455 = vmatpush.bf16.msrb.mxu3 %v8096_v26  ;;  %v8524_v34 = vld [vmem:[%s9393_s29 + $0x1ec] sm:$0xf0]  ;;  %v8522_v44 = vld [vmem:[%s9393_s29 + $0x1b4] sm:$0xf]  ;;  %v8052_v26 = vor.u32 %v8518_v57, %v8049_v41  ;;  %v4846_v41 = vpop.f32.mrf.mxu2 }
0x109b   : > { %13103 = vst [vmem:[#allocation21_spill] sm:$0xff] %v11578_v56  ;;  %v8068_v63 = vor.u32 %v8522_v44, %v8065_v47  ;;  %v8510_v44 = vld [vmem:[%s9393_s29 + $0x34] sm:$0xf]  ;;  %v8023_v47 = vld [vmem:[%s9393_s29 + $0x38] sm:$0xf] }
0x109c   : > { %4977 = vadd.xlane.f32.xlu2 %v4957_v52  ;;  %5600 = vmatpush.bf16.msra.mxu2 %v8140_v10  ;;  %v8100_v52 = vor.u32 %v8530_v2, %v8097_v17  ;;  %v8064_v10 = vor.u32 %v8524_v34, %v8063_v61  ;;  %v8521_v2 = vld [vmem:[%s9393_s29 + $0x174] sm:$0xf0]  ;;  %v8512_v61 = vld [vmem:[%s9393_s29 + $0x6c] sm:$0xf0]  ;;  %v4749_v23 = vpop.f32.mrf.mxu0 }
0x109d   : > { %v4900_v51 = vpop.xlane.xlu1 %4899  ;;  %v8056_v17 = vor.u32 %v8521_v2, %v8055_v6 }
0x109e   : > { %v4926_v4 = vmul.f32 %v4900_v51, %v9736_v43  ;;  %v8104_v51 = vor.u32 %v8533_v62, %v8103_v14  ;;  %5504 = vmatpush.bf16.msrb.mxu1 %v8100_v52  ;;  %5456 = vmatpush.bf16.msrb.mxu3 %v8080_v31  ;;  %v8519_v14 = vld [vmem:[%s9393_s29 + $0x13c] sm:$0xf]  ;;  %v8517_v31 = vld [vmem:[%s9393_s29 + $0xf4] sm:$0xf0] }
0x109f   : > { %v8057_v62 = vld [vmem:[%s9393_s29 + $0x178] sm:$0xf0] }
0x10a0   : > { %v11568_v12 = vsub.f32 %v11507_v53, %v4926_v4  ;;  %5601 = vmatpush.bf16.msra.mxu2 %v8124_v45  ;;  %v8105_v4 = vld [vmem:[%s9393_s29 + $0x2f8] sm:$0xf0]  ;;  %5553 = vmatpush.bf16.msra.mxu0 %v8104_v51  ;;  %v8048_v45 = vor.u32 %v8520_v20, %v8047_v36  ;;  %v8060_v52 = vor.u32 %v8519_v14, %v8057_v62  ;;  %v8031_v51 = vld [vmem:[%s9393_s29 + $0xb0] sm:$0xf] }
0x10a1   : > { %v8108_v29 = vor.u32 %v8531_v40, %v8105_v4  ;;  %v8516_v40 = vld [vmem:[%s9393_s29 + $0xec] sm:$0xf0]  ;;  %v8514_v4 = vld [vmem:[%s9393_s29 + $0xb4] sm:$0xf]  ;;  %v4847_v14 = vadd.f32 %v4846_v41, %v4749_v23 }
0x10a2   : > { %v4958_v60 = vmul.f32 %v11568_v12, %v11568_v12  ;;  %5457 = vmatpush.bf16.msrb.mxu3 %v8064_v10  ;;  %v8032_v50 = vor.u32 %v8516_v40, %v8031_v51  ;;  %v8036_v13 = vor.u32 %v8514_v4, %v8033_v25  ;;  %v8017_v10 = vld [vmem:[%s9393_s29 + $0x70] sm:$0xf0] }
0x10a3   : > { %v8020_v21 = vor.u32 %v8510_v44, %v8017_v10 }
0x10a4   : > { %4979 = vadd.xlane.f32.xlu1 %v4958_v60  ;;  %4911 = vadd.xlane.f32.xlu2 %v11573_v28  ;;  %v8526_v60 = vld [vmem:[%s9393_s29 + $0x234] sm:$0xf]  ;;  %v4752_v51 = vpop.f32.mrf.mxu0 }
0x10a5   : > { %5602 = vmatpush.bf16.msra.mxu2 %v8108_v29  ;;  %v8084_v55 = vor.u32 %v8526_v60, %v8081_v42  ;;  %5554 = vmatpush.bf16.msra.mxu0 %v8088_v30  ;;  %v8039_v60 = vld [vmem:[%s9393_s29 + $0xb8] sm:$0xf]  ;;  %v8041_v30 = vld [vmem:[%s9393_s29 + $0xf8] sm:$0xf0] }
0x10a6   : > { %5458 = vmatpush.bf16.msrb.mxu3 %v8048_v45  ;;  %v8040_v0 = vor.u32 %v8517_v31, %v8039_v60  ;;  %v4849_v31 = vpop.f32.mrf.mxu2 }
0x10a7   : > { %5505 = vmatpush.bf16.msrb.mxu1 %v8084_v55  ;;  %v8515_v55 = vld [vmem:[%s9393_s29 + $0xbc] sm:$0xf] }
0x10a8   : > { %v8044_v5 = vor.u32 %v8515_v55, %v8041_v30 }
0x10a9   : > { %5603 = vmatpush.bf16.msra.mxu2 %v8092_v22  ;;  %5555 = vmatpush.bf16.msra.mxu0 %v8072_v15  ;;  %v8015_v22 = vld [vmem:[%s9393_s29 + $0x30] sm:$0xf]  ;;  %v8511_v15 = vld [vmem:[%s9393_s29 + $0x3c] sm:$0xf] }
0x10aa   : > { %5459 = vmatpush.bf16.msrb.mxu3 %v8032_v50  ;;  %v8016_v34 = vor.u32 %v8512_v61, %v8015_v22  ;;  %v4868_v50 = vadd.f32 %v11474_v48, %v4847_v14  ;;  %v4850_v22 = vadd.f32 %v4849_v31, %v4752_v51 }
0x10ab   : > { %5506 = vmatpush.bf16.msrb.mxu1 %v8068_v63  ;;  %v8513_v63 = vld [vmem:[%s9393_s29 + $0x74] sm:$0xf0] }
0x10ac   : > { %4913 = vadd.xlane.f32.xlu2 %v11578_v56  ;;  %v8024_v39 = vor.u32 %v8513_v63, %v8023_v47 }
0x10ad   : > { %5604 = vmatpush.bf16.msra.mxu2 %v8076_v3  ;;  %5556 = vmatpush.bf16.msra.mxu0 %v8056_v17  ;;  %v8028_v3 = vor.u32 %v8511_v15, %v8025_v46  ;;  %v4869_v15 = vadd.f32 %v11474_v48, %v4850_v22 }
0x10ae   : > { %5460 = vmatpush.bf16.msrb.mxu3 %v8016_v34  ;;  %v11665_v34 = vadd.f32 %v4868_v50, %v10842_v18 }
0x10af   : > { %5507 = vmatpush.bf16.msrb.mxu1 %v8052_v26 }
0x10b0   : > { %13104 = vst [vmem:[#allocation22_spill] sm:$0xff] %v11665_v34 }
0x10b1   : > { %5605 = vmatpush.bf16.msra.mxu2 %v8060_v52  ;;  %5557 = vmatpush.bf16.msra.mxu0 %v8040_v0 }
0x10b3   : > { %5508 = vmatpush.bf16.msrb.mxu1 %v8036_v13 }
0x10b5   : > { %5606 = vmatpush.bf16.msra.mxu2 %v8044_v5  ;;  %5558 = vmatpush.bf16.msra.mxu0 %v8024_v39  ;;  %v4754_v39 = vpop.f32.mrf.mxu0 }
0x10b7   : > { %5509 = vmatpush.bf16.msrb.mxu1 %v8020_v21 }
0x10b9   : > { %5607 = vmatpush.bf16.msra.mxu2 %v8028_v3 }
0x10d9   : > { %v4970_v29 = vpop.xlane.xlu0 %4969 }
0x10da   : > { %v5001_v42 = vmul.f32 %v4970_v29, %v9736_v43 }
0x10dc   : > { %v5017_v37 = vadd.f32 1e-05, %v5001_v42 }
0x10de   : > { %9046 = vrsqrt.f32 %v5017_v37  ;;  %vm5039_vm0 = vweird.f32 %v5017_v37 }
0x10e1   : > { %v4972_v36 = vpop.xlane.xlu1 %4971  ;;  %v4902_v20 = vpop.xlane.xlu0 %4901 }
0x10e2   : > { %v5002_v57 = vmul.f32 %v4972_v36, %v9736_v43  ;;  %v4927_v45 = vmul.f32 %v4902_v20, %v9736_v43 }
0x10e4   : > { %v9047_v6 = vpop.eup %9046  ;;  %v5018_v2 = vadd.f32 1e-05, %v5002_v57  ;;  %v11649_v26 = vsub.f32 %v11522_v54, %v4927_v45  ;;  %v11679_v57 = vld [vmem:[%s9383_s18 + $0x4] ss:$0 sm:$0xff] }
0x10e5   : > { %v5034_v17 = vmul.f32 %v9047_v6, %v5017_v37  ;;  %vm5040_vm10 = vweird.f32 %v9047_v6 }
0x10e6   : > { %9048 = vrsqrt.f32 %v5018_v2  ;;  %v4959_v62 = vmul.f32 %v11649_v26, %v11649_v26  ;;  %vm11667_vm1 = vmor %vm5039_vm0, %vm5040_vm10  ;;  %vm5049_vm3 = vweird.f32 %v5018_v2 }
0x10e7   : > { %v5035_v52 = vmul.f32 %v9047_v6, %v5034_v17  ;;  %v4851_v17 = vpop.f32.mrf.mxu2 }
0x10e8   : > { %4981 = vadd.xlane.f32.xlu1 %v4959_v62  ;;  %v4852_v51 = vadd.f32 %v4851_v17, %v4754_v39 }
0x10e9   : > { %v5036_v40 = vmul.f32 0.5, %v5035_v52  ;;  %v4904_v4 = vpop.xlane.xlu1 %4903  ;;  %v4974_v29 = vpop.xlane.xlu0 %4973 }
0x10ea   : > { %v4928_v25 = vmul.f32 %v4904_v4, %v9736_v43  ;;  %v5003_v60 = vmul.f32 %v4974_v29, %v9736_v43 }
0x10eb   : > { %v5037_v42 = vsub.f32 1.5, %v5036_v40 }
0x10ec   : > { %v9049_v13 = vpop.eup %9048  ;;  %v11657_v0 = vsub.f32 %v11533_v49, %v4928_v25  ;;  %v11659_v55 = vadd.f32 1e-05, %v5003_v60 }
0x10ed   : > { %v5038_v30 = vmul.f32 %v9047_v6, %v5037_v42  ;;  %v5044_v5 = vmul.f32 %v9049_v13, %v5018_v2  ;;  %vm5050_vm2 = vweird.f32 %v9049_v13  ;;  %v11697_v2 = vld [vmem:[%s9383_s18 + $0x5] ss:$0 sm:$0xff]  ;;  %v4870_v42 = vadd.f32 %v11474_v48, %v4852_v51 }
0x10ee   : > { %9050 = vrsqrt.f32 %v11659_v55  ;;  %v4960_v61 = vmul.f32 %v11657_v0, %v11657_v0  ;;  %vm5051_vm4 = vmor %vm5049_vm3, %vm5050_vm2  ;;  %vm5059_vm6 = vweird.f32 %v11659_v55 }
0x10ef   : > { %v5045_v44 = vmul.f32 %v9049_v13, %v5044_v5  ;;  %v5042_v47 = vsel %vm11667_vm1, %v9047_v6, %v5038_v30  ;;  %v11713_v48 = vadd.f32 %v4870_v42, %v10912_v38 }
0x10f0   : > { %4983 = vadd.xlane.f32.xlu0 %v4960_v61  ;;  %4915 = vadd.xlane.f32.xlu1 %v11665_v34  ;;  %v5193_v45 = vmul.f32 %v5042_v47, %v11512_v19  ;;  %v11692_v19 = vadd.f32 %v4869_v15, %v10855_v1 }
0x10f1   : > { %v5046_v23 = vmul.f32 0.5, %v5045_v44  ;;  %v4976_v21 = vpop.xlane.xlu2 %4975  ;;  %v4906_v63 = vpop.xlane.xlu1 %4905  ;;  %13108 = vst [vmem:[#allocation24_spill] sm:$0xff] %v11713_v48 }
0x10f2   : > { %v5004_v18 = vmul.f32 %v4976_v21, %v9736_v43  ;;  %v4929_v37 = vmul.f32 %v4906_v63, %v9736_v43  ;;  %v4908_v46 = vpop.xlane.xlu0 %4907  ;;  %13107 = vst [vmem:[#allocation23_spill] sm:$0xff] %v11692_v19  ;;  %v5210_v25 = vmul.f32 %v11679_v57, %v5193_v45 }
0x10f3   : > { %v5047_v3 = vsub.f32 1.5, %v5046_v23  ;;  %v4930_v36 = vmul.f32 %v4908_v46, %v9736_v43 }
0x10f4   : > { %v9051_v20 = vpop.eup %9050  ;;  %v5020_v41 = vadd.f32 1e-05, %v5004_v18  ;;  %v11683_v6 = vsub.f32 %v11547_v35, %v4929_v37  ;;  %v5227_v61 = vadd.f32 %v11697_v2, %v5210_v25 }
0x10f5   : > { %v5048_v14 = vmul.f32 %v9049_v13, %v5047_v3  ;;  %v5054_v62 = vmul.f32 %v9051_v20, %v11659_v55  ;;  %v11687_v52 = vsub.f32 %v11550_v8, %v4930_v36  ;;  %vm5060_vm5 = vweird.f32 %v9051_v20  ;;  %v8153_v8 = vld [vmem:[%s9393_s29 + $0x68] sm:$0xf0] }
0x10f6   : > { %9052 = vrsqrt.f32 %v5020_v41  ;;  %v4961_v40 = vmul.f32 %v11683_v6, %v11683_v6  ;;  %vm5061_vm7 = vmor %vm5059_vm6, %vm5060_vm5  ;;  %vm5069_vm9 = vweird.f32 %v5020_v41 }
0x10f7   : > { %v5052_v4 = vsel %vm5051_vm4, %v9049_v13, %v5048_v14  ;;  %v5055_v29 = vmul.f32 %v9051_v20, %v5054_v62  ;;  %v4962_v50 = vmul.f32 %v11687_v52, %v11687_v52 }
0x10f8   : > { %v5194_v60 = vmul.f32 %v5052_v4, %v11519_v33  ;;  %4985 = vadd.xlane.f32.xlu0 %v4961_v40  ;;  %4917 = vadd.xlane.f32.xlu1 %v11692_v19 }
0x10f9   : > { %v5056_v31 = vmul.f32 0.5, %v5055_v29  ;;  %4987 = vadd.xlane.f32.xlu2 %v4962_v50 }
0x10fa   : > { %v5211_v1 = vmul.f32 %v11679_v57, %v5194_v60  ;;  %v4910_v13 = vpop.xlane.xlu0 %4909 }
0x10fb   : > { %v5057_v30 = vsub.f32 1.5, %v5056_v31  ;;  %v4931_v5 = vmul.f32 %v4910_v13, %v9736_v43 }
0x10fc   : > { %v9053_v22 = vpop.eup %9052  ;;  %v5228_v44 = vadd.f32 %v11697_v2, %v5211_v1 }
0x10fd   : > { %v5058_v10 = vmul.f32 %v9051_v20, %v5057_v30  ;;  %v5064_v33 = vmul.f32 %v9053_v22, %v5020_v41  ;;  %v11708_v47 = vsub.f32 %v11556_v58, %v4931_v5  ;;  %vm5070_vm8 = vweird.f32 %v9053_v22  ;;  %v8543_v58 = vld [vmem:[%s9393_s29 + $0x2c] sm:$0xf] }
0x10fe   : > { %v11710_v23 = vpack.c.bf16 %v5228_v44, %v5227_v61  ;;  %vm5071_vm11 = vmor %vm5069_vm9, %vm5070_vm8 }
0x10ff   : > { %v5065_v21 = vmul.f32 %v9053_v22, %v5064_v33  ;;  %v4963_v63 = vmul.f32 %v11708_v47, %v11708_v47  ;;  %v5062_v15 = vsel %vm5061_vm7, %v9051_v20, %v5058_v10 }
0x1100   : > { %4919 = vadd.xlane.f32.xlu0 %v11713_v48  ;;  %5461 = vmatmul.bf16.vlgmr.msrb.gmra.mxu3 %v11710_v23  ;;  %v5195_v55 = vmul.f32 %v5062_v15, %v11530_v16 }
0x1101   : > { %v5066_v18 = vmul.f32 0.5, %v5065_v21  ;;  %5510 = vmatmul.bf16.vlgmr.msrb.gmra.mxu1 %v11710_v23  ;;  %5559 = vmatmul.bf16.vlgmr.msra.gmra.mxu0 %v11710_v23 }
0x1102   : > { %5608 = vmatmul.bf16.vlgmr.msra.gmra.mxu2 %v11710_v23  ;;  %4989 = vadd.xlane.f32.xlu2 %v4963_v63  ;;  %v5212_v39 = vmul.f32 %v11679_v57, %v5195_v55 }
0x1103   : > { %v5067_v38 = vsub.f32 1.5, %v5066_v18 }
0x1104   : > { %v5229_v20 = vadd.f32 %v11697_v2, %v5212_v39 }
0x1105   : > { %v5068_v37 = vmul.f32 %v9053_v22, %v5067_v38 }
0x1107   : > { %v5072_v46 = vsel %vm5071_vm11, %v9053_v22, %v5068_v37 }
0x1108   : > { %v5196_v3 = vmul.f32 %v5072_v46, %v11542_v59 }
0x110a   : > { %v5213_v36 = vmul.f32 %v11679_v57, %v5196_v3 }
0x110c   : > { %v5230_v45 = vadd.f32 %v11697_v2, %v5213_v36 }
0x110e   : > { %v11729_v17 = vpack.c.bf16 %v5230_v45, %v5229_v20 }
0x110f   : > { %v4978_v14 = vpop.xlane.xlu2 %4977 }
0x1110   : > { %v5005_v62 = vmul.f32 %v4978_v14, %v9736_v43  ;;  %5466 = vmatmul.bf16.gmra.mxu3 %v11729_v17 }
0x1111   : > { %5515 = vmatmul.bf16.gmra.mxu1 %v11729_v17  ;;  %5564 = vmatmul.bf16.gmra.mxu0 %v11729_v17 }
0x1112   : > { %v5021_v16 = vadd.f32 1e-05, %v5005_v62  ;;  %5613 = vmatmul.bf16.gmra.mxu2 %v11729_v17 }
0x1114   : > { %9054 = vrsqrt.f32 %v5021_v16  ;;  %vm5079_vm13 = vweird.f32 %v5021_v16 }
0x1117   : > { %v4980_v59 = vpop.xlane.xlu1 %4979  ;;  %v4912_v41 = vpop.xlane.xlu2 %4911 }
0x1118   : > { %v5006_v51 = vmul.f32 %v4980_v59, %v9736_v43  ;;  %v4932_v40 = vmul.f32 %v4912_v41, %v9736_v43 }
0x111a   : > { %v9055_v4 = vpop.eup %9054  ;;  %v5022_v29 = vadd.f32 1e-05, %v5006_v51  ;;  %v11739_v50 = vsub.f32 %v11573_v28, %v4932_v40 }
0x111b   : > { %v5074_v25 = vmul.f32 %v9055_v4, %v5021_v16  ;;  %vm5080_vm12 = vweird.f32 %v9055_v4 }
0x111c   : > { %9056 = vrsqrt.f32 %v5022_v29  ;;  %v4964_v60 = vmul.f32 %v11739_v50, %v11739_v50  ;;  %vm5081_vm14 = vmor %vm5079_vm13, %vm5080_vm12  ;;  %vm5089_vm10 = vweird.f32 %v5022_v29 }
0x111d   : > { %v5075_v31 = vmul.f32 %v9055_v4, %v5074_v25 }
0x111e   : > { %4991 = vadd.xlane.f32.xlu1 %v4964_v60 }
0x111f   : > { %v5076_v42 = vmul.f32 0.5, %v5075_v31  ;;  %v4914_v1 = vpop.xlane.xlu2 %4913 }
0x1120   : > { %v4933_v13 = vmul.f32 %v4914_v1, %v9736_v43 }
0x1121   : > { %v5077_v30 = vsub.f32 1.5, %v5076_v42 }
0x1122   : > { %v9057_v5 = vpop.eup %9056  ;;  %v11745_v22 = vsub.f32 %v11578_v56, %v4933_v13 }
0x1123   : > { %v5078_v61 = vmul.f32 %v9055_v4, %v5077_v30  ;;  %v5084_v44 = vmul.f32 %v9057_v5, %v5022_v29  ;;  %vm5090_vm15 = vweird.f32 %v9057_v5 }
0x1124   : > { %v4965_v10 = vmul.f32 %v11745_v22, %v11745_v22  ;;  %vm5091_vm0 = vmor %vm5089_vm10, %vm5090_vm15 }
0x1125   : > { %v5085_v33 = vmul.f32 %v9057_v5, %v5084_v44  ;;  %v5082_v21 = vsel %vm5081_vm14, %v9055_v4, %v5078_v61 }
0x1126   : > { %4993 = vadd.xlane.f32.xlu0 %v4965_v10  ;;  %v5197_v18 = vmul.f32 %v5082_v21, %v11561_v32 }
0x1127   : > { %v5086_v63 = vmul.f32 0.5, %v5085_v33 }
0x1128   : > { %v5214_v37 = vmul.f32 %v11679_v57, %v5197_v18 }
0x1129   : > { %v5087_v15 = vsub.f32 1.5, %v5086_v63 }
0x112a   : > { %v5231_v3 = vadd.f32 %v11697_v2, %v5214_v37 }
0x112b   : > { %v5088_v38 = vmul.f32 %v9057_v5, %v5087_v15 }
0x112d   : > { %v5092_v55 = vsel %vm5091_vm0, %v9057_v5, %v5088_v38 }
0x112e   : > { %v5198_v46 = vmul.f32 %v5092_v55, %v11568_v12 }
0x1130   : > { %v5215_v39 = vmul.f32 %v11679_v57, %v5198_v46 }
0x1132   : > { %v5232_v36 = vadd.f32 %v11697_v2, %v5215_v39 }
0x1134   : > { %v11755_v20 = vpack.c.bf16 %v5232_v36, %v5231_v3 }
0x1136   : > { %5471 = vmatmul.bf16.gmra.mxu3 %v11755_v20  ;;  %5520 = vmatmul.bf16.gmra.mxu1 %v11755_v20 }
0x1137   : > { %5569 = vmatmul.bf16.gmra.mxu0 %v11755_v20  ;;  %5618 = vmatmul.bf16.gmra.mxu2 %v11755_v20 }
0x115b   : > { %v4982_v32 = vpop.xlane.xlu1 %4981 }
0x115c   : > { %v5007_v45 = vmul.f32 %v4982_v32, %v9736_v43 }
0x115e   : > { %v5023_v12 = vadd.f32 1e-05, %v5007_v45 }
0x1160   : > { %9058 = vrsqrt.f32 %v5023_v12  ;;  %vm5099_vm2 = vweird.f32 %v5023_v12 }
0x1163   : > { %v4916_v14 = vpop.xlane.xlu1 %4915  ;;  %v4984_v62 = vpop.xlane.xlu0 %4983 }
0x1164   : > { %v4934_v16 = vmul.f32 %v4916_v14, %v9736_v43  ;;  %v5008_v59 = vmul.f32 %v4984_v62, %v9736_v43 }
0x1166   : > { %v9059_v41 = vpop.eup %9058  ;;  %v11765_v51 = vsub.f32 %v11665_v34, %v4934_v16  ;;  %v5024_v40 = vadd.f32 1e-05, %v5008_v59 }
0x1167   : > { %v5094_v4 = vmul.f32 %v9059_v41, %v5023_v12  ;;  %vm5100_vm1 = vweird.f32 %v9059_v41 }
0x1168   : > { %9060 = vrsqrt.f32 %v5024_v40  ;;  %v4966_v29 = vmul.f32 %v11765_v51, %v11765_v51  ;;  %vm5101_vm3 = vmor %vm5099_vm2, %vm5100_vm1  ;;  %vm5109_vm5 = vweird.f32 %v5024_v40 }
0x1169   : > { %v5095_v25 = vmul.f32 %v9059_v41, %v5094_v4 }
0x116a   : > { %4995 = vadd.xlane.f32.xlu2 %v4966_v29 }
0x116b   : > { %v5096_v60 = vmul.f32 0.5, %v5095_v25  ;;  %v4918_v31 = vpop.xlane.xlu1 %4917  ;;  %v4986_v42 = vpop.xlane.xlu0 %4985 }
0x116c   : > { %v4935_v1 = vmul.f32 %v4918_v31, %v9736_v43  ;;  %v4988_v13 = vpop.xlane.xlu2 %4987  ;;  %v5009_v30 = vmul.f32 %v4986_v42, %v9736_v43 }
0x116d   : > { %v5097_v5 = vsub.f32 1.5, %v5096_v60  ;;  %v5010_v61 = vmul.f32 %v4988_v13, %v9736_v43 }
0x116e   : > { %v9061_v44 = vpop.eup %9060  ;;  %v11773_v10 = vsub.f32 %v11692_v19, %v4935_v1  ;;  %v5025_v33 = vadd.f32 1e-05, %v5009_v30 }
0x116f   : > { %v5098_v21 = vmul.f32 %v9059_v41, %v5097_v5  ;;  %v5104_v63 = vmul.f32 %v9061_v44, %v5024_v40  ;;  %v5026_v15 = vadd.f32 1e-05, %v5010_v61  ;;  %vm5110_vm4 = vweird.f32 %v9061_v44 }
0x1170   : > { %9062 = vrsqrt.f32 %v5025_v33  ;;  %v4967_v18 = vmul.f32 %v11773_v10, %v11773_v10  ;;  %vm5111_vm6 = vmor %vm5109_vm5, %vm5110_vm4  ;;  %vm5119_vm9 = vweird.f32 %v5025_v33 }
0x1171   : > { %v5105_v38 = vmul.f32 %v9061_v44, %v5104_v63  ;;  %9064 = vrsqrt.f32 %v5026_v15  ;;  %v5102_v55 = vsel %vm5101_vm3, %v9059_v41, %v5098_v21  ;;  %v5283_v41 = vld [vmem:[%s9388_s21 + $0x4] sm:$0xf]  ;;  %vm5129_vm11 = vweird.f32 %v5026_v15 }
0x1172   : > { %4997 = vadd.xlane.f32.xlu1 %v4967_v18  ;;  %v5199_v32 = vmul.f32 %v5102_v55, %v11649_v26  ;;  %v11787_v1 = vperm.slane %v5283_v41, 1  ;;  %v11789_v40 = vperm.slane %v5283_v41, 2 }
0x1173   : > { %v5106_v37 = vmul.f32 0.5, %v5105_v38  ;;  %v4920_v46 = vpop.xlane.xlu0 %4919 }
0x1174   : > { %v4936_v39 = vmul.f32 %v4920_v46, %v9736_v43  ;;  %v5216_v60 = vmul.f32 %v11679_v57, %v5199_v32 }
0x1175   : > { %v5107_v3 = vsub.f32 1.5, %v5106_v37  ;;  %v4990_v25 = vpop.xlane.xlu2 %4989 }
0x1176   : > { %v9063_v36 = vpop.eup %9062  ;;  %v11780_v45 = vsub.f32 %v11713_v48, %v4936_v39  ;;  %v5011_v5 = vmul.f32 %v4990_v25, %v9736_v43  ;;  %v5233_v21 = vadd.f32 %v11697_v2, %v5216_v60 }
0x1177   : > { %v9065_v14 = vpop.eup %9064  ;;  %v5108_v12 = vmul.f32 %v9061_v44, %v5107_v3  ;;  %v5114_v62 = vmul.f32 %v9063_v36, %v5025_v33  ;;  %vm5120_vm7 = vweird.f32 %v9063_v36 }
0x1178   : > { %v5124_v16 = vmul.f32 %v9065_v14, %v5026_v15  ;;  %v4968_v59 = vmul.f32 %v11780_v45, %v11780_v45  ;;  %vm5130_vm8 = vweird.f32 %v9065_v14  ;;  %vm5121_vm12 = vmor %vm5119_vm9, %vm5120_vm7  ;;  %v11806_v32 = vadd.f32 1e-05, %v5011_v5 }
0x1179   : > { %v5112_v4 = vsel %vm5111_vm6, %v9061_v44, %v5108_v12  ;;  %v5115_v29 = vmul.f32 %v9063_v36, %v5114_v62  ;;  %v11793_v44 = vperm.slane %v5283_v41, 0  ;;  %vm5131_vm13 = vmor %vm5129_vm11, %vm5130_vm8 }
0x117a   : > { %v5200_v26 = vmul.f32 %v5112_v4, %v11657_v0  ;;  %v5125_v31 = vmul.f32 %v9065_v14, %v5124_v16  ;;  %4999 = vadd.xlane.f32.xlu0 %v4968_v59  ;;  %v11812_v59 = vperm.slane %v5283_v41, 3  ;;  %9066 = vrsqrt.f32 %v11806_v32 }
0x117b   : > { %v5116_v42 = vmul.f32 0.5, %v5115_v29  ;;  %13109 = vst [vmem:[#allocation25_spill] sm:$0xff] %v11793_v44  ;;  %vm5139_vm15 = vweird.f32 %v11806_v32 }
0x117c   : > { %v5217_v13 = vmul.f32 %v11679_v57, %v5200_v26  ;;  %v5126_v30 = vmul.f32 0.5, %v5125_v31 }
0x117d   : > { %v5117_v61 = vsub.f32 1.5, %v5116_v42 }
0x117e   : > { %v5234_v0 = vadd.f32 %v11697_v2, %v5217_v13  ;;  %v5127_v63 = vsub.f32 1.5, %v5126_v30  ;;  %v5511_v18 = vpop.f32.mrf.mxu1  ;;  %v5560_v38 = vpop.f32.mrf.mxu0 }
0x117f   : > { %v5118_v55 = vmul.f32 %v9063_v36, %v5117_v61  ;;  %v11798_v37 = vadd.f32 %v5511_v18, %v11787_v1  ;;  %v11801_v46 = vadd.f32 %v5560_v38, %v11789_v40 }
0x1180   : > { %v11803_v39 = vpack.c.bf16 %v5234_v0, %v5233_v21  ;;  %v5128_v3 = vmul.f32 %v9065_v14, %v5127_v63  ;;  %v11833_v21 = vpop.eup %9066 }
0x1181   : > { %v5122_v12 = vsel %vm5121_vm12, %v9063_v36, %v5118_v55  ;;  %v5714_v62 = vmul.f32 0.044715, %v11798_v37  ;;  %v5715_v33 = vmul.f32 0.044715, %v11801_v46  ;;  %vm5140_vm14 = vweird.f32 %v11833_v21 }
0x1182   : > { %v5132_v16 = vsel %vm5131_vm13, %v9065_v14, %v5128_v3  ;;  %5476 = vmatmul.bf16.gmra.mxu3 %v11803_v39  ;;  %5525 = vmatmul.bf16.gmra.mxu1 %v11803_v39  ;;  %v5201_v29 = vmul.f32 %v5122_v12, %v11683_v6  ;;  %v5651_v28 = vmul.f32 0.5, %v11801_v46  ;;  %vm5141_vm10 = vmor %vm5139_vm15, %vm5140_vm14 }
0x1183   : > { %v5778_v4 = vmul.f32 %v5714_v62, %v11798_v37  ;;  %5574 = vmatmul.bf16.gmra.mxu0 %v11803_v39  ;;  %5623 = vmatmul.bf16.gmra.mxu2 %v11803_v39  ;;  %v5462_v15 = vpop.f32.mrf.mxu3  ;;  %v5202_v36 = vmul.f32 %v5132_v16, %v11687_v52  ;;  %v5779_v41 = vmul.f32 %v5715_v33, %v11801_v46 }
0x1184   : > { %v5463_v14 = vadd.f32 %v5462_v15, %v11793_v44  ;;  %v5218_v13 = vmul.f32 %v11679_v57, %v5201_v29  ;;  %v5134_v16 = vmul.f32 %v11833_v21, %v11806_v32 }
0x1185   : > { %v5842_v25 = vmul.f32 %v5778_v4, %v11798_v37  ;;  %v5609_v60 = vpop.f32.mrf.mxu2  ;;  %v5219_v42 = vmul.f32 %v11679_v57, %v5202_v36  ;;  %v5843_v61 = vmul.f32 %v5779_v41, %v11801_v46 }
0x1186   : > { %v5713_v26 = vmul.f32 0.044715, %v5463_v14  ;;  %v11824_v31 = vadd.f32 %v5609_v60, %v11812_v59  ;;  %v11829_v30 = vpop.f32.mrf.mxu1  ;;  %v11836_v18 = vpop.f32.mrf.mxu0  ;;  %v5235_v3 = vadd.f32 %v11697_v2, %v5218_v13  ;;  %v5135_v41 = vmul.f32 %v11833_v21, %v5134_v16 }
0x1187   : > { %v5906_v5 = vadd.f32 %v5842_v25, %v11798_v37  ;;  %v5236_v55 = vadd.f32 %v11697_v2, %v5219_v42  ;;  %v5907_v33 = vadd.f32 %v5843_v61, %v11801_v46 }
0x1188   : > { %v5777_v52 = vmul.f32 %v5713_v26, %v5463_v14  ;;  %v5716_v6 = vmul.f32 0.044715, %v11824_v31 }
0x1189   : > { %v5970_v15 = vmul.f32 0.7978846, %v5906_v5  ;;  %v11849_v29 = vpack.c.bf16 %v5236_v55, %v5235_v3  ;;  %v5971_v26 = vmul.f32 0.7978846, %v5907_v33 }
0x118a   : > { %v5841_v0 = vmul.f32 %v5777_v52, %v5463_v14  ;;  %v5780_v63 = vmul.f32 %v5716_v6, %v11824_v31 }
0x118b   : > { %v11838_v38 = vpop.f32.mrf.mxu3  ;;  %9068 = vtanh.f32 %v5970_v15 }
0x118c   : > { %v5905_v12 = vadd.f32 %v5841_v0, %v5463_v14  ;;  %v5844_v62 = vmul.f32 %v5780_v63, %v11824_v31  ;;  %v5136_v0 = vmul.f32 0.5, %v5135_v41 }
0x118d   : > { %v11846_v4 = vpop.f32.mrf.mxu2 }
0x118e   : > { %v5908_v36 = vadd.f32 %v5844_v62, %v11824_v31  ;;  %v5969_v25 = vmul.f32 0.7978846, %v5905_v12  ;;  %v5516_v42 = vpop.f32.mrf.mxu1  ;;  %v5565_v55 = vpop.f32.mrf.mxu0  ;;  %v5137_v15 = vsub.f32 1.5, %v5136_v0 }
0x118f   : > { %v11861_v63 = vadd.f32 %v5516_v42, %v11787_v1  ;;  %v11864_v16 = vadd.f32 %v5565_v55, %v11789_v40  ;;  %v5650_v55 = vmul.f32 0.5, %v11798_v37 }
0x1190   : > { %9070 = vtanh.f32 %v5969_v25  ;;  %v5972_v6 = vmul.f32 0.7978846, %v5908_v36  ;;  %v5138_v19 = vmul.f32 %v11833_v21, %v5137_v15 }
0x1191   : > { %v4992_v60 = vpop.xlane.xlu1 %4991  ;;  %9072 = vtanh.f32 %v5971_v26  ;;  %v9069_v12 = vpop.eup %9068  ;;  %v5722_v36 = vmul.f32 0.044715, %v11861_v63 }
0x1192   : > { %v5012_v13 = vmul.f32 %v4992_v60, %v9736_v43  ;;  %5481 = vmatmul.bf16.gmra.mxu3 %v11849_v29  ;;  %5530 = vmatmul.bf16.gmra.mxu1 %v11849_v29  ;;  %v5649_v60 = vmul.f32 0.5, %v5463_v14  ;;  %v6098_v42 = vadd.f32 1.0, %v9069_v12 }
0x1193   : > { %5579 = vmatmul.bf16.gmra.mxu0 %v11849_v29  ;;  %5628 = vmatmul.bf16.gmra.mxu2 %v11849_v29  ;;  %v5467_v52 = vpop.f32.mrf.mxu3 }
0x1194   : > { %v5028_v5 = vadd.f32 1e-05, %v5012_v13  ;;  %v11858_v61 = vadd.f32 %v5467_v52, %v11793_v44  ;;  %v5723_v52 = vmul.f32 0.044715, %v11864_v16  ;;  %v6162_v12 = vmul.f32 %v6098_v42, %v5650_v55 }
0x1195   : > { %v5614_v3 = vpop.f32.mrf.mxu2 }
0x1196   : > { %9074 = vrsqrt.f32 %v5028_v5  ;;  %v9071_v62 = vpop.eup %9070  ;;  %v5721_v33 = vmul.f32 0.044715, %v11858_v61  ;;  %v11869_v25 = vadd.f32 %v5614_v3, %v11812_v59  ;;  %v5786_v3 = vmul.f32 %v5722_v36, %v11861_v63 }
0x1197   : > { %9076 = vtanh.f32 %v5972_v6  ;;  %v6097_v41 = vadd.f32 1.0, %v9071_v62  ;;  %v9073_v26 = vpop.eup %9072  ;;  %v5787_v37 = vmul.f32 %v5723_v52, %v11864_v16  ;;  %vm5149_vm1 = vweird.f32 %v5028_v5 }
0x1198   : > { %v5785_v6 = vmul.f32 %v5721_v33, %v11858_v61  ;;  %v5724_v14 = vmul.f32 0.044715, %v11869_v25  ;;  %v6099_v62 = vadd.f32 1.0, %v9073_v26  ;;  %v5652_v33 = vmul.f32 0.5, %v11824_v31 }
0x1199   : > { %v6161_v48 = vmul.f32 %v6097_v41, %v5649_v60  ;;  %v5142_v60 = vsel %vm5141_vm10, %v11833_v21, %v5138_v19  ;;  %v5850_v42 = vmul.f32 %v5786_v3, %v11861_v63  ;;  %v5851_v52 = vmul.f32 %v5787_v37, %v11864_v16  ;;  %v11902_v37 = vpop.f32.mrf.mxu1 }
0x119a   : > { %v5849_v15 = vmul.f32 %v5785_v6, %v11858_v61  ;;  %v6163_v46 = vmul.f32 %v6099_v62, %v5651_v28  ;;  %v5203_v55 = vmul.f32 %v5142_v60, %v11708_v47  ;;  %v11908_v60 = vpop.f32.mrf.mxu0 }
0x119b   : > { %v11885_v36 = vpack.c.bf16 %v6162_v12, %v6161_v48  ;;  %v5914_v19 = vadd.f32 %v5850_v42, %v11861_v63  ;;  %v5915_v47 = vadd.f32 %v5851_v52, %v11864_v16 }
0x119c   : > { %v9075_v13 = vpop.eup %9074  ;;  %v5913_v6 = vadd.f32 %v5849_v15, %v11858_v61  ;;  %v8572_v15 = vld [vmem:[%s9393_s29 + $0x3dc] sm:$0xf0] }
0x119d   : > { %v9077_v0 = vpop.eup %9076  ;;  %v5144_v34 = vmul.f32 %v9075_v13, %v5028_v5  ;;  %vm5150_vm0 = vweird.f32 %v9075_v13  ;;  %v5978_v62 = vmul.f32 0.7978846, %v5914_v19  ;;  %v8255_v5 = vld [vmem:[%s9393_s29 + $0x3a0] sm:$0xf]  ;;  %v5658_v19 = vmul.f32 0.5, %v11861_v63 }
0x119e   : > { %v6100_v41 = vadd.f32 1.0, %v9077_v0  ;;  %vm5151_vm2 = vmor %vm5149_vm1, %vm5150_vm0  ;;  %v5220_v0 = vmul.f32 %v11679_v57, %v5203_v55  ;;  %v8256_v42 = vor.u32 %v8572_v15, %v8255_v5  ;;  %v11919_v55 = vpop.f32.mrf.mxu2 }
0x119f   : > { %v5145_v56 = vmul.f32 %v9075_v13, %v5144_v34  ;;  %v5788_v34 = vmul.f32 %v5724_v14, %v11869_v25  ;;  %v5977_v14 = vmul.f32 0.7978846, %v5913_v6 }
0x11a0   : > { %v6164_v26 = vmul.f32 %v6100_v41, %v5652_v33  ;;  %6459 = vmatpush.bf16.msra.mxu3 %v8256_v42 }
0x11a1   : > { %v5146_v32 = vmul.f32 0.5, %v5145_v56  ;;  %v5852_v56 = vmul.f32 %v5788_v34, %v11869_v25  ;;  %9078 = vtanh.f32 %v5977_v14 }
0x11a2   : > { %v11893_v48 = vpack.c.bf16 %v6164_v26, %v6163_v46  ;;  %9080 = vtanh.f32 %v5978_v62  ;;  %v11914_v26 = vpop.f32.mrf.mxu3 }
0x11a3   : > { %v5147_v31 = vsub.f32 1.5, %v5146_v32  ;;  %v5916_v12 = vadd.f32 %v5852_v56, %v11869_v25 }
0x11a5   : > { %v5148_v21 = vmul.f32 %v9075_v13, %v5147_v31  ;;  %v5980_v32 = vmul.f32 0.7978846, %v5916_v12 }
0x11a7   : > { %v5152_v28 = vsel %vm5151_vm2, %v9075_v13, %v5148_v21  ;;  %v5237_v13 = vadd.f32 %v11697_v2, %v5220_v0 }
0x11a8   : > { %v5204_v3 = vmul.f32 %v5152_v28, %v11739_v50  ;;  %v5979_v50 = vmul.f32 0.7978846, %v5915_v47 }
0x11aa   : > { %v5221_v33 = vmul.f32 %v11679_v57, %v5204_v3  ;;  %9082 = vtanh.f32 %v5979_v50  ;;  %v9079_v57 = vpop.eup %9078 }
0x11ab   : > { %9084 = vtanh.f32 %v5980_v32  ;;  %v9081_v46 = vpop.eup %9080  ;;  %v6105_v31 = vadd.f32 1.0, %v9079_v57 }
0x11ac   : > { %v5238_v41 = vadd.f32 %v11697_v2, %v5221_v33  ;;  %v5657_v2 = vmul.f32 0.5, %v11858_v61  ;;  %v6106_v52 = vadd.f32 1.0, %v9081_v46  ;;  %v5659_v61 = vmul.f32 0.5, %v11864_v16 }
0x11ad   : > { %v5660_v33 = vmul.f32 0.5, %v11869_v25 }
0x11ae   : > { %v11910_v34 = vpack.c.bf16 %v5238_v41, %v5237_v13  ;;  %v6169_v21 = vmul.f32 %v6105_v31, %v5657_v2  ;;  %v6170_v14 = vmul.f32 %v6106_v52, %v5658_v19 }
0x11b0   : > { %5486 = vmatmul.bf16.gmra.mxu3 %v11910_v34  ;;  %5535 = vmatmul.bf16.gmra.mxu1 %v11910_v34  ;;  %v9083_v56 = vpop.eup %9082  ;;  %v11926_v13 = vpack.c.bf16 %v6170_v14, %v6169_v21 }
0x11b1   : > { %5584 = vmatmul.bf16.gmra.mxu0 %v11910_v34  ;;  %5633 = vmatmul.bf16.gmra.mxu2 %v11910_v34  ;;  %v9085_v47 = vpop.eup %9084  ;;  %v6107_v12 = vadd.f32 1.0, %v9083_v56 }
0x11b2   : > { %v6108_v5 = vadd.f32 1.0, %v9085_v47 }
0x11b3   : > { %v5521_v6 = vpop.f32.mrf.mxu1  ;;  %v6171_v41 = vmul.f32 %v6107_v12, %v5659_v61 }
0x11b4   : > { %v5522_v28 = vadd.f32 %v5521_v6, %v11787_v1  ;;  %v5570_v0 = vpop.f32.mrf.mxu0  ;;  %v6172_v42 = vmul.f32 %v6108_v5, %v5660_v33 }
0x11b5   : > { %v5571_v3 = vadd.f32 %v5570_v0, %v11789_v40 }
0x11b6   : > { %v5730_v62 = vmul.f32 0.044715, %v5522_v28  ;;  %v11929_v2 = vpack.c.bf16 %v6172_v42, %v6171_v41 }
0x11b7   : > { %v5731_v15 = vmul.f32 0.044715, %v5571_v3 }
0x11b8   : > { %v5794_v63 = vmul.f32 %v5730_v62, %v5522_v28  ;;  %v4994_v62 = vpop.xlane.xlu0 %4993 }
0x11b9   : > { %v5472_v50 = vpop.f32.mrf.mxu3  ;;  %v5795_v32 = vmul.f32 %v5731_v15, %v5571_v3  ;;  %v5013_v15 = vmul.f32 %v4994_v62, %v9736_v43 }
0x11ba   : > { %v5473_v57 = vadd.f32 %v5472_v50, %v11793_v44  ;;  %v5619_v46 = vpop.f32.mrf.mxu2  ;;  %v5858_v31 = vmul.f32 %v5794_v63, %v5522_v28 }
0x11bb   : > { %v5620_v52 = vadd.f32 %v5619_v46, %v11812_v59  ;;  %v5859_v25 = vmul.f32 %v5795_v32, %v5571_v3  ;;  %v11933_v42 = vadd.f32 1e-05, %v5013_v15  ;;  %v8571_v15 = vld [vmem:[%s9393_s29 + $0x3ac] sm:$0xf] }
0x11bc   : > { %v5729_v16 = vmul.f32 0.044715, %v5473_v57  ;;  %v5922_v56 = vadd.f32 %v5858_v31, %v5522_v28  ;;  %v5665_v46 = vmul.f32 0.5, %v5473_v57 }
0x11bd   : > { %v5732_v6 = vmul.f32 0.044715, %v5620_v52  ;;  %v5923_v14 = vadd.f32 %v5859_v25, %v5571_v3  ;;  %vm5159_vm4 = vweird.f32 %v11933_v42 }
0x11be   : > { %v5793_v19 = vmul.f32 %v5729_v16, %v5473_v57  ;;  %v5986_v33 = vmul.f32 0.7978846, %v5922_v56 }
0x11bf   : > { %v5796_v21 = vmul.f32 %v5732_v6, %v5620_v52  ;;  %v5987_v63 = vmul.f32 0.7978846, %v5923_v14  ;;  %v5666_v6 = vmul.f32 0.5, %v5522_v28  ;;  %v5668_v14 = vmul.f32 0.5, %v5620_v52 }
0x11c0   : > { %v5857_v0 = vmul.f32 %v5793_v19, %v5473_v57 }
0x11c1   : > { %v5860_v47 = vmul.f32 %v5796_v21, %v5620_v52 }
0x11c2   : > { %v5921_v12 = vadd.f32 %v5857_v0, %v5473_v57 }
0x11c3   : > { %v5924_v61 = vadd.f32 %v5860_v47, %v5620_v52  ;;  %v5667_v47 = vmul.f32 0.5, %v5571_v3 }
0x11c4   : > { %v5985_v5 = vmul.f32 0.7978846, %v5921_v12 }
0x11c5   : > { %v5988_v41 = vmul.f32 0.7978846, %v5924_v61 }
0x11c6   : > { %9086 = vtanh.f32 %v5985_v5 }
0x11c7   : > { %9088 = vtanh.f32 %v5986_v33 }
0x11c8   : > { %9090 = vtanh.f32 %v5987_v63  ;;  %v8265_v63 = vld [vmem:[%s9393_s29 + $0x3e8] sm:$0xf0] }
0x11c9   : > { %9092 = vtanh.f32 %v5988_v41  ;;  %v8268_v52 = vor.u32 %v8571_v15, %v8265_v63  ;;  %v8247_v15 = vld [vmem:[%s9393_s29 + $0x328] sm:$0xf] }
0x11ca   : > { %9094 = vrsqrt.f32 %v11933_v42  ;;  %v8569_v63 = vld [vmem:[%s9393_s29 + $0x364] sm:$0xf0] }
0x11cb   : > { %6606 = vmatpush.bf16.msrb.mxu2 %v8268_v52  ;;  %v8248_v52 = vor.u32 %v8569_v63, %v8247_v15 }
0x11cc   : > { %v9087_v50 = vpop.eup %9086 }
0x11cd   : > { %v9089_v32 = vpop.eup %9088  ;;  %v6113_v31 = vadd.f32 1.0, %v9087_v50  ;;  %v8570_v50 = vld [vmem:[%s9393_s29 + $0x3a4] sm:$0xf] }
0x11ce   : > { %v9091_v16 = vpop.eup %9090  ;;  %v6114_v25 = vadd.f32 1.0, %v9089_v32  ;;  %v8257_v32 = vld [vmem:[%s9393_s29 + $0x3e0] sm:$0xf0] }
0x11cf   : > { %v9093_v19 = vpop.eup %9092  ;;  %v6177_v56 = vmul.f32 %v6113_v31, %v5665_v46  ;;  %v6115_v21 = vadd.f32 1.0, %v9091_v16  ;;  %v8263_v46 = vld [vmem:[%s9393_s29 + $0x3a8] sm:$0xf]  ;;  %v8260_v16 = vor.u32 %v8570_v50, %v8257_v32  ;;  %v8223_v32 = vld [vmem:[%s9393_s29 + $0x2a0] sm:$0xf] }
0x11d0   : > { %v6178_v0 = vmul.f32 %v6114_v25, %v5666_v6  ;;  %v6116_v12 = vadd.f32 1.0, %v9093_v19  ;;  %v11938_v33 = vpop.eup %9094  ;;  %v8573_v6 = vld [vmem:[%s9393_s29 + $0x3e4] sm:$0xf0] }
0x11d1   : > { %v6179_v57 = vmul.f32 %v6115_v21, %v5667_v47  ;;  %v5154_v5 = vmul.f32 %v11938_v33, %v11933_v42  ;;  %v8264_v19 = vor.u32 %v8573_v6, %v8263_v46  ;;  %6508 = vmatpush.bf16.msra.mxu1 %v8260_v16  ;;  %v8239_v21 = vld [vmem:[%s9393_s29 + $0x320] sm:$0xf]  ;;  %vm5160_vm3 = vweird.f32 %v11938_v33 }
0x11d2   : > { %v11936_v62 = vpack.c.bf16 %v6178_v0, %v6177_v56  ;;  %v6180_v61 = vmul.f32 %v6116_v12, %v5668_v14  ;;  %v8568_v0 = vld [vmem:[%s9393_s29 + $0x35c] sm:$0xf0]  ;;  %v8567_v14 = vld [vmem:[%s9393_s29 + $0x32c] sm:$0xf]  ;;  %vm11993_vm5 = vmor %vm5159_vm4, %vm5160_vm3 }
0x11d3   : > { %v5155_v3 = vmul.f32 %v11938_v33, %v5154_v5  ;;  %v8240_v47 = vor.u32 %v8568_v0, %v8239_v21  ;;  %6557 = vmatpush.bf16.msrb.mxu0 %v8264_v19  ;;  %v8249_v12 = vld [vmem:[%s9393_s29 + $0x368] sm:$0xf0]  ;;  %v8241_v5 = vld [vmem:[%s9393_s29 + $0x360] sm:$0xf0]  ;;  %v8564_v46 = vld [vmem:[%s9393_s29 + $0x2dc] sm:$0xf0] }
0x11d4   : > { %v11940_v28 = vpack.c.bf16 %v6180_v61, %v6179_v57  ;;  %v8566_v57 = vld [vmem:[%s9393_s29 + $0x324] sm:$0xf]  ;;  %v8252_v61 = vor.u32 %v8567_v14, %v8249_v12  ;;  %v8224_v6 = vor.u32 %v8564_v46, %v8223_v32  ;;  %v8233_v19 = vld [vmem:[%s9393_s29 + $0x2e8] sm:$0xf0]  ;;  %v8565_v12 = vld [vmem:[%s9393_s29 + $0x2e4] sm:$0xf0] }
0x11d5   : > { %v5156_v25 = vmul.f32 0.5, %v5155_v3  ;;  %6460 = vmatpush.bf16.msra.mxu3 %v8240_v47  ;;  %v8244_v3 = vor.u32 %v8566_v57, %v8241_v5  ;;  %v8562_v21 = vld [vmem:[%s9393_s29 + $0x2a4] sm:$0xf] }
0x11d6   : > { %6607 = vmatpush.bf16.msrb.mxu2 %v8252_v61  ;;  %v8225_v0 = vld [vmem:[%s9393_s29 + $0x2e0] sm:$0xf0] }
0x11d7   : > { %6509 = vmatpush.bf16.msra.mxu1 %v8244_v3  ;;  %6558 = vmatpush.bf16.msrb.mxu0 %v8248_v52  ;;  %v8228_v14 = vor.u32 %v8562_v21, %v8225_v0  ;;  %v8207_v3 = vld [vmem:[%s9393_s29 + $0x220] sm:$0xf]  ;;  %v8209_v46 = vld [vmem:[%s9393_s29 + $0x260] sm:$0xf0]  ;;  %v8217_v21 = vld [vmem:[%s9393_s29 + $0x268] sm:$0xf0] }
0x11d8   : > { %v8560_v52 = vld [vmem:[%s9393_s29 + $0x25c] sm:$0xf0] }
0x11d9   : > { %6461 = vmatpush.bf16.msra.mxu3 %v8224_v6  ;;  %v8208_v32 = vor.u32 %v8560_v52, %v8207_v3  ;;  %v8561_v6 = vld [vmem:[%s9393_s29 + $0x264] sm:$0xf0] }
0x11db   : > { %6510 = vmatpush.bf16.msra.mxu1 %v8228_v14 }
0x11dd   : > { %v4996_v41 = vpop.xlane.xlu2 %4995  ;;  %6462 = vmatpush.bf16.msra.mxu3 %v8208_v32  ;;  %v8193_v32 = vld [vmem:[%s9393_s29 + $0x1e0] sm:$0xf0] }
0x11de   : > { %v5014_v31 = vmul.f32 %v4996_v41, %v9736_v43  ;;  %v5157_v41 = vsub.f32 1.5, %v5156_v25  ;;  %v8231_v25 = vld [vmem:[%s9393_s29 + $0x2a8] sm:$0xf] }
0x11df   : > { %v8232_v5 = vor.u32 %v8565_v12, %v8231_v25 }
0x11e0   : > { %v11952_v56 = vadd.f32 1e-05, %v5014_v31  ;;  %v8563_v31 = vld [vmem:[%s9393_s29 + $0x2ac] sm:$0xf]  ;;  %v5158_v15 = vmul.f32 %v11938_v33, %v5157_v41  ;;  %v8215_v41 = vld [vmem:[%s9393_s29 + $0x228] sm:$0xf] }
0x11e1   : > { %v8236_v47 = vor.u32 %v8563_v31, %v8233_v19  ;;  %6559 = vmatpush.bf16.msrb.mxu0 %v8232_v5  ;;  %v8559_v19 = vld [vmem:[%s9393_s29 + $0x22c] sm:$0xf]  ;;  %v8191_v5 = vld [vmem:[%s9393_s29 + $0x1a0] sm:$0xf] }
0x11e2   : > { %9096 = vrsqrt.f32 %v11952_v56  ;;  %v8220_v14 = vor.u32 %v8559_v19, %v8217_v21  ;;  %v5162_v42 = vsel %vm11993_vm5, %v11938_v33, %v5158_v15  ;;  %v8557_v15 = vld [vmem:[%s9393_s29 + $0x1e4] sm:$0xf0]  ;;  %v8201_v21 = vld [vmem:[%s9393_s29 + $0x1e8] sm:$0xf0]  ;;  %vm5169_vm7 = vweird.f32 %v11952_v56 }
0x11e3   : > { %6608 = vmatpush.bf16.msrb.mxu2 %v8236_v47  ;;  %v8216_v47 = vor.u32 %v8561_v6, %v8215_v41 }
0x11e5   : > { %v4998_v50 = vpop.xlane.xlu1 %4997  ;;  %6560 = vmatpush.bf16.msrb.mxu0 %v8216_v47 }
0x11e6   : > { %v5015_v16 = vmul.f32 %v4998_v50, %v9736_v43  ;;  %v8558_v50 = vld [vmem:[%s9393_s29 + $0x224] sm:$0xf] }
0x11e7   : > { %6609 = vmatpush.bf16.msrb.mxu2 %v8220_v14 }
0x11e8   : > { %v11972_v57 = vpop.eup %9096  ;;  %v11974_v61 = vadd.f32 1e-05, %v5015_v16  ;;  %v8212_v16 = vor.u32 %v8558_v50, %v8209_v46  ;;  %v8554_v50 = vld [vmem:[%s9393_s29 + $0x1a4] sm:$0xf]  ;;  %v8199_v46 = vld [vmem:[%s9393_s29 + $0x1a8] sm:$0xf] }
0x11e9   : > { %v5164_v63 = vmul.f32 %v11972_v57, %v11952_v56  ;;  %vm5170_vm6 = vweird.f32 %v11972_v57  ;;  %v8196_v33 = vor.u32 %v8554_v50, %v8193_v32  ;;  %v8200_v19 = vor.u32 %v8557_v15, %v8199_v46  ;;  %v8177_v56 = vld [vmem:[%s9393_s29 + $0x160] sm:$0xf0]  ;;  %v8553_v50 = vld [vmem:[%s9393_s29 + $0x164] sm:$0xf0]  ;;  %v8551_v32 = vld [vmem:[%s9393_s29 + $0x12c] sm:$0xf] }
0x11ea   : > { %9098 = vrsqrt.f32 %v11974_v61  ;;  %6511 = vmatpush.bf16.msra.mxu1 %v8212_v16  ;;  %vm5171_vm8 = vmor %vm5169_vm7, %vm5170_vm6  ;;  %v8185_v46 = vld [vmem:[%s9393_s29 + $0x168] sm:$0xf0]  ;;  %vm5179_vm11 = vweird.f32 %v11974_v61 }
0x11eb   : > { %v5165_v31 = vmul.f32 %v11972_v57, %v5164_v63  ;;  %v8556_v63 = vld [vmem:[%s9393_s29 + $0x1dc] sm:$0xf0]  ;;  %6561 = vmatpush.bf16.msrb.mxu0 %v8200_v19 }
0x11ec   : > { %v8192_v52 = vor.u32 %v8556_v63, %v8191_v5  ;;  %v8183_v5 = vld [vmem:[%s9393_s29 + $0x128] sm:$0xf] }
0x11ed   : > { %v5166_v25 = vmul.f32 0.5, %v5165_v31  ;;  %v5000_v12 = vpop.xlane.xlu0 %4999  ;;  %v8555_v31 = vld [vmem:[%s9393_s29 + $0x1ac] sm:$0xf] }
0x11ee   : > { %v5016_v3 = vmul.f32 %v5000_v12, %v9736_v43  ;;  %v5205_v43 = vmul.f32 %v5162_v42, %v11745_v22  ;;  %6463 = vmatpush.bf16.msra.mxu3 %v8192_v52  ;;  %6512 = vmatpush.bf16.msra.mxu1 %v8196_v33  ;;  %v8204_v14 = vor.u32 %v8555_v31, %v8201_v21  ;;  %v8175_v22 = vld [vmem:[%s9393_s29 + $0x120] sm:$0xf] }
0x11ef   : > { %v5167_v41 = vsub.f32 1.5, %v5166_v25  ;;  %v8552_v42 = vld [vmem:[%s9393_s29 + $0x15c] sm:$0xf0]  ;;  %v8550_v25 = vld [vmem:[%s9393_s29 + $0x124] sm:$0xf]  ;;  %v8184_v31 = vor.u32 %v8553_v50, %v8183_v5  ;;  %v12051_v50 = vpop.f32.mrf.mxu0 }
0x11f0   : > { %v12009_v16 = vpop.eup %9098  ;;  %v12012_v6 = vadd.f32 1e-05, %v5016_v3  ;;  %v8176_v12 = vor.u32 %v8552_v42, %v8175_v22  ;;  %6610 = vmatpush.bf16.msrb.mxu2 %v8204_v14  ;;  %v8180_v52 = vor.u32 %v8550_v25, %v8177_v56  ;;  %v8159_v21 = vld [vmem:[%s9393_s29 + $0xa0] sm:$0xf]  ;;  %v8546_v22 = vld [vmem:[%s9393_s29 + $0xa4] sm:$0xf]  ;;  %v12043_v25 = vpop.f32.mrf.mxu1 }
0x11f1   : > { %v5168_v0 = vmul.f32 %v11972_v57, %v5167_v41  ;;  %v5174_v47 = vmul.f32 %v12009_v16, %v11974_v61  ;;  %v12033_v41 = vld [vmem:[%s9383_s18 + $0x4] ss:$0 sm:$0xff]  ;;  %6562 = vmatpush.bf16.msrb.mxu0 %v8184_v31  ;;  %v8549_v56 = vld [vmem:[%s9393_s29 + $0xe4] sm:$0xf0]  ;;  %v8547_v5 = vld [vmem:[%s9393_s29 + $0xac] sm:$0xf]  ;;  %vm5180_vm9 = vweird.f32 %v12009_v16 }
0x11f2   : > { %9100 = vrsqrt.f32 %v12012_v6  ;;  %v5222_v33 = vmul.f32 %v12033_v41, %v5205_v43  ;;  %6464 = vmatpush.bf16.msra.mxu3 %v8176_v12  ;;  %6513 = vmatpush.bf16.msra.mxu1 %v8180_v52  ;;  %v8161_v42 = vld [vmem:[%s9393_s29 + $0xe0] sm:$0xf0]  ;;  %v8167_v43 = vld [vmem:[%s9393_s29 + $0xa8] sm:$0xf]  ;;  %vm12071_vm12 = vmor %vm5179_vm11, %vm5180_vm9  ;;  %vm5189_vm14 = vweird.f32 %v12012_v6 }
0x11f3   : > { %v5172_v63 = vsel %vm5171_vm8, %v11972_v57, %v5168_v0  ;;  %v5175_v3 = vmul.f32 %v12009_v16, %v5174_v47  ;;  %v8188_v57 = vor.u32 %v8551_v32, %v8185_v46  ;;  %v8548_v0 = vld [vmem:[%s9393_s29 + $0xdc] sm:$0xf0]  ;;  %v8164_v12 = vor.u32 %v8546_v22, %v8161_v42  ;;  %v8151_v42 = vld [vmem:[%s9393_s29 + $0x28] sm:$0xf] }
0x11f4   : > { %v5206_v15 = vmul.f32 %v5172_v63, %v11765_v51  ;;  %v8160_v14 = vor.u32 %v8548_v0, %v8159_v21  ;;  %v8168_v46 = vor.u32 %v8549_v56, %v8167_v43  ;;  %v8544_v21 = vld [vmem:[%s9393_s29 + $0x5c] sm:$0xf0]  ;;  %v8542_v0 = vld [vmem:[%s9393_s29 + $0x24] sm:$0xf]  ;;  %v8545_v56 = vld [vmem:[%s9393_s29 + $0x64] sm:$0xf0] }
0x11f5   : > { %v5176_v19 = vmul.f32 0.5, %v5175_v3  ;;  %6611 = vmatpush.bf16.msrb.mxu2 %v8188_v57  ;;  %v12048_v3 = vld [vmem:[%s9383_s18 + $0x5] ss:$0 sm:$0xff] }
0x11f6   : > { %v5223_v47 = vmul.f32 %v12033_v41, %v5206_v15  ;;  %v5239_v52 = vadd.f32 %v12048_v3, %v5222_v33  ;;  %6465 = vmatpush.bf16.msra.mxu3 %v8160_v14  ;;  %v8169_v15 = vld [vmem:[%s9393_s29 + $0xe8] sm:$0xf0]  ;;  %6514 = vmatpush.bf16.msra.mxu1 %v8164_v12  ;;  %v8145_v14 = vld [vmem:[%s9393_s29 + $0x60] sm:$0xf0] }
0x11f7   : > { %v5177_v51 = vsub.f32 1.5, %v5176_v19  ;;  %v8172_v33 = vor.u32 %v8547_v5, %v8169_v15  ;;  %v8143_v19 = vld [vmem:[%s9393_s29 + $0x20] sm:$0xf]  ;;  %6563 = vmatpush.bf16.msrb.mxu0 %v8168_v46  ;;  %v8152_v5 = vor.u32 %v8545_v56, %v8151_v42  ;;  %v12084_v15 = vpop.f32.mrf.mxu2 }
0x11f8   : > { %v9101_v63 = vpop.eup %9100  ;;  %v5240_v32 = vadd.f32 %v12048_v3, %v5223_v47  ;;  %v8144_v47 = vor.u32 %v8544_v21, %v8143_v19 }
0x11f9   : > { %v5178_v31 = vmul.f32 %v12009_v16, %v5177_v51  ;;  %v5184_v57 = vmul.f32 %v9101_v63, %v12012_v6  ;;  %6612 = vmatpush.bf16.msrb.mxu2 %v8172_v33  ;;  %v8148_v51 = vor.u32 %v8542_v0, %v8145_v14  ;;  %vm5190_vm13 = vweird.f32 %v9101_v63 }
0x11fa   : > { %v12061_v22 = vpack.c.bf16 %v5240_v32, %v5239_v52  ;;  %v8156_v52 = vor.u32 %v8543_v58, %v8153_v8  ;;  %v12077_v32 = vpop.f32.mrf.mxu3  ;;  %6466 = vmatpush.bf16.msra.mxu3 %v8144_v47  ;;  %vm5191_vm15 = vmor %vm5189_vm14, %vm5190_vm13 }
0x11fb   : > { %v5185_v43 = vmul.f32 %v9101_v63, %v5184_v57  ;;  %v5182_v61 = vsel %vm12071_vm12, %v12009_v16, %v5178_v31  ;;  %6515 = vmatpush.bf16.msra.mxu1 %v8148_v51  ;;  %6564 = vmatpush.bf16.msrb.mxu0 %v8152_v5 }
0x11fc   : > { %5491 = vmatmul.bf16.gmra.mxu3 %v12061_v22  ;;  %5540 = vmatmul.bf16.gmra.mxu1 %v12061_v22  ;;  %v5207_v8 = vmul.f32 %v5182_v61, %v11773_v10 }
0x11fd   : > { %v5186_v46 = vmul.f32 0.5, %v5185_v43  ;;  %5589 = vmatmul.bf16.gmra.mxu0 %v12061_v22  ;;  %5638 = vmatmul.bf16.gmra.mxu2 %v12061_v22 }
0x11fe   : > { %6613 = vmatpush.bf16.msrb.mxu2 %v8156_v52  ;;  %v5224_v14 = vmul.f32 %v12033_v41, %v5207_v8 }
0x11ff   : > { %v5187_v57 = vsub.f32 1.5, %v5186_v46  ;;  %v5526_v33 = vpop.f32.mrf.mxu1 }
0x1200   : > { %v12088_v58 = vadd.f32 %v5526_v33, %v11787_v1  ;;  %v5575_v16 = vpop.f32.mrf.mxu0 }
0x1201   : > { %v5188_v31 = vmul.f32 %v9101_v63, %v5187_v57  ;;  %v12092_v19 = vadd.f32 %v5575_v16, %v11789_v40 }
0x1202   : > { %v5738_v21 = vmul.f32 0.044715, %v12088_v58 }
0x1203   : > { %v5192_v0 = vsel %vm5191_vm15, %v9101_v63, %v5188_v31  ;;  %v5739_v47 = vmul.f32 0.044715, %v12092_v19  ;;  %v5675_v53 = vmul.f32 0.5, %v12092_v19 }
0x1204   : > { %v5208_v10 = vmul.f32 %v5192_v0, %v11780_v45  ;;  %v5802_v42 = vmul.f32 %v5738_v21, %v12088_v58  ;;  %v5241_v45 = vadd.f32 %v12048_v3, %v5224_v14 }
0x1205   : > { %v5803_v43 = vmul.f32 %v5739_v47, %v12092_v19  ;;  %v5477_v51 = vpop.f32.mrf.mxu3 }
0x1206   : > { %v5225_v6 = vmul.f32 %v12033_v41, %v5208_v10  ;;  %v5866_v56 = vmul.f32 %v5802_v42, %v12088_v58  ;;  %v5478_v12 = vadd.f32 %v5477_v51, %v11793_v44  ;;  %v5624_v5 = vpop.f32.mrf.mxu2 }
0x1207   : > { %v5867_v63 = vmul.f32 %v5803_v43, %v12092_v19  ;;  %v5625_v52 = vadd.f32 %v5624_v5, %v11812_v59  ;;  %v12105_v61 = vpop.f32.mrf.mxu1 }
0x1208   : > { %v5242_v46 = vadd.f32 %v12048_v3, %v5225_v6  ;;  %v5930_v57 = vadd.f32 %v5866_v56, %v12088_v58  ;;  %v5737_v33 = vmul.f32 0.044715, %v5478_v12  ;;  %v12110_v8 = vpop.f32.mrf.mxu0  ;;  %v5673_v49 = vmul.f32 0.5, %v5478_v12 }
0x1209   : > { %v5931_v41 = vadd.f32 %v5867_v63, %v12092_v19  ;;  %v5740_v16 = vmul.f32 0.044715, %v5625_v52 }
0x120a   : > { %v12113_v31 = vpack.c.bf16 %v5242_v46, %v5241_v45  ;;  %v5801_v21 = vmul.f32 %v5737_v33, %v5478_v12  ;;  %v5994_v0 = vmul.f32 0.7978846, %v5930_v57 }
0x120b   : > { %v5804_v47 = vmul.f32 %v5740_v16, %v5625_v52  ;;  %v5995_v10 = vmul.f32 0.7978846, %v5931_v41 }
0x120c   : > { %v5865_v42 = vmul.f32 %v5801_v21, %v5478_v12  ;;  %5496 = vmatmul.bf16.gmra.mxu3 %v12113_v31  ;;  %5545 = vmatmul.bf16.gmra.mxu1 %v12113_v31  ;;  %9102 = vtanh.f32 %v5994_v0 }
0x120d   : > { %v5868_v3 = vmul.f32 %v5804_v47, %v5625_v52  ;;  %5594 = vmatmul.bf16.gmra.mxu0 %v12113_v31  ;;  %5643 = vmatmul.bf16.gmra.mxu2 %v12113_v31  ;;  %v12119_v14 = vpop.f32.mrf.mxu3  ;;  %9104 = vtanh.f32 %v5995_v10 }
0x120e   : > { %v5929_v43 = vadd.f32 %v5865_v42, %v5478_v12  ;;  %v12121_v51 = vpop.f32.mrf.mxu2 }
0x120f   : > { %v5932_v6 = vadd.f32 %v5868_v3, %v5625_v52  ;;  %v5531_v56 = vpop.f32.mrf.mxu1 }
0x1210   : > { %v12124_v5 = vadd.f32 %v5531_v56, %v11787_v1  ;;  %v5580_v63 = vpop.f32.mrf.mxu0  ;;  %v5993_v45 = vmul.f32 0.7978846, %v5929_v43 }
0x1211   : > { %v5996_v46 = vmul.f32 0.7978846, %v5932_v6  ;;  %v12127_v57 = vadd.f32 %v5580_v63, %v11789_v40  ;;  %v5674_v63 = vmul.f32 0.5, %v12088_v58 }
0x1212   : > { %9106 = vtanh.f32 %v5993_v45  ;;  %v5746_v33 = vmul.f32 0.044715, %v12124_v5  ;;  %v9103_v41 = vpop.eup %9102 }
0x1213   : > { %9108 = vtanh.f32 %v5996_v46  ;;  %v9105_v16 = vpop.eup %9104  ;;  %v5747_v0 = vmul.f32 0.044715, %v12127_v57  ;;  %v6122_v43 = vadd.f32 1.0, %v9103_v41 }
0x1214   : > { %v5810_v42 = vmul.f32 %v5746_v33, %v12124_v5  ;;  %v6123_v45 = vadd.f32 1.0, %v9105_v16  ;;  %v5676_v33 = vmul.f32 0.5, %v5625_v52 }
0x1215   : > { %v5482_v21 = vpop.f32.mrf.mxu3  ;;  %v6186_v9 = vmul.f32 %v6122_v43, %v5674_v63 }
0x1216   : > { %v5483_v47 = vadd.f32 %v5482_v21, %v11793_v44  ;;  %v5629_v10 = vpop.f32.mrf.mxu2  ;;  %v5811_v21 = vmul.f32 %v5747_v0, %v12127_v57  ;;  %v6187_v12 = vmul.f32 %v6123_v45, %v5675_v53 }
0x1217   : > { %v12134_v3 = vadd.f32 %v5629_v10, %v11812_v59  ;;  %v5874_v10 = vmul.f32 %v5810_v42, %v12124_v5  ;;  %v12155_v43 = vpop.f32.mrf.mxu1 }
0x1218   : > { %v9107_v6 = vpop.eup %9106  ;;  %v5745_v56 = vmul.f32 0.044715, %v5483_v47  ;;  %v5875_v52 = vmul.f32 %v5811_v21, %v12127_v57  ;;  %v5681_v45 = vmul.f32 0.5, %v5483_v47 }
0x1219   : > { %v9109_v46 = vpop.eup %9108  ;;  %v5748_v35 = vmul.f32 0.044715, %v12134_v3  ;;  %v6121_v54 = vadd.f32 1.0, %v9107_v6 }
0x121a   : > { %v5809_v27 = vmul.f32 %v5745_v56, %v5483_v47  ;;  %v6124_v11 = vadd.f32 1.0, %v9109_v46 }
0x121b   : > { %v5812_v41 = vmul.f32 %v5748_v35, %v12134_v3  ;;  %v6185_v7 = vmul.f32 %v6121_v54, %v5673_v49  ;;  %v5939_v49 = vadd.f32 %v5875_v52, %v12127_v57 }
0x121c   : > { %v5873_v58 = vmul.f32 %v5809_v27, %v5483_v47  ;;  %6467 = vmatmul.bf16.vlgmr.msra.gmra.mxu3 %v11710_v23  ;;  %6516 = vmatmul.bf16.vlgmr.msra.gmra.mxu1 %v11710_v23  ;;  %v6188_v16 = vmul.f32 %v6124_v11, %v5676_v33  ;;  %v5938_v27 = vadd.f32 %v5874_v10, %v12124_v5  ;;  %v5682_v33 = vmul.f32 0.5, %v12124_v5 }
0x121d   : > { %6565 = vmatmul.bf16.vlgmr.msrb.gmra.mxu0 %v11710_v23  ;;  %6614 = vmatmul.bf16.vlgmr.msrb.gmra.mxu2 %v11710_v23  ;;  %v12146_v19 = vpack.c.bf16 %v6186_v9, %v6185_v7  ;;  %v5876_v35 = vmul.f32 %v5812_v41, %v12134_v3  ;;  %v12157_v9 = vpop.f32.mrf.mxu0  ;;  %v6003_v7 = vmul.f32 0.7978846, %v5939_v49  ;;  %v12159_v63 = vpop.f32.mrf.mxu3 }
0x121e   : > { %v5937_v0 = vadd.f32 %v5873_v58, %v5483_v47  ;;  %v12150_v54 = vpack.c.bf16 %v6188_v16, %v6187_v12  ;;  %v6002_v42 = vmul.f32 0.7978846, %v5938_v27  ;;  %v12161_v21 = vpop.f32.mrf.mxu2  ;;  %v5683_v27 = vmul.f32 0.5, %v12127_v57 }
0x121f   : > { %13114 = vst [vmem:[#allocation26_spill] sm:$0xff] %v12146_v19  ;;  %v5940_v53 = vadd.f32 %v5876_v35, %v12134_v3 }
0x1220   : > { %13115 = vst [vmem:[#allocation27_spill] sm:$0xff] %v12150_v54  ;;  %v6001_v11 = vmul.f32 0.7978846, %v5937_v0  ;;  %v8583_v54 = vld [vmem:[%s9398_s27 + $0x48] sm:$0xff] }
0x1221   : > { %v6004_v23 = vmul.f32 0.7978846, %v5940_v53 }
0x1222   : > { %9110 = vtanh.f32 %v6001_v11  ;;  %v5684_v11 = vmul.f32 0.5, %v12134_v3 }
0x1223   : > { %9112 = vtanh.f32 %v6002_v42 }
0x1224   : > { %9114 = vtanh.f32 %v6003_v7 }
0x1225   : > { %9116 = vtanh.f32 %v6004_v23 }
0x1228   : > { %v9111_v6 = vpop.eup %9110 }
0x1229   : > { %v9113_v56 = vpop.eup %9112  ;;  %v6129_v46 = vadd.f32 1.0, %v9111_v6 }
0x122a   : > { %v6130_v10 = vadd.f32 1.0, %v9113_v56  ;;  %v9115_v12 = vpop.eup %9114 }
0x122b   : > { %v6193_v58 = vmul.f32 %v6129_v46, %v5681_v45  ;;  %v9117_v0 = vpop.eup %9116  ;;  %v6131_v49 = vadd.f32 1.0, %v9115_v12 }
0x122c   : > { %6472 = vmatmul.bf16.gmra.mxu3 %v11729_v17  ;;  %6521 = vmatmul.bf16.gmra.mxu1 %v11729_v17  ;;  %v6194_v52 = vmul.f32 %v6130_v10, %v5682_v33  ;;  %v6132_v42 = vadd.f32 1.0, %v9117_v0 }
0x122d   : > { %6570 = vmatmul.bf16.gmra.mxu0 %v11729_v17  ;;  %6619 = vmatmul.bf16.gmra.mxu2 %v11729_v17  ;;  %v5536_v41 = vpop.f32.mrf.mxu1  ;;  %v6195_v23 = vmul.f32 %v6131_v49, %v5683_v27 }
0x122e   : > { %v5537_v16 = vadd.f32 %v5536_v41, %v11787_v1  ;;  %v5585_v47 = vpop.f32.mrf.mxu0  ;;  %v12171_v5 = vpack.c.bf16 %v6194_v52, %v6193_v58  ;;  %v6196_v6 = vmul.f32 %v6132_v42, %v5684_v11 }
0x122f   : > { %v5586_v35 = vadd.f32 %v5585_v47, %v11789_v40 }
0x1230   : > { %v5754_v53 = vmul.f32 0.044715, %v5537_v16  ;;  %13116 = vst [vmem:[#allocation28_spill] sm:$0xff] %v12171_v5  ;;  %v12175_v41 = vpack.c.bf16 %v6196_v6, %v6195_v23 }
0x1231   : > { %v5755_v17 = vmul.f32 0.044715, %v5586_v35 }
0x1232   : > { %v5818_v7 = vmul.f32 %v5754_v53, %v5537_v16  ;;  %13117 = vst [vmem:[#allocation29_spill] sm:$0xff] %v12175_v41 }
0x1233   : > { %v5819_v56 = vmul.f32 %v5755_v17, %v5586_v35  ;;  %v5487_v45 = vpop.f32.mrf.mxu3 }
0x1234   : > { %v5882_v46 = vmul.f32 %v5818_v7, %v5537_v16  ;;  %v5488_v33 = vadd.f32 %v5487_v45, %v11793_v44  ;;  %v5634_v10 = vpop.f32.mrf.mxu2  ;;  %v8581_v7 = vld [vmem:[%s9398_s27 + $0x38] sm:$0xff] }
0x1235   : > { %v5635_v57 = vadd.f32 %v5634_v10, %v11812_v59  ;;  %v5883_v12 = vmul.f32 %v5819_v56, %v5586_v35  ;;  %7073 = vmatpush.bf16.msrb.mxu3 %v8581_v7 }
0x1236   : > { %v5753_v58 = vmul.f32 0.044715, %v5488_v33  ;;  %v5946_v47 = vadd.f32 %v5882_v46, %v5537_v16 }
0x1237   : > { %v5756_v3 = vmul.f32 0.044715, %v5635_v57  ;;  %v5947_v53 = vadd.f32 %v5883_v12, %v5586_v35 }
0x1238   : > { %v5817_v52 = vmul.f32 %v5753_v58, %v5488_v33  ;;  %v6010_v11 = vmul.f32 0.7978846, %v5946_v47  ;;  %v5689_v58 = vmul.f32 0.5, %v5488_v33  ;;  %v5690_v47 = vmul.f32 0.5, %v5537_v16  ;;  %v8605_v16 = vld [vmem:[%s9398_s27 + $0xf8] sm:$0xff] }
0x1239   : > { %v5820_v0 = vmul.f32 %v5756_v3, %v5635_v57  ;;  %v6011_v6 = vmul.f32 0.7978846, %v5947_v53  ;;  %7220 = vmatpush.bf16.msra.mxu2 %v8605_v16 }
0x123a   : > { %v5881_v27 = vmul.f32 %v5817_v52, %v5488_v33  ;;  %9118 = vtanh.f32 %v6010_v11 }
0x123b   : > { %v5884_v49 = vmul.f32 %v5820_v0, %v5635_v57 }
0x123c   : > { %v5945_v42 = vadd.f32 %v5881_v27, %v5488_v33  ;;  %6477 = vmatmul.bf16.gmra.mxu3 %v11755_v20  ;;  %6526 = vmatmul.bf16.gmra.mxu1 %v11755_v20  ;;  %v8589_v33 = vld [vmem:[%s9398_s27 + $0x78] sm:$0xff] }
0x123d   : > { %v5948_v17 = vadd.f32 %v5884_v49, %v5635_v57  ;;  %6575 = vmatmul.bf16.gmra.mxu0 %v11755_v20  ;;  %6624 = vmatmul.bf16.gmra.mxu2 %v11755_v20  ;;  %v5691_v20 = vmul.f32 0.5, %v5586_v35  ;;  %v5692_v49 = vmul.f32 0.5, %v5635_v57  ;;  %v8597_v35 = vld [vmem:[%s9398_s27 + $0xb8] sm:$0xff]  ;;  %v12196_v57 = vadd.f32 %v11838_v38, %v11793_v44 }
0x123e   : > { %v6009_v23 = vmul.f32 0.7978846, %v5945_v42  ;;  %7122 = vmatpush.bf16.msrb.mxu1 %v8589_v33  ;;  %7171 = vmatpush.bf16.msra.mxu0 %v8597_v35  ;;  %v12210_v38 = vadd.f32 %v11836_v18, %v11789_v40 }
0x123f   : > { %v6012_v56 = vmul.f32 0.7978846, %v5948_v17 }
0x1240   : > { %9120 = vtanh.f32 %v6009_v23  ;;  %v9119_v45 = vpop.eup %9118 }
0x1241   : > { %9122 = vtanh.f32 %v6011_v6  ;;  %v6138_v46 = vadd.f32 1.0, %v9119_v45  ;;  %v12200_v6 = vadd.f32 %v11829_v30, %v11787_v1  ;;  %v12215_v30 = vadd.f32 %v11846_v4, %v11812_v59 }
0x1242   : > { %9124 = vtanh.f32 %v6012_v56  ;;  %v5717_v56 = vmul.f32 0.044715, %v12196_v57 }
0x1243   : > { %v6202_v53 = vmul.f32 %v6138_v46, %v5690_v47  ;;  %v5720_v4 = vmul.f32 0.044715, %v12215_v30  ;;  %v12232_v47 = vadd.f32 %v11908_v60, %v11789_v40 }
0x1244   : > { %v5781_v45 = vmul.f32 %v5717_v56, %v12196_v57 }
0x1245   : > { %v5727_v60 = vmul.f32 0.044715, %v12232_v47 }
0x1246   : > { %v9121_v10 = vpop.eup %9120  ;;  %v5845_v18 = vmul.f32 %v5781_v45, %v12196_v57 }
0x1247   : > { %v9123_v12 = vpop.eup %9122  ;;  %v6137_v3 = vadd.f32 1.0, %v9121_v10  ;;  %v5719_v10 = vmul.f32 0.044715, %v12210_v38 }
0x1248   : > { %v9125_v52 = vpop.eup %9124  ;;  %v6139_v0 = vadd.f32 1.0, %v9123_v12  ;;  %v8580_v12 = vld [vmem:[%s9398_s27 + $0x30] sm:$0xff] }
0x1249   : > { %v6201_v27 = vmul.f32 %v6137_v3, %v5689_v58  ;;  %v6140_v11 = vadd.f32 1.0, %v9125_v52  ;;  %v12227_v58 = vadd.f32 %v11902_v37, %v11787_v1  ;;  %7074 = vmatpush.bf16.msrb.mxu3 %v8580_v12  ;;  %v12238_v52 = vadd.f32 %v11919_v55, %v11812_v59  ;;  %v8596_v55 = vld [vmem:[%s9398_s27 + $0xb0] sm:$0xff] }
0x124a   : > { %v6203_v17 = vmul.f32 %v6139_v0, %v5691_v20  ;;  %v5909_v37 = vadd.f32 %v5845_v18, %v12196_v57  ;;  %7172 = vmatpush.bf16.msra.mxu0 %v8596_v55 }
0x124b   : > { %v12183_v42 = vpack.c.bf16 %v6202_v53, %v6201_v27  ;;  %v6204_v7 = vmul.f32 %v6140_v11, %v5692_v49  ;;  %v5726_v0 = vmul.f32 0.044715, %v12227_v58  ;;  %v5784_v27 = vmul.f32 %v5720_v4, %v12215_v30  ;;  %v8604_v53 = vld [vmem:[%s9398_s27 + $0xf0] sm:$0xff] }
0x124c   : > { %6482 = vmatmul.bf16.gmra.mxu3 %v11803_v39  ;;  %6531 = vmatmul.bf16.gmra.mxu1 %v11803_v39  ;;  %v8588_v49 = vld [vmem:[%s9398_s27 + $0x70] sm:$0xff]  ;;  %v5973_v35 = vmul.f32 0.7978846, %v5909_v37  ;;  %v8587_v37 = vld [vmem:[%s9398_s27 + $0x68] sm:$0xff]  ;;  %v5662_v41 = vmul.f32 0.5, %v12227_v58 }
0x124d   : > { %13118 = vst [vmem:[#allocation30_spill] sm:$0xff] %v12183_v42  ;;  %6580 = vmatmul.bf16.gmra.mxu0 %v11803_v39  ;;  %6629 = vmatmul.bf16.gmra.mxu2 %v11803_v39  ;;  %v12192_v23 = vpack.c.bf16 %v6204_v7, %v6203_v17  ;;  %v5718_v39 = vmul.f32 0.044715, %v12200_v6  ;;  %v5728_v7 = vmul.f32 0.044715, %v12238_v52  ;;  %v5790_v33 = vmul.f32 %v5726_v0, %v12227_v58  ;;  %v8595_v0 = vld [vmem:[%s9398_s27 + $0xa8] sm:$0xff] }
0x124e   : > { %7221 = vmatpush.bf16.msra.mxu2 %v8604_v53  ;;  %7123 = vmatpush.bf16.msrb.mxu1 %v8588_v49  ;;  %v5848_v56 = vmul.f32 %v5784_v27, %v12215_v30  ;;  %9126 = vtanh.f32 %v5973_v35  ;;  %v8579_v53 = vld [vmem:[%s9398_s27 + $0x28] sm:$0xff]  ;;  %v12279_v35 = vpop.f32.mrf.mxu3 }
0x124f   : > { %13119 = vst [vmem:[#allocation31_spill] sm:$0xff] %v12192_v23  ;;  %v5782_v46 = vmul.f32 %v5718_v39, %v12200_v6  ;;  %v5791_v39 = vmul.f32 %v5727_v60, %v12232_v47  ;;  %v5854_v18 = vmul.f32 %v5790_v33, %v12227_v58  ;;  %7173 = vmatpush.bf16.msra.mxu0 %v8595_v0  ;;  %v8594_v33 = vld [vmem:[%s9398_s27 + $0xa0] sm:$0xff] }
0x1250   : > { %v5912_v4 = vadd.f32 %v5848_v56, %v12215_v30  ;;  %7075 = vmatpush.bf16.msrb.mxu3 %v8579_v53  ;;  %13120 = vst [vmem:[#allocation32_spill] sm:$0xff] %v12279_v35 }
0x1251   : > { %v5846_v3 = vmul.f32 %v5782_v46, %v12200_v6  ;;  %v5792_v46 = vmul.f32 %v5728_v7, %v12238_v52  ;;  %v5918_v49 = vadd.f32 %v5854_v18, %v12227_v58 }
0x1252   : > { %7124 = vmatpush.bf16.msrb.mxu1 %v8587_v37 }
0x1253   : > { %v5910_v11 = vadd.f32 %v5846_v3, %v12200_v6  ;;  %v5855_v3 = vmul.f32 %v5791_v39, %v12232_v47  ;;  %7174 = vmatpush.bf16.msra.mxu0 %v8594_v33 }
0x1254   : > { %v9127_v7 = vpop.eup %9126 }
0x1255   : > { %v6101_v18 = vadd.f32 1.0, %v9127_v7 }
0x125c   : > { %6487 = vmatmul.bf16.gmra.mxu3 %v11849_v29  ;;  %6536 = vmatmul.bf16.gmra.mxu1 %v11849_v29 }
0x125d   : > { %6585 = vmatmul.bf16.gmra.mxu0 %v11849_v29  ;;  %6634 = vmatmul.bf16.gmra.mxu2 %v11849_v29  ;;  %v12221_v29 = vadd.f32 %v11914_v26, %v11793_v44  ;;  %v5783_v26 = vmul.f32 %v5719_v10, %v12210_v38  ;;  %v5974_v10 = vmul.f32 0.7978846, %v5910_v11  ;;  %v5919_v11 = vadd.f32 %v5855_v3, %v12232_v47 }
0x125f   : > { %v5725_v20 = vmul.f32 0.044715, %v12221_v29  ;;  %v5847_v17 = vmul.f32 %v5783_v26, %v12210_v38  ;;  %v12265_v26 = vpop.f32.mrf.mxu1  ;;  %9128 = vtanh.f32 %v5974_v10  ;;  %v5982_v10 = vmul.f32 0.7978846, %v5918_v49 }
0x1261   : > { %v5789_v16 = vmul.f32 %v5725_v20, %v12221_v29  ;;  %v5911_v45 = vadd.f32 %v5847_v17, %v12210_v38  ;;  %v12268_v20 = vpop.f32.mrf.mxu0  ;;  %v5976_v17 = vmul.f32 0.7978846, %v5912_v4  ;;  %v5983_v4 = vmul.f32 0.7978846, %v5919_v11 }
0x1262   : > { %v5654_v11 = vmul.f32 0.5, %v12200_v6 }
0x1263   : > { %v5853_v12 = vmul.f32 %v5789_v16, %v12221_v29  ;;  %v5975_v27 = vmul.f32 0.7978846, %v5911_v45  ;;  %v8586_v16 = vld [vmem:[%s9398_s27 + $0x60] sm:$0xff]  ;;  %v12281_v45 = vpop.f32.mrf.mxu2 }
0x1264   : > { %13121 = vst [vmem:[#allocation33_spill] sm:$0xff] %v12281_v45  ;;  %7125 = vmatpush.bf16.msrb.mxu1 %v8586_v16 }
0x1265   : > { %v5917_v60 = vadd.f32 %v5853_v12, %v12221_v29  ;;  %9130 = vtanh.f32 %v5975_v27  ;;  %v9129_v39 = vpop.eup %9128  ;;  %v5653_v27 = vmul.f32 0.5, %v12196_v57 }
0x1266   : > { %9132 = vtanh.f32 %v5976_v17  ;;  %v5655_v17 = vmul.f32 0.5, %v12210_v38  ;;  %v5656_v38 = vmul.f32 0.5, %v12215_v30  ;;  %v12314_v30 = vadd.f32 %v12051_v50, %v11789_v40  ;;  %v8592_v50 = vld [vmem:[%s9398_s27 + $0x90] sm:$0xff] }
0x1267   : > { %v5981_v56 = vmul.f32 0.7978846, %v5917_v60  ;;  %v6102_v60 = vadd.f32 1.0, %v9129_v39 }
0x1269   : > { %9134 = vtanh.f32 %v5981_v56 }
0x126a   : > { %9136 = vtanh.f32 %v5982_v10  ;;  %v8585_v10 = vld [vmem:[%s9398_s27 + $0x58] sm:$0xff] }
0x126b   : > { %v9131_v53 = vpop.eup %9130  ;;  %9138 = vtanh.f32 %v5983_v4  ;;  %7126 = vmatpush.bf16.msrb.mxu1 %v8585_v10  ;;  %v5661_v10 = vmul.f32 0.5, %v12221_v29  ;;  %v12347_v29 = vadd.f32 %v12077_v32, %v11793_v44 }
0x126c   : > { %6492 = vmatmul.bf16.gmra.mxu3 %v11910_v34  ;;  %6541 = vmatmul.bf16.gmra.mxu1 %v11910_v34  ;;  %v9133_v33 = vpop.eup %9132  ;;  %v6103_v4 = vadd.f32 1.0, %v9131_v53 }
0x126d   : > { %6590 = vmatmul.bf16.gmra.mxu0 %v11910_v34  ;;  %6639 = vmatmul.bf16.gmra.mxu2 %v11910_v34  ;;  %v5856_v34 = vmul.f32 %v5792_v46, %v12238_v52  ;;  %v8603_v46 = vld [vmem:[%s9398_s27 + $0xe8] sm:$0xff] }
0x126e   : > { %7222 = vmatpush.bf16.msra.mxu2 %v8603_v46 }
0x126f   : > { %v5920_v55 = vadd.f32 %v5856_v34, %v12238_v52  ;;  %v9135_v6 = vpop.eup %9134 }
0x1271   : > { %v5984_v37 = vmul.f32 0.7978846, %v5920_v55  ;;  %v6165_v55 = vmul.f32 %v6101_v18, %v5653_v27  ;;  %v6166_v18 = vmul.f32 %v6102_v60, %v5654_v11  ;;  %v8577_v11 = vld [vmem:[%s9398_s27 + $0x18] sm:$0xff] }
0x1273   : > { %9140 = vtanh.f32 %v5984_v37 }
0x1279   : > { %v5541_v12 = vpop.f32.mrf.mxu1 }
0x127a   : > { %v12285_v3 = vadd.f32 %v5541_v12, %v11787_v1  ;;  %v5590_v34 = vpop.f32.mrf.mxu0  ;;  %v8578_v12 = vld [vmem:[%s9398_s27 + $0x20] sm:$0xff] }
0x127b   : > { %v12288_v0 = vadd.f32 %v5590_v34, %v11789_v40  ;;  %v12310_v34 = vadd.f32 %v12043_v25, %v11787_v1  ;;  %v8584_v25 = vld [vmem:[%s9398_s27 + $0x50] sm:$0xff]  ;;  %7076 = vmatpush.bf16.msrb.mxu3 %v8578_v12 }
0x127c   : > { %v5762_v49 = vmul.f32 0.044715, %v12285_v3  ;;  %6497 = vmatmul.bf16.gmra.mxu3 %v12061_v22  ;;  %6546 = vmatmul.bf16.gmra.mxu1 %v12061_v22 }
0x127d   : > { %v5763_v7 = vmul.f32 0.044715, %v12288_v0  ;;  %6595 = vmatmul.bf16.gmra.mxu0 %v12061_v22  ;;  %6644 = vmatmul.bf16.gmra.mxu2 %v12061_v22  ;;  %v8593_v22 = vld [vmem:[%s9398_s27 + $0x98] sm:$0xff]  ;;  %v5734_v5 = vmul.f32 0.044715, %v12310_v34 }
0x127e   : > { %v5826_v16 = vmul.f32 %v5762_v49, %v12285_v3  ;;  %7175 = vmatpush.bf16.msra.mxu0 %v8593_v22  ;;  %7127 = vmatpush.bf16.msrb.mxu1 %v8584_v25  ;;  %v8576_v25 = vld [vmem:[%s9398_s27 + $0x10] sm:$0xff] }
0x127f   : > { %v5827_v56 = vmul.f32 %v5763_v7, %v12288_v0  ;;  %v5492_v39 = vpop.f32.mrf.mxu3  ;;  %v8602_v7 = vld [vmem:[%s9398_s27 + $0xe0] sm:$0xff]  ;;  %7077 = vmatpush.bf16.msrb.mxu3 %v8577_v11 }
0x1280   : > { %v5890_v37 = vmul.f32 %v5826_v16, %v12285_v3  ;;  %v12318_v27 = vadd.f32 %v5492_v39, %v11793_v44  ;;  %v5639_v49 = vpop.f32.mrf.mxu2  ;;  %v12330_v16 = vpack.c.bf16 %v6166_v18, %v6165_v55  ;;  %v9137_v39 = vpop.eup %9136  ;;  %7223 = vmatpush.bf16.msra.mxu2 %v8602_v7  ;;  %v8601_v55 = vld [vmem:[%s9398_s27 + $0xd8] sm:$0xff]  ;;  %v6167_v18 = vmul.f32 %v6103_v4, %v5655_v17 }
0x1281   : > { %v5891_v46 = vmul.f32 %v5827_v56, %v12288_v0  ;;  %v12323_v60 = vadd.f32 %v5639_v49, %v11812_v59  ;;  %v12325_v53 = vpop.f32.mrf.mxu1  ;;  %v6104_v49 = vadd.f32 1.0, %v9133_v33  ;;  %v9139_v22 = vpop.eup %9138 }
0x1282   : > { %13122 = vst [vmem:[#allocation34_spill] sm:$0xff] %v12325_v53  ;;  %v5954_v57 = vadd.f32 %v5890_v37, %v12285_v3  ;;  %v5761_v56 = vmul.f32 0.044715, %v12318_v27  ;;  %v12334_v24 = vpop.f32.mrf.mxu0  ;;  %v9141_v37 = vpop.eup %9140  ;;  %7176 = vmatpush.bf16.msra.mxu0 %v8592_v50  ;;  %v6110_v50 = vadd.f32 1.0, %v9137_v39  ;;  %v6111_v19 = vadd.f32 1.0, %v9139_v22  ;;  %7128 = vmatpush.bf16.msrb.mxu1 %v8583_v54 }
0x1283   : > { %13123 = vst [vmem:[#allocation35_spill] sm:$0xff] %v12334_v24  ;;  %v5955_v23 = vadd.f32 %v5891_v46, %v12288_v0  ;;  %v5764_v42 = vmul.f32 0.044715, %v12323_v60  ;;  %v5735_v24 = vmul.f32 0.044715, %v12314_v30  ;;  %v6168_v7 = vmul.f32 %v6104_v49, %v5656_v38  ;;  %7078 = vmatpush.bf16.msrb.mxu3 %v8576_v25 }
0x1284   : > { %v5825_v12 = vmul.f32 %v5761_v56, %v12318_v27  ;;  %v6018_v33 = vmul.f32 0.7978846, %v5954_v57  ;;  %7224 = vmatpush.bf16.msra.mxu2 %v8601_v55  ;;  %v6109_v57 = vadd.f32 1.0, %v9135_v6  ;;  %v5664_v56 = vmul.f32 0.5, %v12238_v52  ;;  %v8600_v52 = vld [vmem:[%s9398_s27 + $0xd0] sm:$0xff] }
0x1285   : > { %v5828_v46 = vmul.f32 %v5764_v42, %v12323_v60  ;;  %v6019_v17 = vmul.f32 0.7978846, %v5955_v23  ;;  %v8591_v42 = vld [vmem:[%s9398_s27 + $0x88] sm:$0xff]  ;;  %v6112_v58 = vadd.f32 1.0, %v9141_v37  ;;  %v5798_v23 = vmul.f32 %v5734_v5, %v12310_v34  ;;  %v8582_v37 = vld [vmem:[%s9398_s27 + $0x40] sm:$0xff] }
0x1286   : > { %v5889_v4 = vmul.f32 %v5825_v12, %v12318_v27  ;;  %v5799_v11 = vmul.f32 %v5735_v24, %v12314_v30  ;;  %9142 = vtanh.f32 %v6018_v33  ;;  %v5733_v49 = vmul.f32 0.044715, %v12347_v29  ;;  %7177 = vmatpush.bf16.msra.mxu0 %v8591_v42  ;;  %v8590_v12 = vld [vmem:[%s9398_s27 + $0x80] sm:$0xff]  ;;  %7129 = vmatpush.bf16.msrb.mxu1 %v8582_v37 }
0x1287   : > { %v5892_v32 = vmul.f32 %v5828_v46, %v12323_v60  ;;  %v12354_v53 = vpop.f32.mrf.mxu3  ;;  %v12368_v55 = vadd.f32 %v12084_v15, %v11812_v59  ;;  %9144 = vtanh.f32 %v6019_v17  ;;  %v12371_v5 = vpack.c.bf16 %v6168_v7, %v6167_v18 }
0x1288   : > { %13124 = vst [vmem:[#allocation36_spill] sm:$0xff] %v12354_v53  ;;  %v5953_v38 = vadd.f32 %v5889_v4, %v12318_v27  ;;  %v12362_v6 = vpop.f32.mrf.mxu2  ;;  %7225 = vmatpush.bf16.msra.mxu2 %v8600_v52  ;;  %v6173_v33 = vmul.f32 %v6109_v57, %v5661_v10  ;;  %v5663_v46 = vmul.f32 0.5, %v12232_v47  ;;  %v6176_v54 = vmul.f32 %v6112_v58, %v5664_v56  ;;  %v8599_v58 = vld [vmem:[%s9398_s27 + $0xc8] sm:$0xff] }
0x1289   : > { %13125 = vst [vmem:[#allocation37_spill] sm:$0xff] %v12362_v6  ;;  %v5956_v39 = vadd.f32 %v5892_v32, %v12323_v60  ;;  %v5546_v22 = vpop.f32.mrf.mxu1  ;;  %v6174_v32 = vmul.f32 %v6110_v50, %v5662_v41  ;;  %v5862_v17 = vmul.f32 %v5798_v23, %v12310_v34  ;;  %v5863_v18 = vmul.f32 %v5799_v11, %v12314_v30  ;;  %v8575_v41 = vld [vmem:[%s9398_s27 + $0x8] sm:$0xff] }
0x128a   : > { %v5595_v24 = vpop.f32.mrf.mxu0  ;;  %v6017_v4 = vmul.f32 0.7978846, %v5953_v38  ;;  %v12377_v15 = vadd.f32 %v5546_v22, %v11787_v1  ;;  %v5797_v47 = vmul.f32 %v5733_v49, %v12347_v29  ;;  %v5736_v10 = vmul.f32 0.044715, %v12368_v55  ;;  %7178 = vmatpush.bf16.msra.mxu0 %v8590_v12  ;;  %7079 = vmatpush.bf16.msrb.mxu3 %v8575_v41  ;;  %v8574_v49 = vld [vmem:[%s9398_s27] sm:$0xff] }
0x128b   : > { %v6020_v42 = vmul.f32 0.7978846, %v5956_v39  ;;  %v12382_v7 = vadd.f32 %v5595_v24, %v11789_v40  ;;  %v6175_v57 = vmul.f32 %v6111_v19, %v5663_v46  ;;  %v8598_v19 = vld [vmem:[%s9398_s27 + $0xc0] sm:$0xff]  ;;  %v12400_v22 = vpack.c.bf16 %v6174_v32, %v6173_v33 }
0x128c   : > { %6502 = vmatmul.bf16.gmra.mxu3 %v12113_v31  ;;  %6551 = vmatmul.bf16.gmra.mxu1 %v12113_v31  ;;  %9146 = vtanh.f32 %v6017_v4  ;;  %v9143_v56 = vpop.eup %9142  ;;  %v5926_v37 = vadd.f32 %v5862_v17, %v12310_v34  ;;  %v5927_v12 = vadd.f32 %v5863_v18, %v12314_v30  ;;  %v5861_v41 = vmul.f32 %v5797_v47, %v12347_v29 }
0x128d   : > { %6600 = vmatmul.bf16.gmra.mxu0 %v12113_v31  ;;  %6649 = vmatmul.bf16.gmra.mxu2 %v12113_v31  ;;  %9148 = vtanh.f32 %v6020_v42  ;;  %v9145_v38 = vpop.eup %9144  ;;  %v5770_v31 = vmul.f32 0.044715, %v12377_v15  ;;  %v12402_v24 = vpack.c.bf16 %v6176_v54, %v6175_v57  ;;  %v5771_v46 = vmul.f32 0.044715, %v12382_v7 }
0x128e   : > { %7226 = vmatpush.bf16.msra.mxu2 %v8599_v58  ;;  %v5800_v58 = vmul.f32 %v5736_v10, %v12368_v55  ;;  %v6146_v32 = vadd.f32 1.0, %v9143_v56  ;;  %v5698_v57 = vmul.f32 0.5, %v12285_v3  ;;  %v6147_v11 = vadd.f32 1.0, %v9145_v38  ;;  %7080 = vmatpush.bf16.msrb.mxu3 %v8574_v49 }
0x128f   : > { %v5497_v52 = vpop.f32.mrf.mxu3  ;;  %v5834_v47 = vmul.f32 %v5770_v31, %v12377_v15  ;;  %v5835_v50 = vmul.f32 %v5771_v46, %v12382_v7  ;;  %v5990_v38 = vmul.f32 0.7978846, %v5926_v37  ;;  %v12434_v46 = vadd.f32 %v12105_v61, %v11787_v1 }
0x1290   : > { %v12408_v4 = vadd.f32 %v5497_v52, %v11793_v44  ;;  %v5644_v42 = vpop.f32.mrf.mxu2  ;;  %v5699_v52 = vmul.f32 0.5, %v12288_v0  ;;  %v6210_v6 = vmul.f32 %v6146_v32, %v5698_v57  ;;  %v5864_v31 = vmul.f32 %v5800_v58, %v12368_v55 }
0x1291   : > { %v12413_v39 = vadd.f32 %v5644_v42, %v11812_v59  ;;  %v12415_v33 = vpop.f32.mrf.mxu1  ;;  %v5697_v42 = vmul.f32 0.5, %v12318_v27  ;;  %v5899_v32 = vmul.f32 %v5835_v50, %v12382_v7  ;;  %v12450_v61 = vadd.f32 %v12119_v14, %v11793_v44 }
0x1292   : > { %13126 = vst [vmem:[#allocation38_spill] sm:$0xff] %v12415_v33  ;;  %v9147_v54 = vpop.eup %9146  ;;  %v5769_v17 = vmul.f32 0.044715, %v12408_v4  ;;  %v12418_v18 = vpop.f32.mrf.mxu0  ;;  %7227 = vmatpush.bf16.msra.mxu2 %v8598_v19  ;;  %v6211_v19 = vmul.f32 %v6147_v11, %v5699_v52  ;;  %9150 = vtanh.f32 %v5990_v38  ;;  %v5742_v14 = vmul.f32 0.044715, %v12434_v46 }
0x1293   : > { %13127 = vst [vmem:[#allocation39_spill] sm:$0xff] %v12418_v18  ;;  %v9149_v23 = vpop.eup %9148  ;;  %v5772_v10 = vmul.f32 0.044715, %v12413_v39  ;;  %v6145_v56 = vadd.f32 1.0, %v9147_v54  ;;  %v5700_v18 = vmul.f32 0.5, %v12323_v60  ;;  %v5925_v54 = vadd.f32 %v5861_v41, %v12347_v29 }
0x1294   : > { %v5833_v25 = vmul.f32 %v5769_v17, %v12408_v4  ;;  %v6148_v3 = vadd.f32 1.0, %v9149_v23  ;;  %v5898_v60 = vmul.f32 %v5834_v47, %v12377_v15  ;;  %v5705_v45 = vmul.f32 0.5, %v12408_v4 }
0x1295   : > { %v5836_v0 = vmul.f32 %v5772_v10, %v12413_v39  ;;  %v6209_v33 = vmul.f32 %v6145_v56, %v5697_v42  ;;  %v5991_v10 = vmul.f32 0.7978846, %v5927_v12  ;;  %v5928_v42 = vadd.f32 %v5864_v31, %v12368_v55 }
0x1296   : > { %v5897_v49 = vmul.f32 %v5833_v25, %v12408_v4  ;;  %v6212_v27 = vmul.f32 %v6148_v3, %v5700_v18  ;;  %v6289_v18 = vld [vmem:[%s9388_s21] sm:$0xf]  ;;  %v5962_v56 = vadd.f32 %v5898_v60, %v12377_v15  ;;  %v5989_v3 = vmul.f32 0.7978846, %v5925_v54 }
0x1297   : > { %v12437_v23 = vpop.f32.mrf.mxu3  ;;  %v12439_v37 = vpack.c.bf16 %v6210_v6, %v6209_v33  ;;  %v5900_v41 = vmul.f32 %v5836_v0, %v12413_v39  ;;  %v5963_v0 = vadd.f32 %v5899_v32, %v12382_v7  ;;  %v12470_v11 = vperm.slane %v6289_v18, 2 }
0x1298   : > { %13128 = vst [vmem:[#allocation40_spill] sm:$0xff] %v12437_v23  ;;  %v12442_v58 = vpop.f32.mrf.mxu2  ;;  %v12446_v17 = vpack.c.bf16 %v6212_v27, %v6211_v19  ;;  %v5961_v50 = vadd.f32 %v5897_v49, %v12408_v4  ;;  %v12462_v19 = vperm.slane %v6289_v18, 1  ;;  %v12466_v49 = vmul.f32 0.5, %v12347_v29  ;;  %v9151_v38 = vpop.eup %9150 }
0x1299   : > { %13129 = vst [vmem:[#allocation41_spill] sm:$0xff] %v12439_v37  ;;  %v6517_v57 = vpop.f32.mrf.mxu1  ;;  %v5741_v27 = vmul.f32 0.044715, %v12450_v61  ;;  %v5964_v12 = vadd.f32 %v5900_v41, %v12413_v39  ;;  %v5670_v31 = vmul.f32 0.5, %v12310_v34  ;;  %v12474_v60 = vmul.f32 0.5, %v12314_v30 }
0x129a   : > { %13130 = vst [vmem:[#allocation42_spill] sm:$0xff] %v12442_v58  ;;  %v6566_v33 = vpop.f32.mrf.mxu0  ;;  %v12477_v54 = vmul.f32 0.5, %v12368_v55  ;;  %9152 = vtanh.f32 %v5991_v10  ;;  %v6025_v32 = vmul.f32 0.7978846, %v5961_v50  ;;  %v5806_v29 = vmul.f32 %v5742_v14, %v12434_v46 }
0x129b   : > { %13131 = vst [vmem:[#allocation43_spill] sm:$0xff] %v12446_v17  ;;  %9154 = vtanh.f32 %v5989_v3  ;;  %v5992_v52 = vmul.f32 0.7978846, %v5928_v42  ;;  %v6026_v25 = vmul.f32 0.7978846, %v5962_v56  ;;  %v12482_v41 = vadd.f32 %v12121_v51, %v11812_v59 }
0x129c   : > { %v6518_v34 = vadd.f32 %v6517_v57, %v12462_v19  ;;  %9156 = vtanh.f32 %v6025_v32  ;;  %v6027_v6 = vmul.f32 0.7978846, %v5963_v0  ;;  %v5805_v55 = vmul.f32 %v5741_v27, %v12450_v61 }
0x129d   : > { %v6567_v50 = vadd.f32 %v6566_v33, %v12470_v11  ;;  %9158 = vtanh.f32 %v6026_v25  ;;  %v6028_v14 = vmul.f32 0.7978846, %v5964_v12  ;;  %v12489_v42 = vadd.f32 %v12110_v8, %v11789_v40 }
0x129e   : > { %v12491_v56 = vperm.slane %v6289_v18, 0  ;;  %v6118_v57 = vadd.f32 1.0, %v9151_v38  ;;  %v5870_v32 = vmul.f32 %v5806_v29, %v12434_v46  ;;  %v12495_v0 = vperm.slane %v6289_v18, 3 }
0x129f   : > { %v6468_v47 = vpop.f32.mrf.mxu3  ;;  %9160 = vtanh.f32 %v6027_v6  ;;  %v5744_v25 = vmul.f32 0.044715, %v12482_v41  ;;  %v13132_v12 = vunpack.c.h.bf16 %v11885_v36  ;;  %v13133_v17 = vunpack.c.h.bf16 %v12330_v16 }
0x12a0   : > { %v6615_v30 = vpop.f32.mrf.mxu2  ;;  %v9153_v33 = vpop.eup %9152  ;;  %9162 = vtanh.f32 %v6028_v14  ;;  %v5869_v38 = vmul.f32 %v5805_v55, %v12450_v61  ;;  %v13134_v29 = vunpack.c.l.bf16 %v11893_v48  ;;  %v13135_v58 = vunpack.c.l.bf16 %v12371_v5 }
0x12a1   : > { %v6519_v10 = vpop.f32.mrf.mxu1  ;;  %v6720_v8 = vmul.f32 %v13132_v12, %v6518_v34  ;;  %9164 = vtanh.f32 %v5992_v52  ;;  %v5743_v23 = vmul.f32 0.044715, %v12489_v42  ;;  %v6469_v53 = vadd.f32 %v6468_v47, %v12491_v56 }
0x12a2   : > { %v6520_v51 = vadd.f32 %v6519_v10, %v12462_v19  ;;  %v6568_v3 = vpop.f32.mrf.mxu0  ;;  %v9155_v10 = vpop.eup %9154  ;;  %v6721_v18 = vmul.f32 %v13134_v29, %v6567_v50  ;;  %v12510_v12 = vmul.f32 %v6118_v57, %v5670_v31  ;;  %v6616_v14 = vadd.f32 %v6615_v30, %v12495_v0 }
0x12a3   : > { %v6569_v27 = vadd.f32 %v6568_v3, %v12470_v11  ;;  %v9157_v6 = vpop.eup %9156  ;;  %v5934_v29 = vadd.f32 %v5870_v32, %v12434_v46  ;;  %v5933_v31 = vadd.f32 %v5869_v38, %v12450_v61  ;;  %v12522_v32 = vadd.f32 %v12155_v43, %v11787_v1 }
0x12a4   : > { %v6724_v37 = vmul.f32 %v13133_v17, %v6520_v51  ;;  %v9159_v17 = vpop.eup %9158  ;;  %v6153_v50 = vadd.f32 1.0, %v9157_v6  ;;  %v13137_v38 = vunpack.c.l.bf16 %v12330_v16 }
0x12a5   : > { %v6725_v3 = vmul.f32 %v13135_v58, %v6569_v27  ;;  %v5808_v58 = vmul.f32 %v5744_v25, %v12482_v41  ;;  %v6154_v47 = vadd.f32 1.0, %v9159_v17  ;;  %v12526_v25 = vadd.f32 %v12159_v63, %v11793_v44 }
0x12a6   : > { %v6784_v34 = vpack.c.bf16 %v6724_v37, %v6720_v8  ;;  %v9161_v37 = vpop.eup %9160  ;;  %v5706_v8 = vmul.f32 0.5, %v12377_v15  ;;  %v6217_v4 = vmul.f32 %v6153_v50, %v5705_v45  ;;  %v13138_v15 = vunpack.c.h.bf16 %v11893_v48 }
0x12a7   : > { %v6785_v51 = vpack.c.bf16 %v6725_v3, %v6721_v18  ;;  %v6470_v55 = vpop.f32.mrf.mxu3  ;;  %v9163_v18 = vpop.eup %9162  ;;  %v13136_v3 = vunpack.c.l.bf16 %v11885_v36  ;;  %v5707_v63 = vmul.f32 0.5, %v12382_v7  ;;  %v5708_v44 = vmul.f32 0.5, %v12413_v39 }
0x12a8   : > { %v6471_v52 = vadd.f32 %v6470_v55, %v12491_v56  ;;  %v6617_v27 = vpop.f32.mrf.mxu2  ;;  %7130 = vmatmul.bf16.vlgmr.msrb.gmra.mxu1 %v6784_v34  ;;  %v6722_v45 = vmul.f32 %v13138_v15, %v6616_v14  ;;  %v13139_v55 = vunpack.c.h.bf16 %v12371_v5  ;;  %v6218_v43 = vmul.f32 %v6154_v47, %v5706_v8 }
0x12a9   : > { %v6618_v57 = vadd.f32 %v6617_v27, %v12495_v0  ;;  %7179 = vmatmul.bf16.vlgmr.msra.gmra.mxu0 %v6785_v51  ;;  %v6522_v30 = vpop.f32.mrf.mxu1  ;;  %v6719_v6 = vmul.f32 %v13136_v3, %v6469_v53  ;;  %v9165_v51 = vpop.eup %9164  ;;  %v6155_v27 = vadd.f32 1.0, %v9161_v37  ;;  %v6156_v36 = vadd.f32 1.0, %v9163_v18 }
0x12aa   : > { %v6723_v34 = vmul.f32 %v13137_v38, %v6471_v52  ;;  %v6571_v17 = vpop.f32.mrf.mxu0  ;;  %v5872_v53 = vmul.f32 %v5808_v58, %v12482_v41  ;;  %v6119_v52 = vadd.f32 1.0, %v9153_v33  ;;  %v12539_v3 = vpack.c.bf16 %v6218_v43, %v6217_v4 }
0x12ab   : > { %v6726_v50 = vmul.f32 %v13139_v55, %v6618_v57  ;;  %v5749_v48 = vmul.f32 0.044715, %v12526_v25  ;;  %v6117_v14 = vadd.f32 1.0, %v9155_v10  ;;  %v6219_v5 = vmul.f32 %v6155_v27, %v5707_v63 }
0x12ac   : > { %v6783_v35 = vpack.c.bf16 %v6723_v34, %v6719_v6  ;;  %v6220_v57 = vmul.f32 %v6156_v36, %v5708_v44  ;;  %v5807_v47 = vmul.f32 %v5743_v23, %v12489_v42  ;;  %v6672_v7 = vunpack.c.h.bf16 %v11936_v62 }
0x12ad   : > { %v6786_v16 = vpack.c.bf16 %v6726_v50, %v6722_v45  ;;  %v6120_v39 = vadd.f32 1.0, %v9165_v51  ;;  %v5998_v8 = vmul.f32 0.7978846, %v5934_v29  ;;  %v5750_v58 = vmul.f32 0.044715, %v12522_v32 }
0x12ae   : > { %7081 = vmatmul.bf16.vlgmr.msrb.gmra.mxu3 %v6783_v35  ;;  %v6523_v33 = vadd.f32 %v6522_v30, %v12462_v19  ;;  %v5997_v18 = vmul.f32 0.7978846, %v5933_v31  ;;  %v12546_v6 = vpack.c.bf16 %v6220_v57, %v6219_v5  ;;  %v5936_v35 = vadd.f32 %v5872_v53, %v12482_v41 }
0x12af   : > { %7228 = vmatmul.bf16.vlgmr.msra.gmra.mxu2 %v6786_v16  ;;  %v6473_v37 = vpop.f32.mrf.mxu3  ;;  %v12551_v44 = vadd.f32 %v12157_v9, %v11789_v40  ;;  %v6572_v23 = vadd.f32 %v6571_v17, %v12470_v11  ;;  %v6671_v38 = vunpack.c.l.bf16 %v11936_v62  ;;  %v5813_v29 = vmul.f32 %v5749_v48, %v12526_v25 }
0x12b0   : > { %v6620_v4 = vpop.f32.mrf.mxu2  ;;  %v12558_v30 = vadd.f32 %v12161_v21, %v11812_v59  ;;  %v6181_v51 = vmul.f32 %v6117_v14, %v12466_v49  ;;  %v5871_v15 = vmul.f32 %v5807_v47, %v12489_v42  ;;  %v6184_v17 = vmul.f32 %v6120_v39, %v12477_v54 }
0x12b1   : > { %v6524_v10 = vpop.f32.mrf.mxu1  ;;  %9166 = vtanh.f32 %v5998_v8  ;;  %v5814_v45 = vmul.f32 %v5750_v58, %v12522_v32  ;;  %v13140_v55 = vunpack.c.h.bf16 %v11926_v13  ;;  %v13141_v21 = vunpack.c.h.bf16 %v12400_v22 }
0x12b2   : > { %v6525_v31 = vadd.f32 %v6524_v10, %v12462_v19  ;;  %v6573_v34 = vpop.f32.mrf.mxu0  ;;  %9168 = vtanh.f32 %v5997_v18  ;;  %v5751_v27 = vmul.f32 0.044715, %v12551_v44  ;;  %v13142_v49 = vunpack.c.l.bf16 %v11929_v2 }
0x12b3   : > { %v6574_v9 = vadd.f32 %v6573_v34, %v12470_v11  ;;  %v6728_v50 = vmul.f32 %v13140_v55, %v6523_v33  ;;  %v13143_v36 = vunpack.c.l.bf16 %v12402_v24  ;;  %v6000_v16 = vmul.f32 0.7978846, %v5936_v35 }
0x12b4   : > { %v6732_v43 = vmul.f32 %v13141_v21, %v6525_v31  ;;  %v6729_v63 = vmul.f32 %v13142_v49, %v6572_v23  ;;  %v5877_v54 = vmul.f32 %v5813_v29, %v12526_v25  ;;  %v5752_v48 = vmul.f32 0.044715, %v12558_v30 }
0x12b5   : > { %v6733_v53 = vmul.f32 %v13143_v36, %v6574_v9  ;;  %v6474_v14 = vadd.f32 %v6473_v37, %v12491_v56  ;;  %v5935_v57 = vadd.f32 %v5871_v15, %v12489_v42  ;;  %v6621_v47 = vadd.f32 %v6620_v4, %v12495_v0 }
0x12b6   : > { %v6788_v5 = vpack.c.bf16 %v6732_v43, %v6728_v50  ;;  %v6183_v58 = vmul.f32 %v6119_v52, %v12474_v60  ;;  %v5878_v33 = vmul.f32 %v5814_v45, %v12522_v32  ;;  %v6673_v23 = vunpack.c.l.bf16 %v11940_v28 }
0x12b7   : > { %v6475_v39 = vpop.f32.mrf.mxu3  ;;  %v6789_v8 = vpack.c.bf16 %v6733_v53, %v6729_v63  ;;  %v12585_v10 = vpack.c.bf16 %v12510_v12, %v6181_v51  ;;  %v9167_v37 = vpop.eup %9166  ;;  %v5815_v29 = vmul.f32 %v5751_v27, %v12551_v44  ;;  %9170 = vtanh.f32 %v6000_v16 }
0x12b8   : > { %v6476_v18 = vadd.f32 %v6475_v39, %v12491_v56  ;;  %v6622_v35 = vpop.f32.mrf.mxu2  ;;  %7135 = vmatmul.bf16.gmra.mxu1 %v6788_v5  ;;  %v12589_v34 = vpack.c.bf16 %v6184_v17, %v6183_v58  ;;  %v9169_v60 = vpop.eup %9168  ;;  %v5816_v52 = vmul.f32 %v5752_v48, %v12558_v30  ;;  %v13144_v15 = vunpack.c.l.bf16 %v11926_v13 }
0x12b9   : > { %v6623_v4 = vadd.f32 %v6622_v35, %v12495_v0  ;;  %7184 = vmatmul.bf16.gmra.mxu0 %v6789_v8  ;;  %v6527_v31 = vpop.f32.mrf.mxu1  ;;  %v13145_v45 = vunpack.c.l.bf16 %v12400_v22  ;;  %v5941_v55 = vadd.f32 %v5877_v54, %v12526_v25  ;;  %v13146_v50 = vunpack.c.h.bf16 %v11929_v2 }
0x12ba   : > { %v6727_v9 = vmul.f32 %v13144_v15, %v6474_v14  ;;  %v6576_v51 = vpop.f32.mrf.mxu0  ;;  %v13147_v43 = vunpack.c.h.bf16 %v12402_v24  ;;  %v6674_v27 = vunpack.c.h.bf16 %v11940_v28  ;;  %v5999_v49 = vmul.f32 0.7978846, %v5935_v57  ;;  %v13149_v15 = vld [vmem:[#allocation32_spill] sm:$0xff] }
0x12bb   : > { %v6731_v12 = vmul.f32 %v13145_v45, %v6476_v18  ;;  %v6730_v21 = vmul.f32 %v13146_v50, %v6621_v47  ;;  %v6676_v36 = vunpack.c.h.bf16 %v12585_v10  ;;  %v6675_v13 = vunpack.c.l.bf16 %v12585_v10  ;;  %v13150_v45 = vld [vmem:[#allocation33_spill] sm:$0xff] }
0x12bc   : > { %v6734_v17 = vmul.f32 %v13147_v43, %v6623_v4  ;;  %v5942_v22 = vadd.f32 %v5878_v33, %v12522_v32  ;;  %v5879_v53 = vmul.f32 %v5815_v29, %v12551_v44  ;;  %v6677_v54 = vunpack.c.l.bf16 %v12589_v34 }
0x12bd   : > { %v6787_v63 = vpack.c.bf16 %v6731_v12, %v6727_v9  ;;  %v6125_v2 = vadd.f32 1.0, %v9169_v60  ;;  %v5880_v48 = vmul.f32 %v5816_v52, %v12558_v30  ;;  %v6678_v24 = vunpack.c.h.bf16 %v12589_v34  ;;  %v9171_v57 = vpop.eup %9170  ;;  %v13148_v52 = vld [vmem:[#allocation25_spill] sm:$0xff] }
0x12be   : > { %v6790_v16 = vpack.c.bf16 %v6734_v17, %v6730_v21  ;;  %v5678_v14 = vmul.f32 0.5, %v12434_v46  ;;  %v6005_v5 = vmul.f32 0.7978846, %v5941_v55  ;;  %v5677_v39 = vmul.f32 0.5, %v12450_v61 }
0x12bf   : > { %7086 = vmatmul.bf16.gmra.mxu3 %v6787_v63  ;;  %v6478_v47 = vpop.f32.mrf.mxu3  ;;  %v6126_v8 = vadd.f32 1.0, %v9167_v37  ;;  %v12612_v58 = vmul.f32 0.5, %v12489_v42  ;;  %9172 = vtanh.f32 %v5999_v49  ;;  %v12616_v33 = vadd.f32 %v12265_v26, %v11787_v1 }
0x12c0   : > { %7233 = vmatmul.bf16.gmra.mxu2 %v6790_v16  ;;  %v6528_v18 = vadd.f32 %v6527_v31, %v12462_v19  ;;  %v6625_v35 = vpop.f32.mrf.mxu2  ;;  %v5680_v46 = vmul.f32 0.5, %v12482_v41  ;;  %v6006_v29 = vmul.f32 0.7978846, %v5942_v22  ;;  %v12622_v4 = vadd.f32 %v12268_v20, %v11789_v40 }
0x12c1   : > { %v6577_v61 = vadd.f32 %v6576_v51, %v12470_v11  ;;  %v6529_v37 = vpop.f32.mrf.mxu1  ;;  %v6189_v42 = vmul.f32 %v6125_v2, %v5677_v39  ;;  %v5943_v60 = vadd.f32 %v5879_v53, %v12551_v44  ;;  %v12628_v26 = vadd.f32 %v13149_v15, %v13148_v52  ;;  %v13151_v39 = vld [vmem:[#allocation26_spill] sm:$0xff] }
0x12c2   : > { %v6530_v31 = vadd.f32 %v6529_v37, %v12462_v19  ;;  %v6578_v9 = vpop.f32.mrf.mxu0  ;;  %9174 = vtanh.f32 %v6005_v5  ;;  %v5944_v41 = vadd.f32 %v5880_v48, %v12558_v30  ;;  %v12634_v20 = vadd.f32 %v13150_v45, %v11812_v59 }
0x12c3   : > { %v6579_v12 = vadd.f32 %v6578_v9, %v12470_v11  ;;  %v6190_v51 = vmul.f32 %v6126_v8, %v5678_v14  ;;  %v6128_v55 = vadd.f32 1.0, %v9171_v57  ;;  %v5758_v50 = vmul.f32 0.044715, %v12616_v33 }
0x12c4   : > { %v6736_v21 = vmul.f32 %v6672_v7, %v6528_v18  ;;  %v6740_v43 = vmul.f32 %v6676_v36, %v6530_v31  ;;  %9176 = vtanh.f32 %v6006_v29  ;;  %v5759_v49 = vmul.f32 0.044715, %v12622_v4 }
0x12c5   : > { %v9173_v17 = vpop.eup %9172  ;;  %v6737_v63 = vmul.f32 %v6673_v23, %v6577_v61  ;;  %v6741_v22 = vmul.f32 %v6677_v54, %v6579_v12  ;;  %v6007_v53 = vmul.f32 0.7978846, %v5943_v60  ;;  %v5757_v16 = vmul.f32 0.044715, %v12628_v26 }
0x12c6   : > { %v6479_v2 = vadd.f32 %v6478_v47, %v12491_v56  ;;  %v6792_v48 = vpack.c.bf16 %v6740_v43, %v6736_v21  ;;  %v6008_v14 = vmul.f32 0.7978846, %v5944_v41  ;;  %v5760_v5 = vmul.f32 0.044715, %v12634_v20  ;;  %v13152_v21 = vld [vmem:[#allocation27_spill] sm:$0xff] }
0x12c7   : > { %v6626_v7 = vadd.f32 %v6625_v35, %v12495_v0  ;;  %v6480_v36 = vpop.f32.mrf.mxu3  ;;  %v6793_v57 = vpack.c.bf16 %v6741_v22, %v6737_v63  ;;  %v6680_v8 = vunpack.c.h.bf16 %v13151_v39  ;;  %v5822_v29 = vmul.f32 %v5758_v50, %v12616_v33 }
0x12c8   : > { %v9175_v18 = vpop.eup %9174  ;;  %v6481_v23 = vadd.f32 %v6480_v36, %v12491_v56  ;;  %v6627_v54 = vpop.f32.mrf.mxu2  ;;  %7140 = vmatmul.bf16.gmra.mxu1 %v6792_v48  ;;  %v12650_v61 = vpack.c.bf16 %v6190_v51, %v6189_v42  ;;  %v6127_v47 = vadd.f32 1.0, %v9173_v17  ;;  %v5823_v37 = vmul.f32 %v5759_v49, %v12622_v4 }
0x12c9   : > { %v6628_v60 = vadd.f32 %v6627_v54, %v12495_v0  ;;  %7189 = vmatmul.bf16.gmra.mxu0 %v6793_v57  ;;  %v6532_v35 = vpop.f32.mrf.mxu1  ;;  %v6192_v15 = vmul.f32 %v6128_v55, %v5680_v46  ;;  %9178 = vtanh.f32 %v6007_v53  ;;  %v5821_v9 = vmul.f32 %v5757_v16, %v12628_v26 }
0x12ca   : > { %v9177_v31 = vpop.eup %9176  ;;  %v6735_v41 = vmul.f32 %v6671_v38, %v6479_v2  ;;  %v6739_v45 = vmul.f32 %v6675_v13, %v6481_v23  ;;  %v6581_v42 = vpop.f32.mrf.mxu0  ;;  %9180 = vtanh.f32 %v6008_v14  ;;  %v5824_v12 = vmul.f32 %v5760_v5, %v12634_v20 }
0x12cb   : > { %v6738_v51 = vmul.f32 %v6674_v27, %v6626_v7  ;;  %v6742_v46 = vmul.f32 %v6678_v24, %v6628_v60  ;;  %v6133_v55 = vadd.f32 1.0, %v9175_v18  ;;  %v5886_v50 = vmul.f32 %v5822_v29, %v12616_v33 }
0x12cc   : > { %v6681_v43 = vunpack.c.l.bf16 %v13152_v21  ;;  %v6791_v62 = vpack.c.bf16 %v6739_v45, %v6735_v41  ;;  %v6191_v38 = vmul.f32 %v6127_v47, %v12612_v58  ;;  %v5887_v10 = vmul.f32 %v5823_v37, %v12622_v4 }
0x12cd   : > { %v6794_v13 = vpack.c.bf16 %v6742_v46, %v6738_v51  ;;  %v5685_v17 = vmul.f32 0.5, %v12526_v25  ;;  %v6134_v49 = vadd.f32 1.0, %v9177_v31  ;;  %v5885_v28 = vmul.f32 %v5821_v9, %v12628_v26 }
0x12ce   : > { %v6679_v34 = vunpack.c.l.bf16 %v13151_v39  ;;  %v6682_v27 = vunpack.c.h.bf16 %v13152_v21  ;;  %v12672_v24 = vpack.c.bf16 %v6192_v15, %v6191_v38  ;;  %v5888_v22 = vmul.f32 %v5824_v12, %v12634_v20  ;;  %v13155_v39 = vld [vmem:[#allocation34_spill] sm:$0xff] }
0x12cf   : > { %7091 = vmatmul.bf16.gmra.mxu3 %v6791_v62  ;;  %v9179_v63 = vpop.eup %9178  ;;  %v6483_v58 = vpop.f32.mrf.mxu3  ;;  %v6684_v53 = vunpack.c.h.bf16 %v12650_v61  ;;  %v5686_v16 = vmul.f32 0.5, %v12522_v32  ;;  %v6197_v25 = vmul.f32 %v6133_v55, %v5685_v17  ;;  %v6533_v48 = vadd.f32 %v6532_v35, %v12462_v19 }
0x12d0   : > { %7238 = vmatmul.bf16.gmra.mxu2 %v6794_v13  ;;  %v9181_v2 = vpop.eup %9180  ;;  %v6630_v14 = vpop.f32.mrf.mxu2  ;;  %v6683_v5 = vunpack.c.l.bf16 %v12650_v61  ;;  %v5687_v7 = vmul.f32 0.5, %v12551_v44  ;;  %v5950_v36 = vadd.f32 %v5886_v50, %v12616_v33  ;;  %v6582_v57 = vadd.f32 %v6581_v42, %v12470_v11  ;;  %v13153_v42 = vld [vmem:[#allocation36_spill] sm:$0xff]  ;;  %v13154_v50 = vld [vmem:[#allocation37_spill] sm:$0xff] }
0x12d1   : > { %v6534_v18 = vpop.f32.mrf.mxu1  ;;  %v6198_v29 = vmul.f32 %v6134_v49, %v5686_v16  ;;  %v5688_v23 = vmul.f32 0.5, %v12558_v30  ;;  %v5951_v54 = vadd.f32 %v5887_v10, %v12622_v4  ;;  %v6685_v37 = vunpack.c.l.bf16 %v12672_v24 }
0x12d2   : > { %v6535_v32 = vadd.f32 %v6534_v18, %v12462_v19  ;;  %v6583_v47 = vpop.f32.mrf.mxu0  ;;  %v6686_v60 = vunpack.c.h.bf16 %v12672_v24  ;;  %v5949_v61 = vadd.f32 %v5885_v28, %v12628_v26  ;;  %v6135_v15 = vadd.f32 1.0, %v9179_v63 }
0x12d3   : > { %v6584_v44 = vadd.f32 %v6583_v47, %v12470_v11  ;;  %v12689_v35 = vpack.c.bf16 %v6198_v29, %v6197_v25  ;;  %v5952_v31 = vadd.f32 %v5888_v22, %v12634_v20  ;;  %v6744_v30 = vmul.f32 %v6680_v8, %v6533_v48 }
0x12d4   : > { %v6748_v9 = vmul.f32 %v6684_v53, %v6535_v32  ;;  %v6136_v41 = vadd.f32 1.0, %v9181_v2  ;;  %v6014_v45 = vmul.f32 0.7978846, %v5950_v36  ;;  %v12696_v12 = vadd.f32 %v13153_v42, %v13148_v52 }
0x12d5   : > { %v6745_v51 = vmul.f32 %v6681_v43, %v6582_v57  ;;  %v6749_v46 = vmul.f32 %v6685_v37, %v6584_v44  ;;  %v6015_v55 = vmul.f32 0.7978846, %v5951_v54  ;;  %v12700_v62 = vadd.f32 %v13154_v50, %v11812_v59  ;;  %v13156_v43 = vld [vmem:[#allocation35_spill] sm:$0xff] }
0x12d6   : > { %v6484_v38 = vadd.f32 %v6483_v58, %v12491_v56  ;;  %v6796_v10 = vpack.c.bf16 %v6748_v9, %v6744_v30  ;;  %v6013_v13 = vmul.f32 0.7978846, %v5949_v61  ;;  %v12705_v8 = vadd.f32 %v13155_v39, %v11787_v1  ;;  %v13157_v61 = vld [vmem:[#allocation28_spill] sm:$0xff] }
0x12d7   : > { %v6631_v17 = vadd.f32 %v6630_v14, %v12495_v0  ;;  %v6485_v49 = vpop.f32.mrf.mxu3  ;;  %v6797_v28 = vpack.c.bf16 %v6749_v46, %v6745_v51  ;;  %v6016_v24 = vmul.f32 0.7978846, %v5952_v31  ;;  %v12710_v63 = vadd.f32 %v13156_v43, %v11789_v40  ;;  %v13158_v31 = vld [vmem:[#allocation29_spill] sm:$0xff] }
0x12d8   : > { %v6486_v22 = vadd.f32 %v6485_v49, %v12491_v56  ;;  %v6632_v53 = vpop.f32.mrf.mxu2  ;;  %7145 = vmatmul.bf16.gmra.mxu1 %v6796_v10  ;;  %v6200_v58 = vmul.f32 %v6136_v41, %v5688_v23  ;;  %9182 = vtanh.f32 %v6014_v45  ;;  %v5765_v16 = vmul.f32 0.044715, %v12696_v12 }
0x12d9   : > { %v6633_v25 = vadd.f32 %v6632_v53, %v12495_v0  ;;  %7194 = vmatmul.bf16.gmra.mxu0 %v6797_v28  ;;  %v6537_v2 = vpop.f32.mrf.mxu1  ;;  %v6199_v48 = vmul.f32 %v6135_v15, %v5687_v7  ;;  %9184 = vtanh.f32 %v6015_v55  ;;  %v5768_v14 = vmul.f32 0.044715, %v12700_v62 }
0x12da   : > { %v6743_v36 = vmul.f32 %v6679_v34, %v6484_v38  ;;  %v6747_v57 = vmul.f32 %v6683_v5, %v6486_v22  ;;  %v6586_v18 = vpop.f32.mrf.mxu0  ;;  %9186 = vtanh.f32 %v6013_v13  ;;  %v5766_v29 = vmul.f32 0.044715, %v12705_v8 }
0x12db   : > { %v6746_v23 = vmul.f32 %v6682_v27, %v6631_v17  ;;  %v6750_v54 = vmul.f32 %v6686_v60, %v6633_v25  ;;  %9188 = vtanh.f32 %v6016_v24  ;;  %v5767_v32 = vmul.f32 0.044715, %v12710_v63 }
0x12dc   : > { %v6795_v47 = vpack.c.bf16 %v6747_v57, %v6743_v36  ;;  %v12720_v37 = vpack.c.bf16 %v6200_v58, %v6199_v48  ;;  %v5829_v7 = vmul.f32 %v5765_v16, %v12696_v12  ;;  %v6688_v44 = vunpack.c.h.bf16 %v13157_v61 }
0x12dd   : > { %v6798_v34 = vpack.c.bf16 %v6750_v54, %v6746_v23  ;;  %v5832_v15 = vmul.f32 %v5768_v14, %v12700_v62  ;;  %v6689_v30 = vunpack.c.l.bf16 %v13158_v31  ;;  %v6687_v21 = vunpack.c.l.bf16 %v13157_v61  ;;  %v13161_v61 = vld [vmem:[#allocation38_spill] sm:$0xff] }
0x12de   : > { %v9183_v5 = vpop.eup %9182  ;;  %v6690_v27 = vunpack.c.h.bf16 %v13158_v31  ;;  %v5830_v9 = vmul.f32 %v5766_v29, %v12705_v8  ;;  %v6692_v45 = vunpack.c.h.bf16 %v12689_v35  ;;  %v6691_v42 = vunpack.c.l.bf16 %v12689_v35 }
0x12df   : > { %7096 = vmatmul.bf16.gmra.mxu3 %v6795_v47  ;;  %v9185_v60 = vpop.eup %9184  ;;  %v6488_v41 = vpop.f32.mrf.mxu3  ;;  %v5693_v51 = vmul.f32 0.5, %v12628_v26  ;;  %v5831_v55 = vmul.f32 %v5767_v32, %v12710_v63  ;;  %v6538_v50 = vadd.f32 %v6537_v2, %v12462_v19  ;;  %v6693_v10 = vunpack.c.l.bf16 %v12720_v37 }
0x12e0   : > { %7243 = vmatmul.bf16.gmra.mxu2 %v6798_v34  ;;  %v9187_v46 = vpop.eup %9186  ;;  %v6635_v38 = vpop.f32.mrf.mxu2  ;;  %v5694_v13 = vmul.f32 0.5, %v12616_v33  ;;  %v5893_v17 = vmul.f32 %v5829_v7, %v12696_v12  ;;  %v6587_v49 = vadd.f32 %v6586_v18, %v12470_v11  ;;  %v6694_v35 = vunpack.c.h.bf16 %v12720_v37 }
0x12e1   : > { %v9189_v39 = vpop.eup %9188  ;;  %v6539_v28 = vpop.f32.mrf.mxu1  ;;  %v5695_v26 = vmul.f32 0.5, %v12622_v4  ;;  %v5896_v24 = vmul.f32 %v5832_v15, %v12700_v62  ;;  %v6142_v53 = vadd.f32 1.0, %v9183_v5  ;;  %v5696_v58 = vmul.f32 0.5, %v12634_v20  ;;  %v13159_v4 = vld [vmem:[#allocation40_spill] sm:$0xff]  ;;  %v13160_v20 = vld [vmem:[#allocation42_spill] sm:$0xff] }
0x12e2   : > { %v6540_v43 = vadd.f32 %v6539_v28, %v12462_v19  ;;  %v6588_v22 = vpop.f32.mrf.mxu0  ;;  %v5894_v33 = vmul.f32 %v5830_v9, %v12705_v8  ;;  %v6141_v25 = vadd.f32 1.0, %v9187_v46  ;;  %v6143_v2 = vadd.f32 1.0, %v9185_v60 }
0x12e3   : > { %v6589_v16 = vadd.f32 %v6588_v22, %v12470_v11  ;;  %v5895_v48 = vmul.f32 %v5831_v55, %v12710_v63  ;;  %v6752_v14 = vmul.f32 %v6688_v44, %v6538_v50  ;;  %v6144_v57 = vadd.f32 1.0, %v9189_v39 }
0x12e4   : > { %v6756_v36 = vmul.f32 %v6692_v45, %v6540_v43  ;;  %v12748_v18 = vadd.f32 %v13159_v4, %v13148_v52  ;;  %v6753_v29 = vmul.f32 %v6689_v30, %v6587_v49  ;;  %v5957_v54 = vadd.f32 %v5893_v17, %v12696_v12  ;;  %v13162_v30 = vld [vmem:[#allocation39_spill] sm:$0xff] }
0x12e5   : > { %v6757_v23 = vmul.f32 %v6693_v10, %v6589_v16  ;;  %v12753_v32 = vadd.f32 %v13160_v20, %v11812_v59  ;;  %v6489_v47 = vadd.f32 %v6488_v41, %v12491_v56  ;;  %v5960_v7 = vadd.f32 %v5896_v24, %v12700_v62 }
0x12e6   : > { %v6800_v37 = vpack.c.bf16 %v6756_v36, %v6752_v14  ;;  %v12759_v44 = vadd.f32 %v13161_v61, %v11787_v1  ;;  %v6636_v52 = vadd.f32 %v6635_v38, %v12495_v0  ;;  %v5958_v15 = vadd.f32 %v5894_v33, %v12705_v8 }
0x12e7   : > { %v6490_v34 = vpop.f32.mrf.mxu3  ;;  %v6801_v5 = vpack.c.bf16 %v6757_v23, %v6753_v29  ;;  %v12765_v60 = vadd.f32 %v13162_v30, %v11789_v40  ;;  %v6205_v41 = vmul.f32 %v6141_v25, %v5693_v51  ;;  %v5959_v45 = vadd.f32 %v5895_v48, %v12710_v63  ;;  %v13164_v23 = vld [vmem:[#allocation31_spill] sm:$0xff] }
0x12e8   : > { %v6491_v59 = vadd.f32 %v6490_v34, %v12491_v56  ;;  %v6637_v9 = vpop.f32.mrf.mxu2  ;;  %7150 = vmatmul.bf16.gmra.mxu1 %v6800_v37  ;;  %v5773_v1 = vmul.f32 0.044715, %v12748_v18  ;;  %v6208_v50 = vmul.f32 %v6144_v57, %v5696_v58  ;;  %v6021_v38 = vmul.f32 0.7978846, %v5957_v54 }
0x12e9   : > { %v6638_v46 = vadd.f32 %v6637_v9, %v12495_v0  ;;  %7199 = vmatmul.bf16.gmra.mxu0 %v6801_v5  ;;  %v6542_v55 = vpop.f32.mrf.mxu1  ;;  %v5776_v10 = vmul.f32 0.044715, %v12753_v32  ;;  %v6751_v39 = vmul.f32 %v6687_v21, %v6489_v47  ;;  %v6024_v49 = vmul.f32 0.7978846, %v5960_v7 }
0x12ea   : > { %v6755_v40 = vmul.f32 %v6691_v42, %v6491_v59  ;;  %v6591_v17 = vpop.f32.mrf.mxu0  ;;  %v5774_v28 = vmul.f32 0.044715, %v12759_v44  ;;  %v6754_v51 = vmul.f32 %v6690_v27, %v6636_v52  ;;  %v6022_v43 = vmul.f32 0.7978846, %v5958_v15  ;;  %v13163_v27 = vld [vmem:[#allocation30_spill] sm:$0xff] }
0x12eb   : > { %v6758_v24 = vmul.f32 %v6694_v35, %v6638_v46  ;;  %v5775_v22 = vmul.f32 0.044715, %v12765_v60  ;;  %v6206_v16 = vmul.f32 %v6142_v53, %v5694_v13  ;;  %v6023_v25 = vmul.f32 0.7978846, %v5959_v45 }
0x12ec   : > { %v6799_v33 = vpack.c.bf16 %v6755_v40, %v6751_v39  ;;  %v5837_v58 = vmul.f32 %v5773_v1, %v12748_v18  ;;  %v6207_v14 = vmul.f32 %v6143_v2, %v5695_v26  ;;  %9190 = vtanh.f32 %v6021_v38 }
0x12ed   : > { %v6802_v48 = vpack.c.bf16 %v6758_v24, %v6754_v51  ;;  %v5840_v21 = vmul.f32 %v5776_v10, %v12753_v32  ;;  %v6247_v42 = vpack.c.bf16 %v6206_v16, %v6205_v41  ;;  %9192 = vtanh.f32 %v6024_v49 }
0x12ee   : > { %v5838_v31 = vmul.f32 %v5774_v28, %v12759_v44  ;;  %v6696_v35 = vunpack.c.h.bf16 %v13163_v27  ;;  %v6248_v57 = vpack.c.bf16 %v6208_v50, %v6207_v14  ;;  %9194 = vtanh.f32 %v6022_v43 }
0x12ef   : > { %7101 = vmatmul.bf16.gmra.mxu3 %v6799_v33  ;;  %v6493_v36 = vpop.f32.mrf.mxu3  ;;  %v5839_v13 = vmul.f32 %v5775_v22, %v12765_v60  ;;  %v6543_v53 = vadd.f32 %v6542_v55, %v12462_v19  ;;  %v6695_v26 = vunpack.c.l.bf16 %v13163_v27  ;;  %9196 = vtanh.f32 %v6023_v25 }
0x12f0   : > { %7248 = vmatmul.bf16.gmra.mxu2 %v6802_v48  ;;  %v6640_v2 = vpop.f32.mrf.mxu2  ;;  %v5901_v4 = vmul.f32 %v5837_v58, %v12748_v18  ;;  %v6592_v29 = vadd.f32 %v6591_v17, %v12470_v11  ;;  %v6697_v54 = vunpack.c.l.bf16 %v13164_v23  ;;  %v6698_v20 = vunpack.c.h.bf16 %v13164_v23 }
0x12f1   : > { %v6544_v47 = vpop.f32.mrf.mxu1  ;;  %v5904_v37 = vmul.f32 %v5840_v21, %v12753_v32  ;;  %v6700_v61 = vunpack.c.h.bf16 %v6247_v42  ;;  %v6699_v34 = vunpack.c.l.bf16 %v6247_v42  ;;  %v5902_v15 = vmul.f32 %v5838_v31, %v12759_v44 }
0x12f2   : > { %v6545_v7 = vadd.f32 %v6544_v47, %v12462_v19  ;;  %v6593_v52 = vpop.f32.mrf.mxu0  ;;  %v9191_v5 = vpop.eup %9190  ;;  %v6701_v59 = vunpack.c.l.bf16 %v6248_v57  ;;  %v6702_v9 = vunpack.c.h.bf16 %v6248_v57  ;;  %v5903_v45 = vmul.f32 %v5839_v13, %v12765_v60 }
0x12f3   : > { %v6594_v30 = vadd.f32 %v6593_v52, %v12470_v11  ;;  %v9193_v41 = vpop.eup %9192  ;;  %v6760_v1 = vmul.f32 %v6696_v35, %v6543_v53  ;;  %v5702_v55 = vmul.f32 0.5, %v12705_v8  ;;  %v6761_v38 = vmul.f32 %v6697_v54, %v6592_v29 }
0x12f4   : > { %v6764_v46 = vmul.f32 %v6700_v61, %v6545_v7  ;;  %v9195_v50 = vpop.eup %9194  ;;  %v5703_v39 = vmul.f32 0.5, %v12710_v63  ;;  %v5965_v40 = vadd.f32 %v5901_v4, %v12748_v18  ;;  %v6494_v49 = vadd.f32 %v6493_v36, %v12491_v56 }
0x12f5   : > { %v6765_v10 = vmul.f32 %v6701_v59, %v6594_v30  ;;  %v9197_v17 = vpop.eup %9196  ;;  %v6149_v51 = vadd.f32 1.0, %v9191_v5  ;;  %v5968_v24 = vadd.f32 %v5904_v37, %v12753_v32  ;;  %v6641_v43 = vadd.f32 %v6640_v2, %v12495_v0  ;;  %v13165_v30 = vld [vmem:[#allocation41_spill] sm:$0xff] }
0x12f6   : > { %v6804_v28 = vpack.c.bf16 %v6764_v46, %v6760_v1  ;;  %v6152_v16 = vadd.f32 1.0, %v9193_v41  ;;  %v5966_v8 = vadd.f32 %v5902_v15, %v12759_v44  ;;  %v5701_v63 = vmul.f32 0.5, %v12696_v12  ;;  %v13166_v46 = vld [vmem:[#allocation43_spill] sm:$0xff] }
0x12f7   : > { %v6495_v22 = vpop.f32.mrf.mxu3  ;;  %v6805_v33 = vpack.c.bf16 %v6765_v10, %v6761_v38  ;;  %v6150_v48 = vadd.f32 1.0, %v9195_v50  ;;  %v5967_v14 = vadd.f32 %v5903_v45, %v12765_v60  ;;  %v5704_v31 = vmul.f32 0.5, %v12700_v62 }
0x12f8   : > { %v6496_v25 = vadd.f32 %v6495_v22, %v12491_v56  ;;  %v6642_v58 = vpop.f32.mrf.mxu2  ;;  %7155 = vmatmul.bf16.gmra.mxu1 %v6804_v28  ;;  %v6151_v27 = vadd.f32 1.0, %v9197_v17  ;;  %v6029_v35 = vmul.f32 0.7978846, %v5965_v40  ;;  %v6759_v36 = vmul.f32 %v6695_v26, %v6494_v49 }
0x12f9   : > { %v6643_v21 = vadd.f32 %v6642_v58, %v12495_v0  ;;  %7204 = vmatmul.bf16.gmra.mxu0 %v6805_v33  ;;  %v6547_v42 = vpop.f32.mrf.mxu1  ;;  %v6213_v53 = vmul.f32 %v6149_v51, %v5701_v63  ;;  %v6032_v2 = vmul.f32 0.7978846, %v5968_v24  ;;  %v6762_v4 = vmul.f32 %v6698_v20, %v6641_v43 }
0x12fa   : > { %v6763_v57 = vmul.f32 %v6699_v34, %v6496_v25  ;;  %v6596_v13 = vpop.f32.mrf.mxu0  ;;  %v6216_v23 = vmul.f32 %v6152_v16, %v5704_v31  ;;  %v6030_v12 = vmul.f32 0.7978846, %v5966_v8  ;;  %v6214_v47 = vmul.f32 %v6150_v48, %v5702_v55 }
0x12fb   : > { %v6766_v29 = vmul.f32 %v6702_v9, %v6643_v21  ;;  %v6031_v37 = vmul.f32 0.7978846, %v5967_v14  ;;  %v6215_v61 = vmul.f32 %v6151_v27, %v5703_v39  ;;  %9198 = vtanh.f32 %v6029_v35 }
0x12fc   : > { %v6803_v54 = vpack.c.bf16 %v6763_v57, %v6759_v36  ;;  %v6251_v52 = vpack.c.bf16 %v6214_v47, %v6213_v53  ;;  %9200 = vtanh.f32 %v6032_v2  ;;  %v6548_v34 = vadd.f32 %v6547_v42, %v12462_v19 }
0x12fd   : > { %v6806_v7 = vpack.c.bf16 %v6766_v29, %v6762_v4  ;;  %v6252_v26 = vpack.c.bf16 %v6216_v23, %v6215_v61  ;;  %9202 = vtanh.f32 %v6030_v12  ;;  %v6597_v20 = vadd.f32 %v6596_v13, %v12470_v11 }
0x12fe   : > { %9204 = vtanh.f32 %v6031_v37  ;;  %v6704_v59 = vunpack.c.h.bf16 %v13165_v30  ;;  %v6708_v41 = vunpack.c.h.bf16 %v6251_v52  ;;  %v6705_v55 = vunpack.c.l.bf16 %v13166_v46 }
0x12ff   : > { %7106 = vmatmul.bf16.gmra.mxu3 %v6803_v54  ;;  %v6498_v62 = vpop.f32.mrf.mxu3  ;;  %v6709_v38 = vunpack.c.l.bf16 %v6252_v26  ;;  %v6703_v43 = vunpack.c.l.bf16 %v13165_v30  ;;  %v6706_v8 = vunpack.c.h.bf16 %v13166_v46  ;;  %v6707_v14 = vunpack.c.l.bf16 %v6251_v52 }
0x1300   : > { %7253 = vmatmul.bf16.gmra.mxu2 %v6806_v7  ;;  %v6645_v5 = vpop.f32.mrf.mxu2  ;;  %v6768_v39 = vmul.f32 %v6704_v59, %v6548_v34  ;;  %v6769_v49 = vmul.f32 %v6705_v55, %v6597_v20  ;;  %v6499_v24 = vadd.f32 %v6498_v62, %v12491_v56  ;;  %v5709_v42 = vmul.f32 0.5, %v12748_v18 }
0x1301   : > { %v6549_v15 = vpop.f32.mrf.mxu1  ;;  %v9199_v1 = vpop.eup %9198  ;;  %v6646_v16 = vadd.f32 %v6645_v5, %v12495_v0  ;;  %v6710_v35 = vunpack.c.h.bf16 %v6252_v26  ;;  %v5712_v57 = vmul.f32 0.5, %v12753_v32  ;;  %v5710_v29 = vmul.f32 0.5, %v12759_v44 }
0x1302   : > { %v6550_v9 = vadd.f32 %v6549_v15, %v12462_v19  ;;  %v6598_v45 = vpop.f32.mrf.mxu0  ;;  %v9201_v10 = vpop.eup %9200  ;;  %v6157_v33 = vadd.f32 1.0, %v9199_v1  ;;  %v6767_v53 = vmul.f32 %v6703_v43, %v6499_v24  ;;  %v5711_v47 = vmul.f32 0.5, %v12765_v60 }
0x1303   : > { %v6599_v50 = vadd.f32 %v6598_v45, %v12470_v11  ;;  %v9203_v17 = vpop.eup %9202  ;;  %v6160_v63 = vadd.f32 1.0, %v9201_v10  ;;  %v6770_v12 = vmul.f32 %v6706_v8, %v6646_v16  ;;  %v6712_v15 = vunpack.c.h.bf16 %v12539_v3 }
0x1304   : > { %v6772_v40 = vmul.f32 %v6708_v41, %v6550_v9  ;;  %v9205_v51 = vpop.eup %9204  ;;  %v6158_v31 = vadd.f32 1.0, %v9203_v17  ;;  %v6221_v23 = vmul.f32 %v6157_v33, %v5709_v42  ;;  %v6713_v9 = vunpack.c.l.bf16 %v12546_v6 }
0x1305   : > { %v6773_v28 = vmul.f32 %v6709_v38, %v6599_v50  ;;  %v6159_v13 = vadd.f32 1.0, %v9205_v51  ;;  %v6224_v18 = vmul.f32 %v6160_v63, %v5712_v57 }
0x1306   : > { %v6808_v22 = vpack.c.bf16 %v6772_v40, %v6768_v39  ;;  %v6222_v7 = vmul.f32 %v6158_v31, %v5710_v29 }
0x1307   : > { %v6500_v25 = vpop.f32.mrf.mxu3  ;;  %v6809_v58 = vpack.c.bf16 %v6773_v28, %v6769_v49  ;;  %v6223_v52 = vmul.f32 %v6159_v13, %v5711_v47  ;;  %v13167_v13 = vld [vmem:[#allocation9_spill] sm:$0xff] }
0x1308   : > { %v6501_v48 = vadd.f32 %v6500_v25, %v12491_v56  ;;  %v6647_v21 = vpop.f32.mrf.mxu2  ;;  %7160 = vmatmul.bf16.gmra.mxu1 %v6808_v22  ;;  %v6255_v62 = vpack.c.bf16 %v6222_v7, %v6221_v23 }
0x1309   : > { %v6648_v27 = vadd.f32 %v6647_v21, %v12495_v0  ;;  %7209 = vmatmul.bf16.gmra.mxu0 %v6809_v58  ;;  %v6552_v36 = vpop.f32.mrf.mxu1  ;;  %v6256_v26 = vpack.c.bf16 %v6224_v18, %v6223_v52 }
0x130a   : > { %v6771_v2 = vmul.f32 %v6707_v14, %v6501_v48  ;;  %v6601_v4 = vpop.f32.mrf.mxu0  ;;  %v6553_v34 = vadd.f32 %v6552_v36, %v12462_v19  ;;  %v6716_v30 = vunpack.c.h.bf16 %v6255_v62  ;;  %v6715_v28 = vunpack.c.l.bf16 %v6255_v62  ;;  %v12833_v14 = vld [vmem:[%s9383_s18 + $0x8] ss:$0 sm:$0xff] }
0x130b   : > { %v6774_v54 = vmul.f32 %v6710_v35, %v6648_v27  ;;  %v6602_v44 = vadd.f32 %v6601_v4, %v12470_v11  ;;  %v6717_v45 = vunpack.c.l.bf16 %v6256_v26  ;;  %v6718_v43 = vunpack.c.h.bf16 %v6256_v26 }
0x130c   : > { %v6807_v37 = vpack.c.bf16 %v6771_v2, %v6767_v53  ;;  %v6776_v1 = vmul.f32 %v6712_v15, %v6553_v34 }
0x130d   : > { %v6810_v61 = vpack.c.bf16 %v6774_v54, %v6770_v12  ;;  %v6777_v55 = vmul.f32 %v6713_v9, %v6602_v44 }
0x130f   : > { %7111 = vmatmul.bf16.gmra.mxu3 %v6807_v37  ;;  %v6503_v32 = vpop.f32.mrf.mxu3  ;;  %v13168_v37 = vld [vmem:[#allocation10_spill] sm:$0xff] }
0x1310   : > { %7258 = vmatmul.bf16.gmra.mxu2 %v6810_v61  ;;  %v6650_v5 = vpop.f32.mrf.mxu2  ;;  %v6504_v38 = vadd.f32 %v6503_v32, %v12491_v56 }
0x1311   : > { %v6554_v20 = vpop.f32.mrf.mxu1  ;;  %v6651_v39 = vadd.f32 %v6650_v5, %v12495_v0 }
0x1312   : > { %v6555_v60 = vadd.f32 %v6554_v20, %v12462_v19  ;;  %v6603_v59 = vpop.f32.mrf.mxu0  ;;  %v6711_v19 = vunpack.c.l.bf16 %v12539_v3  ;;  %v13169_v20 = vld [vmem:[#allocation11_spill] sm:$0xff] }
0x1313   : > { %v6604_v41 = vadd.f32 %v6603_v59, %v12470_v11  ;;  %v6714_v11 = vunpack.c.h.bf16 %v12546_v6 }
0x1314   : > { %v6780_v46 = vmul.f32 %v6716_v30, %v6555_v60  ;;  %v6775_v22 = vmul.f32 %v6711_v19, %v6504_v38 }
0x1315   : > { %v6781_v50 = vmul.f32 %v6717_v45, %v6604_v41  ;;  %v6778_v16 = vmul.f32 %v6714_v11, %v6651_v39 }
0x1316   : > { %v6812_v10 = vpack.c.bf16 %v6780_v46, %v6776_v1 }
0x1317   : > { %v6505_v40 = vpop.f32.mrf.mxu3  ;;  %v6813_v17 = vpack.c.bf16 %v6781_v50, %v6777_v55  ;;  %v13170_v55 = vld [vmem:[#allocation12_spill] sm:$0xff] }
0x1318   : > { %v6506_v49 = vadd.f32 %v6505_v40, %v12491_v56  ;;  %v6652_v51 = vpop.f32.mrf.mxu2  ;;  %7165 = vmatmul.bf16.gmra.mxu1 %v6812_v10 }
0x1319   : > { %v6653_v24 = vadd.f32 %v6652_v51, %v12495_v0  ;;  %7214 = vmatmul.bf16.gmra.mxu0 %v6813_v17  ;;  %v13171_v51 = vld [vmem:[#allocation13_spill] sm:$0xff] }
0x131a   : > { %v6779_v33 = vmul.f32 %v6715_v28, %v6506_v49 }
0x131b   : > { %v6782_v8 = vmul.f32 %v6718_v43, %v6653_v24 }
0x131c   : > { %v6811_v25 = vpack.c.bf16 %v6779_v33, %v6775_v22 }
0x131d   : > { %v6814_v58 = vpack.c.bf16 %v6782_v8, %v6778_v16 }
0x131f   : > { %7116 = vmatmul.bf16.gmra.mxu3 %v6811_v25 }
0x1320   : > { %7263 = vmatmul.bf16.gmra.mxu2 %v6814_v58 }
0x1325   : > { %v7131_v3 = vpop.f32.mrf.mxu1 }
0x1326   : > { %v7180_v56 = vpop.f32.mrf.mxu0 }
0x132d   : > { %v7133_v63 = vpop.f32.mrf.mxu1 }
0x132e   : > { %v7182_v48 = vpop.f32.mrf.mxu0 }
0x1331   : > { %v7082_v6 = vpop.f32.mrf.mxu3 }
0x1332   : > { %v7083_v21 = vadd.f32 %v12833_v14, %v7082_v6  ;;  %v7229_v0 = vpop.f32.mrf.mxu2 }
0x1334   : > { %v7132_v42 = vadd.f32 %v7131_v3, %v7083_v21  ;;  %v13172_v3 = vld [vmem:[#allocation14_spill] sm:$0xff] }
0x1335   : > { %v7136_v31 = vpop.f32.mrf.mxu1 }
0x1336   : > { %v7181_v27 = vadd.f32 %v7180_v56, %v7132_v42  ;;  %v7185_v35 = vpop.f32.mrf.mxu0 }
0x1338   : > { %v7230_v36 = vadd.f32 %v7229_v0, %v7181_v27 }
0x1339   : > { %v7084_v57 = vpop.f32.mrf.mxu3 }
0x133a   : > { %v12837_v53 = vadd.f32 %v7230_v36, %v13167_v13  ;;  %v7085_v2 = vadd.f32 %v12833_v14, %v7084_v57  ;;  %v7231_v4 = vpop.f32.mrf.mxu2 }
0x133c   : > { %7285 = vst [vmem:[#allocation2 + $0x30] sm:$0xff] %v12837_v53  ;;  %v7134_v29 = vadd.f32 %v7133_v63, %v7085_v2 }
0x133d   : > { %v7138_v23 = vpop.f32.mrf.mxu1 }
0x133e   : > { %v7183_v12 = vadd.f32 %v7182_v48, %v7134_v29  ;;  %v7187_v54 = vpop.f32.mrf.mxu0 }
0x1340   : > { %v7232_v47 = vadd.f32 %v7231_v4, %v7183_v12 }
0x1342   : > { %v7087_v18 = vpop.f32.mrf.mxu3  ;;  %v12842_v7 = vadd.f32 %v7232_v47, %v13168_v37  ;;  %v13174_v47 = vld [vmem:[#allocation16_spill] sm:$0xff] }
0x1343   : > { %v7088_v61 = vadd.f32 %v12833_v14, %v7087_v18  ;;  %v7234_v52 = vpop.f32.mrf.mxu2 }
0x1344   : > { %7286 = vst [vmem:[#allocation2] sm:$0xff] %v12842_v7 }
0x1345   : > { %v7137_v62 = vadd.f32 %v7136_v31, %v7088_v61  ;;  %v7141_v32 = vpop.f32.mrf.mxu1 }
0x1346   : > { %v7190_v34 = vpop.f32.mrf.mxu0 }
0x1347   : > { %v7186_v26 = vadd.f32 %v7185_v35, %v7137_v62  ;;  %v13173_v35 = vld [vmem:[#allocation15_spill] sm:$0xff] }
0x1349   : > { %v7235_v5 = vadd.f32 %v7234_v52, %v7186_v26 }
0x134a   : > { %v7089_v44 = vpop.f32.mrf.mxu3 }
0x134b   : > { %v12847_v15 = vadd.f32 %v7235_v5, %v13169_v20  ;;  %v7090_v60 = vadd.f32 %v12833_v14, %v7089_v44  ;;  %v7236_v30 = vpop.f32.mrf.mxu2  ;;  %v13175_v5 = vld [vmem:[#allocation17_spill] sm:$0xff] }
0x134d   : > { %7287 = vst [vmem:[#allocation2 + $0x58] sm:$0xff] %v12847_v15  ;;  %v7139_v59 = vadd.f32 %v7138_v23, %v7090_v60  ;;  %v7143_v9 = vpop.f32.mrf.mxu1 }
0x134e   : > { %v7192_v45 = vpop.f32.mrf.mxu0 }
0x134f   : > { %v7188_v41 = vadd.f32 %v7187_v54, %v7139_v59 }
0x1351   : > { %v7237_v1 = vadd.f32 %v7236_v30, %v7188_v41 }
0x1352   : > { %v7092_v46 = vpop.f32.mrf.mxu3 }
0x1353   : > { %v12852_v50 = vadd.f32 %v7237_v1, %v13170_v55  ;;  %v7093_v38 = vadd.f32 %v12833_v14, %v7092_v46  ;;  %v7239_v10 = vpop.f32.mrf.mxu2  ;;  %v13176_v1 = vld [vmem:[#allocation18_spill] sm:$0xff] }
0x1355   : > { %7288 = vst [vmem:[#allocation2 + $0x18] sm:$0xff] %v12852_v50  ;;  %v7142_v39 = vadd.f32 %v7141_v32, %v7093_v38  ;;  %v7146_v40 = vpop.f32.mrf.mxu1 }
0x1356   : > { %v7195_v19 = vpop.f32.mrf.mxu0 }
0x1357   : > { %v7191_v17 = vadd.f32 %v7190_v34, %v7142_v39 }
0x1359   : > { %v7240_v49 = vadd.f32 %v7239_v10, %v7191_v17 }
0x135a   : > { %v7094_v28 = vpop.f32.mrf.mxu3 }
0x135b   : > { %v12857_v11 = vadd.f32 %v7240_v49, %v13171_v51  ;;  %v7095_v24 = vadd.f32 %v12833_v14, %v7094_v28  ;;  %v7241_v43 = vpop.f32.mrf.mxu2  ;;  %v13177_v28 = vld [vmem:[#allocation19_spill] sm:$0xff] }
0x135d   : > { %7289 = vst [vmem:[#allocation2 + $0x50] sm:$0xff] %v12857_v11  ;;  %v7144_v22 = vadd.f32 %v7143_v9, %v7095_v24  ;;  %v7148_v33 = vpop.f32.mrf.mxu1 }
0x135e   : > { %v7197_v8 = vpop.f32.mrf.mxu0 }
0x135f   : > { %v7193_v16 = vadd.f32 %v7192_v45, %v7144_v22 }
0x1361   : > { %v7242_v25 = vadd.f32 %v7241_v43, %v7193_v16 }
0x1362   : > { %v7097_v58 = vpop.f32.mrf.mxu3 }
0x1363   : > { %v12862_v56 = vadd.f32 %v7242_v25, %v13172_v3  ;;  %v7098_v63 = vadd.f32 %v12833_v14, %v7097_v58  ;;  %v7244_v48 = vpop.f32.mrf.mxu2  ;;  %v13178_v3 = vld [vmem:[#allocation20_spill] sm:$0xff] }
0x1365   : > { %7290 = vst [vmem:[#allocation2 + $0x68] sm:$0xff] %v12862_v56  ;;  %v7147_v6 = vadd.f32 %v7146_v40, %v7098_v63  ;;  %v7151_v21 = vpop.f32.mrf.mxu1 }
0x1366   : > { %v7200_v42 = vpop.f32.mrf.mxu0 }
0x1367   : > { %v7196_v0 = vadd.f32 %v7195_v19, %v7147_v6 }
0x1369   : > { %v7245_v31 = vadd.f32 %v7244_v48, %v7196_v0 }
0x136a   : > { %v7099_v27 = vpop.f32.mrf.mxu3 }
0x136b   : > { %v12867_v36 = vadd.f32 %v7245_v31, %v13173_v35  ;;  %v7100_v57 = vadd.f32 %v12833_v14, %v7099_v27  ;;  %v7246_v13 = vpop.f32.mrf.mxu2 }
0x136d   : > { %7291 = vst [vmem:[#allocation2 + $0x8] sm:$0xff] %v12867_v36  ;;  %v7149_v2 = vadd.f32 %v7148_v33, %v7100_v57  ;;  %v7153_v29 = vpop.f32.mrf.mxu1  ;;  %v13179_v57 = vld [vmem:[#allocation21_spill] sm:$0xff] }
0x136e   : > { %v7202_v12 = vpop.f32.mrf.mxu0 }
0x136f   : > { %v7198_v4 = vadd.f32 %v7197_v8, %v7149_v2 }
0x1371   : > { %v7247_v23 = vadd.f32 %v7246_v13, %v7198_v4 }
0x1372   : > { %v7102_v54 = vpop.f32.mrf.mxu3 }
0x1373   : > { %v12872_v18 = vadd.f32 %v7247_v23, %v13174_v47  ;;  %v7103_v37 = vadd.f32 %v12833_v14, %v7102_v54  ;;  %v7249_v61 = vpop.f32.mrf.mxu2 }
0x1375   : > { %7292 = vst [vmem:[#allocation2 + $0x48] sm:$0xff] %v12872_v18  ;;  %v7152_v52 = vadd.f32 %v7151_v21, %v7103_v37  ;;  %v7156_v26 = vpop.f32.mrf.mxu1  ;;  %v13180_v37 = vld [vmem:[#allocation22_spill] sm:$0xff] }
0x1376   : > { %v7205_v30 = vpop.f32.mrf.mxu0 }
0x1377   : > { %v7201_v62 = vadd.f32 %v7200_v42, %v7152_v52 }
0x1379   : > { %v7250_v32 = vadd.f32 %v7249_v61, %v7201_v62 }
0x137a   : > { %v7104_v34 = vpop.f32.mrf.mxu3 }
0x137b   : > { %v12877_v44 = vadd.f32 %v7250_v32, %v13175_v5  ;;  %v7105_v20 = vadd.f32 %v12833_v14, %v7104_v34  ;;  %v7251_v60 = vpop.f32.mrf.mxu2 }
0x137d   : > { %7293 = vst [vmem:[#allocation2 + $0x40] sm:$0xff] %v12877_v44  ;;  %v7154_v59 = vadd.f32 %v7153_v29, %v7105_v20  ;;  %v7158_v10 = vpop.f32.mrf.mxu1 }
0x137e   : > { %v7207_v40 = vpop.f32.mrf.mxu0 }
0x137f   : > { %v7203_v9 = vadd.f32 %v7202_v12, %v7154_v59 }
0x1381   : > { %v7252_v41 = vadd.f32 %v7251_v60, %v7203_v9  ;;  %v13181_v60 = vld [vmem:[#allocation23_spill] sm:$0xff] }
0x1382   : > { %v7107_v45 = vpop.f32.mrf.mxu3 }
0x1383   : > { %v12882_v46 = vadd.f32 %v7252_v41, %v13176_v1  ;;  %v7108_v55 = vadd.f32 %v12833_v14, %v7107_v45  ;;  %v7254_v38 = vpop.f32.mrf.mxu2 }
0x1385   : > { %7294 = vst [vmem:[#allocation2 + $0x20] sm:$0xff] %v12882_v46  ;;  %v7157_v39 = vadd.f32 %v7156_v26, %v7108_v55  ;;  %v7161_v33 = vpop.f32.mrf.mxu1 }
0x1386   : > { %v7210_v8 = vpop.f32.mrf.mxu0 }
0x1387   : > { %v7206_v17 = vadd.f32 %v7205_v30, %v7157_v39 }
0x1389   : > { %v7255_v19 = vadd.f32 %v7254_v38, %v7206_v17 }
0x138a   : > { %v7109_v49 = vpop.f32.mrf.mxu3 }
0x138b   : > { %v12887_v51 = vadd.f32 %v7255_v19, %v13177_v28  ;;  %v7110_v24 = vadd.f32 %v12833_v14, %v7109_v49  ;;  %v7256_v43 = vpop.f32.mrf.mxu2 }
0x138d   : > { %7295 = vst [vmem:[#allocation2 + $0x10] sm:$0xff] %v12887_v51  ;;  %v7159_v22 = vadd.f32 %v7158_v10, %v7110_v24  ;;  %v7163_v42 = vpop.f32.mrf.mxu1  ;;  %v13182_v10 = vld [vmem:[#allocation24_spill] sm:$0xff] }
0x138e   : > { %v7212_v27 = vpop.f32.mrf.mxu0 }
0x138f   : > { %v7208_v16 = vadd.f32 %v7207_v40, %v7159_v22 }
0x1391   : > { %v7257_v25 = vadd.f32 %v7256_v43, %v7208_v16 }
0x1392   : > { %v7112_v58 = vpop.f32.mrf.mxu3 }
0x1393   : > { %v12892_v63 = vadd.f32 %v7257_v25, %v13178_v3  ;;  %v7113_v48 = vadd.f32 %v12833_v14, %v7112_v58  ;;  %v7259_v6 = vpop.f32.mrf.mxu2 }
0x1395   : > { %7296 = vst [vmem:[#allocation2 + $0x38] sm:$0xff] %v12892_v63  ;;  %v7162_v21 = vadd.f32 %v7161_v33, %v7113_v48  ;;  %v7166_v54 = vpop.f32.mrf.mxu1 }
0x1396   : > { %v7215_v62 = vpop.f32.mrf.mxu0 }
0x1397   : > { %v7211_v0 = vadd.f32 %v7210_v8, %v7162_v21 }
0x1399   : > { %v7260_v31 = vadd.f32 %v7259_v6, %v7211_v0 }
0x139a   : > { %v7114_v35 = vpop.f32.mrf.mxu3 }
0x139b   : > { %v12897_v13 = vadd.f32 %v7260_v31, %v13179_v57  ;;  %v7115_v2 = vadd.f32 %v12833_v14, %v7114_v35  ;;  %v7261_v4 = vpop.f32.mrf.mxu2 }
0x139d   : > { %7297 = vst [vmem:[#allocation2 + $0x60] sm:$0xff] %v12897_v13  ;;  %v7164_v29 = vadd.f32 %v7163_v42, %v7115_v2  ;;  %v7168_v9 = vpop.f32.mrf.mxu1 }
0x139e   : > { %v7217_v45 = vpop.f32.mrf.mxu0 }
0x139f   : > { %v7213_v23 = vadd.f32 %v7212_v27, %v7164_v29 }
0x13a1   : > { %v7262_v12 = vadd.f32 %v7261_v4, %v7213_v23 }
0x13a2   : > { %v7117_v47 = vpop.f32.mrf.mxu3 }
0x13a3   : > { %v12902_v61 = vadd.f32 %v7262_v12, %v13180_v37  ;;  %v7118_v52 = vadd.f32 %v12833_v14, %v7117_v47  ;;  %v7264_v26 = vpop.f32.mrf.mxu2 }
0x13a5   : > { %7298 = vst [vmem:[#allocation2 + $0x70] sm:$0xff] %v12902_v61  ;;  %v7167_v32 = vadd.f32 %v7166_v54, %v7118_v52 }
0x13a7   : > { %v7216_v34 = vadd.f32 %v7215_v62, %v7167_v32 }
0x13a9   : > { %v7265_v5 = vadd.f32 %v7264_v26, %v7216_v34 }
0x13aa   : > { %v7119_v20 = vpop.f32.mrf.mxu3 }
0x13ab   : > { %v12907_v30 = vadd.f32 %v7265_v5, %v13181_v60  ;;  %v7120_v59 = vadd.f32 %v12833_v14, %v7119_v20  ;;  %v7266_v55 = vpop.f32.mrf.mxu2 }
0x13ad   : > { %7299 = vst [vmem:[#allocation2 + $0x78] sm:$0xff] %v12907_v30  ;;  %v7169_v41 = vadd.f32 %v7168_v9, %v7120_v59 }
0x13af   : > { %v7218_v1 = vadd.f32 %v7217_v45, %v7169_v41 }
0x13b1   : > { %v7267_v38 = vadd.f32 %v7266_v55, %v7218_v1  ;;  %7304 = sbr.rel (%p8397_p6) target bundleno = 5241 (0x1479), region = 80 }
0x13b3   : > { %v7284_v39 = vadd.f32 %v7267_v38, %v13182_v10 }
0x13b5   : > { %7300 = vst [vmem:[#allocation2 + $0x28] sm:$0xff] %v7284_v39 }
0x13b6   : > { %v8613_v40 = vld [vmem:[%s13042_s7 + $0x38] sm:$0xff]  ;;  %v8612_v14 = vld [vmem:[%s13042_s7 + $0x30] sm:$0xff]  ;;  %v8611_v17 = vld [vmem:[%s13042_s7 + $0x28] sm:$0xff]  ;;  %v7305_v22 = vpack.c.bf16 %v12842_v7, %v12837_v53  ;;  %v7307_v33 = vpack.c.bf16 %v12862_v56, %v12857_v11  ;;  %v7309_v16 = vpack.c.bf16 %v12882_v46, %v12877_v44  ;;  %v7311_v8 = vpack.c.bf16 %v12902_v61, %v12897_v13 }
0x13b7   : > { %7381 = vmatpush.bf16.msra.mxu0 %v8613_v40  ;;  %8646 = vmatpush.bf16.msra.mxu1 %v8613_v40  ;;  %v8610_v19 = vld [vmem:[%s13042_s7 + $0x20] sm:$0xff]  ;;  %v8609_v49 = vld [vmem:[%s13042_s7 + $0x18] sm:$0xff]  ;;  %v8608_v28 = vld [vmem:[%s13042_s7 + $0x10] sm:$0xff]  ;;  %v7306_v53 = vpack.c.bf16 %v12852_v50, %v12847_v15  ;;  %v7308_v7 = vpack.c.bf16 %v12872_v18, %v12867_v36  ;;  %v7310_v11 = vpack.c.bf16 %v12892_v63, %v12887_v51 }
0x13b8   : > { %8647 = vmatpush.bf16.msra.mxu2 %v8613_v40  ;;  %8648 = vmatpush.bf16.msra.mxu3 %v8613_v40  ;;  %v8607_v24 = vld [vmem:[%s13042_s7 + $0x8] sm:$0xff]  ;;  %v8606_v43 = vld [vmem:[%s13042_s7] sm:$0xff]  ;;  %v7312_v56 = vpack.c.bf16 %v7284_v39, %v12907_v30  ;;  %v7432_v32 = vld [vmem:[%s13035_s0 + $0x10] sm:$0xff] }
0x13b9   : > { %v12955_v44 = vld [vmem:[%s13043_s8] ss:$0 sm:$0xff]  ;;  %v7431_v31 = vld [vmem:[%s13035_s0 + $0x8] sm:$0xff]  ;;  %v7436_v34 = vld [vmem:[%s13035_s0 + $0x30] sm:$0xff] }
0x13ba   : > { %v7430_v15 = vld [vmem:[%s13035_s0] sm:$0xff]  ;;  %v7435_v35 = vld [vmem:[%s13035_s0 + $0x28] sm:$0xff]  ;;  %v7440_v45 = vld [vmem:[%s13035_s0 + $0x50] sm:$0xff] }
0x13bb   : > { %7382 = vmatpush.bf16.msra.mxu0 %v8612_v14  ;;  %8649 = vmatpush.bf16.msra.mxu1 %v8612_v14  ;;  %v7434_v36 = vld [vmem:[%s13035_s0 + $0x20] sm:$0xff]  ;;  %v7439_v54 = vld [vmem:[%s13035_s0 + $0x48] sm:$0xff]  ;;  %v7444_v55 = vld [vmem:[%s13035_s0 + $0x70] sm:$0xff] }
0x13bc   : > { %8650 = vmatpush.bf16.msra.mxu2 %v8612_v14  ;;  %8651 = vmatpush.bf16.msra.mxu3 %v8612_v14  ;;  %v7438_v63 = vld [vmem:[%s13035_s0 + $0x40] sm:$0xff]  ;;  %v7443_v37 = vld [vmem:[%s13035_s0 + $0x68] sm:$0xff]  ;;  %v7433_v40 = vld [vmem:[%s13035_s0 + $0x18] sm:$0xff] }
0x13bd   : > { %v7442_v6 = vld [vmem:[%s13035_s0 + $0x60] sm:$0xff] }
0x13bf   : > { %7383 = vmatpush.bf16.msra.mxu0 %v8611_v17  ;;  %8652 = vmatpush.bf16.msra.mxu1 %v8611_v17 }
0x13c0   : > { %8653 = vmatpush.bf16.msra.mxu2 %v8611_v17  ;;  %8654 = vmatpush.bf16.msra.mxu3 %v8611_v17  ;;  %v7437_v17 = vld [vmem:[%s13035_s0 + $0x38] sm:$0xff] }
0x13c3   : > { %7384 = vmatpush.bf16.msra.mxu0 %v8610_v19  ;;  %8655 = vmatpush.bf16.msra.mxu1 %v8610_v19 }
0x13c4   : > { %8656 = vmatpush.bf16.msra.mxu2 %v8610_v19  ;;  %8657 = vmatpush.bf16.msra.mxu3 %v8610_v19 }
0x13c7   : > { %7385 = vmatpush.bf16.msra.mxu0 %v8609_v49  ;;  %8658 = vmatpush.bf16.msra.mxu1 %v8609_v49 }
0x13c8   : > { %8659 = vmatpush.bf16.msra.mxu2 %v8609_v49  ;;  %8660 = vmatpush.bf16.msra.mxu3 %v8609_v49 }
0x13cb   : > { %7386 = vmatpush.bf16.msra.mxu0 %v8608_v28  ;;  %8661 = vmatpush.bf16.msra.mxu1 %v8608_v28 }
0x13cc   : > { %8662 = vmatpush.bf16.msra.mxu2 %v8608_v28  ;;  %8663 = vmatpush.bf16.msra.mxu3 %v8608_v28 }
0x13cf   : > { %7387 = vmatpush.bf16.msra.mxu0 %v8607_v24  ;;  %8664 = vmatpush.bf16.msra.mxu1 %v8607_v24 }
0x13d0   : > { %8665 = vmatpush.bf16.msra.mxu2 %v8607_v24  ;;  %8666 = vmatpush.bf16.msra.mxu3 %v8607_v24 }
0x13d3   : > { %7388 = vmatpush.bf16.msra.mxu0 %v8606_v43  ;;  %8667 = vmatpush.bf16.msra.mxu1 %v8606_v43 }
0x13d4   : > { %8668 = vmatpush.bf16.msra.mxu2 %v8606_v43  ;;  %8669 = vmatpush.bf16.msra.mxu3 %v8606_v43 }
0x13d6   : > { %7389 = vmatmul.bf16.vlgmr.msra.gmra.mxu0 %v7305_v22  ;;  %7399 = vmatmul.bf16.vlgmr.msra.gmra.mxu1 %v7307_v33 }
0x13d7   : > { %7409 = vmatmul.bf16.vlgmr.msra.gmra.mxu2 %v7309_v16  ;;  %7419 = vmatmul.bf16.vlgmr.msra.gmra.mxu3 %v7311_v8  ;;  %v7441_v16 = vld [vmem:[%s13035_s0 + $0x58] sm:$0xff] }
0x13e6   : > { %7394 = vmatmul.bf16.gmra.mxu0 %v7306_v53  ;;  %7404 = vmatmul.bf16.gmra.mxu1 %v7308_v7  ;;  %v7445_v53 = vld [vmem:[%s13035_s0 + $0x78] sm:$0xff] }
0x13e7   : > { %7414 = vmatmul.bf16.gmra.mxu2 %v7310_v11  ;;  %7424 = vmatmul.bf16.gmra.mxu3 %v7312_v56 }
0x1453   : > { %v7390_v46 = vpop.f32.mrf.mxu0  ;;  %v7400_v50 = vpop.f32.mrf.mxu1 }
0x1454   : > { %v7391_v18 = vadd.f32 %v12955_v44, %v7390_v46  ;;  %v7401_v51 = vadd.f32 %v12955_v44, %v7400_v50 }
0x1456   : > { %v7446_v25 = vadd.f32 %v7430_v15, %v7391_v18  ;;  %v7450_v58 = vadd.f32 %v7434_v36, %v7401_v51 }
0x1458   : > { %7462 = vst [vmem:[#allocation3] sm:$0xff] %v7446_v25 }
0x1459   : > { %7466 = vst [vmem:[#allocation3 + $0x20] sm:$0xff] %v7450_v58 }
0x145a   : > { %v7410_v3 = vpop.f32.mrf.mxu2  ;;  %v7420_v48 = vpop.f32.mrf.mxu3 }
0x145b   : > { %v7411_v21 = vadd.f32 %v12955_v44, %v7410_v3  ;;  %v7421_v0 = vadd.f32 %v12955_v44, %v7420_v48  ;;  %v7392_v42 = vpop.f32.mrf.mxu0  ;;  %v7402_v27 = vpop.f32.mrf.mxu1 }
0x145c   : > { %v7393_v57 = vadd.f32 %v12955_v44, %v7392_v42  ;;  %v7403_v13 = vadd.f32 %v12955_v44, %v7402_v27 }
0x145d   : > { %v7454_v2 = vadd.f32 %v7438_v63, %v7411_v21  ;;  %v7458_v4 = vadd.f32 %v7442_v6, %v7421_v0 }
0x145e   : > { %v7447_v29 = vadd.f32 %v7431_v31, %v7393_v57  ;;  %v7451_v23 = vadd.f32 %v7435_v35, %v7403_v13 }
0x145f   : > { %7470 = vst [vmem:[#allocation3 + $0x40] sm:$0xff] %v7454_v2 }
0x1460   : > { %7474 = vst [vmem:[#allocation3 + $0x60] sm:$0xff] %v7458_v4 }
0x1461   : > { %7463 = vst [vmem:[#allocation3 + $0x8] sm:$0xff] %v7447_v29 }
0x1462   : > { %7467 = vst [vmem:[#allocation3 + $0x28] sm:$0xff] %v7451_v23  ;;  %v7412_v12 = vpop.f32.mrf.mxu2  ;;  %v7422_v47 = vpop.f32.mrf.mxu3 }
0x1463   : > { %v7413_v61 = vadd.f32 %v12955_v44, %v7412_v12  ;;  %v7423_v52 = vadd.f32 %v12955_v44, %v7422_v47  ;;  %v7395_v62 = vpop.f32.mrf.mxu0  ;;  %v7405_v26 = vpop.f32.mrf.mxu1 }
0x1464   : > { %v7396_v5 = vadd.f32 %v12955_v44, %v7395_v62  ;;  %v7406_v20 = vadd.f32 %v12955_v44, %v7405_v26 }
0x1465   : > { %v7455_v60 = vadd.f32 %v7439_v54, %v7413_v61  ;;  %v7459_v30 = vadd.f32 %v7443_v37, %v7423_v52 }
0x1466   : > { %v7448_v59 = vadd.f32 %v7432_v32, %v7396_v5  ;;  %v7452_v9 = vadd.f32 %v7436_v34, %v7406_v20 }
0x1467   : > { %7471 = vst [vmem:[#allocation3 + $0x48] sm:$0xff] %v7455_v60 }
0x1468   : > { %7475 = vst [vmem:[#allocation3 + $0x68] sm:$0xff] %v7459_v30 }
0x1469   : > { %7464 = vst [vmem:[#allocation3 + $0x10] sm:$0xff] %v7448_v59 }
0x146a   : > { %7468 = vst [vmem:[#allocation3 + $0x30] sm:$0xff] %v7452_v9  ;;  %v7415_v41 = vpop.f32.mrf.mxu2  ;;  %v7425_v1 = vpop.f32.mrf.mxu3 }
0x146b   : > { %v7416_v38 = vadd.f32 %v12955_v44, %v7415_v41  ;;  %v7426_v10 = vadd.f32 %v12955_v44, %v7425_v1  ;;  %v7397_v39 = vpop.f32.mrf.mxu0  ;;  %v7407_v14 = vpop.f32.mrf.mxu1 }
0x146c   : > { %v7398_v19 = vadd.f32 %v12955_v44, %v7397_v39  ;;  %v7408_v49 = vadd.f32 %v12955_v44, %v7407_v14 }
0x146d   : > { %v7456_v28 = vadd.f32 %v7440_v45, %v7416_v38  ;;  %v7460_v24 = vadd.f32 %v7444_v55, %v7426_v10 }
0x146e   : > { %v7449_v43 = vadd.f32 %v7433_v40, %v7398_v19  ;;  %v7453_v22 = vadd.f32 %v7437_v17, %v7408_v49 }
0x146f   : > { %7472 = vst [vmem:[#allocation3 + $0x50] sm:$0xff] %v7456_v28 }
0x1470   : > { %7476 = vst [vmem:[#allocation3 + $0x70] sm:$0xff] %v7460_v24 }
0x1471   : > { %7465 = vst [vmem:[#allocation3 + $0x18] sm:$0xff] %v7449_v43 }
0x1472   : > { %7469 = vst [vmem:[#allocation3 + $0x38] sm:$0xff] %v7453_v22  ;;  %v7417_v33 = vpop.f32.mrf.mxu2  ;;  %v7427_v8 = vpop.f32.mrf.mxu3 }
0x1473   : > { %v7418_v7 = vadd.f32 %v12955_v44, %v7417_v33  ;;  %v7428_v11 = vadd.f32 %v12955_v44, %v7427_v8 }
0x1475   : > { %v7457_v56 = vadd.f32 %v7441_v16, %v7418_v7  ;;  %v7461_v46 = vadd.f32 %v7445_v53, %v7428_v11 }
0x1477   : > { %7473 = vst [vmem:[#allocation3 + $0x58] sm:$0xff] %v7457_v56 }
0x1478   : > { %7477 = vst [vmem:[#allocation3 + $0x78] sm:$0xff] %v7461_v46 }
0x1479 PF: > { %s13183_s15 = sld [smem:[#allocation7_spill]]  ;;  %s9284_s18 = smov [#allocation3]  }
0x147a   : > { %s13185_s27 = sld [smem:[#allocation44_spill]]  ;;  %s7487_s21 = sshll.u32 %s9284_s18, 4  ;;  %s7488_s21 = int_to_ptr.vmem [resolvable:$true] %s7487_s21 }
0x147b   : > { %s9285_s13 = smov 128   ;;  %s9286_s26 = smov 8  }
0x147f   : > { %s13184_s30 = sadd.s32 4294967295, %s13183_s15  }
0x1480   : > { %p8674_p7 = scmp.eq.s32.totalorder %s13184_s30, 1  ;;  %s7489_s29 = sshll.u32 %s13185_s27, 4  ;;  %s7490_s29 = int_to_ptr.hbm [resolvable:$true] %s7489_s29 }
0x1482   : > { %8671 = dma.vmem_to_hbm [thread:$0]  (%p8674_p7), %s7488_s21, 2048, %s7490_s29, [#allocation4], %s9285_s13, %s9285_s13, %s9286_s26  }
0x1483   : > { %9266 = dma.done.wait (%p8674_p7), [#allocation4], 2048  }
0x1484   : > { %9268 = vsyncadd (%p8674_p7), [#allocation4], 4294965248 }
0x1485 PF: > { %s13186_s25 = sld [smem:[#allocation7_spill]] }
0x1486   : > { %s13188_s26 = sld [smem:[#allocation8_spill]] }
0x148b   : > { %s24_s27 = sadd.s32 1, %s13186_s25   ;;  %s13187_s25 = sld [smem:[#allocation6_spill]] }
0x148c   : > { %p21_p8 = scmp.ge.s32.totalorder %s24_s27, 4  }
0x148e   :  { %23 = sbr.rel (!%p21_p8) target bundleno = 4 (0x4), region = 123 }
0x1493   :  { %7506 = vsyncpa [#allocation4], 1 }
0x1494   :  { %7508 = vsyncpa [#allocation4 + $0x1], 1 }

</bundles_post_ra>
